<compile_context>
chip_gen: v5e
topology: v5e:2x2
jax: 0.10.0
libtpu: 0.0.40
codegen_flags: <defaults>
</compile_context>

<pallas_src>
import math
import numpy as np
import jax
import jax.numpy as jnp
from jax.experimental import pallas as pl
from jax.experimental.pallas import tpu as pltpu


# ------------------------------ bilinear operator ---------------------------

def _bilinear_matrix(out_size, in_size):
    # PyTorch F.interpolate bilinear, align_corners=False (modern F.upsample default).
    A = np.zeros((out_size, in_size), np.float32)
    scale = in_size / out_size
    for i in range(out_size):
        src = max((i + 0.5) * scale - 0.5, 0.0)
        i0 = int(math.floor(src))
        i1 = min(i0 + 1, in_size - 1)
        frac = src - i0
        A[i, i0] += 1.0 - frac
        A[i, i1] += frac
    return A


# ------------------------------ fused kernel --------------------------------

def _make_fused_kernel(H, W, Cin, DC, DCr, Cexp):
    Ho, Wo = H // 2, W // 2
    bf16 = jnp.bfloat16
    f32 = jnp.float32

    def im2col_3x3(pad_ref, h, w, c):
        # pad_ref: (h+2, w+2, c) f32 scratch, zero border, data centred.
        taps = []
        for ky in range(3):
            for kx in range(3):
                t = pad_ref[pl.ds(ky, h), pl.ds(kx, w), :]       # (h, w, c) f32
                taps.append(t.reshape(h * w, c).astype(bf16))
        return jnp.concatenate(taps, axis=1)                      # (h*w, 9*c) bf16

    def kernel(x_ref,
               w1_ref, s1_ref, b1_ref,
               w2_ref, s2_ref, b2_ref,
               wa1_ref, sa1_ref, ba1_ref,
               wa3_ref, sa3_ref, ba3_ref,
               up_ref,
               wa4_ref, sa4_ref, ba4_ref,
               w3_ref, s3_ref, b3_ref,
               o_ref,
               pad2_ref, padp_ref, pada_ref):
        x2d = x_ref[...]                                          # (H*W, Cin) f32
        xb = x2d.astype(bf16)

        # ---- conv1 (1x1) + bn1 + relu --------------------------------------
        y = jnp.dot(xb, w1_ref[...], preferred_element_type=f32)
        y = jnp.maximum(y * s1_ref[...] + b1_ref[...], 0.0)       # (H*W, DC)

        # ---- conv2 (grouped 3x3, s=1, p=1) + bn2 + relu (im2col, K=9*DC) ----
        pad2_ref[...] = jnp.zeros(pad2_ref.shape, f32)
        pad2_ref[pl.ds(1, H), pl.ds(1, W), :] = y.reshape(H, W, DC)
        cols = im2col_3x3(pad2_ref, H, W, DC)                     # (H*W, 9*DC) bf16
        y = jnp.dot(cols, w2_ref[...], preferred_element_type=f32)
        out = jnp.maximum(y * s2_ref[...] + b2_ref[...], 0.0)     # (H*W, DC)

        # ---- attention: conv_att1 (1x1) + bn + relu ------------------------
        a = jnp.dot(xb, wa1_ref[...], preferred_element_type=f32)
        a = jnp.maximum(a * sa1_ref[...] + ba1_ref[...], 0.0)     # (H*W, DCr)

        # ---- maxpool k=3, s=2, p=1 -----------------------------------------
        padp_ref[...] = jnp.full(padp_ref.shape, -jnp.inf, f32)
        padp_ref[pl.ds(1, H), pl.ds(1, W), :] = a.reshape(H, W, DCr)
        pooled = jnp.full((Ho, Wo, DCr), -jnp.inf, f32)
        for dy in range(3):
            for dx in range(3):
                v = padp_ref[pl.ds(dy, H), pl.ds(dx, W), :]       # (2Ho, 2Wo, DCr)
                v = v.reshape(Ho, 2, W, DCr)[:, 0]                # rows dy + 2i
                v = v.reshape(Ho, Wo, 2, DCr)[:, :, 0]            # cols dx + 2j
                pooled = jnp.maximum(pooled, v)                   # (Ho, Wo, DCr)

        # ---- conv_att3 (grouped 3x3) + bn + relu (im2col, K=9*DCr) ----------
        pada_ref[...] = jnp.zeros(pada_ref.shape, f32)
        pada_ref[pl.ds(1, Ho), pl.ds(1, Wo), :] = pooled
        cols_a = im2col_3x3(pada_ref, Ho, Wo, DCr)                # (Ho*Wo, 9*DCr)
        a = jnp.dot(cols_a, wa3_ref[...], preferred_element_type=f32)
        a = jnp.maximum(a * sa3_ref[...] + ba3_ref[...], 0.0)     # (Ho*Wo, DCr)

        # ---- bilinear upsample: one channel-last matmul (no transposes) ----
        a = jnp.dot(up_ref[...], a.astype(bf16),
                    preferred_element_type=f32)                   # (H*W, DCr)

        # ---- conv_att4 (1x1) + bn + sigmoid, gate --------------------------
        a = jnp.dot(a.astype(bf16), wa4_ref[...], preferred_element_type=f32)
        att = jax.nn.sigmoid(a * sa4_ref[...] + ba4_ref[...])     # (H*W, DC)
        out = out * att

        # ---- conv3 (1x1) + bn3 + identity residual + relu ------------------
        y = jnp.dot(out.astype(bf16), w3_ref[...], preferred_element_type=f32)
        y = y * s3_ref[...] + b3_ref[...] + x2d                   # Cin == Cexp
        o_ref[...] = jnp.maximum(y, 0.0).astype(o_ref.dtype)

    return kernel


# ------------------------------ module forward ------------------------------

def airx_bottleneck_forward(x_nchw, p):
    N, Cin, H, W = x_nchw.shape
    DC = p["w1"].shape[1]
    DCr = p["wa1"].shape[1]
    Cexp = p["w3"].shape[1]
    assert Cin == Cexp, "identity residual requires inplanes == planes*4 (downsample=None)"
    assert H % 2 == 0 and W % 2 == 0, "maxpool(k=3,s=2,p=1) path assumes even H, W"
    Ho, Wo = H // 2, W // 2
    HW = H * W

    # NCHW -> (N, H*W, C) channel-last rows (row index = h*W + w).
    x = jnp.transpose(x_nchw, (0, 2, 3, 1)).reshape(N, HW, Cin)

    # Bilinear upsample operator (align_corners=False), applied channel-last.
    up = jnp.asarray(np.kron(_bilinear_matrix(H, Ho), _bilinear_matrix(W, Wo)),
                     jnp.bfloat16)                                # (H*W, Ho*Wo)

    kernel = _make_fused_kernel(H, W, Cin, DC, DCr, Cexp)

    def fullspec(arr):
        nd = arr.ndim
        return pl.BlockSpec(arr.shape, lambda n, _nd=nd: (0,) * _nd)

    weights = (p["w1"], p["s1"], p["b1"],
               p["w2"], p["s2"], p["b2"],
               p["wa1"], p["sa1"], p["ba1"],
               p["wa3"], p["sa3"], p["ba3"],
               up,
               p["wa4"], p["sa4"], p["ba4"],
               p["w3"], p["s3"], p["b3"])

    out2d = pl.pallas_call(
        kernel,
        out_shape=jax.ShapeDtypeStruct((N, HW, Cexp), jnp.float32),
        grid=(N,),
        in_specs=[pl.BlockSpec((None, HW, Cin), lambda n: (n, 0, 0))]
                 + [fullspec(w) for w in weights],
        out_specs=pl.BlockSpec((None, HW, Cexp), lambda n: (n, 0, 0)),
        scratch_shapes=[
            pltpu.VMEM((H + 2, W + 2, DC), jnp.float32),      # conv2 padded input
            pltpu.VMEM((H + 2, W + 2, DCr), jnp.float32),     # maxpool padded input
            pltpu.VMEM((Ho + 2, Wo + 2, DCr), jnp.float32),   # conv_att3 padded input
        ],
        compiler_params=pltpu.CompilerParams(
            dimension_semantics=("parallel",)),
    )(x, *weights)

    return jnp.transpose(out2d.reshape(N, H, W, Cexp), (0, 3, 1, 2))   # -> NCHW


# ------------------------------ parameters ----------------------------------

def _grouped_to_im2col(w_np, groups):
    # PyTorch grouped conv weight (Cout, Cin_g, 3, 3) -> im2col weight
    # (9*Cin, Cout): row index = tap*Cin + cin, zero outside group blocks
    # (mathematically identical to the grouped conv).
    cout, cin_g, kh, kw = w_np.shape
    cout_g = cout // groups
    cin = cin_g * groups
    dense = np.zeros((kh * kw, cin, cout), np.float32)
    for g in range(groups):
        blk = w_np[g * cout_g:(g + 1) * cout_g]                  # (cout_g, cin_g, 3, 3)
        for ky in range(kh):
            for kx in range(kw):
                dense[ky * kw + kx,
                      g * cin_g:(g + 1) * cin_g,
                      g * cout_g:(g + 1) * cout_g] = blk[:, :, ky, kx].T
    return jnp.asarray(dense.reshape(kh * kw * cin, cout), jnp.bfloat16)


def init_params(key, inplanes, planes, baseWidth, cardinality, ratio):
    D = int(math.floor(planes * (baseWidth / 64.0)))
    C = cardinality
    DC = D * C
    DCr = DC // ratio
    Ga = C // ratio
    ks = jax.random.split(key, 12)

    def pw_w(k, cin, cout):
        w = jax.random.normal(k, (cin, cout), jnp.float32) / math.sqrt(cin)
        return w.astype(jnp.bfloat16)

    def grouped_w(k, cout, cin_g):
        return np.asarray(jax.random.normal(k, (cout, cin_g, 3, 3), jnp.float32)
                          / math.sqrt(cin_g * 9))

    def bn(k, c):
        # folded inference-mode BatchNorm (synthetic gamma/beta/running stats)
        k1, k2, k3, k4 = jax.random.split(k, 4)
        gamma = 1.0 + 0.1 * jax.random.normal(k1, (c,), jnp.float32)
        beta = 0.1 * jax.random.normal(k2, (c,), jnp.float32)
        mean = 0.1 * jax.random.normal(k3, (c,), jnp.float32)
        var = 0.5 + jnp.abs(jax.random.normal(k4, (c,), jnp.float32))
        scale = gamma / jnp.sqrt(var + 1e-5)
        bias = beta - mean * scale
        return scale.reshape(1, c), bias.reshape(1, c)

    p = {}
    p["w1"] = pw_w(ks[0], inplanes, DC);        p["s1"], p["b1"] = bn(ks[1], DC)
    p["w2"] = _grouped_to_im2col(grouped_w(ks[2], DC, DC // C), C)
    p["s2"], p["b2"] = bn(ks[3], DC)
    p["w3"] = pw_w(ks[4], DC, planes * 4);      p["s3"], p["b3"] = bn(ks[5], planes * 4)
    p["wa1"] = pw_w(ks[6], inplanes, DCr);      p["sa1"], p["ba1"] = bn(ks[7], DCr)
    p["wa3"] = _grouped_to_im2col(grouped_w(ks[8], DCr, DCr // Ga), Ga)
    p["sa3"], p["ba3"] = bn(ks[9], DCr)
    p["wa4"] = pw_w(ks[10], DCr, DC);           p["sa4"], p["ba4"] = bn(ks[11], DC)
    return p


# ------------------------------ main -----------------------------------------

if __name__ == "__main__":
    # AIRXBottleneck(inplanes=32, planes=8, baseWidth=64, cardinality=4,
    #                stride=1, ratio=2, downsample=None)
    # -> D=8, C=4, D*C=32, attention branch active, residual = identity.
    inplanes, planes, baseWidth, cardinality, ratio = 32, 8, 64, 4, 2
    N, Hs, Ws = 2, 16, 16

    key = jax.random.PRNGKey(0)
    kx, kp = jax.random.split(key)
    x = jax.random.normal(kx, (N, inplanes, Hs, Ws), jnp.float32)   # NCHW like PyTorch
    params = init_params(kp, inplanes, planes, baseWidth, cardinality, ratio)

    fwd = jax.jit(airx_bottleneck_forward)
    y = fwd(x, params)
    jax.block_until_ready(y)

    assert y.shape == (N, planes * 4, Hs, Ws), y.shape
    assert bool(jnp.all(jnp.isfinite(y)))
    print("KERNEL_OK")
</pallas_src>

<mosaic_0001>
module attributes {stable_mosaic.version = 11 : i64} {
  func.func @kernel(%arg0: i32, %arg1: memref<1x256x32xf32, #tpu.memory_space<vmem>>, %arg2: memref<32x32xbf16, #tpu.memory_space<vmem>>, %arg3: memref<1x32xf32, #tpu.memory_space<vmem>>, %arg4: memref<1x32xf32, #tpu.memory_space<vmem>>, %arg5: memref<288x32xbf16, #tpu.memory_space<vmem>>, %arg6: memref<1x32xf32, #tpu.memory_space<vmem>>, %arg7: memref<1x32xf32, #tpu.memory_space<vmem>>, %arg8: memref<32x16xbf16, #tpu.memory_space<vmem>>, %arg9: memref<1x16xf32, #tpu.memory_space<vmem>>, %arg10: memref<1x16xf32, #tpu.memory_space<vmem>>, %arg11: memref<144x16xbf16, #tpu.memory_space<vmem>>, %arg12: memref<1x16xf32, #tpu.memory_space<vmem>>, %arg13: memref<1x16xf32, #tpu.memory_space<vmem>>, %arg14: memref<256x64xbf16, #tpu.memory_space<vmem>>, %arg15: memref<16x32xbf16, #tpu.memory_space<vmem>>, %arg16: memref<1x32xf32, #tpu.memory_space<vmem>>, %arg17: memref<1x32xf32, #tpu.memory_space<vmem>>, %arg18: memref<32x32xbf16, #tpu.memory_space<vmem>>, %arg19: memref<1x32xf32, #tpu.memory_space<vmem>>, %arg20: memref<1x32xf32, #tpu.memory_space<vmem>>, %arg21: memref<1x256x32xf32, #tpu.memory_space<vmem>>, %arg22: memref<18x18x32xf32, #tpu.memory_space<vmem>>, %arg23: memref<18x18x16xf32, #tpu.memory_space<vmem>>, %arg24: memref<10x10x16xf32, #tpu.memory_space<vmem>>) attributes {dimension_semantics = [#tpu.dimension_semantics<parallel>], iteration_bounds = array<i64: 2>, scalar_prefetch = 0 : i64, scratch_operands = 3 : i64, tpu.core_type = #tpu.core_type<tc>, window_params = [{transform_indices = @transform_0, window_bounds = array<i64: 1, 256, 32>}, {pipeline_mode = #tpu.pipeline_mode<synchronous>, transform_indices = @transform_1, window_bounds = array<i64: 32, 32>}, {pipeline_mode = #tpu.pipeline_mode<synchronous>, transform_indices = @transform_2, window_bounds = array<i64: 1, 32>}, {pipeline_mode = #tpu.pipeline_mode<synchronous>, transform_indices = @transform_3, window_bounds = array<i64: 1, 32>}, {pipeline_mode = #tpu.pipeline_mode<synchronous>, transform_indices = @transform_4, window_bounds = array<i64: 288, 32>}, {pipeline_mode = #tpu.pipeline_mode<synchronous>, transform_indices = @transform_5, window_bounds = array<i64: 1, 32>}, {pipeline_mode = #tpu.pipeline_mode<synchronous>, transform_indices = @transform_6, window_bounds = array<i64: 1, 32>}, {pipeline_mode = #tpu.pipeline_mode<synchronous>, transform_indices = @transform_7, window_bounds = array<i64: 32, 16>}, {pipeline_mode = #tpu.pipeline_mode<synchronous>, transform_indices = @transform_8, window_bounds = array<i64: 1, 16>}, {pipeline_mode = #tpu.pipeline_mode<synchronous>, transform_indices = @transform_9, window_bounds = array<i64: 1, 16>}, {pipeline_mode = #tpu.pipeline_mode<synchronous>, transform_indices = @transform_10, window_bounds = array<i64: 144, 16>}, {pipeline_mode = #tpu.pipeline_mode<synchronous>, transform_indices = @transform_11, window_bounds = array<i64: 1, 16>}, {pipeline_mode = #tpu.pipeline_mode<synchronous>, transform_indices = @transform_12, window_bounds = array<i64: 1, 16>}, {pipeline_mode = #tpu.pipeline_mode<synchronous>, transform_indices = @transform_13, window_bounds = array<i64: 256, 64>}, {pipeline_mode = #tpu.pipeline_mode<synchronous>, transform_indices = @transform_14, window_bounds = array<i64: 16, 32>}, {pipeline_mode = #tpu.pipeline_mode<synchronous>, transform_indices = @transform_15, window_bounds = array<i64: 1, 32>}, {pipeline_mode = #tpu.pipeline_mode<synchronous>, transform_indices = @transform_16, window_bounds = array<i64: 1, 32>}, {pipeline_mode = #tpu.pipeline_mode<synchronous>, transform_indices = @transform_17, window_bounds = array<i64: 32, 32>}, {pipeline_mode = #tpu.pipeline_mode<synchronous>, transform_indices = @transform_18, window_bounds = array<i64: 1, 32>}, {pipeline_mode = #tpu.pipeline_mode<synchronous>, transform_indices = @transform_19, window_bounds = array<i64: 1, 32>}, {transform_indices = @transform_20, window_bounds = array<i64: 1, 256, 32>}]} {
    %c0 = arith.constant 0 : index
    %c0_0 = arith.constant 0 : index
    %c0_1 = arith.constant 0 : index
    %0 = vector.load %arg1[%c0, %c0_0, %c0_1] : memref<1x256x32xf32, #tpu.memory_space<vmem>>, vector<1x256x32xf32>
    %1 = vector.shape_cast %0 : vector<1x256x32xf32> to vector<256x32xf32>
    %2 = arith.truncf %1 : vector<256x32xf32> to vector<256x32xbf16>
    %c0_2 = arith.constant 0 : index
    %c0_3 = arith.constant 0 : index
    %3 = vector.load %arg2[%c0_2, %c0_3] : memref<32x32xbf16, #tpu.memory_space<vmem>>, vector<32x32xbf16>
    %cst = arith.constant dense<0.000000e+00> : vector<256x32xf32>
    %4 = tpu.matmul %2, %3, %cst {dimension_numbers = #tpu.dot_dimension_numbers<[1], [0], [0], [1], [0, 0, 1, 1], [], []>} : vector<256x32xbf16>, vector<32x32xbf16>, vector<256x32xf32> -> vector<256x32xf32>
    %c0_4 = arith.constant 0 : index
    %c0_5 = arith.constant 0 : index
    %5 = vector.load %arg3[%c0_4, %c0_5] : memref<1x32xf32, #tpu.memory_space<vmem>>, vector<1x32xf32>
    %6 = vector.broadcast %5 : vector<1x32xf32> to vector<256x32xf32>
    %7 = arith.mulf %4, %6 : vector<256x32xf32>
    %c0_6 = arith.constant 0 : index
    %c0_7 = arith.constant 0 : index
    %8 = vector.load %arg4[%c0_6, %c0_7] : memref<1x32xf32, #tpu.memory_space<vmem>>, vector<1x32xf32>
    %9 = vector.broadcast %8 : vector<1x32xf32> to vector<256x32xf32>
    %10 = arith.addf %7, %9 : vector<256x32xf32>
    %cst_8 = arith.constant 0.000000e+00 : f32
    %11 = vector.broadcast %cst_8 : f32 to vector<256x32xf32>
    %12 = arith.maximumf %10, %11 : vector<256x32xf32>
    %cst_9 = arith.constant 0.000000e+00 : f32
    %13 = vector.broadcast %cst_9 : f32 to vector<18x18x32xf32>
    %c0_10 = arith.constant 0 : index
    %c0_11 = arith.constant 0 : index
    %c0_12 = arith.constant 0 : index
    %14 = vector.load %arg22[%c0_10, %c0_11, %c0_12] : memref<18x18x32xf32, #tpu.memory_space<vmem>>, vector<18x18x32xf32>
    tpu.vector_store %arg22[%c0_10, %c0_11, %c0_12], %13 {strides = array<i32>} : memref<18x18x32xf32, #tpu.memory_space<vmem>>, vector<18x18x32xf32>,
    %15 = vector.shape_cast %12 : vector<256x32xf32> to vector<16x16x32xf32>
    %c1 = arith.constant 1 : index
    %c1_13 = arith.constant 1 : index
    %c0_14 = arith.constant 0 : index
    %16 = vector.load %arg22[%c1, %c1_13, %c0_14] : memref<18x18x32xf32, #tpu.memory_space<vmem>>, vector<16x16x32xf32>
    tpu.vector_store %arg22[%c1, %c1_13, %c0_14], %15 {strides = array<i32>} : memref<18x18x32xf32, #tpu.memory_space<vmem>>, vector<16x16x32xf32>,
    %c0_15 = arith.constant 0 : index
    %c0_16 = arith.constant 0 : index
    %c0_17 = arith.constant 0 : index
    %17 = vector.load %arg22[%c0_15, %c0_16, %c0_17] : memref<18x18x32xf32, #tpu.memory_space<vmem>>, vector<16x16x32xf32>
    %18 = vector.shape_cast %17 : vector<16x16x32xf32> to vector<256x32xf32>
    %19 = arith.truncf %18 : vector<256x32xf32> to vector<256x32xbf16>
    %c0_18 = arith.constant 0 : index
    %c1_19 = arith.constant 1 : index
    %c0_20 = arith.constant 0 : index
    %20 = vector.load %arg22[%c0_18, %c1_19, %c0_20] : memref<18x18x32xf32, #tpu.memory_space<vmem>>, vector<16x16x32xf32>
    %21 = vector.shape_cast %20 : vector<16x16x32xf32> to vector<256x32xf32>
    %22 = arith.truncf %21 : vector<256x32xf32> to vector<256x32xbf16>
    %c0_21 = arith.constant 0 : index
    %c2 = arith.constant 2 : index
    %c0_22 = arith.constant 0 : index
    %23 = vector.load %arg22[%c0_21, %c2, %c0_22] : memref<18x18x32xf32, #tpu.memory_space<vmem>>, vector<16x16x32xf32>
    %24 = vector.shape_cast %23 : vector<16x16x32xf32> to vector<256x32xf32>
    %25 = arith.truncf %24 : vector<256x32xf32> to vector<256x32xbf16>
    %c1_23 = arith.constant 1 : index
    %c0_24 = arith.constant 0 : index
    %c0_25 = arith.constant 0 : index
    %26 = vector.load %arg22[%c1_23, %c0_24, %c0_25] : memref<18x18x32xf32, #tpu.memory_space<vmem>>, vector<16x16x32xf32>
    %27 = vector.shape_cast %26 : vector<16x16x32xf32> to vector<256x32xf32>
    %28 = arith.truncf %27 : vector<256x32xf32> to vector<256x32xbf16>
    %c1_26 = arith.constant 1 : index
    %c1_27 = arith.constant 1 : index
    %c0_28 = arith.constant 0 : index
    %29 = vector.load %arg22[%c1_26, %c1_27, %c0_28] : memref<18x18x32xf32, #tpu.memory_space<vmem>>, vector<16x16x32xf32>
    %30 = vector.shape_cast %29 : vector<16x16x32xf32> to vector<256x32xf32>
    %31 = arith.truncf %30 : vector<256x32xf32> to vector<256x32xbf16>
    %c1_29 = arith.constant 1 : index
    %c2_30 = arith.constant 2 : index
    %c0_31 = arith.constant 0 : index
    %32 = vector.load %arg22[%c1_29, %c2_30, %c0_31] : memref<18x18x32xf32, #tpu.memory_space<vmem>>, vector<16x16x32xf32>
    %33 = vector.shape_cast %32 : vector<16x16x32xf32> to vector<256x32xf32>
    %34 = arith.truncf %33 : vector<256x32xf32> to vector<256x32xbf16>
    %c2_32 = arith.constant 2 : index
    %c0_33 = arith.constant 0 : index
    %c0_34 = arith.constant 0 : index
    %35 = vector.load %arg22[%c2_32, %c0_33, %c0_34] : memref<18x18x32xf32, #tpu.memory_space<vmem>>, vector<16x16x32xf32>
    %36 = vector.shape_cast %35 : vector<16x16x32xf32> to vector<256x32xf32>
    %37 = arith.truncf %36 : vector<256x32xf32> to vector<256x32xbf16>
    %c2_35 = arith.constant 2 : index
    %c1_36 = arith.constant 1 : index
    %c0_37 = arith.constant 0 : index
    %38 = vector.load %arg22[%c2_35, %c1_36, %c0_37] : memref<18x18x32xf32, #tpu.memory_space<vmem>>, vector<16x16x32xf32>
    %39 = vector.shape_cast %38 : vector<16x16x32xf32> to vector<256x32xf32>
    %40 = arith.truncf %39 : vector<256x32xf32> to vector<256x32xbf16>
    %c2_38 = arith.constant 2 : index
    %c2_39 = arith.constant 2 : index
    %c0_40 = arith.constant 0 : index
    %41 = vector.load %arg22[%c2_38, %c2_39, %c0_40] : memref<18x18x32xf32, #tpu.memory_space<vmem>>, vector<16x16x32xf32>
    %42 = vector.shape_cast %41 : vector<16x16x32xf32> to vector<256x32xf32>
    %43 = arith.truncf %42 : vector<256x32xf32> to vector<256x32xbf16>
    %44 = tpu.concatenate %19, %22, %25, %28, %31, %34, %37, %40, %43 in 1 : vector<256x32xbf16>, vector<256x32xbf16>, vector<256x32xbf16>, vector<256x32xbf16>, vector<256x32xbf16>, vector<256x32xbf16>, vector<256x32xbf16>, vector<256x32xbf16>, vector<256x32xbf16> -> vector<256x288xbf16>
    %c0_41 = arith.constant 0 : index
    %c0_42 = arith.constant 0 : index
    %45 = vector.load %arg5[%c0_41, %c0_42] : memref<288x32xbf16, #tpu.memory_space<vmem>>, vector<288x32xbf16>
    %cst_43 = arith.constant dense<0.000000e+00> : vector<256x32xf32>
    %46 = tpu.matmul %44, %45, %cst_43 {dimension_numbers = #tpu.dot_dimension_numbers<[1], [0], [0], [1], [0, 0, 1, 1], [], []>} : vector<256x288xbf16>, vector<288x32xbf16>, vector<256x32xf32> -> vector<256x32xf32>
    %c0_44 = arith.constant 0 : index
    %c0_45 = arith.constant 0 : index
    %47 = vector.load %arg6[%c0_44, %c0_45] : memref<1x32xf32, #tpu.memory_space<vmem>>, vector<1x32xf32>
    %48 = vector.broadcast %47 : vector<1x32xf32> to vector<256x32xf32>
    %49 = arith.mulf %46, %48 : vector<256x32xf32>
    %c0_46 = arith.constant 0 : index
    %c0_47 = arith.constant 0 : index
    %50 = vector.load %arg7[%c0_46, %c0_47] : memref<1x32xf32, #tpu.memory_space<vmem>>, vector<1x32xf32>
    %51 = vector.broadcast %50 : vector<1x32xf32> to vector<256x32xf32>
    %52 = arith.addf %49, %51 : vector<256x32xf32>
    %cst_48 = arith.constant 0.000000e+00 : f32
    %53 = vector.broadcast %cst_48 : f32 to vector<256x32xf32>
    %54 = arith.maximumf %52, %53 : vector<256x32xf32>
    %c0_49 = arith.constant 0 : index
    %c0_50 = arith.constant 0 : index
    %55 = vector.load %arg8[%c0_49, %c0_50] : memref<32x16xbf16, #tpu.memory_space<vmem>>, vector<32x16xbf16>
    %cst_51 = arith.constant dense<0.000000e+00> : vector<256x16xf32>
    %56 = tpu.matmul %2, %55, %cst_51 {dimension_numbers = #tpu.dot_dimension_numbers<[1], [0], [0], [1], [0, 0, 1, 1], [], []>} : vector<256x32xbf16>, vector<32x16xbf16>, vector<256x16xf32> -> vector<256x16xf32>
    %c0_52 = arith.constant 0 : index
    %c0_53 = arith.constant 0 : index
    %57 = vector.load %arg9[%c0_52, %c0_53] : memref<1x16xf32, #tpu.memory_space<vmem>>, vector<1x16xf32>
    %58 = vector.broadcast %57 : vector<1x16xf32> to vector<256x16xf32>
    %59 = arith.mulf %56, %58 : vector<256x16xf32>
    %c0_54 = arith.constant 0 : index
    %c0_55 = arith.constant 0 : index
    %60 = vector.load %arg10[%c0_54, %c0_55] : memref<1x16xf32, #tpu.memory_space<vmem>>, vector<1x16xf32>
    %61 = vector.broadcast %60 : vector<1x16xf32> to vector<256x16xf32>
    %62 = arith.addf %59, %61 : vector<256x16xf32>
    %cst_56 = arith.constant 0.000000e+00 : f32
    %63 = vector.broadcast %cst_56 : f32 to vector<256x16xf32>
    %64 = arith.maximumf %62, %63 : vector<256x16xf32>
    %cst_57 = arith.constant 0xFF800000 : f32
    %65 = vector.broadcast %cst_57 : f32 to vector<18x18x16xf32>
    %c0_58 = arith.constant 0 : index
    %c0_59 = arith.constant 0 : index
    %c0_60 = arith.constant 0 : index
    %66 = vector.load %arg23[%c0_58, %c0_59, %c0_60] : memref<18x18x16xf32, #tpu.memory_space<vmem>>, vector<18x18x16xf32>
    tpu.vector_store %arg23[%c0_58, %c0_59, %c0_60], %65 {strides = array<i32>} : memref<18x18x16xf32, #tpu.memory_space<vmem>>, vector<18x18x16xf32>,
    %67 = vector.shape_cast %64 : vector<256x16xf32> to vector<16x16x16xf32>
    %c1_61 = arith.constant 1 : index
    %c1_62 = arith.constant 1 : index
    %c0_63 = arith.constant 0 : index
    %68 = vector.load %arg23[%c1_61, %c1_62, %c0_63] : memref<18x18x16xf32, #tpu.memory_space<vmem>>, vector<16x16x16xf32>
    tpu.vector_store %arg23[%c1_61, %c1_62, %c0_63], %67 {strides = array<i32>} : memref<18x18x16xf32, #tpu.memory_space<vmem>>, vector<16x16x16xf32>,
    %cst_64 = arith.constant 0xFF800000 : f32
    %69 = vector.broadcast %cst_64 : f32 to vector<8x8x16xf32>
    %c0_65 = arith.constant 0 : index
    %c0_66 = arith.constant 0 : index
    %c0_67 = arith.constant 0 : index
    %70 = vector.load %arg23[%c0_65, %c0_66, %c0_67] : memref<18x18x16xf32, #tpu.memory_space<vmem>>, vector<16x16x16xf32>
    %71 = vector.shape_cast %70 : vector<16x16x16xf32> to vector<8x2x16x16xf32>
    %72 = vector.extract_strided_slice %71 {offsets = [0, 0, 0, 0], sizes = [8, 1, 16, 16], strides = [1, 1, 1, 1]} : vector<8x2x16x16xf32> to vector<8x1x16x16xf32>
    %73 = vector.shape_cast %72 : vector<8x1x16x16xf32> to vector<8x16x16xf32>
    %74 = vector.shape_cast %73 : vector<8x16x16xf32> to vector<8x8x2x16xf32>
    %75 = vector.extract_strided_slice %74 {offsets = [0, 0, 0, 0], sizes = [8, 8, 1, 16], strides = [1, 1, 1, 1]} : vector<8x8x2x16xf32> to vector<8x8x1x16xf32>
    %76 = vector.shape_cast %75 : vector<8x8x1x16xf32> to vector<8x8x16xf32>
    %77 = arith.maximumf %69, %76 : vector<8x8x16xf32>
    %c0_68 = arith.constant 0 : index
    %c1_69 = arith.constant 1 : index
    %c0_70 = arith.constant 0 : index
    %78 = vector.load %arg23[%c0_68, %c1_69, %c0_70] : memref<18x18x16xf32, #tpu.memory_space<vmem>>, vector<16x16x16xf32>
    %79 = vector.shape_cast %78 : vector<16x16x16xf32> to vector<8x2x16x16xf32>
    %80 = vector.extract_strided_slice %79 {offsets = [0, 0, 0, 0], sizes = [8, 1, 16, 16], strides = [1, 1, 1, 1]} : vector<8x2x16x16xf32> to vector<8x1x16x16xf32>
    %81 = vector.shape_cast %80 : vector<8x1x16x16xf32> to vector<8x16x16xf32>
    %82 = vector.shape_cast %81 : vector<8x16x16xf32> to vector<8x8x2x16xf32>
    %83 = vector.extract_strided_slice %82 {offsets = [0, 0, 0, 0], sizes = [8, 8, 1, 16], strides = [1, 1, 1, 1]} : vector<8x8x2x16xf32> to vector<8x8x1x16xf32>
    %84 = vector.shape_cast %83 : vector<8x8x1x16xf32> to vector<8x8x16xf32>
    %85 = arith.maximumf %77, %84 : vector<8x8x16xf32>
    %c0_71 = arith.constant 0 : index
    %c2_72 = arith.constant 2 : index
    %c0_73 = arith.constant 0 : index
    %86 = vector.load %arg23[%c0_71, %c2_72, %c0_73] : memref<18x18x16xf32, #tpu.memory_space<vmem>>, vector<16x16x16xf32>
    %87 = vector.shape_cast %86 : vector<16x16x16xf32> to vector<8x2x16x16xf32>
    %88 = vector.extract_strided_slice %87 {offsets = [0, 0, 0, 0], sizes = [8, 1, 16, 16], strides = [1, 1, 1, 1]} : vector<8x2x16x16xf32> to vector<8x1x16x16xf32>
    %89 = vector.shape_cast %88 : vector<8x1x16x16xf32> to vector<8x16x16xf32>
    %90 = vector.shape_cast %89 : vector<8x16x16xf32> to vector<8x8x2x16xf32>
    %91 = vector.extract_strided_slice %90 {offsets = [0, 0, 0, 0], sizes = [8, 8, 1, 16], strides = [1, 1, 1, 1]} : vector<8x8x2x16xf32> to vector<8x8x1x16xf32>
    %92 = vector.shape_cast %91 : vector<8x8x1x16xf32> to vector<8x8x16xf32>
    %93 = arith.maximumf %85, %92 : vector<8x8x16xf32>
    %c1_74 = arith.constant 1 : index
    %c0_75 = arith.constant 0 : index
    %c0_76 = arith.constant 0 : index
    %94 = vector.load %arg23[%c1_74, %c0_75, %c0_76] : memref<18x18x16xf32, #tpu.memory_space<vmem>>, vector<16x16x16xf32>
    %95 = vector.shape_cast %94 : vector<16x16x16xf32> to vector<8x2x16x16xf32>
    %96 = vector.extract_strided_slice %95 {offsets = [0, 0, 0, 0], sizes = [8, 1, 16, 16], strides = [1, 1, 1, 1]} : vector<8x2x16x16xf32> to vector<8x1x16x16xf32>
    %97 = vector.shape_cast %96 : vector<8x1x16x16xf32> to vector<8x16x16xf32>
    %98 = vector.shape_cast %97 : vector<8x16x16xf32> to vector<8x8x2x16xf32>
    %99 = vector.extract_strided_slice %98 {offsets = [0, 0, 0, 0], sizes = [8, 8, 1, 16], strides = [1, 1, 1, 1]} : vector<8x8x2x16xf32> to vector<8x8x1x16xf32>
    %100 = vector.shape_cast %99 : vector<8x8x1x16xf32> to vector<8x8x16xf32>
    %101 = arith.maximumf %93, %100 : vector<8x8x16xf32>
    %c1_77 = arith.constant 1 : index
    %c1_78 = arith.constant 1 : index
    %c0_79 = arith.constant 0 : index
    %102 = vector.load %arg23[%c1_77, %c1_78, %c0_79] : memref<18x18x16xf32, #tpu.memory_space<vmem>>, vector<16x16x16xf32>
    %103 = vector.shape_cast %102 : vector<16x16x16xf32> to vector<8x2x16x16xf32>
    %104 = vector.extract_strided_slice %103 {offsets = [0, 0, 0, 0], sizes = [8, 1, 16, 16], strides = [1, 1, 1, 1]} : vector<8x2x16x16xf32> to vector<8x1x16x16xf32>
    %105 = vector.shape_cast %104 : vector<8x1x16x16xf32> to vector<8x16x16xf32>
    %106 = vector.shape_cast %105 : vector<8x16x16xf32> to vector<8x8x2x16xf32>
    %107 = vector.extract_strided_slice %106 {offsets = [0, 0, 0, 0], sizes = [8, 8, 1, 16], strides = [1, 1, 1, 1]} : vector<8x8x2x16xf32> to vector<8x8x1x16xf32>
    %108 = vector.shape_cast %107 : vector<8x8x1x16xf32> to vector<8x8x16xf32>
    %109 = arith.maximumf %101, %108 : vector<8x8x16xf32>
    %c1_80 = arith.constant 1 : index
    %c2_81 = arith.constant 2 : index
    %c0_82 = arith.constant 0 : index
    %110 = vector.load %arg23[%c1_80, %c2_81, %c0_82] : memref<18x18x16xf32, #tpu.memory_space<vmem>>, vector<16x16x16xf32>
    %111 = vector.shape_cast %110 : vector<16x16x16xf32> to vector<8x2x16x16xf32>
    %112 = vector.extract_strided_slice %111 {offsets = [0, 0, 0, 0], sizes = [8, 1, 16, 16], strides = [1, 1, 1, 1]} : vector<8x2x16x16xf32> to vector<8x1x16x16xf32>
    %113 = vector.shape_cast %112 : vector<8x1x16x16xf32> to vector<8x16x16xf32>
    %114 = vector.shape_cast %113 : vector<8x16x16xf32> to vector<8x8x2x16xf32>
    %115 = vector.extract_strided_slice %114 {offsets = [0, 0, 0, 0], sizes = [8, 8, 1, 16], strides = [1, 1, 1, 1]} : vector<8x8x2x16xf32> to vector<8x8x1x16xf32>
    %116 = vector.shape_cast %115 : vector<8x8x1x16xf32> to vector<8x8x16xf32>
    %117 = arith.maximumf %109, %116 : vector<8x8x16xf32>
    %c2_83 = arith.constant 2 : index
    %c0_84 = arith.constant 0 : index
    %c0_85 = arith.constant 0 : index
    %118 = vector.load %arg23[%c2_83, %c0_84, %c0_85] : memref<18x18x16xf32, #tpu.memory_space<vmem>>, vector<16x16x16xf32>
    %119 = vector.shape_cast %118 : vector<16x16x16xf32> to vector<8x2x16x16xf32>
    %120 = vector.extract_strided_slice %119 {offsets = [0, 0, 0, 0], sizes = [8, 1, 16, 16], strides = [1, 1, 1, 1]} : vector<8x2x16x16xf32> to vector<8x1x16x16xf32>
    %121 = vector.shape_cast %120 : vector<8x1x16x16xf32> to vector<8x16x16xf32>
    %122 = vector.shape_cast %121 : vector<8x16x16xf32> to vector<8x8x2x16xf32>
    %123 = vector.extract_strided_slice %122 {offsets = [0, 0, 0, 0], sizes = [8, 8, 1, 16], strides = [1, 1, 1, 1]} : vector<8x8x2x16xf32> to vector<8x8x1x16xf32>
    %124 = vector.shape_cast %123 : vector<8x8x1x16xf32> to vector<8x8x16xf32>
    %125 = arith.maximumf %117, %124 : vector<8x8x16xf32>
    %c2_86 = arith.constant 2 : index
    %c1_87 = arith.constant 1 : index
    %c0_88 = arith.constant 0 : index
    %126 = vector.load %arg23[%c2_86, %c1_87, %c0_88] : memref<18x18x16xf32, #tpu.memory_space<vmem>>, vector<16x16x16xf32>
    %127 = vector.shape_cast %126 : vector<16x16x16xf32> to vector<8x2x16x16xf32>
    %128 = vector.extract_strided_slice %127 {offsets = [0, 0, 0, 0], sizes = [8, 1, 16, 16], strides = [1, 1, 1, 1]} : vector<8x2x16x16xf32> to vector<8x1x16x16xf32>
    %129 = vector.shape_cast %128 : vector<8x1x16x16xf32> to vector<8x16x16xf32>
    %130 = vector.shape_cast %129 : vector<8x16x16xf32> to vector<8x8x2x16xf32>
    %131 = vector.extract_strided_slice %130 {offsets = [0, 0, 0, 0], sizes = [8, 8, 1, 16], strides = [1, 1, 1, 1]} : vector<8x8x2x16xf32> to vector<8x8x1x16xf32>
    %132 = vector.shape_cast %131 : vector<8x8x1x16xf32> to vector<8x8x16xf32>
    %133 = arith.maximumf %125, %132 : vector<8x8x16xf32>
    %c2_89 = arith.constant 2 : index
    %c2_90 = arith.constant 2 : index
    %c0_91 = arith.constant 0 : index
    %134 = vector.load %arg23[%c2_89, %c2_90, %c0_91] : memref<18x18x16xf32, #tpu.memory_space<vmem>>, vector<16x16x16xf32>
    %135 = vector.shape_cast %134 : vector<16x16x16xf32> to vector<8x2x16x16xf32>
    %136 = vector.extract_strided_slice %135 {offsets = [0, 0, 0, 0], sizes = [8, 1, 16, 16], strides = [1, 1, 1, 1]} : vector<8x2x16x16xf32> to vector<8x1x16x16xf32>
    %137 = vector.shape_cast %136 : vector<8x1x16x16xf32> to vector<8x16x16xf32>
    %138 = vector.shape_cast %137 : vector<8x16x16xf32> to vector<8x8x2x16xf32>
    %139 = vector.extract_strided_slice %138 {offsets = [0, 0, 0, 0], sizes = [8, 8, 1, 16], strides = [1, 1, 1, 1]} : vector<8x8x2x16xf32> to vector<8x8x1x16xf32>
    %140 = vector.shape_cast %139 : vector<8x8x1x16xf32> to vector<8x8x16xf32>
    %141 = arith.maximumf %133, %140 : vector<8x8x16xf32>
    %cst_92 = arith.constant 0.000000e+00 : f32
    %142 = vector.broadcast %cst_92 : f32 to vector<10x10x16xf32>
    %c0_93 = arith.constant 0 : index
    %c0_94 = arith.constant 0 : index
    %c0_95 = arith.constant 0 : index
    %143 = vector.load %arg24[%c0_93, %c0_94, %c0_95] : memref<10x10x16xf32, #tpu.memory_space<vmem>>, vector<10x10x16xf32>
    tpu.vector_store %arg24[%c0_93, %c0_94, %c0_95], %142 {strides = array<i32>} : memref<10x10x16xf32, #tpu.memory_space<vmem>>, vector<10x10x16xf32>,
    %c1_96 = arith.constant 1 : index
    %c1_97 = arith.constant 1 : index
    %c0_98 = arith.constant 0 : index
    %144 = vector.load %arg24[%c1_96, %c1_97, %c0_98] : memref<10x10x16xf32, #tpu.memory_space<vmem>>, vector<8x8x16xf32>
    tpu.vector_store %arg24[%c1_96, %c1_97, %c0_98], %141 {strides = array<i32>} : memref<10x10x16xf32, #tpu.memory_space<vmem>>, vector<8x8x16xf32>,
    %c0_99 = arith.constant 0 : index
    %c0_100 = arith.constant 0 : index
    %c0_101 = arith.constant 0 : index
    %145 = vector.load %arg24[%c0_99, %c0_100, %c0_101] : memref<10x10x16xf32, #tpu.memory_space<vmem>>, vector<8x8x16xf32>
    %146 = vector.shape_cast %145 : vector<8x8x16xf32> to vector<64x16xf32>
    %147 = arith.truncf %146 : vector<64x16xf32> to vector<64x16xbf16>
    %c0_102 = arith.constant 0 : index
    %c1_103 = arith.constant 1 : index
    %c0_104 = arith.constant 0 : index
    %148 = vector.load %arg24[%c0_102, %c1_103, %c0_104] : memref<10x10x16xf32, #tpu.memory_space<vmem>>, vector<8x8x16xf32>
    %149 = vector.shape_cast %148 : vector<8x8x16xf32> to vector<64x16xf32>
    %150 = arith.truncf %149 : vector<64x16xf32> to vector<64x16xbf16>
    %c0_105 = arith.constant 0 : index
    %c2_106 = arith.constant 2 : index
    %c0_107 = arith.constant 0 : index
    %151 = vector.load %arg24[%c0_105, %c2_106, %c0_107] : memref<10x10x16xf32, #tpu.memory_space<vmem>>, vector<8x8x16xf32>
    %152 = vector.shape_cast %151 : vector<8x8x16xf32> to vector<64x16xf32>
    %153 = arith.truncf %152 : vector<64x16xf32> to vector<64x16xbf16>
    %c1_108 = arith.constant 1 : index
    %c0_109 = arith.constant 0 : index
    %c0_110 = arith.constant 0 : index
    %154 = vector.load %arg24[%c1_108, %c0_109, %c0_110] : memref<10x10x16xf32, #tpu.memory_space<vmem>>, vector<8x8x16xf32>
    %155 = vector.shape_cast %154 : vector<8x8x16xf32> to vector<64x16xf32>
    %156 = arith.truncf %155 : vector<64x16xf32> to vector<64x16xbf16>
    %c1_111 = arith.constant 1 : index
    %c1_112 = arith.constant 1 : index
    %c0_113 = arith.constant 0 : index
    %157 = vector.load %arg24[%c1_111, %c1_112, %c0_113] : memref<10x10x16xf32, #tpu.memory_space<vmem>>, vector<8x8x16xf32>
    %158 = vector.shape_cast %157 : vector<8x8x16xf32> to vector<64x16xf32>
    %159 = arith.truncf %158 : vector<64x16xf32> to vector<64x16xbf16>
    %c1_114 = arith.constant 1 : index
    %c2_115 = arith.constant 2 : index
    %c0_116 = arith.constant 0 : index
    %160 = vector.load %arg24[%c1_114, %c2_115, %c0_116] : memref<10x10x16xf32, #tpu.memory_space<vmem>>, vector<8x8x16xf32>
    %161 = vector.shape_cast %160 : vector<8x8x16xf32> to vector<64x16xf32>
    %162 = arith.truncf %161 : vector<64x16xf32> to vector<64x16xbf16>
    %c2_117 = arith.constant 2 : index
    %c0_118 = arith.constant 0 : index
    %c0_119 = arith.constant 0 : index
    %163 = vector.load %arg24[%c2_117, %c0_118, %c0_119] : memref<10x10x16xf32, #tpu.memory_space<vmem>>, vector<8x8x16xf32>
    %164 = vector.shape_cast %163 : vector<8x8x16xf32> to vector<64x16xf32>
    %165 = arith.truncf %164 : vector<64x16xf32> to vector<64x16xbf16>
    %c2_120 = arith.constant 2 : index
    %c1_121 = arith.constant 1 : index
    %c0_122 = arith.constant 0 : index
    %166 = vector.load %arg24[%c2_120, %c1_121, %c0_122] : memref<10x10x16xf32, #tpu.memory_space<vmem>>, vector<8x8x16xf32>
    %167 = vector.shape_cast %166 : vector<8x8x16xf32> to vector<64x16xf32>
    %168 = arith.truncf %167 : vector<64x16xf32> to vector<64x16xbf16>
    %c2_123 = arith.constant 2 : index
    %c2_124 = arith.constant 2 : index
    %c0_125 = arith.constant 0 : index
    %169 = vector.load %arg24[%c2_123, %c2_124, %c0_125] : memref<10x10x16xf32, #tpu.memory_space<vmem>>, vector<8x8x16xf32>
    %170 = vector.shape_cast %169 : vector<8x8x16xf32> to vector<64x16xf32>
    %171 = arith.truncf %170 : vector<64x16xf32> to vector<64x16xbf16>
    %172 = tpu.concatenate %147, %150, %153, %156, %159, %162, %165, %168, %171 in 1 : vector<64x16xbf16>, vector<64x16xbf16>, vector<64x16xbf16>, vector<64x16xbf16>, vector<64x16xbf16>, vector<64x16xbf16>, vector<64x16xbf16>, vector<64x16xbf16>, vector<64x16xbf16> -> vector<64x144xbf16>
    %c0_126 = arith.constant 0 : index
    %c0_127 = arith.constant 0 : index
    %173 = vector.load %arg11[%c0_126, %c0_127] : memref<144x16xbf16, #tpu.memory_space<vmem>>, vector<144x16xbf16>
    %cst_128 = arith.constant dense<0.000000e+00> : vector<64x16xf32>
    %174 = tpu.matmul %172, %173, %cst_128 {dimension_numbers = #tpu.dot_dimension_numbers<[1], [0], [0], [1], [0, 0, 1, 1], [], []>} : vector<64x144xbf16>, vector<144x16xbf16>, vector<64x16xf32> -> vector<64x16xf32>
    %c0_129 = arith.constant 0 : index
    %c0_130 = arith.constant 0 : index
    %175 = vector.load %arg12[%c0_129, %c0_130] : memref<1x16xf32, #tpu.memory_space<vmem>>, vector<1x16xf32>
    %176 = vector.broadcast %175 : vector<1x16xf32> to vector<64x16xf32>
    %177 = arith.mulf %174, %176 : vector<64x16xf32>
    %c0_131 = arith.constant 0 : index
    %c0_132 = arith.constant 0 : index
    %178 = vector.load %arg13[%c0_131, %c0_132] : memref<1x16xf32, #tpu.memory_space<vmem>>, vector<1x16xf32>
    %179 = vector.broadcast %178 : vector<1x16xf32> to vector<64x16xf32>
    %180 = arith.addf %177, %179 : vector<64x16xf32>
    %cst_133 = arith.constant 0.000000e+00 : f32
    %181 = vector.broadcast %cst_133 : f32 to vector<64x16xf32>
    %182 = arith.maximumf %180, %181 : vector<64x16xf32>
    %c0_134 = arith.constant 0 : index
    %c0_135 = arith.constant 0 : index
    %183 = vector.load %arg14[%c0_134, %c0_135] : memref<256x64xbf16, #tpu.memory_space<vmem>>, vector<256x64xbf16>
    %184 = arith.truncf %182 : vector<64x16xf32> to vector<64x16xbf16>
    %cst_136 = arith.constant dense<0.000000e+00> : vector<256x16xf32>
    %185 = tpu.matmul %183, %184, %cst_136 {dimension_numbers = #tpu.dot_dimension_numbers<[1], [0], [0], [1], [0, 0, 1, 1], [], []>} : vector<256x64xbf16>, vector<64x16xbf16>, vector<256x16xf32> -> vector<256x16xf32>
    %186 = arith.truncf %185 : vector<256x16xf32> to vector<256x16xbf16>
    %c0_137 = arith.constant 0 : index
    %c0_138 = arith.constant 0 : index
    %187 = vector.load %arg15[%c0_137, %c0_138] : memref<16x32xbf16, #tpu.memory_space<vmem>>, vector<16x32xbf16>
    %cst_139 = arith.constant dense<0.000000e+00> : vector<256x32xf32>
    %188 = tpu.matmul %186, %187, %cst_139 {dimension_numbers = #tpu.dot_dimension_numbers<[1], [0], [0], [1], [0, 0, 1, 1], [], []>} : vector<256x16xbf16>, vector<16x32xbf16>, vector<256x32xf32> -> vector<256x32xf32>
    %c0_140 = arith.constant 0 : index
    %c0_141 = arith.constant 0 : index
    %189 = vector.load %arg16[%c0_140, %c0_141] : memref<1x32xf32, #tpu.memory_space<vmem>>, vector<1x32xf32>
    %190 = vector.broadcast %189 : vector<1x32xf32> to vector<256x32xf32>
    %191 = arith.mulf %188, %190 : vector<256x32xf32>
    %c0_142 = arith.constant 0 : index
    %c0_143 = arith.constant 0 : index
    %192 = vector.load %arg17[%c0_142, %c0_143] : memref<1x32xf32, #tpu.memory_space<vmem>>, vector<1x32xf32>
    %193 = vector.broadcast %192 : vector<1x32xf32> to vector<256x32xf32>
    %194 = arith.addf %191, %193 : vector<256x32xf32>
    %195 = arith.negf %194 : vector<256x32xf32>
    %196 = math.exp %195 : vector<256x32xf32>
    %cst_144 = arith.constant 1.000000e+00 : f32
    %197 = vector.broadcast %cst_144 : f32 to vector<256x32xf32>
    %198 = arith.addf %197, %196 : vector<256x32xf32>
    %199 = arith.divf %197, %198 : vector<256x32xf32>
    %200 = arith.mulf %54, %199 : vector<256x32xf32>
    %201 = arith.truncf %200 : vector<256x32xf32> to vector<256x32xbf16>
    %c0_145 = arith.constant 0 : index
    %c0_146 = arith.constant 0 : index
    %202 = vector.load %arg18[%c0_145, %c0_146] : memref<32x32xbf16, #tpu.memory_space<vmem>>, vector<32x32xbf16>
    %cst_147 = arith.constant dense<0.000000e+00> : vector<256x32xf32>
    %203 = tpu.matmul %201, %202, %cst_147 {dimension_numbers = #tpu.dot_dimension_numbers<[1], [0], [0], [1], [0, 0, 1, 1], [], []>} : vector<256x32xbf16>, vector<32x32xbf16>, vector<256x32xf32> -> vector<256x32xf32>
    %c0_148 = arith.constant 0 : index
    %c0_149 = arith.constant 0 : index
    %204 = vector.load %arg19[%c0_148, %c0_149] : memref<1x32xf32, #tpu.memory_space<vmem>>, vector<1x32xf32>
    %205 = vector.broadcast %204 : vector<1x32xf32> to vector<256x32xf32>
    %206 = arith.mulf %203, %205 : vector<256x32xf32>
    %c0_150 = arith.constant 0 : index
    %c0_151 = arith.constant 0 : index
    %207 = vector.load %arg20[%c0_150, %c0_151] : memref<1x32xf32, #tpu.memory_space<vmem>>, vector<1x32xf32>
    %208 = vector.broadcast %207 : vector<1x32xf32> to vector<256x32xf32>
    %209 = arith.addf %206, %208 : vector<256x32xf32>
    %210 = arith.addf %209, %1 : vector<256x32xf32>
    %cst_152 = arith.constant 0.000000e+00 : f32
    %211 = vector.broadcast %cst_152 : f32 to vector<256x32xf32>
    %212 = arith.maximumf %210, %211 : vector<256x32xf32>
    %c0_153 = arith.constant 0 : index
    %c0_154 = arith.constant 0 : index
    %c0_155 = arith.constant 0 : index
    %213 = vector.load %arg21[%c0_153, %c0_154, %c0_155] : memref<1x256x32xf32, #tpu.memory_space<vmem>>, vector<1x256x32xf32>
    %214 = vector.shape_cast %213 : vector<1x256x32xf32> to vector<256x32xf32>
    %215 = vector.shape_cast %212 : vector<256x32xf32> to vector<1x256x32xf32>
    tpu.vector_store %arg21[%c0_153, %c0_154, %c0_155], %215 {strides = array<i32>} : memref<1x256x32xf32, #tpu.memory_space<vmem>>, vector<1x256x32xf32>,
    return
  }
  func.func @transform_0(%arg0: i32) -> (i32, i32, i32) {
    %c0_i32 = arith.constant 0 : i32
    %c0_i32_0 = arith.constant 0 : i32
    %c0_i32_1 = arith.constant 0 : i32
    return %arg0, %c0_i32, %c0_i32_0 : i32, i32, i32
  }
  func.func @transform_1(%arg0: i32) -> (i32, i32) {
    %c0_i32 = arith.constant 0 : i32
    %c0_i32_0 = arith.constant 0 : i32
    %c0_i32_1 = arith.constant 0 : i32
    return %c0_i32, %c0_i32_0 : i32, i32
  }
  func.func @transform_2(%arg0: i32) -> (i32, i32) {
    %c0_i32 = arith.constant 0 : i32
    %c0_i32_0 = arith.constant 0 : i32
    %c0_i32_1 = arith.constant 0 : i32
    return %c0_i32, %c0_i32_0 : i32, i32
  }
  func.func @transform_3(%arg0: i32) -> (i32, i32) {
    %c0_i32 = arith.constant 0 : i32
    %c0_i32_0 = arith.constant 0 : i32
    %c0_i32_1 = arith.constant 0 : i32
    return %c0_i32, %c0_i32_0 : i32, i32
  }
  func.func @transform_4(%arg0: i32) -> (i32, i32) {
    %c0_i32 = arith.constant 0 : i32
    %c0_i32_0 = arith.constant 0 : i32
    %c0_i32_1 = arith.constant 0 : i32
    return %c0_i32, %c0_i32_0 : i32, i32
  }
  func.func @transform_5(%arg0: i32) -> (i32, i32) {
    %c0_i32 = arith.constant 0 : i32
    %c0_i32_0 = arith.constant 0 : i32
    %c0_i32_1 = arith.constant 0 : i32
    return %c0_i32, %c0_i32_0 : i32, i32
  }
  func.func @transform_6(%arg0: i32) -> (i32, i32) {
    %c0_i32 = arith.constant 0 : i32
    %c0_i32_0 = arith.constant 0 : i32
    %c0_i32_1 = arith.constant 0 : i32
    return %c0_i32, %c0_i32_0 : i32, i32
  }
  func.func @transform_7(%arg0: i32) -> (i32, i32) {
    %c0_i32 = arith.constant 0 : i32
    %c0_i32_0 = arith.constant 0 : i32
    %c0_i32_1 = arith.constant 0 : i32
    return %c0_i32, %c0_i32_0 : i32, i32
  }
  func.func @transform_8(%arg0: i32) -> (i32, i32) {
    %c0_i32 = arith.constant 0 : i32
    %c0_i32_0 = arith.constant 0 : i32
    %c0_i32_1 = arith.constant 0 : i32
    return %c0_i32, %c0_i32_0 : i32, i32
  }
  func.func @transform_9(%arg0: i32) -> (i32, i32) {
    %c0_i32 = arith.constant 0 : i32
    %c0_i32_0 = arith.constant 0 : i32
    %c0_i32_1 = arith.constant 0 : i32
    return %c0_i32, %c0_i32_0 : i32, i32
  }
  func.func @transform_10(%arg0: i32) -> (i32, i32) {
    %c0_i32 = arith.constant 0 : i32
    %c0_i32_0 = arith.constant 0 : i32
    %c0_i32_1 = arith.constant 0 : i32
    return %c0_i32, %c0_i32_0 : i32, i32
  }
  func.func @transform_11(%arg0: i32) -> (i32, i32) {
    %c0_i32 = arith.constant 0 : i32
    %c0_i32_0 = arith.constant 0 : i32
    %c0_i32_1 = arith.constant 0 : i32
    return %c0_i32, %c0_i32_0 : i32, i32
  }
  func.func @transform_12(%arg0: i32) -> (i32, i32) {
    %c0_i32 = arith.constant 0 : i32
    %c0_i32_0 = arith.constant 0 : i32
    %c0_i32_1 = arith.constant 0 : i32
    return %c0_i32, %c0_i32_0 : i32, i32
  }
  func.func @transform_13(%arg0: i32) -> (i32, i32) {
    %c0_i32 = arith.constant 0 : i32
    %c0_i32_0 = arith.constant 0 : i32
    %c0_i32_1 = arith.constant 0 : i32
    return %c0_i32, %c0_i32_0 : i32, i32
  }
  func.func @transform_14(%arg0: i32) -> (i32, i32) {
    %c0_i32 = arith.constant 0 : i32
    %c0_i32_0 = arith.constant 0 : i32
    %c0_i32_1 = arith.constant 0 : i32
    return %c0_i32, %c0_i32_0 : i32, i32
  }
  func.func @transform_15(%arg0: i32) -> (i32, i32) {
    %c0_i32 = arith.constant 0 : i32
    %c0_i32_0 = arith.constant 0 : i32
    %c0_i32_1 = arith.constant 0 : i32
    return %c0_i32, %c0_i32_0 : i32, i32
  }
  func.func @transform_16(%arg0: i32) -> (i32, i32) {
    %c0_i32 = arith.constant 0 : i32
    %c0_i32_0 = arith.constant 0 : i32
    %c0_i32_1 = arith.constant 0 : i32
    return %c0_i32, %c0_i32_0 : i32, i32
  }
  func.func @transform_17(%arg0: i32) -> (i32, i32) {
    %c0_i32 = arith.constant 0 : i32
    %c0_i32_0 = arith.constant 0 : i32
    %c0_i32_1 = arith.constant 0 : i32
    return %c0_i32, %c0_i32_0 : i32, i32
  }
  func.func @transform_18(%arg0: i32) -> (i32, i32) {
    %c0_i32 = arith.constant 0 : i32
    %c0_i32_0 = arith.constant 0 : i32
    %c0_i32_1 = arith.constant 0 : i32
    return %c0_i32, %c0_i32_0 : i32, i32
  }
  func.func @transform_19(%arg0: i32) -> (i32, i32) {
    %c0_i32 = arith.constant 0 : i32
    %c0_i32_0 = arith.constant 0 : i32
    %c0_i32_1 = arith.constant 0 : i32
    return %c0_i32, %c0_i32_0 : i32, i32
  }
  func.func @transform_20(%arg0: i32) -> (i32, i32, i32) {
    %c0_i32 = arith.constant 0 : i32
    %c0_i32_0 = arith.constant 0 : i32
    %c0_i32_1 = arith.constant 0 : i32
    return %arg0, %c0_i32, %c0_i32_0 : i32, i32, i32
  }
}

</mosaic_0001>

<bundles_post_ra>
// kernel: airx_bottleneck_forward.1
= control target key start
LH: loop header
LB: loop body
LE: loop exit
PB: predicated region body
PF: predicated region fallthrough
CT: control target
= control target key end

     0   :  { %s11891_s0 = inlined_call_operand.hbm [shape: f32[2,256,32], index: 0, kind: input, shape index: {}]   ;;  %s11892_s1 = inlined_call_operand.vmem [shape: bf16[32,32], index: 1, kind: input, shape index: {}]   ;;  %s11893_s2 = inlined_call_operand.vmem [shape: f32[1,32], index: 2, kind: input, shape index: {}]   ;;  %s11894_s3 = inlined_call_operand.vmem [shape: f32[1,32], index: 3, kind: input, shape index: {}]   ;;  %s11895_s4 = inlined_call_operand.vmem [shape: bf16[288,32], index: 4, kind: input, shape index: {}]   ;;  %s11896_s5 = inlined_call_operand.vmem [shape: f32[1,32], index: 5, kind: input, shape index: {}]   ;;  %s11897_s6 = inlined_call_operand.vmem [shape: f32[1,32], index: 6, kind: input, shape index: {}]   ;;  %s11898_s7 = inlined_call_operand.vmem [shape: bf16[32,16], index: 7, kind: input, shape index: {}]   ;;  %s11899_s8 = inlined_call_operand.vmem [shape: f32[1,16], index: 8, kind: input, shape index: {}]   ;;  %s11900_s9 = inlined_call_operand.vmem [shape: f32[1,16], index: 9, kind: input, shape index: {}]   ;;  %s11901_s10 = inlined_call_operand.vmem [shape: bf16[144,16], index: 10, kind: input, shape index: {}]   ;;  %s11902_s11 = inlined_call_operand.vmem [shape: f32[1,16], index: 11, kind: input, shape index: {}]   ;;  %s11903_s12 = inlined_call_operand.vmem [shape: f32[1,16], index: 12, kind: input, shape index: {}]   ;;  %s11904_s13 = inlined_call_operand.vmem [shape: bf16[256,64], index: 13, kind: input, shape index: {}]   ;;  %s11905_s14 = inlined_call_operand.vmem [shape: bf16[16,32], index: 14, kind: input, shape index: {}]   ;;  %s11906_s15 = inlined_call_operand.vmem [shape: f32[1,32], index: 15, kind: input, shape index: {}]   ;;  %s11907_s16 = inlined_call_operand.vmem [shape: f32[1,32], index: 16, kind: input, shape index: {}]   ;;  %s11908_s17 = inlined_call_operand.vmem [shape: bf16[32,32], index: 17, kind: input, shape index: {}]   ;;  %s11909_s18 = inlined_call_operand.vmem [shape: f32[1,32], index: 18, kind: input, shape index: {}]   ;;  %s11910_s19 = inlined_call_operand.vmem [shape: f32[1,32], index: 19, kind: input, shape index: {}]   ;;  %s11911_s20 = inlined_call_operand.hbm [shape: f32[2,256,32], index: 20, kind: output, shape index: {}]  }
   0x1   :  { %11953 = sst [smem:[#allocation68_spill]] %s11891_s0 }
   0x2   :  { %11954 = sst [smem:[#allocation69_spill]] %s11892_s1 }
   0x3   :  { %11955 = sst [smem:[#allocation70_spill]] %s11893_s2 }
   0x4   :  { %11956 = sst [smem:[#allocation71_spill]] %s11894_s3 }
   0x5   :  { %11957 = sst [smem:[#allocation72_spill]] %s11895_s4 }
   0x6   :  { %11958 = sst [smem:[#allocation73_spill]] %s11896_s5 }
   0x7   :  { %11959 = sst [smem:[#allocation74_spill]] %s11897_s6 }
   0x8   :  { %11960 = sst [smem:[#allocation75_spill]] %s11898_s7 }
   0x9   :  { %11961 = sst [smem:[#allocation76_spill]] %s11899_s8 }
   0xa   :  { %11962 = sst [smem:[#allocation77_spill]] %s11900_s9 }
   0xb   :  { %11963 = sst [smem:[#allocation78_spill]] %s11901_s10 }
   0xc   :  { %11964 = sst [smem:[#allocation79_spill]] %s11902_s11 }
   0xd   :  { %11965 = sst [smem:[#allocation80_spill]] %s11909_s18 }
   0xe   :  { %11966 = sst [smem:[#allocation81_spill]] %s11910_s19 }
   0xf   :  { %11967 = sst [smem:[#allocation82_spill]] %s11911_s20 }
  0x10   :  { %25 = vsyncpa [#allocation6], 0 }
  0x11   :  { %27 = vsyncpa [#allocation6 + $0x1], 0 }
  0x12   :  { %28 = vsyncpa [#allocation7], 0 }
  0x13   :  { %30 = vsyncpa [#allocation7 + $0x1], 0  ;;  %s8580_s1 = smov 0   ;;  %s8582_s22 = smov 0  }
  0x14   :  { %s8584_s23 = smov 0   ;;  %s8586_s24 = smov 0  }
  0x15 LB: > { %11968 = sst [smem:[#allocation11_spill]] %s8448_s1  ;;  %s8601_s2 = sadd.s32 4294967295, %s8460_s24   ;;  %s8460_s24 = sphi %s8586_s24, %s12162_s24   ;;  %s8456_s23 = sphi %s8584_s23, %s12164_s23   ;;  %s8452_s22 = sphi %s8582_s22, %s12166_s22   ;;  %s8448_s1 = sphi %s8580_s1, %s12165_s1  }
  0x16   : > { %11969 = sst [smem:[#allocation12_spill]] %s8456_s23  ;;  %s7720_s25 = sadd.s32 4294967294, %s8460_s24  }
  0x17   : > { %11970 = sst [smem:[#allocation13_spill]] %s8601_s2  ;;  %s8605_s3 = sadd.s32 1, %s8460_s24  }
  0x18   : > { %11971 = sst [smem:[#allocation14_spill]] %s8605_s3  ;;  %s43_s26 = sadd.s32 1, %s8456_s23 }
  0x19   : > { %s40_s27 = ssub.s32 %s8460_s24, %s8605_s3  ;;  %p50_p0 = scmp.ne.s32.totalorder %s8456_s23, %s8452_s22 }
  0x1a   : > { %p41_p1 = scmp.eq.s32.totalorder %s40_s27, 0  ;;  %p51_p2 = scmp.eq.s32.totalorder %s8460_s24, 0 }
  0x1b   : > { %p56_p3 = scmp.ne.s32.totalorder %s8452_s22, %s8448_s1  ;;  %p57_p4 = scmp.eq.s32.totalorder %s8601_s2, 0 }
  0x1c   : > { %s8617_s28 = scalar_select %p41_p1, %s8456_s23, %s43_s26  }
  0x1d   : > { %p8619_p5 = por %p51_p2, %p50_p0  ;;  %p8623_p6 = por %p57_p4, %p56_p3 }
  0x1e   : > { %11972 = sst [smem:[#allocation15_spill]] %s8617_s28  ;;  %p479_p7 = scmp.eq.s32.totalorder %s8601_s2, 1 }
  0x1f   : > { %p485_p8 = scmp.eq.s32.totalorder %s7720_s25, 1  ;;  %p8133_p10 = scmp.lt.s32.totalorder %s8460_s24, 2 }
  0x20   : > { %p8630_p11 = por %p479_p7, %p50_p0  ;;  %s562_s21 = sand.u32 1, %s8456_s23  }
  0x21   : > { %p8634_p12 = por %p485_p8, %p56_p3  ;;  %s8066_s26 = sshll.u32 %s8460_s24, 8 }
  0x22   : > { %s11975_s30 = scalar_select %p8630_p11, 1, 0 }
  0x23   : > { %s11977_s0 = scalar_select %p8634_p12, 1, 0 }
  0x24   : > { %11976 = sst [smem:[#allocation16_spill]] %s11975_s30  ;;  %s7723_s27 = sshll.u32 %s562_s21, 8 }
  0x25   : > { %11978 = sst [smem:[#allocation17_spill]] %s11977_s0  ;;  %s566_s25 = scalar_lea.vmem [#allocation5], %s7723_s27 }
  0x26   : > { %s11979_s1 = sld [smem:[#allocation68_spill]]  ;;  %s574_s18 = sshll.u32 %s566_s25, 4  ;;  %s575_s18 = int_to_ptr.vmem [resolvable:$true] %s574_s18 }
  0x27   : > { %p8645_p13 = pnand %p8133_p10, %p8619_p5  ;;  %p7726_p0 = scmp.ge.s32.totalorder %s8460_s24, 1 }
  0x28   : > { %p582_p1 = scmp.lt.s32.totalorder %s8460_s24, 3  ;;  %s563_s23 = scalar_lea.sflag [#allocation6], %s562_s21 }
  0x29   : > { %p8368_p3 = pneg %p8645_p13 }
  0x2c   : > { %s11980_s20 = smov %s11979_s1  ;;  %s571_s2 = scalar_lea.hbm %s11979_s1, %s8066_s26 }
  0x2d   : > { %s572_s19 = sshll.u32 %s571_s2, 4  ;;  %s8371_s3 = scalar_lea.hbm %s11980_s20, 512  ;;  %s573_s19 = int_to_ptr.hbm [resolvable:$true] %s572_s19 }
  0x2e   : > { %s8364_s0 = sshra.s32 %s573_s19, 4  ;;  %s8365_s0 = int_to_ptr.hbm [resolvable:$true] %s8364_s0 }
  0x2f   : > { %s8366_s30 = scalar_lea.hbm %s8365_s0, 256  ;;  %p8372_p5 = scmp.lt.s32.totalorder %s8365_s0, %s11980_s20 }
  0x30   : > { %p8367_p2 = scmp.ne.s32.totalorder %s8365_s0, %s8366_s30  ;;  %p8373_p8 = scmp.lt.s32.totalorder %s8371_s3, %s8366_s30 }
  0x32   : > { %p8369_p4 = pnand %p8368_p3, %p8367_p2  ;;  %p8374_p10 = por %p8373_p8, %p8372_p5 }
  0x34   : > { %p8370_p7 = pneg %p8369_p4 }
  0x36   : > { %p8375_p9 = pnand %p8374_p10, %p8370_p7 }
  0x38   : > { %8378 = shalt.err (!%p8375_p9)
}
  0x39   : > { %s8462_s21 = smov 128   ;;  %s8463_s26 = smov 8  }
  0x3a   : > { %8128 = dma.hbm_to_vmem [thread:$0]  (!%p8645_p13), %s573_s19, 4096, %s575_s18, %s563_s23, %s8462_s21, %s8462_s21, %s8463_s26  }
  0x3b   : > { %p583_p2 = pnand %p7726_p0, %p582_p1 }
  0x3d   : > { %586 = sbr.rel (%p583_p2) target bundleno = 1809 (0x711), region = 100 }
  0x42   : > { %s8666_s27 = sand.u32 1, %s8452_s22  }
  0x43   : > { %s11929_s30 = sshll.u32 %s8666_s27, 8  ;;  %s589_s0 = scalar_lea.sflag [#allocation6], %s8666_s27 }
  0x44   : > { %s8672_s25 = scalar_lea.vmem [#allocation5], %s11929_s30 }
  0x45   : > { %8439 = dma.done.wait (%p8623_p6), %s589_s0, 4096  }
  0x46   : > { %8441 = vsyncadd (%p8623_p6), %s589_s0, 4294963200  ;;  %vm3564_vm0 = vcmask 130048   ;;  %vm3567_vm1 = vcmask 123904   ;;  %v8464_v0 = vmov -inf   ;;  %s11982_s19 = sld [smem:[#allocation69_spill]]  ;;  %v651_v3 = vld [vmem:[%s8672_s25] sm:$0xff] }
  0x47   : > { %3565 = vst.msk [vmem:[#allocation3] sm:$0xff] %vm3564_vm0, %v8464_v0  ;;  %v652_v4 = vld [vmem:[%s8672_s25 + $0x8] sm:$0xff]  ;;  %vm715_vm2 = vcmask 261120   ;;  %s11983_s7 = sld [smem:[#allocation75_spill]]  ;;  %v653_v7 = vld [vmem:[%s8672_s25 + $0x10] sm:$0xff]  ;;  %v654_v8 = vld [vmem:[%s8672_s25 + $0x18] sm:$0xff] }
  0x48   : > { %3566 = vst.msk [vmem:[#allocation3 + $0x8] sm:$0xff] %vm3564_vm0, %v8464_v0  ;;  %v8704_v5 = vpack.c.bf16 %v652_v4, %v651_v3  ;;  %v8745_v9 = vpack.c.bf16 %v654_v8, %v653_v7  ;;  %v655_v10 = vld [vmem:[%s8672_s25 + $0x20] sm:$0xff]  ;;  %v656_v11 = vld [vmem:[%s8672_s25 + $0x28] sm:$0xff]  ;;  %v657_v13 = vld [vmem:[%s8672_s25 + $0x30] sm:$0xff]  ;;  %v8465_v25 = vmov 0.0   ;;  %s11984_s26 = sld [smem:[#allocation70_spill]] }
  0x49   : > { %3568 = vst.msk [vmem:[#allocation3 + $0x10] sm:$0x3] %vm3567_vm1, %v8464_v0  ;;  %v8783_v12 = vpack.c.bf16 %v656_v11, %v655_v10  ;;  %v658_v14 = vld [vmem:[%s8672_s25 + $0x38] sm:$0xff]  ;;  %v659_v16 = vld [vmem:[%s8672_s25 + $0x40] sm:$0xff]  ;;  %v660_v17 = vld [vmem:[%s8672_s25 + $0x48] sm:$0xff]  ;;  %s11985_s18 = sld [smem:[#allocation71_spill]] }
  0x4a   : > { %3569 = vst.msk [vmem:[#allocation3 + $0x18] sm:$0xff] %vm3564_vm0, %v8464_v0  ;;  %v8809_v15 = vpack.c.bf16 %v658_v14, %v657_v13  ;;  %v8815_v18 = vpack.c.bf16 %v660_v17, %v659_v16  ;;  %v661_v19 = vld [vmem:[%s8672_s25 + $0x50] sm:$0xff]  ;;  %v662_v20 = vld [vmem:[%s8672_s25 + $0x58] sm:$0xff]  ;;  %v663_v22 = vld [vmem:[%s8672_s25 + $0x60] sm:$0xff]  ;;  %vm959_vm3 = vcmask 254976   ;;  %s11930_s23 = smov 96  }
  0x4b   : > { %3570 = vst.msk [vmem:[#allocation3 + $0x20] sm:$0xff] %vm3564_vm0, %v8464_v0  ;;  %v8821_v21 = vpack.c.bf16 %v662_v20, %v661_v19  ;;  %v664_v23 = vld [vmem:[%s8672_s25 + $0x68] sm:$0xff]  ;;  %v665_v26 = vld [vmem:[%s8672_s25 + $0x70] sm:$0xff]  ;;  %v666_v27 = vld [vmem:[%s8672_s25 + $0x78] sm:$0xff]  ;;  %s11939_s29 = smov 64   ;;  %s8468_s1 = smov 32  }
  0x4c   : > { %v8068_v1 = vld [vmem:[%s11982_s19 + $0x8] sm:$0xff]  ;;  %v8067_v2 = vld [vmem:[%s11982_s19] sm:$0xff]  ;;  %3571 = vst.msk [vmem:[#allocation3 + $0x28] sm:$0x3] %vm3567_vm1, %v8464_v0  ;;  %v8827_v24 = vpack.c.bf16 %v664_v23, %v663_v22  ;;  %v8865_v28 = vpack.c.bf16 %v666_v27, %v665_v26  ;;  %v669_v40 = vld [vmem:[%s8672_s25 + $0x90] sm:$0xff]  ;;  %s11986_s28 = sld [smem:[#allocation72_spill]] }
  0x4d   : > { %770 = vmatpush.bf16.msra.mxu0 %v8068_v1  ;;  %3572 = vst.msk [vmem:[#allocation3 + $0x30] sm:$0xff] %vm3564_vm0, %v8464_v0  ;;  %v8088_v6 = vld [vmem:[%s11983_s7 + $0x8] sm:$0xff]  ;;  %v8087_v29 = vld [vmem:[%s11983_s7] sm:$0xff]  ;;  %v670_v41 = vld [vmem:[%s8672_s25 + $0x98] sm:$0xff]  ;;  %s11987_s2 = smov 96   ;;  %vm2582_vm4 = vcmask 523264  }
  0x4e   : > { %3573 = vst.msk [vmem:[#allocation3 + $0x38] sm:$0xff] %vm3564_vm0, %v8464_v0  ;;  %v667_v30 = vld [vmem:[%s8672_s25 + $0x80] sm:$0xff]  ;;  %v668_v31 = vld [vmem:[%s8672_s25 + $0x88] sm:$0xff]  ;;  %v8958_v43 = vpack.c.bf16 %v670_v41, %v669_v40  ;;  %vm2615_vm5 = vcmask 785408   ;;  %s11988_s8 = sld [smem:[#allocation76_spill]]  ;;  %vm5466_vm6 = vcmask 1041409  }
  0x4f   : > { %3574 = vst.msk [vmem:[#allocation3 + $0x40] sm:$0x3] %vm3567_vm1, %v8464_v0  ;;  %v8905_v32 = vld [vmem:[%s11984_s26] ss:$0 sm:$0xff]  ;;  %v8918_v34 = vpack.c.bf16 %v668_v31, %v667_v30  ;;  %v672_v51 = vld [vmem:[%s8672_s25 + $0xa8] sm:$0xff]  ;;  %s11989_s9 = sld [smem:[#allocation77_spill]] }
  0x50   : > { %3575 = vst.msk [vmem:[#allocation3 + $0x48] sm:$0xff] %vm3564_vm0, %v8464_v0  ;;  %v8914_v33 = vld [vmem:[%s11985_s18] ss:$0 sm:$0xff]  ;;  %vm5468_vm7 = vcmask 1042434   ;;  %vm5470_vm8 = vcmask 1043459   ;;  %vm5472_vm9 = vcmask 1044484  }
  0x51   : > { %771 = vmatpush.bf16.msra.mxu0 %v8067_v2  ;;  %3576 = vst.msk [vmem:[#allocation3 + $0x50] sm:$0xff] %vm3564_vm0, %v8464_v0  ;;  %v671_v50 = vld [vmem:[%s8672_s25 + $0xa0] sm:$0xff]  ;;  %vm5474_vm10 = vcmask 1045509   ;;  %vm5476_vm11 = vcmask 1046534   ;;  %vm5478_vm12 = vcmask 1047559   ;;  %s8469_s21 = smov 16  }
  0x52   : > { %3577 = vst.msk [vmem:[#allocation3 + $0x58] sm:$0x3] %vm3567_vm1, %v8464_v0  ;;  %v8997_v55 = vpack.c.bf16 %v672_v51, %v671_v50  ;;  %v9033_v40 = vld [vmem:[%s11986_s28 + $0x88] sm:$0xff]  ;;  %v674_v50 = vld [vmem:[%s8672_s25 + $0xb8] sm:$0xff]  ;;  %s8470_s3 = smov 80   ;;  %s8471_s4 = smov 48  }
  0x53   : > { %3578 = vst.msk [vmem:[#allocation3 + $0x60] sm:$0xff] %vm3564_vm0, %v8464_v0  ;;  %8118 = vmatpush.bf16.msra.mxu3 %v9033_v40  ;;  %s11999_s10 = sld [smem:[#allocation78_spill]]  ;;  %s8472_s0 = smov 112   ;;  %vm5947_vm13 = vcmask 392192   ;;  %vm5964_vm14 = vcmask 654336   ;;  %vm5981_vm15 = vcmask 916480  }
  0x54   : > { %7737 = vmatmul.msk.bf16.vlgmr.msra.gmra.mxu0 %vm715_vm2, %v8704_v5  ;;  %3579 = vst.msk [vmem:[#allocation3 + $0x68] sm:$0xff] %vm3564_vm0, %v8464_v0  ;;  %s12028_s6 = smov 64   ;;  %s12068_s11 = sld [smem:[#allocation79_spill]] }
  0x55   : > { %3580 = vst.msk [vmem:[#allocation3 + $0x70] sm:$0x3] %vm3567_vm1, %v8464_v0  ;;  %3377 = vmatpush.bf16.msrb.mxu0 %v8088_v6  ;;  %s12077_s5 = sld [smem:[#allocation73_spill]] }
  0x56   : > { %3581 = vst.msk [vmem:[#allocation3 + $0x78] sm:$0xff] %vm3564_vm0, %v8464_v0 }
  0x57   : > { %3582 = vst.msk [vmem:[#allocation3 + $0x80] sm:$0xff] %vm3564_vm0, %v8464_v0 }
  0x58   : > { %3583 = vst.msk [vmem:[#allocation3 + $0x88] sm:$0x3] %vm3567_vm1, %v8464_v0 }
  0x59   : > { %3584 = vst.msk [vmem:[#allocation3 + $0x90] sm:$0xff] %vm3564_vm0, %v8464_v0  ;;  %3378 = vmatpush.bf16.msrb.mxu0 %v8087_v29 }
  0x5a   : > { %3585 = vst.msk [vmem:[#allocation3 + $0x98] sm:$0xff] %vm3564_vm0, %v8464_v0 }
  0x5b   : > { %3586 = vst.msk [vmem:[#allocation3 + $0xa0] sm:$0x3] %vm3567_vm1, %v8464_v0 }
  0x5c   : > { %3587 = vst.msk [vmem:[#allocation3 + $0xa8] sm:$0xff] %vm3564_vm0, %v8464_v0 }
  0x5d   : > { %3588 = vst.msk [vmem:[#allocation3 + $0xb0] sm:$0xff] %vm3564_vm0, %v8464_v0 }
  0x5e   : > { %3589 = vst.msk [vmem:[#allocation3 + $0xb8] sm:$0x3] %vm3567_vm1, %v8464_v0 }
  0x5f   : > { %3590 = vst.msk [vmem:[#allocation3 + $0xc0] sm:$0xff] %vm3564_vm0, %v8464_v0 }
  0x60   : > { %3591 = vst.msk [vmem:[#allocation3 + $0xc8] sm:$0xff] %vm3564_vm0, %v8464_v0 }
  0x61   : > { %3592 = vst.msk [vmem:[#allocation3 + $0xd0] sm:$0x3] %vm3567_vm1, %v8464_v0 }
  0x62   : > { %3593 = vst.msk [vmem:[#allocation3 + $0xd8] sm:$0xff] %vm3564_vm0, %v8464_v0 }
  0x63   : > { %3594 = vst.msk [vmem:[#allocation3 + $0xe0] sm:$0xff] %vm3564_vm0, %v8464_v0 }
  0x64   : > { %7738 = vmatmul.msk.bf16.gmra.mxu0 %vm715_vm2, %v8745_v9  ;;  %3595 = vst.msk [vmem:[#allocation3 + $0xe8] sm:$0x3] %vm3567_vm1, %v8464_v0 }
  0x65   : > { %3596 = vst.msk [vmem:[#allocation3 + $0xf0] sm:$0xff] %vm3564_vm0, %v8464_v0 }
  0x66   : > { %3597 = vst.msk [vmem:[#allocation3 + $0xf8] sm:$0xff] %vm3564_vm0, %v8464_v0 }
  0x67   : > { %3598 = vst.msk [vmem:[#allocation3 + $0x100] sm:$0x3] %vm3567_vm1, %v8464_v0 }
  0x68   : > { %3599 = vst.msk [vmem:[#allocation3 + $0x108] sm:$0xff] %vm3564_vm0, %v8464_v0 }
  0x69   : > { %3600 = vst.msk [vmem:[#allocation3 + $0x110] sm:$0xff] %vm3564_vm0, %v8464_v0 }
  0x6a   : > { %3601 = vst.msk [vmem:[#allocation3 + $0x118] sm:$0x3] %vm3567_vm1, %v8464_v0 }
  0x6b   : > { %3602 = vst.msk [vmem:[#allocation3 + $0x120] sm:$0xff] %vm3564_vm0, %v8464_v0 }
  0x6c   : > { %3603 = vst.msk [vmem:[#allocation3 + $0x128] sm:$0xff] %vm3564_vm0, %v8464_v0 }
  0x6d   : > { %3604 = vst.msk [vmem:[#allocation3 + $0x130] sm:$0x3] %vm3567_vm1, %v8464_v0 }
  0x6e   : > { %3605 = vst.msk [vmem:[#allocation3 + $0x138] sm:$0xff] %vm3564_vm0, %v8464_v0 }
  0x6f   : > { %3606 = vst.msk [vmem:[#allocation3 + $0x140] sm:$0xff] %vm3564_vm0, %v8464_v0 }
  0x70   : > { %3607 = vst.msk [vmem:[#allocation3 + $0x148] sm:$0x3] %vm3567_vm1, %v8464_v0 }
  0x71   : > { %3608 = vst.msk [vmem:[#allocation3 + $0x150] sm:$0xff] %vm3564_vm0, %v8464_v0 }
  0x72   : > { %3609 = vst.msk [vmem:[#allocation3 + $0x158] sm:$0xff] %vm3564_vm0, %v8464_v0 }
  0x73   : > { %3610 = vst.msk [vmem:[#allocation3 + $0x160] sm:$0x3] %vm3567_vm1, %v8464_v0 }
  0x74   : > { %7739 = vmatmul.msk.bf16.gmra.mxu0 %vm715_vm2, %v8783_v12  ;;  %3611 = vst.msk [vmem:[#allocation3 + $0x168] sm:$0xff] %vm3564_vm0, %v8464_v0 }
  0x75   : > { %3612 = vst.msk [vmem:[#allocation3 + $0x170] sm:$0xff] %vm3564_vm0, %v8464_v0 }
  0x76   : > { %3613 = vst.msk [vmem:[#allocation3 + $0x178] sm:$0x3] %vm3567_vm1, %v8464_v0 }
  0x77   : > { %3614 = vst.msk [vmem:[#allocation3 + $0x180] sm:$0xff] %vm3564_vm0, %v8464_v0 }
  0x78   : > { %3615 = vst.msk [vmem:[#allocation3 + $0x188] sm:$0xff] %vm3564_vm0, %v8464_v0 }
  0x79   : > { %3616 = vst.msk [vmem:[#allocation3 + $0x190] sm:$0x3] %vm3567_vm1, %v8464_v0 }
  0x7a   : > { %961 = vst.msk [vmem:[#allocation2 + $0x18] sm:$0xff] %vm715_vm2, %v8465_v25 }
  0x7b   : > { %962 = vst.msk [vmem:[#allocation2 + $0x20] sm:$0xff] %vm715_vm2, %v8465_v25 }
  0x7c   : > { %957 = vst.msk [vmem:[#allocation2] sm:$0xff] %vm715_vm2, %v8465_v25 }
  0x7d   : > { %958 = vst.msk [vmem:[#allocation2 + $0x8] sm:$0xff] %vm715_vm2, %v8465_v25 }
  0x7e   : > { %964 = vst.msk [vmem:[#allocation2 + $0x30] sm:$0xff] %vm715_vm2, %v8465_v25 }
  0x7f   : > { %965 = vst.msk [vmem:[#allocation2 + $0x38] sm:$0xff] %vm715_vm2, %v8465_v25 }
  0x80   : > { %967 = vst.msk [vmem:[#allocation2 + $0x48] sm:$0xff] %vm715_vm2, %v8465_v25 }
  0x81   : > { %968 = vst.msk [vmem:[#allocation2 + $0x50] sm:$0xff] %vm715_vm2, %v8465_v25 }
  0x82   : > { %970 = vst.msk [vmem:[#allocation2 + $0x60] sm:$0xff] %vm715_vm2, %v8465_v25 }
  0x83   : > { %971 = vst.msk [vmem:[#allocation2 + $0x68] sm:$0xff] %vm715_vm2, %v8465_v25 }
  0x84   : > { %7740 = vmatmul.msk.bf16.gmra.mxu0 %vm715_vm2, %v8809_v15  ;;  %973 = vst.msk [vmem:[#allocation2 + $0x78] sm:$0xff] %vm715_vm2, %v8465_v25  ;;  %v1109_v48 = vld [vmem:[#allocation2 + $0x1] sm:$0xff] }
  0x85   : > { %974 = vst.msk [vmem:[#allocation2 + $0x80] sm:$0xff] %vm715_vm2, %v8465_v25  ;;  %v1141_v52 = vpack.c.bf16 %v1109_v48, %v1109_v48  ;;  %v1173_v62 = vld [vmem:[#allocation2 + $0x2] sm:$0xff] }
  0x86   : > { %976 = vst.msk [vmem:[#allocation2 + $0x90] sm:$0xff] %vm715_vm2, %v8465_v25  ;;  %v1205_v17 = vpack.c.bf16 %v1173_v62, %v1173_v62 }
  0x87   : > { %977 = vst.msk [vmem:[#allocation2 + $0x98] sm:$0xff] %vm715_vm2, %v8465_v25  ;;  %v1734_v6 = vunpack.c.l.b16 %v1141_v52 }
  0x88   : > { %979 = vst.msk [vmem:[#allocation2 + $0xa8] sm:$0xff] %vm715_vm2, %v8465_v25 }
  0x89   : > { %980 = vst.msk [vmem:[#allocation2 + $0xb0] sm:$0xff] %vm715_vm2, %v8465_v25 }
  0x8a   : > { %982 = vst.msk [vmem:[#allocation2 + $0xc0] sm:$0xff] %vm715_vm2, %v8465_v25 }
  0x8b   : > { %983 = vst.msk [vmem:[#allocation2 + $0xc8] sm:$0xff] %vm715_vm2, %v8465_v25 }
  0x8c   : > { %985 = vst.msk [vmem:[#allocation2 + $0xd8] sm:$0xff] %vm715_vm2, %v8465_v25 }
  0x8d   : > { %986 = vst.msk [vmem:[#allocation2 + $0xe0] sm:$0xff] %vm715_vm2, %v8465_v25 }
  0x8e   : > { %988 = vst.msk [vmem:[#allocation2 + $0xf0] sm:$0xff] %vm715_vm2, %v8465_v25 }
  0x8f   : > { %989 = vst.msk [vmem:[#allocation2 + $0xf8] sm:$0xff] %vm715_vm2, %v8465_v25 }
  0x90   : > { %991 = vst.msk [vmem:[#allocation2 + $0x108] sm:$0xff] %vm715_vm2, %v8465_v25 }
  0x91   : > { %992 = vst.msk [vmem:[#allocation2 + $0x110] sm:$0xff] %vm715_vm2, %v8465_v25 }
  0x92   : > { %994 = vst.msk [vmem:[#allocation2 + $0x120] sm:$0xff] %vm715_vm2, %v8465_v25 }
  0x93   : > { %995 = vst.msk [vmem:[#allocation2 + $0x128] sm:$0xff] %vm715_vm2, %v8465_v25 }
  0x94   : > { %7741 = vmatmul.msk.bf16.gmra.mxu0 %vm715_vm2, %v8815_v18  ;;  %997 = vst.msk [vmem:[#allocation2 + $0x138] sm:$0xff] %vm715_vm2, %v8465_v25 }
  0x95   : > { %998 = vst.msk [vmem:[#allocation2 + $0x140] sm:$0xff] %vm715_vm2, %v8465_v25 }
  0x96   : > { %1000 = vst.msk [vmem:[#allocation2 + $0x150] sm:$0xff] %vm715_vm2, %v8465_v25 }
  0x97   : > { %1001 = vst.msk [vmem:[#allocation2 + $0x158] sm:$0xff] %vm715_vm2, %v8465_v25 }
  0x98   : > { %1003 = vst.msk [vmem:[#allocation2 + $0x168] sm:$0xff] %vm715_vm2, %v8465_v25 }
  0x99   : > { %1004 = vst.msk [vmem:[#allocation2 + $0x170] sm:$0xff] %vm715_vm2, %v8465_v25 }
  0x9a   : > { %1006 = vst.msk [vmem:[#allocation2 + $0x180] sm:$0xff] %vm715_vm2, %v8465_v25 }
  0x9b   : > { %1007 = vst.msk [vmem:[#allocation2 + $0x188] sm:$0xff] %vm715_vm2, %v8465_v25 }
  0x9c   : > { %1009 = vst.msk [vmem:[#allocation2 + $0x198] sm:$0xff] %vm715_vm2, %v8465_v25 }
  0x9d   : > { %1010 = vst.msk [vmem:[#allocation2 + $0x1a0] sm:$0xff] %vm715_vm2, %v8465_v25 }
  0x9e   : > { %5318 = vst.msk [vmem:[#allocation4] sm:$0xff] %vm3564_vm0, %v8465_v25 }
  0x9f   : > { %5319 = vst.msk [vmem:[#allocation4 + $0x8] sm:$0x3] %vm3567_vm1, %v8465_v25 }
  0xa0   : > { %5320 = vst.msk [vmem:[#allocation4 + $0x10] sm:$0xff] %vm3564_vm0, %v8465_v25 }
  0xa1   : > { %5321 = vst.msk [vmem:[#allocation4 + $0x18] sm:$0x3] %vm3567_vm1, %v8465_v25 }
  0xa2   : > { %5322 = vst.msk [vmem:[#allocation4 + $0x20] sm:$0xff] %vm3564_vm0, %v8465_v25 }
  0xa3   : > { %5323 = vst.msk [vmem:[#allocation4 + $0x28] sm:$0x3] %vm3567_vm1, %v8465_v25 }
  0xa4   : > { %7742 = vmatmul.msk.bf16.gmra.mxu0 %vm715_vm2, %v8821_v21  ;;  %5324 = vst.msk [vmem:[#allocation4 + $0x30] sm:$0xff] %vm3564_vm0, %v8465_v25 }
  0xa5   : > { %5325 = vst.msk [vmem:[#allocation4 + $0x38] sm:$0x3] %vm3567_vm1, %v8465_v25 }
  0xa6   : > { %5326 = vst.msk [vmem:[#allocation4 + $0x40] sm:$0xff] %vm3564_vm0, %v8465_v25 }
  0xa7   : > { %5327 = vst.msk [vmem:[#allocation4 + $0x48] sm:$0x3] %vm3567_vm1, %v8465_v25 }
  0xa8   : > { %5328 = vst.msk [vmem:[#allocation4 + $0x50] sm:$0xff] %vm3564_vm0, %v8465_v25 }
  0xa9   : > { %5329 = vst.msk [vmem:[#allocation4 + $0x58] sm:$0x3] %vm3567_vm1, %v8465_v25 }
  0xaa   : > { %5330 = vst.msk [vmem:[#allocation4 + $0x60] sm:$0xff] %vm3564_vm0, %v8465_v25 }
  0xab   : > { %5331 = vst.msk [vmem:[#allocation4 + $0x68] sm:$0x3] %vm3567_vm1, %v8465_v25 }
  0xac   : > { %5332 = vst.msk [vmem:[#allocation4 + $0x70] sm:$0xff] %vm3564_vm0, %v8465_v25 }
  0xad   : > { %5333 = vst.msk [vmem:[#allocation4 + $0x78] sm:$0x3] %vm3567_vm1, %v8465_v25 }
  0xae   : > { %5334 = vst.msk [vmem:[#allocation4 + $0x80] sm:$0xff] %vm3564_vm0, %v8465_v25 }
  0xaf   : > { %5335 = vst.msk [vmem:[#allocation4 + $0x88] sm:$0x3] %vm3567_vm1, %v8465_v25 }
  0xb0   : > { %5336 = vst.msk [vmem:[#allocation4 + $0x90] sm:$0xff] %vm3564_vm0, %v8465_v25 }
  0xb1   : > { %5337 = vst.msk [vmem:[#allocation4 + $0x98] sm:$0x3] %vm3567_vm1, %v8465_v25 }
  0xb2   : > { %963 = vst.msk [vmem:[#allocation2 + $0x28] sm:$0x3] %vm959_vm3, %v8465_v25 }
  0xb3   : > { %960 = vst.msk [vmem:[#allocation2 + $0x10] sm:$0x3] %vm959_vm3, %v8465_v25 }
  0xb4   : > { %7743 = vmatmul.msk.bf16.gmra.mxu0 %vm715_vm2, %v8827_v24  ;;  %966 = vst.msk [vmem:[#allocation2 + $0x40] sm:$0x3] %vm959_vm3, %v8465_v25 }
  0xb5   : > { %969 = vst.msk [vmem:[#allocation2 + $0x58] sm:$0x3] %vm959_vm3, %v8465_v25 }
  0xb6   : > { %972 = vst.msk [vmem:[#allocation2 + $0x70] sm:$0x3] %vm959_vm3, %v8465_v25 }
  0xb7   : > { %975 = vst.msk [vmem:[#allocation2 + $0x88] sm:$0x3] %vm959_vm3, %v8465_v25 }
  0xb8   : > { %978 = vst.msk [vmem:[#allocation2 + $0xa0] sm:$0x3] %vm959_vm3, %v8465_v25 }
  0xb9   : > { %981 = vst.msk [vmem:[#allocation2 + $0xb8] sm:$0x3] %vm959_vm3, %v8465_v25 }
  0xba   : > { %984 = vst.msk [vmem:[#allocation2 + $0xd0] sm:$0x3] %vm959_vm3, %v8465_v25  ;;  %v1110_v61 = vld [vmem:[#allocation2 + $0x9] sm:$0xff] }
  0xbb   : > { %v1174_v63 = vld [vmem:[#allocation2 + $0xa] sm:$0xff]  ;;  %987 = vst.msk [vmem:[#allocation2 + $0xe8] sm:$0x3] %vm959_vm3, %v8465_v25  ;;  %v1142_v4 = vpack.c.bf16 %v1110_v61, %v1110_v61 }
  0xbc   : > { %990 = vst.msk [vmem:[#allocation2 + $0x100] sm:$0x3] %vm959_vm3, %v8465_v25  ;;  %v1206_v19 = vpack.c.bf16 %v1174_v63, %v1174_v63 }
  0xbd   : > { %993 = vst.msk [vmem:[#allocation2 + $0x118] sm:$0x3] %vm959_vm3, %v8465_v25  ;;  %v1735_v16 = vunpack.c.l.b16 %v1142_v4 }
  0xbe   : > { %996 = vst.msk [vmem:[#allocation2 + $0x130] sm:$0x3] %vm959_vm3, %v8465_v25 }
  0xbf   : > { %999 = vst.msk [vmem:[#allocation2 + $0x148] sm:$0x3] %vm959_vm3, %v8465_v25  ;;  %v1766_v30 = vpack.c.b16 %v1735_v16, %v1734_v6 }
  0xc0   : > { %1002 = vst.msk [vmem:[#allocation2 + $0x160] sm:$0x3] %vm959_vm3, %v8465_v25 }
  0xc1   : > { %1005 = vst.msk [vmem:[#allocation2 + $0x178] sm:$0x3] %vm959_vm3, %v8465_v25  ;;  %1782 = vrot.lane.b32.xlu0 %v1766_v30, %s8468_s1 }
  0xc2   : > { %1008 = vst.msk [vmem:[#allocation2 + $0x190] sm:$0x3] %vm959_vm3, %v8465_v25 }
  0xc3   : > { %1011 = vst.msk [vmem:[#allocation2 + $0x1a8] sm:$0x3] %vm959_vm3, %v8465_v25 }
  0xc4   : > { %7744 = vmatmul.msk.bf16.gmra.mxu0 %vm715_vm2, %v8865_v28 }
  0xd1   : > { %v773_v35 = vpop.f32.mrf.mxu0 }
  0xd2   : > { %v857_v36 = vmul.f32 %v8905_v32, %v773_v35 }
  0xd4   : > { %v893_v37 = vadd.f32 %v8914_v33, %v857_v36  ;;  %7745 = vmatmul.msk.bf16.gmra.mxu0 %vm715_vm2, %v8918_v34  ;;  %v1846_v36 = vunpack.c.l.b16 %v1205_v17 }
  0xd6   : > { %v925_v38 = vmax.f32 %v893_v37, 0.0  ;;  %v1847_v37 = vunpack.c.l.b16 %v1206_v19 }
  0xd8   : > { %1013 = vst.msk [vmem:[#allocation2 + $0x19] sm:$0xff] %vm715_vm2, %v925_v38  ;;  %v1878_v48 = vpack.c.b16 %v1847_v37, %v1846_v36 }
  0xd9   : > { %v775_v39 = vpop.f32.mrf.mxu0 }
  0xda   : > { %v858_v42 = vmul.f32 %v8905_v32, %v775_v39  ;;  %1894 = vrot.lane.b32.xlu0 %v1878_v48, %s11939_s29 }
  0xdc   : > { %v894_v45 = vadd.f32 %v8914_v33, %v858_v42 }
  0xde   : > { %v926_v46 = vmax.f32 %v894_v45, 0.0  ;;  %v9044_v45 = vld [vmem:[%s11986_s28 + $0x80] sm:$0xff] }
  0xdf   : > { %v1237_v49 = vld [vmem:[#allocation2 + $0x18] sm:$0xff]  ;;  %8119 = vmatpush.bf16.msra.mxu3 %v9044_v45 }
  0xe0   : > { %1014 = vst.msk [vmem:[#allocation2 + $0x21] sm:$0xff] %vm715_vm2, %v926_v46  ;;  %v1269_v53 = vpack.c.bf16 %v1237_v49, %v1237_v49  ;;  %v1111_v22 = vld [vmem:[#allocation2 + $0x19] sm:$0xff]  ;;  %v673_v49 = vld [vmem:[%s8672_s25 + $0xb0] sm:$0xff] }
  0xe1   : > { %v778_v44 = vpop.f32.mrf.mxu0  ;;  %v1143_v35 = vpack.c.bf16 %v1111_v22, %v1111_v22  ;;  %v9058_v52 = vpack.c.bf16 %v674_v50, %v673_v49 }
  0xe2   : > { %v859_v54 = vmul.f32 %v8905_v32, %v778_v44  ;;  %v1958_v7 = vunpack.c.l.b16 %v1269_v53 }
  0xe3   : > { %v1736_v46 = vunpack.c.l.b16 %v1143_v35 }
  0xe4   : > { %7746 = vmatmul.msk.bf16.gmra.mxu0 %vm715_vm2, %v8958_v43  ;;  %v895_v10 = vadd.f32 %v8914_v33, %v859_v54 }
  0xe6   : > { %v927_v31 = vmax.f32 %v895_v10, 0.0 }
  0xe7   : > { %v1365_v57 = vld [vmem:[#allocation2 + $0x1a] sm:$0xff]  ;;  %v1366_v58 = vld [vmem:[#allocation2 + $0x22] sm:$0xff] }
  0xe8   : > { %v1238_v59 = vld [vmem:[#allocation2 + $0x20] sm:$0xff]  ;;  %v1397_v0 = vpack.c.bf16 %v1365_v57, %v1365_v57  ;;  %v1398_v1 = vpack.c.bf16 %v1366_v58, %v1366_v58  ;;  %1015 = vst.msk [vmem:[#allocation2 + $0x31] sm:$0xff] %vm715_vm2, %v927_v31 }
  0xe9   : > { %v780_v47 = vpop.f32.mrf.mxu0  ;;  %v1270_v2 = vpack.c.bf16 %v1238_v59, %v1238_v59  ;;  %v1112_v8 = vld [vmem:[#allocation2 + $0x21] sm:$0xff] }
  0xea   : > { %v860_v56 = vmul.f32 %v8905_v32, %v780_v47  ;;  %v2150_v11 = vunpack.c.l.b16 %v1397_v0  ;;  %v2151_v13 = vunpack.c.l.b16 %v1398_v1  ;;  %v1144_v29 = vpack.c.bf16 %v1112_v8, %v1112_v8 }
  0xeb   : > { %v1959_v14 = vunpack.c.l.b16 %v1270_v2 }
  0xec   : > { %v896_v20 = vadd.f32 %v8914_v33, %v860_v56  ;;  %v9017_v23 = vpack.c.b16 %v2151_v13, %v2150_v11  ;;  %v1737_v42 = vunpack.c.l.b16 %v1144_v29 }
  0xed   : > { %v1990_v26 = vpack.c.b16 %v1959_v14, %v1958_v7 }
  0xee   : > { %1896 = vrot.lane.b32.xlu2 %v9017_v23, %s11939_s29  ;;  %v928_v38 = vmax.f32 %v896_v20, 0.0  ;;  %v9052_v25 = vpack.c.b16 %v1737_v42, %v1736_v46  ;;  %2198 = vrot.lane.b32.xlu0 %v9017_v23, %s8468_s1 }
  0xef   : > { %2006 = vrot.lane.b32.xlu1 %v1990_v26, %s11930_s23  ;;  %v1239_v56 = vld [vmem:[#allocation2 + $0x30] sm:$0xff] }
  0xf0   : > { %1016 = vst.msk [vmem:[#allocation2 + $0x39] sm:$0xff] %vm715_vm2, %v928_v38  ;;  %v1113_v57 = vld [vmem:[#allocation2 + $0x31] sm:$0xff]  ;;  %v1271_v59 = vpack.c.bf16 %v1239_v56, %v1239_v56  ;;  %v675_v38 = vld [vmem:[%s8672_s25 + $0xc0] sm:$0xff] }
  0xf1   : > { %v783_v60 = vpop.f32.mrf.mxu0 }
  0xf2   : > { %v861_v3 = vmul.f32 %v8905_v32, %v783_v60  ;;  %v1960_v7 = vunpack.c.l.b16 %v1271_v59 }
  0xf4   : > { %7747 = vmatmul.msk.bf16.gmra.mxu0 %vm715_vm2, %v8997_v55  ;;  %v897_v27 = vadd.f32 %v8914_v33, %v861_v3  ;;  %v1145_v3 = vpack.c.bf16 %v1113_v57, %v1113_v57 }
  0xf6   : > { %v929_v41 = vmax.f32 %v897_v27, 0.0  ;;  %v1738_v31 = vunpack.c.l.b16 %v1145_v3 }
  0xf7   : > { %1784 = vrot.lane.b32.xlu1 %v9052_v25, %s8468_s1  ;;  %v1240_v58 = vld [vmem:[#allocation2 + $0x38] sm:$0xff] }
  0xf8   : > { %1017 = vst.msk [vmem:[#allocation2 + $0x49] sm:$0xff] %vm715_vm2, %v929_v41  ;;  %v1177_v60 = vld [vmem:[#allocation2 + $0x32] sm:$0xff]  ;;  %v1178_v61 = vld [vmem:[#allocation2 + $0x3a] sm:$0xff]  ;;  %v1272_v63 = vpack.c.bf16 %v1240_v58, %v1240_v58 }
  0xf9   : > { %v785_v39 = vpop.f32.mrf.mxu0  ;;  %v1209_v0 = vpack.c.bf16 %v1177_v60, %v1177_v60  ;;  %v1210_v1 = vpack.c.bf16 %v1178_v61, %v1178_v61  ;;  %v1114_v2 = vld [vmem:[#allocation2 + $0x39] sm:$0xff] }
  0xfa   : > { %v862_v44 = vmul.f32 %v8905_v32, %v785_v39  ;;  %v1146_v4 = vpack.c.bf16 %v1114_v2, %v1114_v2  ;;  %v1961_v8 = vunpack.c.l.b16 %v1272_v63  ;;  %v676_v39 = vld [vmem:[%s8672_s25 + $0xc8] sm:$0xff] }
  0xfb   : > { %v1850_v10 = vunpack.c.l.b16 %v1209_v0  ;;  %v1851_v11 = vunpack.c.l.b16 %v1210_v1  ;;  %v9079_v46 = vpack.c.bf16 %v676_v39, %v675_v38 }
  0xfc   : > { %v898_v47 = vadd.f32 %v8914_v33, %v862_v44  ;;  %v1991_v19 = vpack.c.b16 %v1961_v8, %v1960_v7  ;;  %v1739_v22 = vunpack.c.l.b16 %v1146_v4 }
  0xfd   : > { %v1880_v20 = vpack.c.b16 %v1851_v11, %v1850_v10 }
  0xfe   : > { %v930_v51 = vmax.f32 %v898_v47, 0.0  ;;  %2008 = vrot.lane.b32.xlu2 %v1991_v19, %s11930_s23  ;;  %v1768_v23 = vpack.c.b16 %v1739_v22, %v1738_v31 }
  0xff   : > { %1898 = vrot.lane.b32.xlu1 %v1880_v20, %s11939_s29  ;;  %v1241_v42 = vld [vmem:[#allocation2 + $0x48] sm:$0xff] }
 0x100   : > { %1018 = vst.msk [vmem:[#allocation2 + $0x51] sm:$0xff] %vm715_vm2, %v930_v51  ;;  %1786 = vrot.lane.b32.xlu0 %v1768_v23, %s8468_s1  ;;  %v1273_v47 = vpack.c.bf16 %v1241_v42, %v1241_v42 }
 0x101   : > { %v788_v53 = vpop.f32.mrf.mxu0 }
 0x102   : > { %v863_v54 = vmul.f32 %v8905_v32, %v788_v53  ;;  %v1115_v53 = vld [vmem:[#allocation2 + $0x49] sm:$0xff]  ;;  %v1962_v56 = vunpack.c.l.b16 %v1273_v47 }
 0x103   : > { %v1147_v60 = vpack.c.bf16 %v1115_v53, %v1115_v53 }
 0x104   : > { %v899_v62 = vadd.f32 %v8914_v33, %v863_v54  ;;  %7748 = vmatmul.msk.bf16.gmra.mxu0 %vm715_vm2, %v9058_v52 }
 0x105   : > { %v1740_v7 = vunpack.c.l.b16 %v1147_v60 }
 0x106   : > { %v931_v6 = vmax.f32 %v899_v62, 0.0  ;;  %2310 = vrot.lane.b32.xlu2 %v1991_v19, %s11939_s29 }
 0x107   : > { %v1560_v13 = vld [vmem:[#allocation2 + $0x4a] sm:$0xff]  ;;  %v1561_v14 = vld [vmem:[#allocation2 + $0x52] sm:$0xff]  ;;  %2422 = vrot.lane.b32.xlu1 %v1768_v23, %s11930_s23 }
 0x108   : > { %1019 = vst.msk [vmem:[#allocation2 + $0x61] sm:$0xff] %vm715_vm2, %v931_v6  ;;  %v1592_v16 = vpack.c.bf16 %v1560_v13, %v1560_v13  ;;  %v1593_v17 = vpack.c.bf16 %v1561_v14, %v1561_v14  ;;  %v1242_v37 = vld [vmem:[#allocation2 + $0x50] sm:$0xff]  ;;  %2200 = vrot.lane.b32.xlu0 %v1880_v20, %s8468_s1 }
 0x109   : > { %v790_v26 = vpop.f32.mrf.mxu0  ;;  %v1274_v44 = vpack.c.bf16 %v1242_v37, %v1242_v37  ;;  %v1116_v49 = vld [vmem:[#allocation2 + $0x51] sm:$0xff] }
 0x10a   : > { %v864_v27 = vmul.f32 %v8905_v32, %v790_v26  ;;  %v2488_v29 = vunpack.c.l.b16 %v1592_v16  ;;  %v2489_v30 = vunpack.c.l.b16 %v1593_v17  ;;  %v1148_v57 = vpack.c.bf16 %v1116_v49, %v1116_v49  ;;  %v677_v14 = vld [vmem:[%s8672_s25 + $0xd0] sm:$0xff]  ;;  %v678_v16 = vld [vmem:[%s8672_s25 + $0xd8] sm:$0xff] }
 0x10b   : > { %v1963_v51 = vunpack.c.l.b16 %v1274_v44  ;;  %v9102_v22 = vpack.c.bf16 %v678_v16, %v677_v14 }
 0x10c   : > { %v900_v35 = vadd.f32 %v8914_v33, %v864_v27  ;;  %v9072_v36 = vpack.c.b16 %v2489_v30, %v2488_v29  ;;  %v1741_v1 = vunpack.c.l.b16 %v1148_v57 }
 0x10d   : > { %v1992_v59 = vpack.c.b16 %v1963_v51, %v1962_v56 }
 0x10e   : > { %v932_v41 = vmax.f32 %v900_v35, 0.0  ;;  %7826 = vmatmul.msk.bf16.vlgmr.msra.gmra.mxu3 %vm715_vm2, %v9072_v36  ;;  %v1769_v13 = vpack.c.b16 %v1741_v1, %v1740_v7 }
 0x10f   : > { %2010 = vrot.lane.b32.xlu2 %v1992_v59, %s11930_s23  ;;  %1900 = vrot.lane.b32.xlu1 %v9072_v36, %s11939_s29  ;;  %v1243_v19 = vld [vmem:[#allocation2 + $0x60] sm:$0xff] }
 0x110   : > { %1020 = vst.msk [vmem:[#allocation2 + $0x69] sm:$0xff] %vm715_vm2, %v932_v41  ;;  %1788 = vrot.lane.b32.xlu0 %v1769_v13, %s8468_s1  ;;  %v1275_v26 = vpack.c.bf16 %v1243_v19, %v1243_v19  ;;  %v1117_v35 = vld [vmem:[#allocation2 + $0x61] sm:$0xff] }
 0x111   : > { %v793_v48 = vpop.f32.mrf.mxu0  ;;  %v1149_v42 = vpack.c.bf16 %v1117_v35, %v1117_v35 }
 0x112   : > { %v865_v50 = vmul.f32 %v8905_v32, %v793_v48  ;;  %v1964_v23 = vunpack.c.l.b16 %v1275_v26 }
 0x113   : > { %v1742_v57 = vunpack.c.l.b16 %v1149_v42 }
 0x114   : > { %v901_v54 = vadd.f32 %v8914_v33, %v865_v50  ;;  %7749 = vmatmul.msk.bf16.gmra.mxu0 %vm715_vm2, %v9079_v46 }
 0x116   : > { %v933_v58 = vmax.f32 %v901_v54, 0.0 }
 0x117   : > { %v1562_v61 = vld [vmem:[#allocation2 + $0x62] sm:$0xff]  ;;  %v1563_v62 = vld [vmem:[#allocation2 + $0x6a] sm:$0xff]  ;;  %2312 = vrot.lane.b32.xlu2 %v1992_v59, %s11939_s29  ;;  %2424 = vrot.lane.b32.xlu1 %v1769_v13, %s11930_s23 }
 0x118   : > { %1021 = vst.msk [vmem:[#allocation2 + $0x79] sm:$0xff] %vm715_vm2, %v933_v58  ;;  %v1594_v63 = vpack.c.bf16 %v1562_v61, %v1562_v61  ;;  %v1595_v0 = vpack.c.bf16 %v1563_v62, %v1563_v62  ;;  %v1244_v11 = vld [vmem:[#allocation2 + $0x68] sm:$0xff]  ;;  %2202 = vrot.lane.b32.xlu0 %v9072_v36, %s8468_s1  ;;  %v8076_v58 = vld [vmem:[%s11986_s28 + $0x38] sm:$0xff]  ;;  %v679_v62 = vld [vmem:[%s8672_s25 + $0xe0] sm:$0xff] }
 0x119   : > { %v795_v2 = vpop.f32.mrf.mxu0  ;;  %v1276_v20 = vpack.c.bf16 %v1244_v11, %v1244_v11  ;;  %v1118_v29 = vld [vmem:[#allocation2 + $0x69] sm:$0xff]  ;;  %2984 = vmatpush.bf16.msra.mxu1 %v8076_v58 }
 0x11a   : > { %v866_v3 = vmul.f32 %v8905_v32, %v795_v2  ;;  %v2490_v4 = vunpack.c.l.b16 %v1594_v63  ;;  %v2491_v6 = vunpack.c.l.b16 %v1595_v0  ;;  %v1150_v38 = vpack.c.bf16 %v1118_v29, %v1118_v29  ;;  %v680_v63 = vld [vmem:[%s8672_s25 + $0xe8] sm:$0xff]  ;;  %v8075_v13 = vld [vmem:[%s11986_s28 + $0x30] sm:$0xff] }
 0x11b   : > { %v1965_v31 = vunpack.c.l.b16 %v1276_v20  ;;  %v8074_v20 = vld [vmem:[%s11986_s28 + $0x28] sm:$0xff] }
 0x11c   : > { %v902_v8 = vadd.f32 %v8914_v33, %v866_v3  ;;  %v9095_v10 = vpack.c.b16 %v2491_v6, %v2490_v4  ;;  %v1743_v50 = vunpack.c.l.b16 %v1150_v38  ;;  %v9129_v3 = vpack.c.bf16 %v680_v63, %v679_v62 }
 0x11d   : > { %v1993_v41 = vpack.c.b16 %v1965_v31, %v1964_v23  ;;  %2985 = vmatpush.bf16.msra.mxu1 %v8075_v13 }
 0x11e   : > { %v934_v17 = vmax.f32 %v902_v8, 0.0  ;;  %7827 = vmatmul.msk.bf16.gmra.mxu3 %vm715_vm2, %v9095_v10  ;;  %v1770_v61 = vpack.c.b16 %v1743_v50, %v1742_v57  ;;  %v682_v57 = vld [vmem:[%s8672_s25 + $0xf8] sm:$0xff] }
 0x11f   : > { %2012 = vrot.lane.b32.xlu2 %v1993_v41, %s11930_s23  ;;  %1902 = vrot.lane.b32.xlu1 %v9095_v10, %s11939_s29  ;;  %v1245_v1 = vld [vmem:[#allocation2 + $0x78] sm:$0xff] }
 0x120   : > { %1022 = vst.msk [vmem:[#allocation2 + $0x81] sm:$0xff] %vm715_vm2, %v934_v17  ;;  %1790 = vrot.lane.b32.xlu0 %v1770_v61, %s8468_s1  ;;  %v1277_v4 = vpack.c.bf16 %v1245_v1, %v1245_v1  ;;  %v1119_v14 = vld [vmem:[#allocation2 + $0x79] sm:$0xff] }
 0x121   : > { %v798_v27 = vpop.f32.mrf.mxu0  ;;  %v1151_v29 = vpack.c.bf16 %v1119_v14, %v1119_v14  ;;  %2986 = vmatpush.bf16.msra.mxu1 %v8074_v20 }
 0x122   : > { %v867_v30 = vmul.f32 %v8905_v32, %v798_v27  ;;  %v1966_v17 = vunpack.c.l.b16 %v1277_v4 }
 0x124   : > { %v903_v37 = vadd.f32 %v8914_v33, %v867_v30  ;;  %7750 = vmatmul.msk.bf16.gmra.mxu0 %vm715_vm2, %v9102_v22 }
 0x126   : > { %v935_v39 = vmax.f32 %v903_v37, 0.0 }
 0x127   : > { %v1564_v44 = vld [vmem:[#allocation2 + $0x7a] sm:$0xff]  ;;  %v1565_v47 = vld [vmem:[#allocation2 + $0x82] sm:$0xff]  ;;  %2314 = vrot.lane.b32.xlu2 %v1993_v41, %s11939_s29  ;;  %2426 = vrot.lane.b32.xlu1 %v1770_v61, %s11930_s23 }
 0x128   : > { %1023 = vst.msk [vmem:[#allocation2 + $0x91] sm:$0xff] %vm715_vm2, %v935_v39  ;;  %v1596_v48 = vpack.c.bf16 %v1564_v44, %v1564_v44  ;;  %v1597_v49 = vpack.c.bf16 %v1565_v47, %v1565_v47  ;;  %v1246_v36 = vld [vmem:[#allocation2 + $0x80] sm:$0xff]  ;;  %2204 = vrot.lane.b32.xlu0 %v9095_v10, %s8468_s1  ;;  %v1744_v47 = vunpack.c.l.b16 %v1151_v29 }
 0x129   : > { %v800_v51 = vpop.f32.mrf.mxu0  ;;  %v1278_v2 = vpack.c.bf16 %v1246_v36, %v1246_v36  ;;  %v1120_v7 = vld [vmem:[#allocation2 + $0x81] sm:$0xff] }
 0x12a   : > { %v868_v53 = vmul.f32 %v8905_v32, %v800_v51  ;;  %v2492_v54 = vunpack.c.l.b16 %v1596_v48  ;;  %v2493_v56 = vunpack.c.l.b16 %v1597_v49  ;;  %v1152_v19 = vpack.c.bf16 %v1120_v7, %v1120_v7  ;;  %v8073_v10 = vld [vmem:[%s11986_s28 + $0x20] sm:$0xff] }
 0x12b   : > { %v1967_v11 = vunpack.c.l.b16 %v1278_v2  ;;  %2987 = vmatpush.bf16.msra.mxu1 %v8073_v10 }
 0x12c   : > { %v904_v59 = vadd.f32 %v8914_v33, %v868_v53  ;;  %v9122_v60 = vpack.c.b16 %v2493_v56, %v2492_v54  ;;  %v1745_v23 = vunpack.c.l.b16 %v1152_v19  ;;  %v681_v56 = vld [vmem:[%s8672_s25 + $0xf0] sm:$0xff] }
 0x12d   : > { %v1994_v27 = vpack.c.b16 %v1967_v11, %v1966_v17  ;;  %v9162_v62 = vpack.c.bf16 %v682_v57, %v681_v56 }
 0x12e   : > { %v936_v0 = vmax.f32 %v904_v59, 0.0  ;;  %7828 = vmatmul.msk.bf16.gmra.mxu3 %vm715_vm2, %v9122_v60  ;;  %v1771_v53 = vpack.c.b16 %v1745_v23, %v1744_v47 }
 0x12f   : > { %2014 = vrot.lane.b32.xlu2 %v1994_v27, %s11930_s23  ;;  %1904 = vrot.lane.b32.xlu1 %v9122_v60, %s11939_s29  ;;  %v1121_v51 = vld [vmem:[#allocation2 + $0x91] sm:$0xff] }
 0x130   : > { %1024 = vst.msk [vmem:[#allocation2 + $0x99] sm:$0xff] %vm715_vm2, %v936_v0  ;;  %v1247_v59 = vld [vmem:[#allocation2 + $0x90] sm:$0xff]  ;;  %v1153_v61 = vpack.c.bf16 %v1121_v51, %v1121_v51  ;;  %1792 = vrot.lane.b32.xlu0 %v1771_v53, %s8468_s1  ;;  %v8070_v51 = vld [vmem:[%s11986_s28 + $0x8] sm:$0xff] }
 0x131   : > { %v803_v6 = vpop.f32.mrf.mxu0  ;;  %v1279_v63 = vpack.c.bf16 %v1247_v59, %v1247_v59 }
 0x132   : > { %v869_v8 = vmul.f32 %v8905_v32, %v803_v6  ;;  %v1746_v6 = vunpack.c.l.b16 %v1153_v61 }
 0x134   : > { %v905_v16 = vadd.f32 %v8914_v33, %v869_v8  ;;  %7751 = vmatmul.msk.bf16.gmra.mxu0 %vm715_vm2, %v9129_v3  ;;  %v1968_v8 = vunpack.c.l.b16 %v1279_v63 }
 0x136   : > { %v937_v26 = vmax.f32 %v905_v16, 0.0 }
 0x137   : > { %v1566_v30 = vld [vmem:[#allocation2 + $0x92] sm:$0xff]  ;;  %v1567_v31 = vld [vmem:[#allocation2 + $0x9a] sm:$0xff]  ;;  %2316 = vrot.lane.b32.xlu2 %v1994_v27, %s11939_s29  ;;  %2428 = vrot.lane.b32.xlu1 %v1771_v53, %s11930_s23 }
 0x138   : > { %1025 = vst.msk [vmem:[#allocation2 + $0xa9] sm:$0xff] %vm715_vm2, %v937_v26  ;;  %v1598_v35 = vpack.c.bf16 %v1566_v30, %v1566_v30  ;;  %v1599_v37 = vpack.c.bf16 %v1567_v31, %v1567_v31  ;;  %v1122_v44 = vld [vmem:[#allocation2 + $0x99] sm:$0xff] }
 0x139   : > { %v805_v38 = vpop.f32.mrf.mxu0  ;;  %v1248_v50 = vld [vmem:[#allocation2 + $0x98] sm:$0xff]  ;;  %v1154_v54 = vpack.c.bf16 %v1122_v44, %v1122_v44 }
 0x13a   : > { %v870_v39 = vmul.f32 %v8905_v32, %v805_v38  ;;  %v2494_v41 = vunpack.c.l.b16 %v1598_v35  ;;  %v2495_v42 = vunpack.c.l.b16 %v1599_v37  ;;  %v1280_v36 = vpack.c.bf16 %v1248_v50, %v1248_v50  ;;  %v8072_v38 = vld [vmem:[%s11986_s28 + $0x18] sm:$0xff] }
 0x13b   : > { %v1747_v0 = vunpack.c.l.b16 %v1154_v54  ;;  %2988 = vmatpush.bf16.msra.mxu1 %v8072_v38  ;;  %v8084_v53 = vld [vmem:[%s11986_s28 + $0x78] sm:$0xff]  ;;  %v1045_v38 = vld [vmem:[#allocation2] sm:$0xff] }
 0x13c   : > { %v906_v48 = vadd.f32 %v8914_v33, %v870_v39  ;;  %v9155_v49 = vpack.c.b16 %v2495_v42, %v2494_v41  ;;  %v1969_v4 = vunpack.c.l.b16 %v1280_v36  ;;  %3073 = vmatpush.bf16.msra.mxu2 %v8084_v53 }
 0x13d   : > { %v1772_v11 = vpack.c.b16 %v1747_v0, %v1746_v6 }
 0x13e   : > { %v938_v58 = vmax.f32 %v906_v48, 0.0  ;;  %7829 = vmatmul.msk.bf16.gmra.mxu3 %vm715_vm2, %v9155_v49  ;;  %v1995_v14 = vpack.c.b16 %v1969_v4, %v1968_v8 }
 0x13f   : > { %1794 = vrot.lane.b32.xlu0 %v1772_v11, %s8468_s1  ;;  %2206 = vrot.lane.b32.xlu1 %v9122_v60, %s8468_s1  ;;  %v1123_v23 = vld [vmem:[#allocation2 + $0xa9] sm:$0xff] }
 0x140   : > { %1026 = vst.msk [vmem:[#allocation2 + $0xb1] sm:$0xff] %vm715_vm2, %v938_v58  ;;  %2016 = vrot.lane.b32.xlu2 %v1995_v14, %s11930_s23  ;;  %v8071_v60 = vld [vmem:[%s11986_s28 + $0x10] sm:$0xff]  ;;  %v1155_v42 = vpack.c.bf16 %v1123_v23, %v1123_v23  ;;  %v8069_v58 = vld [vmem:[%s11986_s28] sm:$0xff]  ;;  %v1249_v61 = vld [vmem:[#allocation2 + $0xa8] sm:$0xff] }
 0x141   : > { %v808_v1 = vpop.f32.mrf.mxu0  ;;  %2989 = vmatpush.bf16.msra.mxu1 %v8071_v60  ;;  %v1281_v8 = vpack.c.bf16 %v1249_v61, %v1249_v61  ;;  %v1046_v23 = vld [vmem:[#allocation2 + $0x8] sm:$0xff] }
 0x142   : > { %v871_v2 = vmul.f32 %v8905_v32, %v808_v1  ;;  %v1748_v48 = vunpack.c.l.b16 %v1155_v42 }
 0x144   : > { %v907_v7 = vadd.f32 %v8914_v33, %v871_v2  ;;  %7752 = vmatmul.msk.bf16.gmra.mxu0 %vm715_vm2, %v9162_v62 }
 0x145   : > { %2990 = vmatpush.bf16.msra.mxu1 %v8070_v51 }
 0x146   : > { %v939_v13 = vmax.f32 %v907_v7, 0.0 }
 0x147   : > { %v1568_v16 = vld [vmem:[#allocation2 + $0xaa] sm:$0xff]  ;;  %v1569_v17 = vld [vmem:[#allocation2 + $0xb2] sm:$0xff]  ;;  %2318 = vrot.lane.b32.xlu0 %v1995_v14, %s11939_s29  ;;  %1906 = vrot.lane.b32.xlu1 %v9155_v49, %s11939_s29 }
 0x148   : > { %1027 = vst.msk [vmem:[#allocation2 + $0xc1] sm:$0xff] %vm715_vm2, %v939_v13  ;;  %v1600_v19 = vpack.c.bf16 %v1568_v16, %v1568_v16  ;;  %v1601_v20 = vpack.c.bf16 %v1569_v17, %v1569_v17  ;;  %v1124_v31 = vld [vmem:[#allocation2 + $0xb1] sm:$0xff]  ;;  %2430 = vrot.lane.b32.xlu2 %v1772_v11, %s11930_s23  ;;  %v8082_v16 = vld [vmem:[%s11986_s28 + $0x68] sm:$0xff]  ;;  %v9220_v17 = vpop.permute.xlu2 %1896  ;;  %s12106_s23 = sshll.u32 %s8666_s27, 8 }
 0x149   : > { %v810_v26 = vpop.f32.mrf.mxu0  ;;  %v1156_v39 = vpack.c.bf16 %v1124_v31, %v1124_v31  ;;  %v1250_v57 = vld [vmem:[#allocation2 + $0xb0] sm:$0xff]  ;;  %2991 = vmatpush.bf16.msra.mxu1 %v8069_v58 }
 0x14a   : > { %v872_v27 = vmul.f32 %v8905_v32, %v810_v26  ;;  %v2496_v29 = vunpack.c.l.b16 %v1600_v19  ;;  %v2497_v30 = vunpack.c.l.b16 %v1601_v20  ;;  %v1282_v1 = vpack.c.bf16 %v1250_v57, %v1250_v57 }
 0x14b   : > { %v1749_v44 = vunpack.c.l.b16 %v1156_v39 }
 0x14c   : > { %v908_v35 = vadd.f32 %v8914_v33, %v872_v27  ;;  %v9178_v37 = vpack.c.b16 %v2497_v30, %v2496_v29  ;;  %v1971_v19 = vunpack.c.l.b16 %v1282_v1  ;;  %v1970_v27 = vunpack.c.l.b16 %v1281_v8  ;;  %v1783_v8 = vpop.permute.xlu0 %1782 }
 0x14d   : > { %v1773_v54 = vpack.c.b16 %v1749_v44, %v1748_v48 }
 0x14e   : > { %v940_v41 = vmax.f32 %v908_v35, 0.0  ;;  %7830 = vmatmul.msk.bf16.gmra.mxu3 %vm715_vm2, %v9178_v37  ;;  %v1996_v30 = vpack.c.b16 %v1971_v19, %v1970_v27 }
 0x14f   : > { %1796 = vrot.lane.b32.xlu0 %v1773_v54, %s8468_s1  ;;  %1908 = vrot.lane.b32.xlu1 %v9178_v37, %s11939_s29  ;;  %v1251_v26 = vld [vmem:[#allocation2 + $0xc0] sm:$0xff] }
 0x150   : > { %1028 = vst.msk [vmem:[#allocation2 + $0xc9] sm:$0xff] %vm715_vm2, %v940_v41  ;;  %2208 = vrot.lane.b32.xlu2 %v9155_v49, %s8468_s1  ;;  %v8081_v49 = vld [vmem:[%s11986_s28 + $0x60] sm:$0xff]  ;;  %v1283_v31 = vpack.c.bf16 %v1251_v26, %v1251_v26  ;;  %v8080_v41 = vld [vmem:[%s11986_s28 + $0x58] sm:$0xff] }
 0x151   : > { %v813_v47 = vpop.f32.mrf.mxu0  ;;  %v1506_v53 = vld [vmem:[#allocation2 + $0xc1] sm:$0xff] }
 0x152   : > { %v873_v10 = vmul.f32 %v8905_v32, %v813_v47  ;;  %v1078_v47 = vpack.c.bf16 %v1046_v23, %v1046_v23 }
 0x154   : > { %v909_v50 = vadd.f32 %v8914_v33, %v873_v10  ;;  %7849 = vmatmul.msk.bf16.vlgmr.msrb.gmra.mxu0 %vm715_vm2, %v8704_v5  ;;  %v8083_v5 = vld [vmem:[%s11986_s28 + $0x70] sm:$0xff]  ;;  %v1077_v10 = vpack.c.bf16 %v1045_v38, %v1045_v38 }
 0x155   : > { %3074 = vmatpush.bf16.msra.mxu2 %v8083_v5 }
 0x156   : > { %v941_v56 = vmax.f32 %v909_v50, 0.0  ;;  %v1972_v50 = vunpack.c.l.b16 %v1283_v31  ;;  %v1654_v61 = vunpack.c.l.b16 %v1077_v10 }
 0x157   : > { %v1570_v59 = vld [vmem:[#allocation2 + $0xc2] sm:$0xff]  ;;  %v1571_v36 = vld [vmem:[#allocation2 + $0xca] sm:$0xff]  ;;  %2432 = vrot.lane.b32.xlu0 %v1773_v54, %s11987_s2  ;;  %2320 = vrot.lane.b32.xlu1 %v1996_v30, %s11939_s29 }
 0x158   : > { %1029 = vst.msk [vmem:[#allocation2 + $0xd9] sm:$0xff] %vm715_vm2, %v941_v56  ;;  %v1602_v63 = vpack.c.bf16 %v1570_v59, %v1570_v59  ;;  %v1603_v0 = vpack.c.bf16 %v1571_v36, %v1571_v36  ;;  %v1252_v14 = vld [vmem:[#allocation2 + $0xc8] sm:$0xff]  ;;  %2018 = vrot.lane.b32.xlu2 %v1996_v30, %s11987_s2  ;;  %v9237_v48 = vpop.permute.xlu2 %2008  ;;  %v8079_v54 = vld [vmem:[%s11986_s28 + $0x50] sm:$0xff]  ;;  %v1655_v36 = vunpack.c.l.b16 %v1078_v47  ;;  %v1895_v47 = vpop.permute.xlu0 %1894 }
 0x159   : > { %v815_v2 = vpop.f32.mrf.mxu0  ;;  %3075 = vmatpush.bf16.msra.mxu2 %v8082_v16  ;;  %v1284_v29 = vpack.c.bf16 %v1252_v14, %v1252_v14  ;;  %v1507_v44 = vld [vmem:[#allocation2 + $0xc9] sm:$0xff] }
 0x15a   : > { %v874_v4 = vmul.f32 %v8905_v32, %v815_v2  ;;  %v2498_v6 = vunpack.c.l.b16 %v1602_v63  ;;  %v2499_v7 = vunpack.c.l.b16 %v1603_v0  ;;  %v1539_v57 = vpack.c.bf16 %v1507_v44, %v1507_v44 }
 0x15b   : > { %v1973_v60 = vunpack.c.l.b16 %v1284_v29  ;;  %v1538_v63 = vpack.c.bf16 %v1506_v53, %v1506_v53 }
 0x15c   : > { %v910_v11 = vadd.f32 %v8914_v33, %v874_v4  ;;  %v2524_v13 = vpack.c.b16 %v2499_v7, %v2498_v6  ;;  %v8078_v7 = vld [vmem:[%s11986_s28 + $0x48] sm:$0xff] }
 0x15d   : > { %3076 = vmatpush.bf16.msra.mxu2 %v8081_v49  ;;  %v1997_v56 = vpack.c.b16 %v1973_v60, %v1972_v50  ;;  %v2386_v49 = vunpack.c.l.b16 %v1538_v63 }
 0x15e   : > { %v942_v20 = vmax.f32 %v910_v11, 0.0  ;;  %7831 = vmatmul.msk.bf16.gmra.mxu3 %vm715_vm2, %v2524_v13  ;;  %v2387_v11 = vunpack.c.l.b16 %v1539_v57 }
 0x15f   : > { %2210 = vrot.lane.b32.xlu0 %v9178_v37, %s8468_s1  ;;  %1910 = vrot.lane.b32.xlu1 %v2524_v13, %s11939_s29  ;;  %v1253_v29 = vld [vmem:[#allocation2 + $0xd8] sm:$0xff]  ;;  %v8077_v13 = vld [vmem:[%s11986_s28 + $0x40] sm:$0xff] }
 0x160   : > { %1030 = vst.msk [vmem:[#allocation2 + $0xe1] sm:$0xff] %vm715_vm2, %v942_v20  ;;  %2020 = vrot.lane.b32.xlu2 %v1997_v56, %s11987_s2  ;;  %v1686_v20 = vpack.c.b16 %v1655_v36, %v1654_v61  ;;  %v9252_v26 = vpop.permute.xlu2 %2310  ;;  %v1127_v30 = vld [vmem:[#allocation2 + $0xd9] sm:$0xff]  ;;  %v2412_v31 = vpack.c.b16 %v2387_v11, %v2386_v49 }
 0x161   : > { %v818_v35 = vpop.f32.mrf.mxu0  ;;  %3077 = vmatpush.bf16.msra.mxu2 %v8080_v41  ;;  %v2007_v1 = vpop.permute.xlu1 %2006  ;;  %v1159_v41 = vpack.c.bf16 %v1127_v30, %v1127_v30 }
 0x162   : > { %v875_v39 = vmul.f32 %v8905_v32, %v818_v35  ;;  %v2536_v38 = vsel %vm715_vm2, %v1686_v20, %v1783_v8  ;;  %v9278_v20 = vld [vmem:[%s11984_s26] ss:$0 sm:$0xff]  ;;  %v2199_v30 = vpop.permute.xlu0 %2198 }
 0x163   : > { %v2584_v53 = vsel %vm2582_vm4, %v2536_v38, %v1895_v47 }
 0x164   : > { %v911_v42 = vadd.f32 %v8914_v33, %v875_v39  ;;  %7850 = vmatmul.msk.bf16.gmra.mxu0 %vm715_vm2, %v8745_v9  ;;  %v1285_v39 = vpack.c.bf16 %v1253_v29, %v1253_v29 }
 0x165   : > { %3078 = vmatpush.bf16.msra.mxu2 %v8079_v54  ;;  %v1047_v54 = vld [vmem:[#allocation2 + $0x18] sm:$0xff] }
 0x166   : > { %v943_v51 = vmax.f32 %v911_v42, 0.0  ;;  %v1048_v42 = vld [vmem:[#allocation2 + $0x20] sm:$0xff]  ;;  %v1079_v63 = vpack.c.bf16 %v1047_v54, %v1047_v54  ;;  %v2666_v54 = vsel %vm715_vm2, %v9052_v25, %v2199_v30 }
 0x167   : > { %v1572_v58 = vld [vmem:[#allocation2 + $0xda] sm:$0xff]  ;;  %v1573_v5 = vld [vmem:[#allocation2 + $0xe2] sm:$0xff]  ;;  %1798 = vrot.lane.b32.xlu0 %v2412_v31, %s8468_s1  ;;  %2434 = vrot.lane.b32.xlu1 %v2412_v31, %s11987_s2  ;;  %v2713_v25 = vsel %vm2582_vm4, %v2666_v54, %v9252_v26 }
 0x168   : > { %1031 = vst.msk [vmem:[#allocation2 + $0xf1] sm:$0xff] %vm715_vm2, %v943_v51  ;;  %v1604_v9 = vpack.c.bf16 %v1572_v58, %v1572_v58  ;;  %v1605_v59 = vpack.c.bf16 %v1573_v5, %v1573_v5  ;;  %v1254_v16 = vld [vmem:[#allocation2 + $0xe0] sm:$0xff]  ;;  %2322 = vrot.lane.b32.xlu2 %v1997_v56, %s11939_s29  ;;  %v1080_v58 = vpack.c.bf16 %v1048_v42, %v1048_v42  ;;  %v1974_v5 = vunpack.c.l.b16 %v1285_v39 }
 0x169   : > { %v820_v0 = vpop.f32.mrf.mxu0  ;;  %v1128_v19 = vld [vmem:[#allocation2 + $0xe1] sm:$0xff]  ;;  %3079 = vmatpush.bf16.msra.mxu2 %v8078_v7  ;;  %v1286_v35 = vpack.c.bf16 %v1254_v16, %v1254_v16  ;;  %v1785_v10 = vpop.permute.xlu1 %1784  ;;  %v1752_v56 = vunpack.c.l.b16 %v1159_v41  ;;  %v9286_v31 = vld [vmem:[%s11985_s18] ss:$0 sm:$0xff] }
 0x16a   : > { %v876_v2 = vmul.f32 %v8905_v32, %v820_v0  ;;  %v2500_v4 = vunpack.c.l.b16 %v1604_v9  ;;  %v2501_v6 = vunpack.c.l.b16 %v1605_v59  ;;  %v1160_v23 = vpack.c.bf16 %v1128_v19, %v1128_v19  ;;  %v9270_v9 = vpop.permute.xlu2 %2010 }
 0x16b   : > { %v1975_v50 = vunpack.c.l.b16 %v1286_v35  ;;  %v1657_v8 = vunpack.c.l.b16 %v1080_v58 }
 0x16c   : > { %v912_v37 = vadd.f32 %v8914_v33, %v876_v2  ;;  %v2525_v14 = vpack.c.b16 %v2501_v6, %v2500_v4  ;;  %v1753_v51 = vunpack.c.l.b16 %v1160_v23 }
 0x16d   : > { %3080 = vmatpush.bf16.msra.mxu2 %v8077_v13  ;;  %v1998_v0 = vpack.c.b16 %v1975_v50, %v1974_v5  ;;  %v1656_v13 = vunpack.c.l.b16 %v1079_v63 }
 0x16e   : > { %v944_v27 = vmax.f32 %v912_v37, 0.0  ;;  %7832 = vmatmul.msk.bf16.gmra.mxu3 %vm715_vm2, %v2525_v14  ;;  %v1775_v2 = vpack.c.b16 %v1753_v51, %v1752_v56  ;;  %v1049_v56 = vld [vmem:[#allocation2 + $0x30] sm:$0xff] }
 0x16f   : > { %v1255_v36 = vld [vmem:[#allocation2 + $0xf0] sm:$0xff]  ;;  %1912 = vrot.lane.b32.xlu0 %v2525_v14, %s11939_s29  ;;  %v1687_v38 = vpack.c.b16 %v1657_v8, %v1656_v13 }
 0x170   : > { %1032 = vst.msk [vmem:[#allocation2 + $0xf9] sm:$0xff] %vm715_vm2, %v944_v27  ;;  %v1129_v61 = vld [vmem:[#allocation2 + $0xf1] sm:$0xff]  ;;  %v1287_v37 = vpack.c.bf16 %v1255_v36, %v1255_v36  ;;  %2022 = vrot.lane.b32.xlu2 %v1998_v0, %s11987_s2  ;;  %1800 = vrot.lane.b32.xlu1 %v1775_v2, %s8468_s1  ;;  %v1304_v0 = vld [vmem:[#allocation2 + $0x39] sm:$0xff] }
 0x171   : > { %v823_v60 = vpop.f32.mrf.mxu0  ;;  %3168 = vmatpush.bf16.msrb.mxu2 %v9033_v40  ;;  %v1161_v16 = vpack.c.bf16 %v1129_v61, %v1129_v61  ;;  %v9289_v39 = vpop.permute.xlu1 %1898  ;;  %v1336_v8 = vpack.c.bf16 %v1304_v0, %v1304_v0 }
 0x172   : > { %v877_v44 = vmul.f32 %v8905_v32, %v823_v60  ;;  %v2617_v32 = vsel %vm2615_vm5, %v2584_v53, %v2007_v1  ;;  %v1976_v41 = vunpack.c.l.b16 %v1287_v37  ;;  %v9293_v51 = vpop.permute.xlu2 %2312 }
 0x173   : > { %2992 = vmatmul.bf16.vlgmr.msra.gmra.mxu1 %v2617_v32  ;;  %v1754_v60 = vunpack.c.l.b16 %v1161_v16 }
 0x174   : > { %v913_v57 = vadd.f32 %v8914_v33, %v877_v44  ;;  %7851 = vmatmul.msk.bf16.gmra.mxu0 %vm715_vm2, %v8783_v12  ;;  %v2539_v44 = vsel %vm715_vm2, %v1687_v38, %v1785_v10  ;;  %v1787_v10 = vpop.permute.xlu0 %1786 }
 0x175   : > { %3169 = vmatpush.bf16.msrb.mxu2 %v9044_v45  ;;  %v2586_v32 = vsel %vm2582_vm4, %v2539_v44, %v9220_v17 }
 0x176   : > { %v945_v59 = vmax.f32 %v913_v57, 0.0  ;;  %v1050_v57 = vld [vmem:[#allocation2 + $0x38] sm:$0xff]  ;;  %v2620_v17 = vsel %vm2615_vm5, %v2586_v32, %v9237_v48 }
 0x177   : > { %v1574_v33 = vld [vmem:[#allocation2 + $0xf2] sm:$0xff]  ;;  %v1575_v4 = vld [vmem:[#allocation2 + $0xfa] sm:$0xff]  ;;  %v1082_v61 = vpack.c.bf16 %v1050_v57, %v1050_v57 }
 0x178   : > { %v1256_v6 = vld [vmem:[#allocation2 + $0xf8] sm:$0xff]  ;;  %1033 = vst.msk [vmem:[#allocation2 + $0x109] sm:$0xff] %vm715_vm2, %v945_v59  ;;  %v1606_v12 = vpack.c.bf16 %v1574_v33, %v1574_v33  ;;  %v1607_v40 = vpack.c.bf16 %v1575_v4, %v1575_v4 }
 0x179   : > { %v1288_v1 = vpack.c.bf16 %v1256_v6, %v1256_v6  ;;  %v1130_v7 = vld [vmem:[#allocation2 + $0xf9] sm:$0xff]  ;;  %v825_v11 = vpop.f32.mrf.mxu0  ;;  %v2423_v63 = vpop.permute.xlu1 %2422  ;;  %v1303_v33 = vld [vmem:[#allocation2 + $0x31] sm:$0xff]  ;;  %v1659_v16 = vunpack.c.l.b16 %v1082_v61 }
 0x17a   : > { %v1162_v19 = vpack.c.bf16 %v1130_v7, %v1130_v7  ;;  %v878_v49 = vmul.f32 %v9278_v20, %v825_v11  ;;  %v2502_v27 = vunpack.c.l.b16 %v1606_v12  ;;  %v2503_v29 = vunpack.c.l.b16 %v1607_v40  ;;  %v9313_v30 = vpop.permute.xlu2 %2012 }
 0x17b   : > { %v1977_v45 = vunpack.c.l.b16 %v1288_v1  ;;  %v2745_v4 = vsel %vm2615_vm5, %v2713_v25, %v2423_v63  ;;  %v1081_v12 = vpack.c.bf16 %v1049_v56, %v1049_v56  ;;  %v1052_v25 = vld [vmem:[#allocation2 + $0x50] sm:$0xff] }
 0x17c   : > { %v1755_v14 = vunpack.c.l.b16 %v1162_v19  ;;  %v914_v35 = vadd.f32 %v9286_v31, %v878_v49  ;;  %v2526_v23 = vpack.c.b16 %v2503_v29, %v2502_v27  ;;  %3081 = vmatmul.bf16.vlgmr.msra.gmra.mxu2 %v2745_v4  ;;  %v1335_v19 = vpack.c.bf16 %v1303_v33, %v1303_v33  ;;  %v2201_v38 = vpop.permute.xlu0 %2200 }
 0x17d   : > { %v1999_v47 = vpack.c.b16 %v1977_v45, %v1976_v41 }
 0x17e   : > { %v946_v42 = vmax.f32 %v914_v35, 0.0  ;;  %7833 = vmatmul.msk.bf16.gmra.mxu3 %vm715_vm2, %v2526_v23  ;;  %v1776_v50 = vpack.c.b16 %v1755_v14, %v1754_v60  ;;  %1914 = vrot.lane.b32.xlu0 %v2526_v23, %s11939_s29  ;;  %v1658_v23 = vunpack.c.l.b16 %v1081_v12  ;;  %v2072_v32 = vunpack.c.l.b16 %v1335_v19 }
 0x17f   : > { %v1257_v5 = vld [vmem:[#allocation2 + $0x108] sm:$0xff]  ;;  %2024 = vrot.lane.b32.xlu2 %v1999_v47, %s11987_s2 }
 0x180   : > { %1034 = vst.msk [vmem:[#allocation2 + $0x111] sm:$0xff] %vm715_vm2, %v946_v42  ;;  %1802 = vrot.lane.b32.xlu1 %v1776_v50, %s8468_s1  ;;  %v1131_v36 = vld [vmem:[#allocation2 + $0x109] sm:$0xff]  ;;  %v1289_v2 = vpack.c.bf16 %v1257_v5, %v1257_v5  ;;  %v2073_v42 = vunpack.c.l.b16 %v1336_v8 }
 0x181   : > { %v828_v53 = vpop.f32.mrf.mxu0  ;;  %v1163_v7 = vpack.c.bf16 %v1131_v36, %v1131_v36  ;;  %v9317_v54 = vpop.permute.xlu1 %1900 }
 0x182   : > { %v879_v58 = vmul.f32 %v9278_v20, %v828_v53  ;;  %v1978_v27 = vunpack.c.l.b16 %v1289_v2  ;;  %v1688_v53 = vpack.c.b16 %v1659_v16, %v1658_v23  ;;  %v2103_v56 = vpack.c.b16 %v2073_v42, %v2072_v32  ;;  %v1051_v2 = vld [vmem:[#allocation2 + $0x48] sm:$0xff] }
 0x183   : > { %2997 = vmatmul.bf16.gmra.mxu1 %v2620_v17  ;;  %v1756_v41 = vunpack.c.l.b16 %v1163_v7  ;;  %v1305_v7 = vld [vmem:[#allocation2 + $0x49] sm:$0xff] }
 0x184   : > { %v915_v59 = vadd.f32 %v9286_v31, %v879_v58  ;;  %7852 = vmatmul.msk.bf16.gmra.mxu0 %vm715_vm2, %v8809_v15  ;;  %v2542_v5 = vsel %vm715_vm2, %v1688_v53, %v1787_v10  ;;  %v2669_v36 = vsel %vm715_vm2, %v2103_v56, %v2201_v38  ;;  %v1789_v0 = vpop.permute.xlu0 %1788  ;;  %v9329_v10 = vpop.permute.xlu2 %2314 }
 0x185   : > { %v2588_v61 = vsel %vm2582_vm4, %v2542_v5, %v9289_v39  ;;  %v2715_v39 = vsel %vm2582_vm4, %v2669_v36, %v9293_v51 }
 0x186   : > { %v947_v6 = vmax.f32 %v915_v59, 0.0  ;;  %v2623_v12 = vsel %vm2615_vm5, %v2588_v61, %v9270_v9 }
 0x187   : > { %v1576_v40 = vld [vmem:[#allocation2 + $0x10a] sm:$0xff]  ;;  %v1577_v15 = vld [vmem:[#allocation2 + $0x112] sm:$0xff] }
 0x188   : > { %v1258_v1 = vld [vmem:[#allocation2 + $0x110] sm:$0xff]  ;;  %1035 = vst.msk [vmem:[#allocation2 + $0x121] sm:$0xff] %vm715_vm2, %v947_v6  ;;  %v1608_v26 = vpack.c.bf16 %v1576_v40, %v1576_v40  ;;  %v1609_v11 = vpack.c.bf16 %v1577_v15, %v1577_v15  ;;  %v1084_v6 = vpack.c.bf16 %v1052_v25, %v1052_v25 }
 0x189   : > { %v1290_v48 = vpack.c.bf16 %v1258_v1, %v1258_v1  ;;  %v1132_v37 = vld [vmem:[#allocation2 + $0x111] sm:$0xff]  ;;  %v830_v49 = vpop.f32.mrf.mxu0  ;;  %v2425_v40 = vpop.permute.xlu1 %2424 }
 0x18a   : > { %v1164_v29 = vpack.c.bf16 %v1132_v37, %v1132_v37  ;;  %v880_v13 = vmul.f32 %v9278_v20, %v830_v49  ;;  %v2504_v45 = vunpack.c.l.b16 %v1608_v26  ;;  %v2505_v14 = vunpack.c.l.b16 %v1609_v11  ;;  %v1306_v15 = vld [vmem:[#allocation2 + $0x51] sm:$0xff] }
 0x18b   : > { %v1979_v35 = vunpack.c.l.b16 %v1290_v48  ;;  %v2748_v8 = vsel %vm2615_vm5, %v2715_v39, %v2425_v40  ;;  %v1083_v11 = vpack.c.bf16 %v1051_v2, %v1051_v2  ;;  %v1338_v19 = vpack.c.bf16 %v1306_v15, %v1306_v15  ;;  %v1053_v39 = vld [vmem:[#allocation2 + $0x60] sm:$0xff] }
 0x18c   : > { %v1757_v60 = vunpack.c.l.b16 %v1164_v29  ;;  %v916_v44 = vadd.f32 %v9286_v31, %v880_v13  ;;  %v2527_v47 = vpack.c.b16 %v2505_v14, %v2504_v45  ;;  %3086 = vmatmul.bf16.gmra.mxu2 %v2748_v8  ;;  %v1661_v51 = vunpack.c.l.b16 %v1084_v6  ;;  %v9344_v25 = vpop.permute.xlu2 %2014 }
 0x18d   : > { %v2000_v50 = vpack.c.b16 %v1979_v35, %v1978_v27  ;;  %v1337_v13 = vpack.c.bf16 %v1305_v7, %v1305_v7  ;;  %v1660_v42 = vunpack.c.l.b16 %v1083_v11  ;;  %v2075_v53 = vunpack.c.l.b16 %v1338_v19 }
 0x18e   : > { %v1777_v57 = vpack.c.b16 %v1757_v60, %v1756_v41  ;;  %v948_v58 = vmax.f32 %v916_v44, 0.0  ;;  %7834 = vmatmul.msk.bf16.gmra.mxu3 %vm715_vm2, %v2527_v47  ;;  %1916 = vrot.lane.b32.xlu0 %v2527_v47, %s11939_s29  ;;  %v2203_v44 = vpop.permute.xlu0 %2202 }
 0x18f   : > { %2026 = vrot.lane.b32.xlu2 %v2000_v50, %s11987_s2  ;;  %v1259_v63 = vld [vmem:[#allocation2 + $0x120] sm:$0xff]  ;;  %v1689_v5 = vpack.c.b16 %v1661_v51, %v1660_v42  ;;  %v2074_v36 = vunpack.c.l.b16 %v1337_v13 }
 0x190   : > { %1804 = vrot.lane.b32.xlu1 %v1777_v57, %s8468_s1  ;;  %1036 = vst.msk [vmem:[#allocation2 + $0x129] sm:$0xff] %vm715_vm2, %v948_v58  ;;  %v1133_v4 = vld [vmem:[#allocation2 + $0x121] sm:$0xff]  ;;  %v1291_v1 = vpack.c.bf16 %v1259_v63, %v1259_v63 }
 0x191   : > { %v833_v59 = vpop.f32.mrf.mxu0  ;;  %v1165_v16 = vpack.c.bf16 %v1133_v4, %v1133_v4  ;;  %v9342_v56 = vpop.permute.xlu1 %1902  ;;  %v2104_v63 = vpack.c.b16 %v2075_v53, %v2074_v36  ;;  %v1054_v4 = vld [vmem:[#allocation2 + $0x68] sm:$0xff] }
 0x192   : > { %v881_v17 = vmul.f32 %v9278_v20, %v833_v59  ;;  %v1980_v14 = vunpack.c.l.b16 %v1291_v1  ;;  %v1086_v7 = vpack.c.bf16 %v1054_v4, %v1054_v4 }
 0x193   : > { %3002 = vmatmul.bf16.gmra.mxu1 %v2623_v12  ;;  %v1758_v47 = vunpack.c.l.b16 %v1165_v16  ;;  %v1085_v16 = vpack.c.bf16 %v1053_v39, %v1053_v39 }
 0x194   : > { %v917_v33 = vadd.f32 %v9286_v31, %v881_v17  ;;  %7853 = vmatmul.msk.bf16.gmra.mxu0 %vm715_vm2, %v8815_v18  ;;  %v2545_v17 = vsel %vm715_vm2, %v1689_v5, %v1789_v0  ;;  %v1308_v0 = vld [vmem:[#allocation2 + $0x69] sm:$0xff]  ;;  %v1663_v13 = vunpack.c.l.b16 %v1086_v7 }
 0x195   : > { %v2590_v6 = vsel %vm2582_vm4, %v2545_v17, %v9317_v54  ;;  %v1340_v19 = vpack.c.bf16 %v1308_v0, %v1308_v0  ;;  %v1662_v42 = vunpack.c.l.b16 %v1085_v16 }
 0x196   : > { %v949_v26 = vmax.f32 %v917_v33, 0.0  ;;  %v2672_v33 = vsel %vm715_vm2, %v2104_v63, %v2203_v44  ;;  %v1791_v15 = vpop.permute.xlu0 %1790  ;;  %v2626_v8 = vsel %vm2615_vm5, %v2590_v6, %v9313_v30 }
 0x197   : > { %v1578_v48 = vld [vmem:[#allocation2 + $0x122] sm:$0xff]  ;;  %v1579_v18 = vld [vmem:[#allocation2 + $0x12a] sm:$0xff]  ;;  %v2717_v11 = vsel %vm2582_vm4, %v2672_v33, %v9329_v10  ;;  %v2077_v44 = vunpack.c.l.b16 %v1340_v19  ;;  %v1690_v5 = vpack.c.b16 %v1663_v13, %v1662_v42 }
 0x198   : > { %v1260_v37 = vld [vmem:[#allocation2 + $0x128] sm:$0xff]  ;;  %1037 = vst.msk [vmem:[#allocation2 + $0x139] sm:$0xff] %vm715_vm2, %v949_v26  ;;  %v1610_v9 = vpack.c.bf16 %v1578_v48, %v1578_v48  ;;  %v1611_v49 = vpack.c.bf16 %v1579_v18, %v1579_v18 }
 0x199   : > { %v1292_v27 = vpack.c.bf16 %v1260_v37, %v1260_v37  ;;  %v1134_v29 = vld [vmem:[#allocation2 + $0x129] sm:$0xff]  ;;  %v835_v45 = vpop.f32.mrf.mxu0  ;;  %v2427_v26 = vpop.permute.xlu1 %2426  ;;  %v1307_v48 = vld [vmem:[#allocation2 + $0x61] sm:$0xff]  ;;  %v2548_v63 = vsel %vm715_vm2, %v1690_v5, %v1791_v15 }
 0x19a   : > { %v1166_v35 = vpack.c.bf16 %v1134_v29, %v1134_v29  ;;  %v882_v23 = vmul.f32 %v9278_v20, %v835_v45  ;;  %v2506_v38 = vunpack.c.l.b16 %v1610_v9  ;;  %v2507_v41 = vunpack.c.l.b16 %v1611_v49  ;;  %v1310_v19 = vld [vmem:[#allocation2 + $0x81] sm:$0xff] }
 0x19b   : > { %v1981_v60 = vunpack.c.l.b16 %v1292_v27  ;;  %v2751_v18 = vsel %vm2615_vm5, %v2717_v11, %v2427_v26  ;;  %v2317_v27 = vpop.permute.xlu2 %2316  ;;  %v1339_v10 = vpack.c.bf16 %v1307_v48, %v1307_v48  ;;  %v2592_v39 = vsel %vm2582_vm4, %v2548_v63, %v9342_v56 }
 0x19c   : > { %v1759_v50 = vunpack.c.l.b16 %v1166_v35  ;;  %v918_v57 = vadd.f32 %v9286_v31, %v882_v23  ;;  %v2528_v32 = vpack.c.b16 %v2507_v41, %v2506_v38  ;;  %3091 = vmatmul.bf16.gmra.mxu2 %v2751_v18  ;;  %v2629_v48 = vsel %vm2615_vm5, %v2592_v39, %v9344_v25 }
 0x19d   : > { %v2001_v58 = vpack.c.b16 %v1981_v60, %v1980_v14  ;;  %v2076_v36 = vunpack.c.l.b16 %v1339_v10  ;;  %v1342_v10 = vpack.c.bf16 %v1310_v19, %v1310_v19 }
 0x19e   : > { %v1778_v59 = vpack.c.b16 %v1759_v50, %v1758_v47  ;;  %v950_v61 = vmax.f32 %v918_v57, 0.0  ;;  %7835 = vmatmul.msk.bf16.gmra.mxu3 %vm715_vm2, %v2528_v32  ;;  %1918 = vrot.lane.b32.xlu0 %v2528_v32, %s11939_s29  ;;  %v2205_v47 = vpop.permute.xlu0 %2204 }
 0x19f   : > { %2028 = vrot.lane.b32.xlu2 %v2001_v58, %s11987_s2  ;;  %v1261_v40 = vld [vmem:[#allocation2 + $0x138] sm:$0xff] }
 0x1a0   : > { %1806 = vrot.lane.b32.xlu1 %v1778_v59, %s8468_s1  ;;  %1038 = vst.msk [vmem:[#allocation2 + $0x141] sm:$0xff] %vm715_vm2, %v950_v61  ;;  %v1293_v54 = vpack.c.bf16 %v1261_v40, %v1261_v40  ;;  %v1135_v50 = vld [vmem:[#allocation2 + $0x139] sm:$0xff] }
 0x1a1   : > { %v838_v2 = vpop.f32.mrf.mxu0  ;;  %v9367_v59 = vpop.permute.xlu1 %1904  ;;  %v1167_v17 = vpack.c.bf16 %v1135_v50, %v1135_v50  ;;  %v1056_v40 = vld [vmem:[#allocation2 + $0x80] sm:$0xff] }
 0x1a2   : > { %v883_v12 = vmul.f32 %v9278_v20, %v838_v2  ;;  %v1982_v14 = vunpack.c.l.b16 %v1293_v54  ;;  %v2105_v2 = vpack.c.b16 %v2077_v44, %v2076_v36  ;;  %v1088_v54 = vpack.c.bf16 %v1056_v40, %v1056_v40 }
 0x1a3   : > { %3007 = vmatmul.bf16.gmra.mxu1 %v2626_v8  ;;  %v1055_v8 = vld [vmem:[#allocation2 + $0x78] sm:$0xff] }
 0x1a4   : > { %v919_v1 = vadd.f32 %v9286_v31, %v883_v12  ;;  %7854 = vmatmul.msk.bf16.gmra.mxu0 %vm715_vm2, %v8821_v21  ;;  %v2675_v6 = vsel %vm715_vm2, %v2105_v2, %v2205_v47  ;;  %v9375_v12 = vpop.permute.xlu2 %2016 }
 0x1a6   : > { %v951_v37 = vmax.f32 %v919_v1, 0.0  ;;  %v1760_v1 = vunpack.c.l.b16 %v1167_v17  ;;  %v1793_v15 = vpop.permute.xlu0 %1792 }
 0x1a7   : > { %v1580_v9 = vld [vmem:[#allocation2 + $0x13a] sm:$0xff]  ;;  %v1581_v49 = vld [vmem:[#allocation2 + $0x142] sm:$0xff] }
 0x1a8   : > { %v1262_v21 = vld [vmem:[#allocation2 + $0x140] sm:$0xff]  ;;  %1039 = vst.msk [vmem:[#allocation2 + $0x151] sm:$0xff] %vm715_vm2, %v951_v37  ;;  %v1612_v30 = vpack.c.bf16 %v1580_v9, %v1580_v9  ;;  %v1613_v29 = vpack.c.bf16 %v1581_v49, %v1581_v49  ;;  %v2719_v37 = vsel %vm2582_vm4, %v2675_v6, %v2317_v27  ;;  %v1087_v49 = vpack.c.bf16 %v1055_v8, %v1055_v8  ;;  %v9397_v6 = vpop.f32.mrf.mxu3 }
 0x1a9   : > { %v1294_v51 = vpack.c.bf16 %v1262_v21, %v1262_v21  ;;  %v840_v45 = vpop.f32.mrf.mxu0  ;;  %v1136_v35 = vld [vmem:[#allocation2 + $0x141] sm:$0xff]  ;;  %v2429_v18 = vpop.permute.xlu1 %2428  ;;  %v1665_v27 = vunpack.c.l.b16 %v1088_v54  ;;  %v1058_v54 = vld [vmem:[#allocation2 + $0x98] sm:$0xff] }
 0x1aa   : > { %v884_v23 = vmul.f32 %v9278_v20, %v840_v45  ;;  %v2508_v38 = vunpack.c.l.b16 %v1612_v30  ;;  %v2509_v41 = vunpack.c.l.b16 %v1613_v29  ;;  %v1168_v58 = vpack.c.bf16 %v1136_v35, %v1136_v35  ;;  %v1309_v29 = vld [vmem:[#allocation2 + $0x79] sm:$0xff] }
 0x1ab   : > { %v1983_v60 = vunpack.c.l.b16 %v1294_v51  ;;  %v2754_v16 = vsel %vm2615_vm5, %v2719_v37, %v2429_v18  ;;  %v1664_v42 = vunpack.c.l.b16 %v1087_v49  ;;  %v1341_v44 = vpack.c.bf16 %v1309_v29, %v1309_v29  ;;  %v1057_v49 = vld [vmem:[#allocation2 + $0x90] sm:$0xff] }
 0x1ac   : > { %v920_v53 = vadd.f32 %v9286_v31, %v884_v23  ;;  %v2529_v57 = vpack.c.b16 %v2509_v41, %v2508_v38  ;;  %v1761_v33 = vunpack.c.l.b16 %v1168_v58  ;;  %3096 = vmatmul.bf16.gmra.mxu2 %v2754_v16 }
 0x1ad   : > { %v2002_v32 = vpack.c.b16 %v1983_v60, %v1982_v14  ;;  %v1691_v36 = vpack.c.b16 %v1665_v27, %v1664_v42  ;;  %v1089_v27 = vpack.c.bf16 %v1057_v49, %v1057_v49 }
 0x1ae   : > { %v952_v61 = vmax.f32 %v920_v53, 0.0  ;;  %7836 = vmatmul.msk.bf16.gmra.mxu3 %vm715_vm2, %v2529_v57  ;;  %1920 = vrot.lane.b32.xlu1 %v2529_v57, %s11939_s29  ;;  %v1779_v11 = vpack.c.b16 %v1761_v33, %v1760_v1  ;;  %v2431_v53 = vpop.permute.xlu2 %2430 }
 0x1af   : > { %2030 = vrot.lane.b32.xlu2 %v2002_v32, %s11987_s2  ;;  %v1263_v7 = vld [vmem:[#allocation2 + $0x150] sm:$0xff]  ;;  %v2551_v33 = vsel %vm715_vm2, %v1691_v36, %v1793_v15 }
 0x1b0   : > { %1040 = vst.msk [vmem:[#allocation2 + $0x159] sm:$0xff] %vm715_vm2, %v952_v61  ;;  %v1295_v56 = vpack.c.bf16 %v1263_v7, %v1263_v7  ;;  %v1137_v50 = vld [vmem:[#allocation2 + $0x151] sm:$0xff]  ;;  %v2079_v61 = vunpack.c.l.b16 %v1342_v10  ;;  %v2594_v1 = vsel %vm2582_vm4, %v2551_v33, %v9367_v59 }
 0x1b1   : > { %v843_v4 = vpop.f32.mrf.mxu0  ;;  %v9390_v47 = vpop.permute.xlu0 %1794  ;;  %v1169_v2 = vpack.c.bf16 %v1137_v50, %v1137_v50 }
 0x1b2   : > { %v885_v0 = vmul.f32 %v9278_v20, %v843_v4  ;;  %v1984_v14 = vunpack.c.l.b16 %v1295_v56  ;;  %v2207_v17 = vpop.permute.xlu1 %2206  ;;  %v2078_v4 = vunpack.c.l.b16 %v1341_v44  ;;  %v2632_v56 = vsel %vm2615_vm5, %v2594_v1, %v9375_v12 }
 0x1b3   : > { %3012 = vmatmul.bf16.gmra.mxu1 %v2629_v48  ;;  %v1762_v8 = vunpack.c.l.b16 %v1169_v2 }
 0x1b4   : > { %v921_v26 = vadd.f32 %v9286_v31, %v885_v0  ;;  %7855 = vmatmul.msk.bf16.gmra.mxu0 %vm715_vm2, %v8827_v24  ;;  %v2106_v39 = vpack.c.b16 %v2079_v61, %v2078_v4 }
 0x1b6   : > { %v953_v9 = vmax.f32 %v921_v26, 0.0 }
 0x1b7   : > { %1808 = vrot.lane.b32.xlu2 %v1779_v11, %s8468_s1  ;;  %v1582_v21 = vld [vmem:[#allocation2 + $0x152] sm:$0xff]  ;;  %v1583_v24 = vld [vmem:[#allocation2 + $0x15a] sm:$0xff]  ;;  %v2678_v11 = vsel %vm715_vm2, %v2106_v39, %v2207_v17  ;;  %v1666_v17 = vunpack.c.l.b16 %v1089_v27 }
 0x1b8   : > { %v1264_v30 = vld [vmem:[#allocation2 + $0x158] sm:$0xff]  ;;  %1041 = vst.msk [vmem:[#allocation2 + $0x169] sm:$0xff] %vm715_vm2, %v953_v9  ;;  %v1614_v25 = vpack.c.bf16 %v1582_v21, %v1582_v21  ;;  %v1615_v51 = vpack.c.bf16 %v1583_v24, %v1583_v24  ;;  %v9411_v9 = vpop.permute.xlu2 %2208  ;;  %v1090_v24 = vpack.c.bf16 %v1058_v54, %v1058_v54  ;;  %v9435_v39 = vld [vmem:[%s11989_s9] ss:$0 sm:$0xff] }
 0x1b9   : > { %v1296_v13 = vpack.c.bf16 %v1264_v30, %v1264_v30  ;;  %v845_v45 = vpop.f32.mrf.mxu0  ;;  %v1138_v35 = vld [vmem:[#allocation2 + $0x159] sm:$0xff]  ;;  %v2319_v15 = vpop.permute.xlu0 %2318 }
 0x1ba   : > { %v886_v23 = vmul.f32 %v9278_v20, %v845_v45  ;;  %v2510_v38 = vunpack.c.l.b16 %v1614_v25  ;;  %v2511_v41 = vunpack.c.l.b16 %v1615_v51  ;;  %v1170_v5 = vpack.c.bf16 %v1138_v35, %v1138_v35  ;;  %v1907_v59 = vpop.permute.xlu1 %1906  ;;  %v1312_v25 = vld [vmem:[#allocation2 + $0x99] sm:$0xff]  ;;  %v9415_v35 = vpop.f32.mrf.mxu3 }
 0x1bb   : > { %v1985_v60 = vunpack.c.l.b16 %v1296_v13  ;;  %v2721_v48 = vsel %vm2582_vm4, %v2678_v11, %v2319_v15  ;;  %v1344_v44 = vpack.c.bf16 %v1312_v25, %v1312_v25  ;;  %v1667_v50 = vunpack.c.l.b16 %v1090_v24  ;;  %v1060_v11 = vld [vmem:[#allocation2 + $0xb0] sm:$0xff] }
 0x1bc   : > { %v922_v57 = vadd.f32 %v9286_v31, %v886_v23  ;;  %v2530_v32 = vpack.c.b16 %v2511_v41, %v2510_v38  ;;  %v1763_v40 = vunpack.c.l.b16 %v1170_v5  ;;  %v2757_v16 = vsel %vm2615_vm5, %v2721_v48, %v2431_v53  ;;  %v1311_v23 = vld [vmem:[#allocation2 + $0x91] sm:$0xff]  ;;  %v1313_v25 = vld [vmem:[#allocation2 + $0xa9] sm:$0xff] }
 0x1bd   : > { %v2003_v58 = vpack.c.b16 %v1985_v60, %v1984_v14  ;;  %3101 = vmatmul.bf16.gmra.mxu2 %v2757_v16  ;;  %v1343_v61 = vpack.c.bf16 %v1311_v23, %v1311_v23  ;;  %v2081_v4 = vunpack.c.l.b16 %v1344_v44 }
 0x1be   : > { %v954_v63 = vmax.f32 %v922_v57, 0.0  ;;  %7837 = vmatmul.msk.bf16.gmra.mxu3 %vm715_vm2, %v2530_v32  ;;  %v1780_v37 = vpack.c.b16 %v1763_v40, %v1762_v8 }
 0x1bf   : > { %2032 = vrot.lane.b32.xlu0 %v2003_v58, %s11987_s2  ;;  %1922 = vrot.lane.b32.xlu2 %v2530_v32, %s11939_s29  ;;  %v1265_v26 = vld [vmem:[#allocation2 + $0x168] sm:$0xff]  ;;  %v2080_v1 = vunpack.c.l.b16 %v1343_v61 }
 0x1c0   : > { %1042 = vst.msk [vmem:[#allocation2 + $0x171] sm:$0xff] %vm715_vm2, %v954_v63  ;;  %v1297_v19 = vpack.c.bf16 %v1265_v26, %v1265_v26  ;;  %v1139_v57 = vld [vmem:[#allocation2 + $0x169] sm:$0xff]  ;;  %v2019_v40 = vpop.permute.xlu2 %2018 }
 0x1c1   : > { %v848_v0 = vpop.f32.mrf.mxu0  ;;  %v9418_v53 = vpop.permute.xlu0 %1796  ;;  %v1171_v33 = vpack.c.bf16 %v1139_v57, %v1139_v57 }
 0x1c2   : > { %v887_v7 = vmul.f32 %v9278_v20, %v848_v0  ;;  %v1986_v45 = vunpack.c.l.b16 %v1297_v19  ;;  %v9421_v63 = vpop.permute.xlu1 %1908  ;;  %v1314_v19 = vld [vmem:[#allocation2 + $0xb1] sm:$0xff] }
 0x1c3   : > { %3017 = vmatmul.bf16.gmra.mxu1 %v2632_v56  ;;  %v1764_v54 = vunpack.c.l.b16 %v1171_v33  ;;  %v1059_v56 = vld [vmem:[#allocation2 + $0xa8] sm:$0xff] }
 0x1c4   : > { %v923_v18 = vadd.f32 %v9286_v31, %v887_v7  ;;  %7856 = vmatmul.msk.bf16.gmra.mxu0 %vm715_vm2, %v8865_v28 }
 0x1c6   : > { %v955_v21 = vmax.f32 %v923_v18, 0.0  ;;  %v2107_v18 = vpack.c.b16 %v2081_v4, %v2080_v1 }
 0x1c7   : > { %1810 = vrot.lane.b32.xlu0 %v1780_v37, %s8468_s1  ;;  %v1584_v30 = vld [vmem:[#allocation2 + $0x16a] sm:$0xff]  ;;  %v1585_v29 = vld [vmem:[#allocation2 + $0x172] sm:$0xff]  ;;  %v9441_v37 = vpop.f32.mrf.mxu3 }
 0x1c8   : > { %v1266_v28 = vld [vmem:[#allocation2 + $0x170] sm:$0xff]  ;;  %1043 = vst.msk [vmem:[#allocation2 + $0x181] sm:$0xff] %vm715_vm2, %v955_v21  ;;  %v1616_v12 = vpack.c.bf16 %v1584_v30, %v1584_v30  ;;  %v1617_v51 = vpack.c.bf16 %v1585_v29, %v1585_v29  ;;  %v1092_v21 = vpack.c.bf16 %v1060_v11, %v1060_v11  ;;  %v2021_v44 = vpop.permute.xlu2 %2020 }
 0x1c9   : > { %v1298_v13 = vpack.c.bf16 %v1266_v28, %v1266_v28  ;;  %v850_v10 = vpop.f32.mrf.mxu0  ;;  %v1140_v14 = vld [vmem:[#allocation2 + $0x171] sm:$0xff]  ;;  %11990 = vst [vmem:[#allocation18_spill] sm:$0xff] %v9441_v37  ;;  %v2433_v16 = vpop.permute.xlu0 %2432 }
 0x1ca   : > { %v888_v38 = vmul.f32 %v9278_v20, %v850_v10  ;;  %v2512_v41 = vunpack.c.l.b16 %v1616_v12  ;;  %v2513_v60 = vunpack.c.l.b16 %v1617_v51  ;;  %v1172_v36 = vpack.c.bf16 %v1140_v14, %v1140_v14  ;;  %v9428_v20 = vld [vmem:[%s11988_s8] ss:$0 sm:$0xff]  ;;  %v2321_v30 = vpop.permute.xlu1 %2320 }
 0x1cb   : > { %v1987_v42 = vunpack.c.l.b16 %v1298_v13  ;;  %v1091_v51 = vpack.c.bf16 %v1059_v56, %v1059_v56  ;;  %v1061_v56 = vld [vmem:[#allocation2 + $0xc0] sm:$0xff] }
 0x1cc   : > { %v924_v32 = vadd.f32 %v9286_v31, %v888_v38  ;;  %v2531_v58 = vpack.c.b16 %v2513_v60, %v2512_v41  ;;  %v1692_v31 = vpack.c.b16 %v1667_v50, %v1666_v17  ;;  %v1765_v0 = vunpack.c.l.b16 %v1172_v36 }
 0x1cd   : > { %v2004_v5 = vpack.c.b16 %v1987_v42, %v1986_v45  ;;  %v1669_v38 = vunpack.c.l.b16 %v1092_v21  ;;  %v1345_v41 = vpack.c.bf16 %v1313_v25, %v1313_v25  ;;  %v1064_v21 = vld [vmem:[#allocation2 + $0xe0] sm:$0xff] }
 0x1ce   : > { %v956_v2 = vmax.f32 %v924_v32, 0.0  ;;  %7838 = vmatmul.msk.bf16.gmra.mxu3 %vm715_vm2, %v2531_v58  ;;  %v2554_v7 = vsel %vm715_vm2, %v1692_v31, %v9390_v47  ;;  %v1781_v47 = vpack.c.b16 %v1765_v0, %v1764_v54  ;;  %v1062_v54 = vld [vmem:[#allocation2 + $0xc8] sm:$0xff]  ;;  %v1096_v25 = vpack.c.bf16 %v1064_v21, %v1064_v21  ;;  %v3974_v21 = vld [vmem:[#allocation3 + $0xa] sm:$0xff] }
 0x1cf   : > { %2034 = vrot.lane.b32.xlu1 %v2004_v5, %s11987_s2  ;;  %1924 = vrot.lane.b32.xlu0 %v2531_v58, %s11939_s29  ;;  %v2596_v26 = vsel %vm2582_vm4, %v2554_v7, %v1907_v59  ;;  %v1267_v48 = vld [vmem:[#allocation2 + $0x180] sm:$0xff]  ;;  %v2681_v59 = vsel %vm715_vm2, %v2107_v18, %v9411_v9  ;;  %v1668_v5 = vunpack.c.l.b16 %v1091_v51  ;;  %v9455_v31 = vpop.f32.mrf.mxu3  ;;  %v1065_v51 = vld [vmem:[#allocation2 + $0xf0] sm:$0xff] }
 0x1d0   : > { %1044 = vst.msk [vmem:[#allocation2 + $0x189] sm:$0xff] %vm715_vm2, %v956_v2  ;;  %v2635_v24 = vsel %vm2615_vm5, %v2596_v26, %v2019_v40  ;;  %v1299_v29 = vpack.c.bf16 %v1267_v48, %v1267_v48  ;;  %v2723_v28 = vsel %vm2582_vm4, %v2681_v59, %v2321_v30  ;;  %v2082_v40 = vunpack.c.l.b16 %v1345_v41  ;;  %v2323_v18 = vpop.permute.xlu2 %2322 }
 0x1d1   : > { %v3380_v8 = vpop.f32.mrf.mxu0  ;;  %v2760_v13 = vsel %vm2615_vm5, %v2723_v28, %v2433_v16  ;;  %v1693_v33 = vpack.c.b16 %v1669_v38, %v1668_v5  ;;  %11991 = vst [vmem:[#allocation19_spill] sm:$0xff] %v9455_v31  ;;  %v2211_v7 = vpop.permute.xlu0 %2210  ;;  %v1066_v28 = vld [vmem:[#allocation2 + $0xf8] sm:$0xff] }
 0x1d2   : > { %v3464_v15 = vmul.f32 %v9428_v20, %v3380_v8  ;;  %3106 = vmatmul.bf16.gmra.mxu2 %v2760_v13  ;;  %v1988_v42 = vunpack.c.l.b16 %v1299_v29  ;;  %v1911_v4 = vpop.permute.xlu1 %1910  ;;  %v1063_v29 = vld [vmem:[#allocation2 + $0xd8] sm:$0xff] }
 0x1d3   : > { %3022 = vmatmul.bf16.gmra.mxu1 %v2635_v24  ;;  %v2557_v1 = vsel %vm715_vm2, %v1693_v33, %v9418_v53 }
 0x1d4   : > { %v3500_v49 = vadd.f32 %v9435_v39, %v3464_v15  ;;  %7857 = vmatmul.msk.bf16.gmra.mxu0 %vm715_vm2, %v8918_v34  ;;  %v1346_v34 = vpack.c.bf16 %v1314_v19, %v1314_v19  ;;  %v2598_v15 = vsel %vm2582_vm4, %v2557_v1, %v9421_v63  ;;  %v1094_v19 = vpack.c.bf16 %v1062_v54, %v1062_v54  ;;  %v3782_v1 = vld [vmem:[#allocation3 + $0x9] sm:$0xff] }
 0x1d5   : > { %v2638_v53 = vsel %vm2615_vm5, %v2598_v15, %v2021_v44  ;;  %v1093_v63 = vpack.c.bf16 %v1061_v56, %v1061_v56 }
 0x1d6   : > { %v3532_v12 = vmax.f32 %v3500_v49, 0.0  ;;  %v2083_v36 = vunpack.c.l.b16 %v1346_v34  ;;  %v1671_v30 = vunpack.c.l.b16 %v1094_v19  ;;  %v1095_v34 = vpack.c.bf16 %v1063_v29, %v1063_v29 }
 0x1d7   : > { %1812 = vrot.lane.b32.xlu1 %v1781_v47, %s8468_s1  ;;  %v1586_v27 = vld [vmem:[#allocation2 + $0x182] sm:$0xff]  ;;  %v1587_v10 = vld [vmem:[#allocation2 + $0x18a] sm:$0xff]  ;;  %v3817_v29 = vrot.slane %v3782_v1, 4 }
 0x1d8   : > { %v1268_v45 = vld [vmem:[#allocation2 + $0x188] sm:$0xff]  ;;  %3621 = vst.msk [vmem:[#allocation3 + $0x19] sm:$0xff] %vm3564_vm0, %v3532_v12  ;;  %v1618_v9 = vpack.c.bf16 %v1586_v27, %v1586_v27  ;;  %v1619_v14 = vpack.c.bf16 %v1587_v10, %v1587_v10  ;;  %v2108_v8 = vpack.c.b16 %v2083_v36, %v2082_v40  ;;  %v1670_v12 = vunpack.c.l.b16 %v1093_v63 }
 0x1d9   : > { %v1300_v23 = vpack.c.bf16 %v1268_v45, %v1268_v45  ;;  %v3382_v60 = vpop.f32.mrf.mxu0  ;;  %v1799_v13 = vpop.permute.xlu0 %1798  ;;  %v1098_v27 = vpack.c.bf16 %v1066_v28, %v1066_v28  ;;  %v3653_v45 = vld [vmem:[#allocation3] sm:$0xff]  ;;  %v9476_v41 = vunpack.c.l.b16 %v1095_v34 }
 0x1da   : > { %v3465_v50 = vmul.f32 %v9428_v20, %v3382_v60  ;;  %v2514_v57 = vunpack.c.l.b16 %v1618_v9  ;;  %v2515_v32 = vunpack.c.l.b16 %v1619_v14  ;;  %v2684_v11 = vsel %vm715_vm2, %v2108_v8, %v2211_v7  ;;  %v2435_v16 = vpop.permute.xlu1 %2434  ;;  %v3781_v9 = vld [vmem:[#allocation3 + $0x1] sm:$0xff]  ;;  %v2023_v7 = vpop.permute.xlu2 %2022 }
 0x1db   : > { %v1989_v58 = vunpack.c.l.b16 %v1300_v23  ;;  %v2725_v49 = vsel %vm2582_vm4, %v2684_v11, %v2323_v18  ;;  %v1694_v10 = vpack.c.b16 %v1671_v30, %v1670_v12  ;;  %v9473_v14 = vunpack.c.l.b16 %v1096_v25 }
 0x1dc   : > { %v3501_v61 = vadd.f32 %v9435_v39, %v3465_v50  ;;  %v2532_v17 = vpack.c.b16 %v2515_v32, %v2514_v57  ;;  %v2763_v59 = vsel %vm2615_vm5, %v2725_v49, %v2435_v16  ;;  %v1097_v23 = vpack.c.bf16 %v1065_v51, %v1065_v51  ;;  %v1068_v32 = vld [vmem:[#allocation2 + $0x110] sm:$0xff] }
 0x1dd   : > { %v2005_v2 = vpack.c.b16 %v1989_v58, %v1988_v42  ;;  %v2560_v38 = vsel %vm715_vm2, %v1694_v10, %v1799_v13  ;;  %v9479_v42 = vunpack.c.l.b16 %v1098_v27  ;;  %v3685_v44 = vrot.slane %v3653_v45, 2  ;;  %v3973_v58 = vld [vmem:[#allocation3 + $0x2] sm:$0xff] }
 0x1de   : > { %v3533_v0 = vmax.f32 %v3501_v61, 0.0  ;;  %7839 = vmatmul.msk.bf16.gmra.mxu3 %vm715_vm2, %v2532_v17  ;;  %v3813_v50 = vrot.slane %v3781_v9, 2  ;;  %v1695_v5 = vpack.c.b16 %v9473_v14, %v9476_v41  ;;  %v2600_v36 = vsel %vm2582_vm4, %v2560_v38, %v1911_v4 }
 0x1df   : > { %2036 = vrot.lane.b32.xlu2 %v2005_v2, %s11987_s2  ;;  %v9484_v61 = vunpack.c.l.b16 %v1097_v23  ;;  %v3686_v17 = vrot.slane %v3653_v45, 4  ;;  %v3687_v2 = vrot.slane %v3653_v45, 6  ;;  %v3814_v33 = vrot.slane %v3781_v9, 4  ;;  %v4165_v63 = vld [vmem:[#allocation3 + $0x18] sm:$0xff] }
 0x1e0   : > { %3622 = vst.msk [vmem:[#allocation3 + $0x21] sm:$0xff] %vm3564_vm0, %v3533_v0  ;;  %v3815_v40 = vrot.slane %v3781_v9, 6  ;;  %v3654_v0 = vld [vmem:[#allocation3 + $0x8] sm:$0xff]  ;;  %v3909_v8 = vmax.f32 %v3653_v45, %v3781_v9  ;;  %v1100_v15 = vpack.c.bf16 %v1068_v32, %v1068_v32  ;;  %v3910_v4 = vmax.f32 %v3685_v44, %v3813_v50  ;;  %v9496_v9 = vld [vmem:[#allocation2 + $0x108] sm:$0xff] }
 0x1e1   : > { %v3385_v26 = vpop.f32.mrf.mxu0  ;;  %v1696_v11 = vpack.c.b16 %v9479_v42, %v9484_v61  ;;  %v4005_v54 = vrot.slane %v3973_v58, 2  ;;  %v4006_v56 = vrot.slane %v3973_v58, 4  ;;  %v3816_v16 = vrot.slane %v3782_v1, 2 }
 0x1e2   : > { %v3466_v48 = vmul.f32 %v9428_v20, %v3385_v26  ;;  %3111 = vmatmul.bf16.gmra.mxu2 %v2763_v59  ;;  %v3911_v49 = vmax.f32 %v3686_v17, %v3814_v33  ;;  %v4007_v59 = vrot.slane %v3973_v58, 6  ;;  %v3689_v30 = vrot.slane %v3654_v0, 4 }
 0x1e3   : > { %3027 = vmatmul.bf16.gmra.mxu1 %v2638_v53  ;;  %v3688_v53 = vrot.slane %v3654_v0, 2  ;;  %v4102_v28 = vmax.f32 %v3910_v4, %v4005_v54  ;;  %v3690_v25 = vrot.slane %v3654_v0, 6  ;;  %v3818_v12 = vrot.slane %v3782_v1, 6 }
 0x1e4   : > { %7858 = vmatmul.msk.bf16.gmra.mxu0 %vm715_vm2, %v8958_v43  ;;  %v3502_v47 = vadd.f32 %v9435_v39, %v3466_v48  ;;  %v2641_v48 = vsel %vm2615_vm5, %v2600_v36, %v2023_v7  ;;  %v4197_v34 = vrot.slane %v4165_v63, 2  ;;  %v4008_v10 = vrot.slane %v3974_v21, 2  ;;  %v1801_v36 = vpop.permute.xlu1 %1800 }
 0x1e5   : > { %v3914_v27 = vmax.f32 %v3688_v53, %v3816_v16  ;;  %v4103_v23 = vmax.f32 %v3911_v49, %v4006_v56  ;;  %v4199_v44 = vrot.slane %v4165_v63, 6  ;;  %v3915_v50 = vmax.f32 %v3689_v30, %v3817_v29  ;;  %v1913_v16 = vpop.permute.xlu0 %1912 }
 0x1e6   : > { %v3534_v24 = vmax.f32 %v3502_v47, 0.0  ;;  %v3912_v47 = vmax.f32 %v3687_v2, %v3815_v40  ;;  %v4357_v2 = vld [vmem:[#allocation3 + $0x19] sm:$0xff]  ;;  %v3916_v33 = vmax.f32 %v3690_v25, %v3818_v12  ;;  %v4010_v40 = vrot.slane %v3974_v21, 6 }
 0x1e7   : > { %v4549_v4 = vld [vmem:[#allocation3 + $0x1a] sm:$0xff]  ;;  %v4389_v49 = vrot.slane %v4357_v2, 2 }
 0x1e8   : > { %3623 = vst.msk [vmem:[#allocation3 + $0x31] sm:$0xff] %vm3564_vm0, %v3534_v24  ;;  %v4104_v38 = vmax.f32 %v3912_v47, %v4007_v59  ;;  %v4358_v30 = vld [vmem:[#allocation3 + $0x21] sm:$0xff]  ;;  %v4581_v29 = vrot.slane %v4549_v4, 2 }
 0x1e9   : > { %v3387_v43 = vpop.f32.mrf.mxu0 }
 0x1ea   : > { %v3467_v60 = vmul.f32 %v9428_v20, %v3387_v43  ;;  %v3913_v43 = vmax.f32 %v3654_v0, %v3782_v1  ;;  %v1099_v0 = vpack.c.bf16 %v9496_v9, %v9496_v9  ;;  %v9502_v1 = vunpack.c.l.b16 %v1100_v15 }
 0x1eb   : > { %v4296_v56 = vmax.f32 %v4104_v38, %v4199_v44  ;;  %v4582_v38 = vrot.slane %v4549_v4, 4  ;;  %v4583_v44 = vrot.slane %v4549_v4, 6 }
 0x1ec   : > { %v3503_v26 = vadd.f32 %v9435_v39, %v3467_v60  ;;  %v4198_v60 = vrot.slane %v4165_v63, 4  ;;  %v4105_v32 = vmax.f32 %v3913_v43, %v3974_v21 }
 0x1ee   : > { %v3535_v19 = vmax.f32 %v3503_v26, 0.0  ;;  %v4106_v26 = vmax.f32 %v3914_v27, %v4008_v10  ;;  %v2025_v27 = vpop.permute.xlu2 %2024 }
 0x1f0   : > { %3624 = vst.msk [vmem:[#allocation3 + $0x39] sm:$0xff] %vm3564_vm0, %v3535_v19  ;;  %v9504_v54 = vpop.f32.mrf.mxu1  ;;  %v2563_v19 = vsel %vm715_vm2, %v1695_v5, %v1801_v36 }
 0x1f1   : > { %v3390_v57 = vpop.f32.mrf.mxu0  ;;  %v2602_v14 = vsel %vm2582_vm4, %v2563_v19, %v1913_v16 }
 0x1f2   : > { %v3468_v18 = vmul.f32 %v9428_v20, %v3390_v57  ;;  %v4009_v57 = vrot.slane %v3974_v21, 4  ;;  %v4390_v21 = vrot.slane %v4357_v2, 4 }
 0x1f3   : > { %3032 = vmatmul.bf16.gmra.mxu1 %v2641_v48 }
 0x1f4   : > { %7859 = vmatmul.msk.bf16.gmra.mxu0 %vm715_vm2, %v8997_v55  ;;  %v3504_v24 = vadd.f32 %v9435_v39, %v3468_v18  ;;  %v4101_v55 = vmax.f32 %v3909_v8, %v3973_v58  ;;  %v4166_v58 = vld [vmem:[#allocation3 + $0x20] sm:$0xff]  ;;  %v4294_v8 = vmax.f32 %v4102_v28, %v4197_v34  ;;  %v4295_v18 = vmax.f32 %v4103_v23, %v4198_v60 }
 0x1f5   : > { %v4200_v53 = vrot.slane %v4166_v58, 2  ;;  %v4107_v47 = vmax.f32 %v3915_v50, %v4009_v57  ;;  %v4201_v15 = vrot.slane %v4166_v58, 4  ;;  %v4297_v59 = vmax.f32 %v4105_v32, %v4166_v58 }
 0x1f6   : > { %v3536_v51 = vmax.f32 %v3504_v24, 0.0  ;;  %v4293_v7 = vmax.f32 %v4101_v55, %v4165_v63  ;;  %v9510_v63 = vld [vmem:[#allocation3 + $0x30] sm:$0xff]  ;;  %v4391_v24 = vrot.slane %v4357_v2, 6  ;;  %v4108_v55 = vmax.f32 %v3916_v33, %v4010_v40 }
 0x1f7   : > { %v4486_v28 = vmax.f32 %v4294_v8, %v4389_v49  ;;  %v4202_v25 = vrot.slane %v4166_v58, 6  ;;  %v4487_v5 = vmax.f32 %v4295_v18, %v4390_v21  ;;  %v3691_v34 = vrot.slane %v9510_v63, 2  ;;  %v9523_v33 = vld [vmem:[#allocation3 + $0x32] sm:$0xff] }
 0x1f8   : > { %3625 = vst.msk [vmem:[#allocation3 + $0x49] sm:$0xff] %vm3564_vm0, %v3536_v51  ;;  %v4485_v43 = vmax.f32 %v4293_v7, %v4357_v2  ;;  %v4488_v12 = vmax.f32 %v4296_v56, %v4391_v24  ;;  %v4298_v51 = vmax.f32 %v4106_v26, %v4200_v53  ;;  %v4299_v10 = vmax.f32 %v4107_v47, %v4201_v15  ;;  %v9521_v2 = vld [vmem:[#allocation3 + $0x31] sm:$0xff]  ;;  %v9530_v19 = vpop.f32.mrf.mxu1 }
 0x1f9   : > { %v3392_v13 = vpop.f32.mrf.mxu0  ;;  %v4489_v23 = vmax.f32 %v4297_v59, %v4358_v30  ;;  %v4393_v60 = vrot.slane %v4358_v30, 4  ;;  %v4678_v50 = vmax.f32 %v4486_v28, %v4581_v29  ;;  %v2644_v57 = vsel %vm2615_vm5, %v2602_v14, %v2025_v27  ;;  %v9528_v26 = vld [vmem:[#allocation3 + $0x38] sm:$0xff] }
 0x1fa   : > { %v3469_v45 = vmul.f32 %v9428_v20, %v3392_v13  ;;  %v4550_v13 = vld [vmem:[#allocation3 + $0x22] sm:$0xff]  ;;  %v4300_v32 = vmax.f32 %v4108_v55, %v4202_v25  ;;  %v4394_v58 = vrot.slane %v4358_v30, 6  ;;  %v4677_v7 = vmax.f32 %v4485_v43, %v4549_v4  ;;  %v1915_v55 = vpop.permute.xlu0 %1914 }
 0x1fb   : > { %v4584_v36 = vrot.slane %v4550_v13, 2  ;;  %v3693_v8 = vrot.slane %v9510_v63, 6  ;;  %v4491_v18 = vmax.f32 %v4299_v10, %v4393_v60  ;;  %v4585_v56 = vrot.slane %v4550_v13, 4 }
 0x1fc   : > { %v3505_v17 = vadd.f32 %v9435_v39, %v3469_v45  ;;  %v4392_v45 = vrot.slane %v4358_v30, 2  ;;  %v4679_v53 = vmax.f32 %v4487_v5, %v4582_v38  ;;  %v4681_v16 = vmax.f32 %v4489_v23, %v4550_v13 }
 0x1fd   : > { %v4680_v49 = vmax.f32 %v4488_v12, %v4583_v44  ;;  %v3819_v47 = vrot.slane %v9521_v2, 2  ;;  %v4870_v15 = vmax.f32 %v4677_v7, %v9510_v63  ;;  %v4011_v4 = vrot.slane %v9523_v33, 2 }
 0x1fe   : > { %v3537_v48 = vmax.f32 %v3505_v17, 0.0  ;;  %v3692_v17 = vrot.slane %v9510_v63, 4  ;;  %v4490_v40 = vmax.f32 %v4298_v51, %v4392_v45  ;;  %v4492_v59 = vmax.f32 %v4300_v32, %v4394_v58 }
 0x1ff   : > { %v4874_v24 = vmax.f32 %v4681_v16, %v9528_v26  ;;  %v3082_v29 = vpop.f32.mrf.mxu2  ;;  %v4586_v43 = vrot.slane %v4550_v13, 6  ;;  %v4873_v25 = vmax.f32 %v4680_v49, %v3693_v8  ;;  %v4683_v12 = vmax.f32 %v4491_v18, %v4585_v56 }
 0x200   : > { %3626 = vst.msk [vmem:[#allocation3 + $0x51] sm:$0xff] %vm3564_vm0, %v3537_v48  ;;  %v1803_v48 = vpop.permute.xlu1 %1802  ;;  %v4872_v21 = vmax.f32 %v4679_v53, %v3692_v17  ;;  %v4682_v28 = vmax.f32 %v4490_v40, %v4584_v36  ;;  %v3820_v51 = vrot.slane %v9521_v2, 4  ;;  %v3694_v27 = vrot.slane %v9528_v26, 2  ;;  %v2998_v49 = vpop.f32.mrf.mxu1 }
 0x201   : > { %v9514_v41 = vpop.f32.mrf.mxu0  ;;  %v2566_v30 = vsel %vm715_vm2, %v1696_v11, %v1803_v48  ;;  %v4012_v10 = vrot.slane %v9523_v33, 4  ;;  %v3821_v42 = vrot.slane %v9521_v2, 6  ;;  %v5062_v61 = vmax.f32 %v4870_v15, %v9521_v2  ;;  %v9551_v11 = vld [vmem:[#allocation3 + $0x39] sm:$0xff] }
 0x202   : > { %v2604_v45 = vsel %vm2582_vm4, %v2566_v30, %v1915_v55  ;;  %v4684_v23 = vmax.f32 %v4492_v59, %v4586_v43  ;;  %v5064_v38 = vmax.f32 %v4872_v21, %v3820_v51  ;;  %v5066_v60 = vmax.f32 %v4874_v24, %v9551_v11 }
 0x203   : > { %3037 = vmatmul.bf16.gmra.mxu1 %v2644_v57  ;;  %v5065_v44 = vmax.f32 %v4873_v25, %v3821_v42  ;;  %v3695_v57 = vrot.slane %v9528_v26, 4  ;;  %v4013_v32 = vrot.slane %v9523_v33, 6  ;;  %v5254_v58 = vmax.f32 %v5062_v61, %v9523_v33 }
 0x204   : > { %7860 = vmatmul.msk.bf16.gmra.mxu0 %vm715_vm2, %v9058_v52  ;;  %v4871_v52 = vmax.f32 %v4678_v50, %v3691_v34  ;;  %v2027_v50 = vpop.permute.xlu2 %2026  ;;  %v4875_v36 = vmax.f32 %v4682_v28, %v3694_v27  ;;  %v5256_v40 = vmax.f32 %v5064_v38, %v4012_v10  ;;  %v3696_v18 = vrot.slane %v9528_v26, 6 }
 0x205   : > { %v2647_v7 = vsel %vm2615_vm5, %v2604_v45, %v2027_v50  ;;  %v3822_v56 = vrot.slane %v9551_v11, 2  ;;  %v3823_v53 = vrot.slane %v9551_v11, 4  ;;  %v3824_v59 = vrot.slane %v9551_v11, 6 }
 0x206   : > { %v5063_v14 = vmax.f32 %v4871_v52, %v3819_v47  ;;  %v9569_v52 = vld [vmem:[#allocation3 + $0x3a] sm:$0xff]  ;;  %v4876_v21 = vmax.f32 %v4683_v12, %v3695_v57  ;;  %v5257_v24 = vmax.f32 %v5065_v44, %v4013_v32  ;;  %v5402_v55 = vperm.slane %v5254_v58, 0 }
 0x207   : > { %v5258_v16 = vmax.f32 %v5066_v60, %v9569_v52  ;;  %v9575_v15 = vpop.f32.mrf.mxu2  ;;  %v4014_v43 = vrot.slane %v9569_v52, 2  ;;  %v5067_v28 = vmax.f32 %v4875_v36, %v3822_v56  ;;  %v5404_v25 = vperm.slane %v5256_v40, 0 }
 0x208   : > { %v5255_v13 = vmax.f32 %v5063_v14, %v4011_v4  ;;  %v9586_v14 = vadd.f32 %v3082_v29, %v9504_v54  ;;  %v4015_v61 = vrot.slane %v9569_v52, 4  ;;  %v4016_v38 = vrot.slane %v9569_v52, 6 }
 0x209   : > { %v3397_v5 = vpop.f32.mrf.mxu0  ;;  %v5406_v60 = vperm.slane %v5258_v16, 0  ;;  %v4877_v54 = vmax.f32 %v4684_v23, %v3696_v18  ;;  %v5405_v29 = vperm.slane %v5257_v24, 0  ;;  %v5068_v58 = vmax.f32 %v4876_v21, %v3823_v53 }
 0x20a   : > { %v5403_v48 = vperm.slane %v5255_v13, 0  ;;  %v3470_v13 = vmul.f32 %v9428_v20, %v9514_v41  ;;  %v3471_v45 = vmul.f32 %v9428_v20, %v3397_v5  ;;  %v5259_v36 = vmax.f32 %v5067_v28, %v4014_v43 }
 0x20b   : > { %v5069_v5 = vmax.f32 %v4877_v54, %v3824_v59  ;;  %v1676_v28 = vunpack.c.l.b16 %v1099_v0 }
 0x20c   : > { %v5467_v12 = vsel %vm5466_vm6, %v5403_v48, %v5402_v55  ;;  %v3507_v50 = vadd.f32 %v9435_v39, %v3471_v45  ;;  %v5260_v48 = vmax.f32 %v5068_v58, %v4015_v61  ;;  %v9621_v45 = vpop.f32.mrf.mxu1  ;;  %v1070_v58 = vld [vmem:[#allocation2 + $0x128] sm:$0xff] }
 0x20d   : > { %v5469_v40 = vsel %vm5468_vm7, %v5404_v25, %v5467_v12  ;;  %v5261_v21 = vmax.f32 %v5069_v5, %v4016_v38 }
 0x20e   : > { %v3539_v23 = vmax.f32 %v3507_v50, 0.0  ;;  %v5471_v16 = vsel %vm5470_vm8, %v5405_v29, %v5469_v40  ;;  %v5408_v12 = vperm.slane %v5260_v48, 0  ;;  %v1074_v40 = vld [vmem:[#allocation2 + $0x158] sm:$0xff]  ;;  %v2029_v48 = vpop.permute.xlu2 %2028 }
 0x20f   : > { %v3087_v24 = vpop.f32.mrf.mxu2  ;;  %v5409_v54 = vperm.slane %v5261_v21, 0 }
 0x210   : > { %v9619_v25 = vadd.f32 %v3087_v24, %v2998_v49  ;;  %3628 = vst.msk [vmem:[#allocation3 + $0x69] sm:$0xff] %vm3564_vm0, %v3539_v23  ;;  %v1076_v23 = vld [vmem:[#allocation2 + $0x170] sm:$0xff] }
 0x211   : > { %v3400_v30 = vpop.f32.mrf.mxu0 }
 0x212   : > { %v3472_v44 = vmul.f32 %v9428_v20, %v3400_v30  ;;  %v5407_v30 = vperm.slane %v5259_v36, 0 }
 0x213   : > { %3042 = vmatmul.bf16.gmra.mxu1 %v2647_v7 }
 0x214   : > { %7861 = vmatmul.msk.bf16.gmra.mxu0 %vm715_vm2, %v9079_v46  ;;  %v3506_v46 = vadd.f32 %v9435_v39, %v3470_v13  ;;  %v3508_v41 = vadd.f32 %v9435_v39, %v3472_v44  ;;  %v5473_v13 = vsel %vm5472_vm9, %v5406_v60, %v5471_v16  ;;  %v1805_v44 = vpop.permute.xlu1 %1804  ;;  %v1697_v60 = vpack.c.b16 %v9502_v1, %v1676_v28  ;;  %v1069_v1 = vld [vmem:[#allocation2 + $0x120] sm:$0xff]  ;;  %v9637_v28 = vpop.f32.mrf.mxu1 }
 0x215   : > { %v5475_v29 = vsel %vm5474_vm10, %v5407_v30, %v5473_v13  ;;  %v1102_v16 = vpack.c.bf16 %v1070_v58, %v1070_v58  ;;  %v1106_v30 = vpack.c.bf16 %v1074_v40, %v1074_v40  ;;  %v1075_v13 = vld [vmem:[#allocation2 + $0x168] sm:$0xff] }
 0x216   : > { %v3538_v7 = vmax.f32 %v3506_v46, 0.0  ;;  %v3540_v55 = vmax.f32 %v3508_v41, 0.0  ;;  %v5477_v9 = vsel %vm5476_vm11, %v5408_v12, %v5475_v29  ;;  %v1917_v46 = vpop.permute.xlu0 %1916  ;;  %v2569_v50 = vsel %vm715_vm2, %v1697_v60, %v1805_v44  ;;  %v1072_v41 = vld [vmem:[#allocation2 + $0x140] sm:$0xff] }
 0x217   : > { %v5479_v0 = vsel %vm5478_vm12, %v5409_v54, %v5477_v9  ;;  %v2606_v5 = vsel %vm2582_vm4, %v2569_v50, %v1917_v46  ;;  %v9632_v36 = vpop.f32.mrf.mxu2  ;;  %v1104_v24 = vpack.c.bf16 %v1072_v41, %v1072_v41  ;;  %v1101_v12 = vpack.c.bf16 %v1069_v1, %v1069_v1 }
 0x218   : > { %3627 = vst.msk [vmem:[#allocation3 + $0x61] sm:$0xff] %vm3564_vm0, %v3538_v7  ;;  %v1071_v7 = vld [vmem:[#allocation2 + $0x138] sm:$0xff]  ;;  %v2650_v21 = vsel %vm2615_vm5, %v2606_v5, %v2029_v48  ;;  %v1108_v29 = vpack.c.bf16 %v1076_v23, %v1076_v23  ;;  %v1679_v9 = vunpack.c.l.b16 %v1102_v16  ;;  %v1107_v46 = vpack.c.bf16 %v1075_v13, %v1075_v13 }
 0x219   : > { %3629 = vst.msk [vmem:[#allocation3 + $0x79] sm:$0xff] %vm3564_vm0, %v3540_v55  ;;  %v3402_v49 = vpop.f32.mrf.mxu0  ;;  %v1073_v55 = vld [vmem:[#allocation2 + $0x150] sm:$0xff]  ;;  %v1103_v44 = vpack.c.bf16 %v1071_v7, %v1071_v7  ;;  %v9643_v50 = vunpack.c.l.b16 %v1106_v30  ;;  %v3917_v16 = vmax.f32 %v9510_v63, %v9521_v2  ;;  %v3924_v63 = vmax.f32 %v3696_v18, %v3824_v59 }
 0x21a   : > { %5538 = vst.msk [vmem:[#allocation4 + $0x11] sm:$0xff] %vm3564_vm0, %v5479_v0  ;;  %v1105_v60 = vpack.c.bf16 %v1073_v55, %v1073_v55  ;;  %v9641_v0 = vunpack.c.l.b16 %v1104_v24  ;;  %v9647_v5 = vunpack.c.l.b16 %v1108_v29  ;;  %v9653_v48 = vunpack.c.l.b16 %v1107_v46  ;;  %v9661_v55 = vld [vmem:[#allocation3 + $0x48] sm:$0xff] }
 0x21b   : > { %v9645_v58 = vunpack.c.l.b16 %v1103_v44  ;;  %v3918_v24 = vmax.f32 %v3691_v34, %v3819_v47  ;;  %v3473_v30 = vmul.f32 %v9428_v20, %v3402_v49  ;;  %v3920_v44 = vmax.f32 %v3693_v8, %v3821_v42  ;;  %v5562_v47 = vld [vmem:[#allocation4 + $0x1] sm:$0xff] }
 0x21c   : > { %v9649_v40 = vunpack.c.l.b16 %v1105_v60  ;;  %v1807_v1 = vpop.permute.xlu1 %1806  ;;  %v3921_v34 = vmax.f32 %v9528_v26, %v9551_v11  ;;  %v3922_v60 = vmax.f32 %v3694_v27, %v3822_v56  ;;  %v4203_v42 = vrot.slane %v9661_v55, 2  ;;  %v9696_v56 = vpop.f32.mrf.mxu1 }
 0x21d   : > { %v1699_v23 = vpack.c.b16 %v9641_v0, %v9645_v58  ;;  %v4204_v27 = vrot.slane %v9661_v55, 4  ;;  %v5570_v18 = vpack.c.bf16 %v5562_v47, %v5562_v47  ;;  %v4112_v59 = vmax.f32 %v3920_v44, %v4013_v32 }
 0x21e   : > { %v1919_v2 = vpop.permute.xlu0 %1918  ;;  %v9706_v46 = vmax.f32 %v3921_v34, %v9569_v52 }
 0x21f   : > { %v3092_v41 = vpop.f32.mrf.mxu2 }
 0x221   : > { %v9639_v54 = vpop.f32.mrf.mxu0  ;;  %v5579_v11 = vld [vmem:[#allocation4 + $0x12] sm:$0xff] }
 0x222   : > { %v5587_v44 = vpack.c.bf16 %v5579_v11, %v5579_v11 }
 0x223   : > { %3047 = vmatmul.bf16.gmra.mxu1 %v2650_v21  ;;  %v5578_v21 = vld [vmem:[#allocation4 + $0x2] sm:$0xff] }
 0x224   : > { %7862 = vmatmul.msk.bf16.gmra.mxu0 %vm715_vm2, %v9102_v22  ;;  %v1678_v22 = vunpack.c.l.b16 %v1101_v12  ;;  %v3919_v12 = vmax.f32 %v3692_v17, %v3820_v51  ;;  %v3923_v17 = vmax.f32 %v3695_v57, %v3823_v53  ;;  %v9692_v51 = vmax.f32 %v3917_v16, %v9523_v33 }
 0x225   : > { %v4110_v57 = vmax.f32 %v3918_v24, %v4011_v4  ;;  %v3509_v53 = vadd.f32 %v9435_v39, %v3473_v30  ;;  %v4114_v4 = vmax.f32 %v3922_v60, %v4014_v43  ;;  %v4116_v33 = vmax.f32 %v3924_v63, %v4016_v38  ;;  %v9720_v24 = vld [vmem:[#allocation3 + $0x50] sm:$0xff] }
 0x226   : > { %v1698_v7 = vpack.c.b16 %v1679_v9, %v1678_v22  ;;  %v5586_v9 = vpack.c.bf16 %v5578_v21, %v5578_v21  ;;  %v4111_v26 = vmax.f32 %v3919_v12, %v4012_v10  ;;  %v4205_v22 = vrot.slane %v9661_v55, 6  ;;  %v2031_v12 = vpop.permute.xlu2 %2030  ;;  %v4359_v43 = vld [vmem:[#allocation3 + $0x49] sm:$0xff] }
 0x227   : > { %v9710_v16 = vpop.f32.mrf.mxu2  ;;  %v4115_v10 = vmax.f32 %v3923_v17, %v4015_v61  ;;  %v4301_v32 = vmax.f32 %v9692_v51, %v9661_v55  ;;  %v4302_v21 = vmax.f32 %v4110_v57, %v4203_v42  ;;  %v5719_v60 = vunpack.c.l.b16 %v5570_v18 }
 0x228   : > { %v2572_v8 = vsel %vm715_vm2, %v1698_v7, %v1807_v1  ;;  %v5563_v1 = vld [vmem:[#allocation4 + $0x11] sm:$0xff]  ;;  %11992 = vst [vmem:[#allocation20_spill] sm:$0xff] %v9710_v16  ;;  %v4303_v30 = vmax.f32 %v4111_v26, %v4204_v27  ;;  %v5747_v34 = vunpack.c.l.b16 %v5586_v9  ;;  %v3541_v61 = vmax.f32 %v3509_v53, 0.0 }
 0x229   : > { %v3407_v29 = vpop.f32.mrf.mxu0  ;;  %v2608_v7 = vsel %vm2582_vm4, %v2572_v8, %v1919_v2  ;;  %v5571_v47 = vpack.c.bf16 %v5563_v1, %v5563_v1  ;;  %v4304_v38 = vmax.f32 %v4112_v59, %v4205_v22  ;;  %v4206_v17 = vrot.slane %v9720_v24, 2  ;;  %v4360_v22 = vld [vmem:[#allocation3 + $0x51] sm:$0xff]  ;;  %v3008_v1 = vpop.f32.mrf.mxu1 }
 0x22a   : > { %v2653_v52 = vsel %vm2615_vm5, %v2608_v7, %v2031_v12  ;;  %v9726_v55 = vunpack.c.l.b16 %v5587_v44  ;;  %v9729_v63 = vadd.f32 %v3092_v41, %v9637_v28  ;;  %v4207_v2 = vrot.slane %v9720_v24, 4  ;;  %3630 = vst.msk [vmem:[#allocation3 + $0x81] sm:$0xff] %vm3564_vm0, %v3541_v61 }
 0x22b   : > { %v4208_v8 = vrot.slane %v9720_v24, 6  ;;  %v3474_v51 = vmul.f32 %v9428_v20, %v9639_v54  ;;  %v4395_v27 = vrot.slane %v4359_v43, 2  ;;  %v3475_v57 = vmul.f32 %v9428_v20, %v3407_v29  ;;  %v9745_v54 = vld [vmem:[#allocation3 + $0x4a] sm:$0xff] }
 0x22c   : > { %11993 = vst [vmem:[#allocation21_spill] sm:$0xff] %v9729_v63  ;;  %v5755_v9 = vpack.c.b16 %v9726_v55, %v5747_v34  ;;  %v4396_v41 = vrot.slane %v4359_v43, 4  ;;  %v4397_v26 = vrot.slane %v4359_v43, 6  ;;  %v4305_v53 = vmax.f32 %v9706_v46, %v9720_v24 }
 0x22d   : > { %v3510_v18 = vadd.f32 %v9435_v39, %v3474_v51  ;;  %v4306_v59 = vmax.f32 %v4114_v4, %v4206_v17  ;;  %v3511_v29 = vadd.f32 %v9435_v39, %v3475_v57  ;;  %v4307_v12 = vmax.f32 %v4115_v10, %v4207_v2  ;;  %v4552_v51 = vld [vmem:[#allocation3 + $0x52] sm:$0xff]  ;;  %v1921_v57 = vpop.permute.xlu1 %1920 }
 0x22e   : > { %5759 = vrot.lane.b32.xlu1 %v5755_v9, %s8468_s1  ;;  %v4308_v44 = vmax.f32 %v4116_v33, %v4208_v8  ;;  %v4493_v46 = vmax.f32 %v4301_v32, %v4359_v43  ;;  %v4494_v4 = vmax.f32 %v4302_v21, %v4395_v27  ;;  %v4398_v61 = vrot.slane %v4360_v22, 2  ;;  %v9757_v8 = vld [vmem:[#allocation3 + $0x60] sm:$0xff]  ;;  %v1809_v32 = vpop.permute.xlu2 %1808 }
 0x22f   : > { %v3097_v7 = vpop.f32.mrf.mxu2  ;;  %v3542_v34 = vmax.f32 %v3510_v18, 0.0  ;;  %v3543_v24 = vmax.f32 %v3511_v29, 0.0  ;;  %v4400_v17 = vrot.slane %v4360_v22, 6  ;;  %v4496_v10 = vmax.f32 %v4304_v38, %v4397_v26  ;;  %v3785_v29 = vld [vmem:[#allocation3 + $0x61] sm:$0xff] }
 0x230   : > { %v4588_v33 = vrot.slane %v9745_v54, 4  ;;  %v4589_v2 = vrot.slane %v9745_v54, 6  ;;  %v4497_v21 = vmax.f32 %v4305_v53, %v4360_v22  ;;  %v4498_v43 = vmax.f32 %v4306_v59, %v4398_v61 }
 0x231   : > { %v3410_v42 = vpop.f32.mrf.mxu0  ;;  %3631 = vst.msk [vmem:[#allocation3 + $0x91] sm:$0xff] %vm3564_vm0, %v3542_v34  ;;  %v4500_v9 = vmax.f32 %v4308_v44, %v4400_v17  ;;  %v4685_v38 = vmax.f32 %v4493_v46, %v9745_v54  ;;  %v3697_v18 = vrot.slane %v9757_v8, 2  ;;  %v2575_v53 = vsel %vm715_vm2, %v1699_v23, %v1809_v32  ;;  %v9770_v34 = vld [vmem:[#allocation3 + $0x68] sm:$0xff] }
 0x232   : > { %v3476_v28 = vmul.f32 %v9428_v20, %v3410_v42  ;;  %v4587_v42 = vrot.slane %v9745_v54, 2  ;;  %3632 = vst.msk [vmem:[#allocation3 + $0x99] sm:$0xff] %vm3564_vm0, %v3543_v24  ;;  %v9772_v46 = vld [vmem:[#allocation3 + $0x69] sm:$0xff]  ;;  %v3826_v0 = vrot.slane %v3785_v29, 4  ;;  %v3827_v58 = vrot.slane %v3785_v29, 6 }
 0x233   : > { %3052 = vmatmul.bf16.gmra.mxu1 %v2653_v52  ;;  %v4399_v52 = vrot.slane %v4360_v22, 4  ;;  %v4688_v22 = vmax.f32 %v4496_v10, %v4589_v2  ;;  %v3977_v23 = vld [vmem:[#allocation3 + $0x62] sm:$0xff]  ;;  %v3925_v61 = vmax.f32 %v9757_v8, %v3785_v29  ;;  %v3701_v10 = vrot.slane %v9770_v34, 4 }
 0x234   : > { %7863 = vmatmul.msk.bf16.gmra.mxu0 %vm715_vm2, %v9129_v3  ;;  %v9733_v3 = vunpack.c.l.b16 %v5571_v47  ;;  %v3512_v20 = vadd.f32 %v9435_v39, %v3476_v28  ;;  %v9751_v47 = vadd.f32 %v3097_v7, %v3008_v1  ;;  %v4495_v39 = vmax.f32 %v4303_v30, %v4396_v41  ;;  %v2033_v41 = vpop.permute.xlu0 %2032 }
 0x235   : > { %v4499_v27 = vmax.f32 %v4307_v12, %v4399_v52  ;;  %v4590_v28 = vrot.slane %v4552_v51, 2  ;;  %v4592_v30 = vrot.slane %v4552_v51, 6  ;;  %v4686_v26 = vmax.f32 %v4494_v4, %v4587_v42 }
 0x236   : > { %v5727_v11 = vpack.c.b16 %v9733_v3, %v5719_v60  ;;  %11994 = vst [vmem:[#allocation22_spill] sm:$0xff] %v9751_v47  ;;  %v3544_v60 = vmax.f32 %v3512_v20, 0.0  ;;  %v3698_v1 = vrot.slane %v9757_v8, 4  ;;  %v4687_v59 = vmax.f32 %v4495_v39, %v4588_v33 }
 0x237   : > { %v3699_v7 = vrot.slane %v9757_v8, 6  ;;  %v2610_v20 = vsel %vm2582_vm4, %v2575_v53, %v1921_v57  ;;  %v4689_v12 = vmax.f32 %v4497_v21, %v4552_v51  ;;  %v4690_v54 = vmax.f32 %v4498_v43, %v4590_v28  ;;  %v9788_v28 = vpop.f32.mrf.mxu1 }
 0x238   : > { %5731 = vrot.lane.b32.xlu0 %v5727_v11, %s8469_s21  ;;  %3633 = vst.msk [vmem:[#allocation3 + $0xa9] sm:$0xff] %vm3564_vm0, %v3544_v60  ;;  %v4591_v11 = vrot.slane %v4552_v51, 4  ;;  %v2656_v4 = vsel %vm2615_vm5, %v2610_v20, %v2033_v41  ;;  %v4692_v24 = vmax.f32 %v4500_v9, %v4592_v30  ;;  %v3825_v60 = vrot.slane %v3785_v29, 2  ;;  %v9785_v9 = vld [vmem:[#allocation3 + $0x6a] sm:$0xff] }
 0x239   : > { %v4878_v52 = vmax.f32 %v4685_v38, %v9757_v8  ;;  %v4879_v17 = vmax.f32 %v4686_v26, %v3697_v18  ;;  %v4880_v51 = vmax.f32 %v4687_v59, %v3698_v1  ;;  %v4881_v42 = vmax.f32 %v4688_v22, %v3699_v7  ;;  %11995 = vst [vmem:[#allocation23_spill] sm:$0xff] %v9788_v28  ;;  %v3412_v63 = vpop.f32.mrf.mxu0 }
 0x23a   : > { %v4691_v44 = vmax.f32 %v4499_v27, %v4591_v11  ;;  %v3700_v39 = vrot.slane %v9770_v34, 2  ;;  %v3828_v33 = vrot.slane %v9772_v46, 2  ;;  %v3702_v2 = vrot.slane %v9770_v34, 6 }
 0x23b   : > { %v3829_v32 = vrot.slane %v9772_v46, 4  ;;  %v4017_v21 = vrot.slane %v3977_v23, 2  ;;  %v3926_v43 = vmax.f32 %v3697_v18, %v3825_v60  ;;  %v3927_v27 = vmax.f32 %v3698_v1, %v3826_v0 }
 0x23c   : > { %v3928_v8 = vmax.f32 %v3699_v7, %v3827_v58  ;;  %v4882_v57 = vmax.f32 %v4689_v12, %v9770_v34  ;;  %v5070_v11 = vmax.f32 %v4878_v52, %v3785_v29  ;;  %v5071_v30 = vmax.f32 %v4879_v17, %v3825_v60 }
 0x23d   : > { %v5072_v38 = vmax.f32 %v4880_v51, %v3826_v0  ;;  %v4018_v41 = vrot.slane %v3977_v23, 4  ;;  %v5073_v26 = vmax.f32 %v4881_v42, %v3827_v58  ;;  %v3929_v53 = vmax.f32 %v9770_v34, %v9772_v46  ;;  %v9796_v34 = vpop.f32.mrf.mxu2 }
 0x23e   : > { %v3930_v59 = vmax.f32 %v3700_v39, %v3828_v33  ;;  %v4019_v22 = vrot.slane %v3977_v23, 6  ;;  %v3931_v20 = vmax.f32 %v3701_v10, %v3829_v32  ;;  %v4020_v1 = vrot.slane %v9785_v9, 2 }
 0x23f   : > { %v5263_v7 = vmax.f32 %v5071_v30, %v4017_v21  ;;  %v4021_v12 = vrot.slane %v9785_v9, 4  ;;  %v4022_v49 = vrot.slane %v9785_v9, 6  ;;  %v4117_v29 = vmax.f32 %v3925_v61, %v3977_v23 }
 0x240   : > { %v5074_v60 = vmax.f32 %v4882_v57, %v9772_v46  ;;  %v4118_v0 = vmax.f32 %v3926_v43, %v4017_v21  ;;  %v4119_v58 = vmax.f32 %v3927_v27, %v4018_v41  ;;  %v4883_v52 = vmax.f32 %v4690_v54, %v3700_v39  ;;  %v4361_v21 = vld [vmem:[#allocation3 + $0x79] sm:$0xff] }
 0x241   : > { %v5262_v17 = vmax.f32 %v5070_v11, %v3977_v23  ;;  %v4120_v51 = vmax.f32 %v3928_v8, %v4019_v22  ;;  %v5264_v42 = vmax.f32 %v5072_v38, %v4018_v41  ;;  %v5265_v13 = vmax.f32 %v5073_v26, %v4019_v22  ;;  %v4170_v41 = vld [vmem:[#allocation3 + $0x80] sm:$0xff]  ;;  %v3013_v26 = vpop.f32.mrf.mxu1 }
 0x242   : > { %v9799_v30 = vmax.f32 %v3929_v53, %v9785_v9  ;;  %v5411_v28 = vperm.slane %v5263_v7, 0  ;;  %v4122_v61 = vmax.f32 %v3930_v59, %v4020_v1  ;;  %v4884_v16 = vmax.f32 %v4691_v44, %v3701_v10 }
 0x243   : > { %3057 = vmatmul.bf16.gmra.mxu1 %v2656_v4  ;;  %v4169_v4 = vld [vmem:[#allocation3 + $0x78] sm:$0xff]  ;;  %v4885_v54 = vmax.f32 %v4692_v24, %v3702_v2  ;;  %v4123_v23 = vmax.f32 %v3931_v20, %v4021_v12  ;;  %v5075_v39 = vmax.f32 %v4883_v52, %v3828_v33  ;;  %v5410_v43 = vperm.slane %v5262_v17, 0 }
 0x244   : > { %7864 = vmatmul.msk.bf16.gmra.mxu0 %vm715_vm2, %v9162_v62  ;;  %v3830_v62 = vrot.slane %v9772_v46, 6  ;;  %v4209_v47 = vrot.slane %v4169_v4, 2  ;;  %v4210_v31 = vrot.slane %v4169_v4, 4  ;;  %v4211_v37 = vrot.slane %v4169_v4, 6 }
 0x245   : > { %v5266_v46 = vmax.f32 %v5074_v60, %v9785_v9  ;;  %v4309_v27 = vmax.f32 %v4117_v29, %v4169_v4  ;;  %v5412_v57 = vperm.slane %v5264_v42, 0  ;;  %v5413_v11 = vperm.slane %v5265_v13, 0  ;;  %v9803_v9 = vld [vmem:[#allocation3 + $0x81] sm:$0xff]  ;;  %v3102_v13 = vpop.f32.mrf.mxu2 }
 0x246   : > { %v3932_v18 = vmax.f32 %v3702_v2, %v3830_v62  ;;  %v4310_v38 = vmax.f32 %v4118_v0, %v4209_v47  ;;  %v5480_v53 = vsel %vm5466_vm6, %v5411_v28, %v5410_v43  ;;  %v4311_v22 = vmax.f32 %v4119_v58, %v4210_v31  ;;  %v9807_v0 = vld [vmem:[#allocation3 + $0x7a] sm:$0xff] }
 0x247   : > { %v4312_v7 = vmax.f32 %v4120_v51, %v4211_v37  ;;  %v4401_v59 = vrot.slane %v4361_v21, 2  ;;  %v5414_v44 = vperm.slane %v5266_v46, 0  ;;  %v4402_v10 = vrot.slane %v4361_v21, 4  ;;  %v1811_v51 = vpop.permute.xlu0 %1810 }
 0x248   : > { %v4124_v8 = vmax.f32 %v3932_v18, %v4022_v49  ;;  %v5076_v24 = vmax.f32 %v4884_v16, %v3829_v32  ;;  %v5077_v2 = vmax.f32 %v4885_v54, %v3830_v62  ;;  %v4403_v33 = vrot.slane %v4361_v21, 6  ;;  %v3415_v32 = vpop.f32.mrf.mxu0 }
 0x249   : > { %v9805_v20 = vmax.f32 %v4309_v27, %v4361_v21  ;;  %v4212_v18 = vrot.slane %v4170_v41, 2  ;;  %v5267_v4 = vmax.f32 %v5075_v39, %v4020_v1  ;;  %v4502_v47 = vmax.f32 %v4310_v38, %v4401_v59 }
 0x24a   : > { %v4213_v29 = vrot.slane %v4170_v41, 4  ;;  %v4214_v60 = vrot.slane %v4170_v41, 6  ;;  %v5481_v37 = vsel %vm5468_vm7, %v5412_v57, %v5480_v53  ;;  %v4503_v31 = vmax.f32 %v4311_v22, %v4402_v10  ;;  %v9817_v57 = vld [vmem:[#allocation3 + $0x82] sm:$0xff]  ;;  %v9833_v22 = vpop.f32.mrf.mxu1 }
 0x24b   : > { %v4504_v28 = vmax.f32 %v4312_v7, %v4403_v33  ;;  %v4313_v58 = vmax.f32 %v9799_v30, %v4170_v41  ;;  %v4404_v16 = vrot.slane %v9803_v9, 2  ;;  %v4405_v62 = vrot.slane %v9803_v9, 4  ;;  %v9852_v33 = vld [vmem:[#allocation3 + $0x90] sm:$0xff] }
 0x24c   : > { %v4406_v52 = vrot.slane %v9803_v9, 6  ;;  %v5268_v1 = vmax.f32 %v5076_v24, %v4021_v12  ;;  %v5269_v17 = vmax.f32 %v5077_v2, %v4022_v49  ;;  %v4314_v42 = vmax.f32 %v4122_v61, %v4212_v18  ;;  %v9827_v61 = vld [vmem:[%s11988_s8] ss:$0 sm:$0xff]  ;;  %v9854_v18 = vld [vmem:[#allocation3 + $0x91] sm:$0xff] }
 0x24d   : > { %v4593_v46 = vrot.slane %v9807_v0, 2  ;;  %v5415_v21 = vperm.slane %v5267_v4, 0  ;;  %v5482_v54 = vsel %vm5470_vm8, %v5413_v11, %v5481_v37  ;;  %v4315_v39 = vmax.f32 %v4123_v23, %v4213_v29  ;;  %v1923_v11 = vpop.permute.xlu2 %1922  ;;  %v9848_v24 = vpop.f32.mrf.mxu2 }
 0x24e   : > { %v4316_v43 = vmax.f32 %v4124_v8, %v4214_v60  ;;  %v5416_v27 = vperm.slane %v5268_v1, 0  ;;  %v5483_v30 = vsel %vm5472_vm9, %v5414_v44, %v5482_v54  ;;  %v5417_v38 = vperm.slane %v5269_v17, 0  ;;  %v2035_v8 = vpop.permute.xlu1 %2034 }
 0x24f   : > { %v5484_v41 = vsel %vm5474_vm10, %v5415_v21, %v5483_v30  ;;  %v11996_v49 = vpack.c.b16 %v9643_v50, %v9649_v40  ;;  %v3477_v23 = vmul.f32 %v9827_v61, %v3412_v63  ;;  %v9831_v53 = vmax.f32 %v4313_v58, %v9803_v9  ;;  %v9844_v63 = vld [vmem:[%s11989_s9] ss:$0 sm:$0xff] }
 0x250   : > { %v5485_v7 = vsel %vm5476_vm11, %v5416_v27, %v5484_v41  ;;  %v9836_v59 = vadd.f32 %v3102_v13, %v3013_v26  ;;  %v3478_v50 = vmul.f32 %v9827_v61, %v3415_v32  ;;  %v4594_v40 = vrot.slane %v9807_v0, 4  ;;  %v3417_v32 = vpop.f32.mrf.mxu0 }
 0x251   : > { %v2578_v12 = vsel %vm715_vm2, %v11996_v49, %v1811_v51  ;;  %v5486_v44 = vsel %vm5478_vm12, %v5417_v38, %v5485_v7  ;;  %v3513_v10 = vadd.f32 %v9844_v63, %v3477_v23  ;;  %v4595_v26 = vrot.slane %v9807_v0, 6 }
 0x252   : > { %11997 = vst [vmem:[#allocation24_spill] sm:$0xff] %v9836_v59  ;;  %v2612_v9 = vsel %vm2582_vm4, %v2578_v12, %v1923_v11  ;;  %v4596_v2 = vrot.slane %v9817_v57, 2  ;;  %v3514_v4 = vadd.f32 %v9844_v63, %v3478_v50  ;;  %v4506_v29 = vmax.f32 %v4314_v42, %v4404_v16 }
 0x253   : > { %5539 = vst.msk [vmem:[#allocation4 + $0x21] sm:$0xff] %vm3564_vm0, %v5486_v44  ;;  %v2659_v13 = vsel %vm2615_vm5, %v2612_v9, %v2035_v8  ;;  %v4507_v60 = vmax.f32 %v4315_v39, %v4405_v62  ;;  %v4597_v37 = vrot.slane %v9817_v57, 4  ;;  %v3545_v58 = vmax.f32 %v3513_v10, 0.0  ;;  %v5594_v62 = vld [vmem:[#allocation4 + $0x10] sm:$0xff]  ;;  %v3018_v10 = vpop.f32.mrf.mxu1 }
 0x254   : > { %3062 = vmatmul.bf16.gmra.mxu1 %v2659_v13  ;;  %v4508_v1 = vmax.f32 %v4316_v43, %v4406_v52  ;;  %v4598_v17 = vrot.slane %v9817_v57, 6  ;;  %v3546_v51 = vmax.f32 %v3514_v4, 0.0  ;;  %v3479_v21 = vmul.f32 %v9827_v61, %v3417_v32  ;;  %v9888_v44 = vld [vmem:[#allocation3 + $0x99] sm:$0xff] }
 0x255   : > { %v4693_v54 = vmax.f32 %v9805_v20, %v9807_v0  ;;  %v4694_v27 = vmax.f32 %v4502_v47, %v4593_v46  ;;  %v3703_v30 = vrot.slane %v9852_v33, 2  ;;  %v3831_v16 = vrot.slane %v9854_v18, 2  ;;  %3634 = vst.msk [vmem:[#allocation3 + $0xb1] sm:$0xff] %vm3564_vm0, %v3545_v58  ;;  %v3107_v50 = vpop.f32.mrf.mxu2 }
 0x256   : > { %v4695_v42 = vmax.f32 %v4503_v31, %v4594_v40  ;;  %v4696_v39 = vmax.f32 %v4504_v28, %v4595_v26  ;;  %v4697_v52 = vmax.f32 %v9831_v53, %v9817_v57  ;;  %3635 = vst.msk [vmem:[#allocation3 + $0xc1] sm:$0xff] %vm3564_vm0, %v3546_v51  ;;  %v3515_v43 = vadd.f32 %v9844_v63, %v3479_v21  ;;  %v9880_v28 = vld [vmem:[#allocation3 + $0x98] sm:$0xff] }
 0x257   : > { %v9871_v38 = vmax.f32 %v4506_v29, %v4596_v2  ;;  %v9873_v20 = vmax.f32 %v4507_v60, %v4597_v37  ;;  %v3704_v47 = vrot.slane %v9852_v33, 4  ;;  %v3705_v0 = vrot.slane %v9852_v33, 6 }
 0x258   : > { %v9877_v46 = vmax.f32 %v4508_v1, %v4598_v17  ;;  %v3832_v31 = vrot.slane %v9854_v18, 4  ;;  %v5602_v41 = vpack.c.bf16 %v5594_v62, %v5594_v62  ;;  %v3547_v57 = vmax.f32 %v3515_v43, 0.0 }
 0x259   : > { %v3833_v49 = vrot.slane %v9854_v18, 6  ;;  %v3933_v12 = vmax.f32 %v9852_v33, %v9854_v18  ;;  %v3934_v23 = vmax.f32 %v3703_v30, %v3831_v16  ;;  %v9886_v8 = vmax.f32 %v4693_v54, %v9852_v33  ;;  %v3979_v33 = vld [vmem:[#allocation3 + $0x92] sm:$0xff] }
 0x25a   : > { %v5627_v11 = vld [vmem:[#allocation4 + $0x22] sm:$0xff]  ;;  %v4887_v40 = vmax.f32 %v4694_v27, %v3703_v30  ;;  %3636 = vst.msk [vmem:[#allocation3 + $0xc9] sm:$0xff] %vm3564_vm0, %v3547_v57  ;;  %v4888_v4 = vmax.f32 %v4695_v42, %v3704_v47  ;;  %v4889_v13 = vmax.f32 %v4696_v39, %v3705_v0  ;;  %v3706_v29 = vrot.slane %v9880_v28, 2 }
 0x25b   : > { %v5611_v53 = vld [vmem:[#allocation4 + $0x21] sm:$0xff]  ;;  %v5635_v9 = vpack.c.bf16 %v5627_v11, %v5627_v11  ;;  %v9892_v60 = vadd.f32 %v3107_v50, %v3018_v10  ;;  %v5775_v32 = vunpack.c.l.b16 %v5602_v41  ;;  %v3707_v17 = vrot.slane %v9880_v28, 4  ;;  %v9910_v41 = vld [vmem:[#allocation3 + $0x9a] sm:$0xff] }
 0x25c   : > { %v5595_v7 = vld [vmem:[#allocation4 + $0x20] sm:$0xff]  ;;  %v5619_v26 = vpack.c.bf16 %v5611_v53, %v5611_v53  ;;  %v11934_v51 = vrot.slane %v9880_v28, 6  ;;  %v3834_v21 = vrot.slane %v9888_v44, 2  ;;  %v11933_v54 = vrot.slane %v9888_v44, 4 }
 0x25d   : > { %v5603_v2 = vpack.c.bf16 %v5595_v7, %v5595_v7  ;;  %11998 = vst [vmem:[#allocation25_spill] sm:$0xff] %v9892_v60  ;;  %v9894_v37 = vunpack.c.l.b16 %v5635_v9  ;;  %v11932_v27 = vrot.slane %v9888_v44, 6  ;;  %v3935_v39 = vmax.f32 %v3704_v47, %v3832_v31 }
 0x25e   : > { %v9896_v58 = vunpack.c.l.b16 %v5619_v26  ;;  %v3936_v43 = vmax.f32 %v3705_v0, %v3833_v49  ;;  %v4023_v57 = vrot.slane %v3979_v33, 2  ;;  %v4890_v11 = vmax.f32 %v4697_v52, %v9880_v28 }
 0x25f   : > { %v9898_v1 = vunpack.c.l.b16 %v5603_v2  ;;  %v5839_v30 = vpack.c.b16 %v9894_v37, %v9726_v55  ;;  %v5078_v53 = vmax.f32 %v9886_v8, %v9854_v18  ;;  %v5079_v7 = vmax.f32 %v4887_v40, %v3831_v16  ;;  %v3420_v2 = vpop.f32.mrf.mxu0 }
 0x260   : > { %v5811_v62 = vpack.c.b16 %v9896_v58, %v9733_v3  ;;  %v5080_v50 = vmax.f32 %v4888_v4, %v3832_v31  ;;  %v4024_v10 = vrot.slane %v3979_v33, 4  ;;  %v5081_v55 = vmax.f32 %v4889_v13, %v3833_v49  ;;  %v4171_v49 = vld [vmem:[#allocation3 + $0xa8] sm:$0xff]  ;;  %v8097_v4 = vld [vmem:[%s11999_s10 + $0x40] sm:$0xff] }
 0x261   : > { %v5783_v42 = vpack.c.b16 %v9898_v1, %v5775_v32  ;;  %5843 = vrot.lane.b32.xlu1 %v5839_v30, %s8470_s3  ;;  %v3937_v3 = vmax.f32 %v9880_v28, %v9888_v44  ;;  %v3938_v47 = vmax.f32 %v3706_v29, %v3834_v21  ;;  %v4025_v0 = vrot.slane %v3979_v33, 6  ;;  %v8096_v13 = vld [vmem:[%s11999_s10 + $0x38] sm:$0xff]  ;;  %6114 = vmatpush.bf16.msra.mxu0 %v8097_v4 }
 0x262   : > { %5815 = vrot.lane.b32.xlu0 %v5811_v62, %s11939_s29  ;;  %v3939_v18 = vmax.f32 %v3707_v17, %v11933_v54  ;;  %v3940_v16 = vmax.f32 %v11934_v51, %v11932_v27  ;;  %v11935_v52 = vrot.slane %v9910_v41, 2  ;;  %v4125_v40 = vmax.f32 %v3933_v12, %v3979_v33  ;;  %6078 = vmatpush.bf16.msrb.mxu3 %v8096_v13 }
 0x263   : > { %5787 = vrot.lane.b32.xlu2 %v5783_v42, %s8471_s4  ;;  %v5082_v9 = vmax.f32 %v4890_v11, %v9888_v44  ;;  %v5271_v26 = vmax.f32 %v5079_v7, %v4023_v57  ;;  %v4126_v32 = vmax.f32 %v3934_v23, %v4023_v57  ;;  %v4127_v30 = vmax.f32 %v3935_v39, %v4024_v10  ;;  %v4172_v23 = vld [vmem:[#allocation3 + $0xb0] sm:$0xff] }
 0x264   : > { %v4891_v62 = vmax.f32 %v9871_v38, %v3706_v29  ;;  %v5270_v42 = vmax.f32 %v5078_v53, %v3979_v33  ;;  %v4128_v27 = vmax.f32 %v3936_v43, %v4025_v0  ;;  %v4129_v12 = vmax.f32 %v3937_v3, %v9910_v41  ;;  %8120 = vmatpush.bf16.msrb.mxu1 %v8097_v4  ;;  %v4363_v3 = vld [vmem:[#allocation3 + $0xa9] sm:$0xff] }
 0x265   : > { %v4215_v54 = vrot.slane %v4171_v49, 2  ;;  %v4216_v11 = vrot.slane %v4171_v49, 4  ;;  %v4130_v7 = vmax.f32 %v3938_v47, %v11935_v52  ;;  %v9940_v51 = vmax.f32 %v5080_v50, %v4024_v10 }
 0x266   : > { %v9942_v8 = vmax.f32 %v5081_v55, %v4025_v0  ;;  %v4217_v31 = vrot.slane %v4171_v49, 6  ;;  %v12000_v38 = vrot.slane %v9910_v41, 4  ;;  %v12001_v33 = vrot.slane %v9910_v41, 6 }
 0x267   : > { %v9949_v43 = vmax.f32 %v5082_v9, %v9910_v41  ;;  %v5419_v57 = vperm.slane %v5271_v26, 0  ;;  %v9952_v53 = vmax.f32 %v9873_v20, %v3707_v17  ;;  %v9954_v50 = vmax.f32 %v4891_v62, %v3834_v21  ;;  %v1813_v62 = vpop.permute.xlu1 %1812  ;;  %v3422_v26 = vpop.f32.mrf.mxu0 }
 0x268   : > { %v4131_v29 = vmax.f32 %v3939_v18, %v12000_v38  ;;  %v4132_v39 = vmax.f32 %v3940_v16, %v12001_v33  ;;  %v5418_v10 = vperm.slane %v5270_v42, 0  ;;  %v4317_v55 = vmax.f32 %v4125_v40, %v4171_v49  ;;  %v5546_v18 = vld [vmem:[#allocation4] sm:$0xff]  ;;  %v9964_v42 = vpop.f32.mrf.mxu2 }
 0x269   : > { %v4318_v47 = vmax.f32 %v4126_v32, %v4215_v54  ;;  %v4319_v0 = vmax.f32 %v4127_v30, %v4216_v11  ;;  %v4218_v4 = vrot.slane %v4172_v23, 2  ;;  %v4219_v13 = vrot.slane %v4172_v23, 4  ;;  %v4364_v32 = vld [vmem:[#allocation3 + $0xb1] sm:$0xff]  ;;  %12002 = vst [vmem:[#allocation26_spill] sm:$0xff] %v9964_v42 }
 0x26a   : > { %v4320_v9 = vmax.f32 %v4128_v27, %v4217_v31  ;;  %v4220_v33 = vrot.slane %v4172_v23, 6  ;;  %v5487_v20 = vsel %vm5466_vm6, %v5419_v57, %v5418_v10  ;;  %v4407_v17 = vrot.slane %v4363_v3, 2  ;;  %v9962_v30 = vld [vmem:[#allocation3 + $0xaa] sm:$0xff]  ;;  %v9966_v57 = vpop.f32.mrf.mxu1 }
 0x26b   : > { %v4408_v21 = vrot.slane %v4363_v3, 4  ;;  %v4409_v49 = vrot.slane %v4363_v3, 6  ;;  %v9960_v40 = vmax.f32 %v4317_v55, %v4363_v3  ;;  %v4321_v54 = vmax.f32 %v4129_v12, %v4172_v23  ;;  %12003 = vst [vmem:[#allocation27_spill] sm:$0xff] %v9966_v57  ;;  %v9973_v3 = vld [vmem:[#allocation4 + $0x10] sm:$0xff] }
 0x26c   : > { %v5554_v11 = vpack.c.bf16 %v5546_v18, %v5546_v18  ;;  %v4510_v16 = vmax.f32 %v4318_v47, %v4407_v17  ;;  %v4322_v31 = vmax.f32 %v4130_v7, %v4218_v4  ;;  %v4323_v38 = vmax.f32 %v4131_v29, %v4219_v13  ;;  %v9975_v47 = vld [vmem:[#allocation3 + $0xb2] sm:$0xff] }
 0x26d   : > { %v4511_v27 = vmax.f32 %v4319_v0, %v4408_v21  ;;  %v4512_v52 = vmax.f32 %v4320_v9, %v4409_v49  ;;  %v4324_v10 = vmax.f32 %v4132_v39, %v4220_v33  ;;  %v12004_v55 = vpack.c.b16 %v9647_v5, %v9653_v48 }
 0x26e   : > { %v3480_v23 = vmul.f32 %v9827_v61, %v3420_v2  ;;  %v4410_v60 = vrot.slane %v4364_v32, 2  ;;  %v4411_v18 = vrot.slane %v4364_v32, 4  ;;  %v4599_v7 = vrot.slane %v9962_v30, 2 }
 0x26f   : > { %v2581_v12 = vsel %vm715_vm2, %v12004_v55, %v1813_v62  ;;  %v4600_v29 = vrot.slane %v9962_v30, 4  ;;  %v4412_v0 = vrot.slane %v4364_v32, 6  ;;  %v9979_v4 = vmax.f32 %v4321_v54, %v4364_v32 }
 0x270   : > { %v4601_v39 = vrot.slane %v9962_v30, 6  ;;  %v9982_v5 = vunpack.c.l.b16 %v5554_v11  ;;  %v4514_v48 = vmax.f32 %v4322_v31, %v4410_v60  ;;  %v4515_v13 = vmax.f32 %v4323_v38, %v4411_v18  ;;  %v1925_v38 = vpop.permute.xlu0 %1924  ;;  %v2037_v11 = vpop.permute.xlu2 %2036 }
 0x271   : > { %v12005_v2 = vrot.slane %v9880_v28, 6  ;;  %v4516_v17 = vmax.f32 %v4324_v10, %v4412_v0  ;;  %v4602_v21 = vrot.slane %v9975_v47, 2  ;;  %v4603_v62 = vrot.slane %v9975_v47, 4  ;;  %v9997_v10 = vld [vmem:[#allocation3 + $0xc0] sm:$0xff] }
 0x272   : > { %v4604_v49 = vrot.slane %v9975_v47, 6  ;;  %v4701_v54 = vmax.f32 %v9960_v40, %v9962_v30  ;;  %v4702_v32 = vmax.f32 %v4510_v16, %v4599_v7  ;;  %v4703_v60 = vmax.f32 %v4511_v27, %v4600_v29  ;;  %v10010_v7 = vld [vmem:[#allocation3 + $0xc1] sm:$0xff] }
 0x273   : > { %v4893_v9 = vmax.f32 %v9877_v46, %v12005_v2  ;;  %v3516_v28 = vadd.f32 %v9844_v63, %v3480_v23  ;;  %v4704_v46 = vmax.f32 %v4512_v52, %v4601_v39  ;;  %v4705_v31 = vmax.f32 %v9979_v4, %v9975_v47  ;;  %v3425_v52 = vpop.f32.mrf.mxu0 }
 0x274   : > { %v2614_v55 = vsel %vm2582_vm4, %v2581_v12, %v1925_v38  ;;  %v12006_v18 = vrot.slane %v9888_v44, 4  ;;  %v10003_v2 = vmax.f32 %v4514_v48, %v4602_v21  ;;  %v12007_v30 = vrot.slane %v9888_v44, 6  ;;  %v3112_v38 = vpop.f32.mrf.mxu2 }
 0x275   : > { %v3548_v16 = vmax.f32 %v3516_v28, 0.0  ;;  %v2662_v40 = vsel %vm2615_vm5, %v2614_v55, %v2037_v11  ;;  %v10008_v23 = vmax.f32 %v4515_v13, %v4603_v62  ;;  %v12008_v12 = vrot.slane %v9910_v41, 2  ;;  %v3023_v11 = vpop.f32.mrf.mxu1 }
 0x276   : > { %v5084_v0 = vmax.f32 %v9952_v53, %v12006_v18  ;;  %v5085_v27 = vmax.f32 %v4893_v9, %v12007_v30  ;;  %3067 = vmatmul.bf16.gmra.mxu1 %v2662_v40  ;;  %v12009_v53 = vrot.slane %v9910_v41, 4  ;;  %v12010_v48 = vperm.slane %v9940_v51, 0 }
 0x277   : > { %v5275_v29 = vmax.f32 %v9954_v50, %v12008_v12  ;;  %v3709_v44 = vrot.slane %v9997_v10, 2  ;;  %3637 = vst.msk [vmem:[#allocation3 + $0xd9] sm:$0xff] %vm3564_vm0, %v3548_v16  ;;  %v12011_v13 = vrot.slane %v9910_v41, 6  ;;  %v12012_v62 = vperm.slane %v9942_v8, 0 }
 0x278   : > { %v5276_v39 = vmax.f32 %v5084_v0, %v12009_v53  ;;  %v5488_v21 = vsel %vm5468_vm7, %v12010_v48, %v5487_v20  ;;  %v3481_v50 = vmul.f32 %v9827_v61, %v3422_v26  ;;  %v3710_v55 = vrot.slane %v9997_v10, 4  ;;  %v10043_v53 = vld [vmem:[#allocation3 + $0xc8] sm:$0xff] }
 0x279   : > { %v5277_v9 = vmax.f32 %v5085_v27, %v12011_v13  ;;  %v5489_v28 = vsel %vm5470_vm8, %v12012_v62, %v5488_v21  ;;  %v5423_v51 = vperm.slane %v5275_v29, 0  ;;  %v12013_v20 = vperm.slane %v9949_v43, 0 }
 0x27a   : > { %v5424_v18 = vperm.slane %v5276_v39, 0  ;;  %v3711_v16 = vrot.slane %v9997_v10, 6  ;;  %v3837_v41 = vrot.slane %v10010_v7, 2  ;;  %v3517_v40 = vadd.f32 %v9844_v63, %v3481_v50 }
 0x27b   : > { %v5490_v0 = vsel %vm5472_vm9, %v12013_v20, %v5489_v28  ;;  %v10035_v8 = vadd.f32 %v3112_v38, %v3023_v11  ;;  %v10037_v30 = vmax.f32 %v4516_v17, %v4604_v49  ;;  %v5425_v26 = vperm.slane %v5277_v9, 0  ;;  %v10049_v17 = vld [vmem:[#allocation3 + $0xc9] sm:$0xff]  ;;  %v3427_v50 = vpop.f32.mrf.mxu0 }
 0x27c   : > { %v5491_v27 = vsel %vm5474_vm10, %v5423_v51, %v5490_v0  ;;  %v3482_v12 = vmul.f32 %v9827_v61, %v3425_v52  ;;  %v3838_v29 = vrot.slane %v10010_v7, 4  ;;  %v3839_v43 = vrot.slane %v10010_v7, 6 }
 0x27d   : > { %12014 = vst [vmem:[#allocation28_spill] sm:$0xff] %v10035_v8  ;;  %v5492_v39 = vsel %vm5476_vm11, %v5424_v18, %v5491_v27  ;;  %v3549_v48 = vmax.f32 %v3517_v40, 0.0  ;;  %v10047_v21 = vmax.f32 %v4701_v54, %v9997_v10  ;;  %v4895_v38 = vmax.f32 %v4702_v32, %v3709_v44  ;;  %v3981_v32 = vld [vmem:[#allocation3 + $0xc2] sm:$0xff] }
 0x27e   : > { %v5493_v49 = vsel %vm5478_vm12, %v5425_v26, %v5492_v39  ;;  %v3518_v13 = vadd.f32 %v9844_v63, %v3482_v12  ;;  %v3941_v52 = vmax.f32 %v9997_v10, %v10010_v7  ;;  %v3942_v9 = vmax.f32 %v3709_v44, %v3837_v41  ;;  %v10064_v44 = vld [vmem:[#allocation3 + $0xca] sm:$0xff]  ;;  %v8095_v12 = vld [vmem:[%s11999_s10 + $0x30] sm:$0xff]  ;;  %v4173_v47 = vld [vmem:[#allocation3 + $0xd8] sm:$0xff] }
 0x27f   : > { %v4896_v62 = vmax.f32 %v4703_v60, %v3710_v55  ;;  %v4897_v28 = vmax.f32 %v4704_v46, %v3711_v16  ;;  %5540 = vst.msk [vmem:[#allocation4 + $0x31] sm:$0xff] %vm3564_vm0, %v5493_v49  ;;  %v3712_v11 = vrot.slane %v10043_v53, 2  ;;  %v3713_v54 = vrot.slane %v10043_v53, 4  ;;  %6079 = vmatpush.bf16.msrb.mxu3 %v8095_v12 }
 0x280   : > { %3638 = vst.msk [vmem:[#allocation3 + $0xe1] sm:$0xff] %vm3564_vm0, %v3549_v48  ;;  %v3550_v51 = vmax.f32 %v3518_v13, 0.0  ;;  %v3483_v18 = vmul.f32 %v9827_v61, %v3427_v50  ;;  %v11938_v20 = vrot.slane %v10043_v53, 6  ;;  %v3840_v10 = vrot.slane %v10049_v17, 2 }
 0x281   : > { %v11936_v60 = vrot.slane %v10049_v17, 4  ;;  %v11937_v46 = vrot.slane %v10049_v17, 6  ;;  %v3943_v0 = vmax.f32 %v3710_v55, %v3838_v29  ;;  %v3944_v40 = vmax.f32 %v3711_v16, %v3839_v43 }
 0x282   : > { %v5086_v26 = vmax.f32 %v10047_v21, %v10010_v7  ;;  %v5087_v27 = vmax.f32 %v4895_v38, %v3837_v41  ;;  %3639 = vst.msk [vmem:[#allocation3 + $0xf1] sm:$0xff] %vm3564_vm0, %v3550_v51  ;;  %v5088_v39 = vmax.f32 %v4896_v62, %v3838_v29  ;;  %v5089_v48 = vmax.f32 %v4897_v28, %v3839_v43 }
 0x283   : > { %v3945_v49 = vmax.f32 %v10043_v53, %v10049_v17  ;;  %v4029_v13 = vrot.slane %v3981_v32, 2  ;;  %v4030_v50 = vrot.slane %v3981_v32, 4  ;;  %v4031_v33 = vrot.slane %v3981_v32, 6 }
 0x284   : > { %v4032_v55 = vrot.slane %v10064_v44, 2  ;;  %v3519_v16 = vadd.f32 %v9844_v63, %v3483_v18  ;;  %v3946_v7 = vmax.f32 %v3712_v11, %v3840_v10  ;;  %v3947_v41 = vmax.f32 %v3713_v54, %v11936_v60 }
 0x285   : > { %v3948_v29 = vmax.f32 %v11938_v20, %v11937_v46  ;;  %v10084_v38 = vmax.f32 %v3941_v52, %v3981_v32  ;;  %v4898_v62 = vmax.f32 %v4705_v31, %v10043_v53  ;;  %v4899_v60 = vmax.f32 %v10003_v2, %v3712_v11 }
 0x286   : > { %v5660_v28 = vld [vmem:[#allocation4 + $0x31] sm:$0xff]  ;;  %v3551_v12 = vmax.f32 %v3519_v16, 0.0  ;;  %v4134_v20 = vmax.f32 %v3942_v9, %v4029_v13  ;;  %v4135_v43 = vmax.f32 %v3943_v0, %v4030_v50  ;;  %v4136_v57 = vmax.f32 %v3944_v40, %v4031_v33 }
 0x287   : > { %v5644_v51 = vld [vmem:[#allocation4 + $0x30] sm:$0xff]  ;;  %v5668_v8 = vpack.c.bf16 %v5660_v28, %v5660_v28  ;;  %v10092_v52 = vmax.f32 %v3945_v49, %v10064_v44  ;;  %v5279_v21 = vmax.f32 %v5087_v27, %v4029_v13  ;;  %v4900_v2 = vmax.f32 %v10008_v23, %v3713_v54 }
 0x288   : > { %v5676_v18 = vld [vmem:[#allocation4 + $0x32] sm:$0xff]  ;;  %v5652_v42 = vpack.c.bf16 %v5644_v51, %v5644_v51  ;;  %3640 = vst.msk [vmem:[#allocation3 + $0xf9] sm:$0xff] %vm3564_vm0, %v3551_v12  ;;  %v5090_v11 = vmax.f32 %v4898_v62, %v10049_v17  ;;  %v5278_v9 = vmax.f32 %v5086_v26, %v3981_v32  ;;  %v10103_v0 = vmax.f32 %v5088_v39, %v4030_v50  ;;  %v4365_v28 = vld [vmem:[#allocation3 + $0xd9] sm:$0xff] }
 0x289   : > { %v5684_v46 = vpack.c.bf16 %v5676_v18, %v5676_v18  ;;  %v10095_v4 = vunpack.c.l.b16 %v5668_v8  ;;  %v5091_v40 = vmax.f32 %v4899_v60, %v3840_v10  ;;  %v4138_v8 = vmax.f32 %v3946_v7, %v4032_v55 }
 0x28a   : > { %v10097_v31 = vunpack.c.l.b16 %v5652_v42  ;;  %v12016_v23 = vrot.slane %v10064_v44, 6  ;;  %v4221_v32 = vrot.slane %v4173_v47, 2  ;;  %v10115_v26 = vmax.f32 %v5089_v48, %v4031_v33 }
 0x28b   : > { %v10099_v16 = vunpack.c.l.b16 %v5684_v46  ;;  %v5895_v49 = vpack.c.b16 %v10095_v4, %v9896_v58  ;;  %v12015_v46 = vrot.slane %v10064_v44, 4  ;;  %v5427_v10 = vperm.slane %v5279_v21, 0  ;;  %v4174_v58 = vld [vmem:[#allocation3 + $0xe0] sm:$0xff] }
 0x28c   : > { %v5867_v27 = vpack.c.b16 %v10097_v31, %v9898_v1  ;;  %v4140_v54 = vmax.f32 %v3948_v29, %v12016_v23  ;;  %v4222_v60 = vrot.slane %v4173_v47, 4  ;;  %v4223_v39 = vrot.slane %v4173_v47, 6 }
 0x28d   : > { %v5923_v42 = vpack.c.b16 %v10099_v16, %v9894_v37  ;;  %v4139_v13 = vmax.f32 %v3947_v41, %v12015_v46  ;;  %5899 = vrot.lane.b32.xlu0 %v5895_v49, %s8472_s0  ;;  %5733 = vrot.lane.b32.xlu1 %v5895_v49, %s8469_s21  ;;  %v10119_v37 = vpop.f32.mrf.mxu0  ;;  %v12017_v1 = vrot.slane %v10043_v53, 6  ;;  %v12018_v7 = vrot.slane %v10049_v17, 4  ;;  %v4557_v46 = vld [vmem:[#allocation3 + $0xda] sm:$0xff] }
 0x28e   : > { %v10127_v33 = vmax.f32 %v5090_v11, %v10064_v44  ;;  %5871 = vrot.lane.b32.xlu2 %v5867_v27, %s11987_s2  ;;  %v12019_v48 = vpack.c.bf16 %v9973_v3, %v9973_v3  ;;  %v10136_v21 = vmax.f32 %v5091_v40, %v4032_v55  ;;  %v5426_v53 = vperm.slane %v5278_v9, 0 }
 0x28f   : > { %v4901_v50 = vmax.f32 %v10037_v30, %v12017_v1  ;;  %v5092_v41 = vmax.f32 %v4900_v2, %v12018_v7  ;;  %7901 = vmatmul.msk.bf16.vlgmr.msra.gmra.mxu0 %vm3564_vm0, %v5923_v42  ;;  %v4325_v62 = vmax.f32 %v10084_v38, %v4173_v47  ;;  %v4326_v51 = vmax.f32 %v4134_v20, %v4221_v32  ;;  %v4366_v1 = vld [vmem:[#allocation3 + $0xe1] sm:$0xff]  ;;  %v10166_v59 = vld [vmem:[#allocation3 + $0xf2] sm:$0xff] }
 0x290   : > { %v10134_v29 = vunpack.c.l.b16 %v12019_v48  ;;  %v4224_v18 = vrot.slane %v4174_v58, 2  ;;  %v4225_v12 = vrot.slane %v4174_v58, 4  ;;  %v4226_v2 = vrot.slane %v4174_v58, 6 }
 0x291   : > { %v10142_v49 = vsel %vm5466_vm6, %v5427_v10, %v5426_v53  ;;  %v4327_v3 = vmax.f32 %v4135_v43, %v4222_v60  ;;  %v4328_v27 = vmax.f32 %v4136_v57, %v4223_v39  ;;  %v4413_v40 = vrot.slane %v4365_v28, 2  ;;  %v10152_v39 = vld [vmem:[#allocation3 + $0xf0] sm:$0xff] }
 0x292   : > { %v4414_v9 = vrot.slane %v4365_v28, 4  ;;  %v12020_v23 = vrot.slane %v10049_v17, 6  ;;  %v4415_v47 = vrot.slane %v4365_v28, 6  ;;  %v4517_v20 = vmax.f32 %v4325_v62, %v4365_v28  ;;  %v4558_v28 = vld [vmem:[#allocation3 + $0xe2] sm:$0xff] }
 0x293   : > { %v4329_v32 = vmax.f32 %v10092_v52, %v4174_v58  ;;  %v12021_v7 = vrot.slane %v10064_v44, 4  ;;  %v4518_v10 = vmax.f32 %v4326_v51, %v4413_v40  ;;  %v4330_v43 = vmax.f32 %v4138_v8, %v4224_v18 }
 0x294   : > { %v5093_v38 = vmax.f32 %v4901_v50, %v12020_v23  ;;  %v4331_v57 = vmax.f32 %v4139_v13, %v4225_v12  ;;  %v4332_v60 = vmax.f32 %v4140_v54, %v4226_v2  ;;  %v4519_v53 = vmax.f32 %v4327_v3, %v4414_v9  ;;  %v10157_v13 = vld [vmem:[#allocation3 + $0xf1] sm:$0xff] }
 0x295   : > { %v10150_v48 = vmax.f32 %v5092_v41, %v12021_v7  ;;  %v4520_v55 = vmax.f32 %v4328_v27, %v4415_v47  ;;  %v4605_v11 = vrot.slane %v4557_v46, 2  ;;  %v4606_v17 = vrot.slane %v4557_v46, 4  ;;  %v3432_v18 = vpop.f32.mrf.mxu0 }
 0x296   : > { %v4416_v50 = vrot.slane %v4366_v1, 2  ;;  %v4417_v23 = vrot.slane %v4366_v1, 4  ;;  %v4418_v62 = vrot.slane %v4366_v1, 6  ;;  %v4607_v52 = vrot.slane %v4557_v46, 6  ;;  %5761 = vrot.lane.b32.xlu2 %v5923_v42, %s8468_s1 }
 0x297   : > { %v4521_v58 = vmax.f32 %v4329_v32, %v4366_v1  ;;  %v3715_v41 = vrot.slane %v10152_v39, 2  ;;  %v3716_v8 = vrot.slane %v10152_v39, 4  ;;  %v12022_v54 = vrot.slane %v10064_v44, 6 }
 0x298   : > { %v4522_v12 = vmax.f32 %v4330_v43, %v4416_v50  ;;  %v4523_v2 = vmax.f32 %v4331_v57, %v4417_v23  ;;  %v4524_v3 = vmax.f32 %v4332_v60, %v4418_v62  ;;  %v3717_v27 = vrot.slane %v10152_v39, 6 }
 0x299   : > { %v10161_v51 = vmax.f32 %v5093_v38, %v12022_v54  ;;  %v4608_v40 = vrot.slane %v4558_v28, 2  ;;  %v4709_v9 = vmax.f32 %v4517_v20, %v4557_v46  ;;  %v4710_v42 = vmax.f32 %v4518_v10, %v4605_v11 }
 0x29a   : > { %v4711_v47 = vmax.f32 %v4519_v53, %v4606_v17  ;;  %v4609_v32 = vrot.slane %v4558_v28, 4  ;;  %v4712_v1 = vmax.f32 %v4520_v55, %v4607_v52  ;;  %v3843_v7 = vrot.slane %v10157_v13, 2  ;;  %v10173_v53 = vld [vmem:[#allocation3 + $0xf8] sm:$0xff] }
 0x29b   : > { %v3844_v30 = vrot.slane %v10157_v13, 4  ;;  %v4610_v44 = vrot.slane %v4558_v28, 6  ;;  %v4902_v38 = vmax.f32 %v4709_v9, %v10152_v39  ;;  %v4903_v43 = vmax.f32 %v4710_v42, %v3715_v41 }
 0x29c   : > { %v4904_v57 = vmax.f32 %v4711_v47, %v3716_v8  ;;  %v4713_v60 = vmax.f32 %v4521_v58, %v4558_v28  ;;  %v4905_v50 = vmax.f32 %v4712_v1, %v3717_v27  ;;  %v5431_v11 = vperm.slane %v10136_v21, 0  ;;  %v10183_v58 = vld [vmem:[#allocation3 + $0xf9] sm:$0xff] }
 0x29d   : > { %v5432_v46 = vperm.slane %v10150_v48, 0  ;;  %v4714_v55 = vmax.f32 %v4522_v12, %v4608_v40  ;;  %v4715_v20 = vmax.f32 %v4523_v2, %v4609_v32  ;;  %v4716_v10 = vmax.f32 %v4524_v3, %v4610_v44  ;;  %v3435_v2 = vpop.f32.mrf.mxu0 }
 0x29e   : > { %v4035_v17 = vrot.slane %v10166_v59, 2  ;;  %v3845_v23 = vrot.slane %v10157_v13, 6  ;;  %v3949_v62 = vmax.f32 %v10152_v39, %v10157_v13  ;;  %v10179_v28 = vmax.f32 %v3715_v41, %v3843_v7 }
 0x29f   : > { %v10181_v52 = vmax.f32 %v3716_v8, %v3844_v30  ;;  %v5094_v21 = vmax.f32 %v4902_v38, %v10157_v13  ;;  %v5095_v48 = vmax.f32 %v4903_v43, %v3843_v7  ;;  %v5096_v54 = vmax.f32 %v4904_v57, %v3844_v30 }
 0x2a0   : > { %v4036_v12 = vrot.slane %v10166_v59, 4  ;;  %v5097_v3 = vmax.f32 %v4905_v50, %v3845_v23  ;;  %v3718_v40 = vrot.slane %v10173_v53, 2  ;;  %v3719_v9 = vrot.slane %v10173_v53, 4 }
 0x2a1   : > { %v3484_v41 = vmul.f32 %v9827_v61, %v10119_v37  ;;  %v3720_v8 = vrot.slane %v10173_v53, 6  ;;  %v3846_v42 = vrot.slane %v10183_v58, 2  ;;  %v5287_v47 = vmax.f32 %v5095_v48, %v4035_v17 }
 0x2a2   : > { %v12023_v30 = vperm.slane %v10103_v0, 0  ;;  %v4906_v1 = vmax.f32 %v4713_v60, %v10173_v53  ;;  %v12024_v44 = vperm.slane %v10115_v26, 0  ;;  %v3485_v38 = vmul.f32 %v9827_v61, %v3432_v18 }
 0x2a3   : > { %v3520_v7 = vadd.f32 %v9844_v63, %v3484_v41  ;;  %v5286_v43 = vmax.f32 %v5094_v21, %v10166_v59  ;;  %v5288_v57 = vmax.f32 %v5096_v54, %v4036_v12  ;;  %v12025_v50 = vperm.slane %v10127_v33, 0 }
 0x2a4   : > { %v5495_v32 = vsel %vm5468_vm7, %v12023_v30, %v10142_v49  ;;  %v3486_v49 = vmul.f32 %v9827_v61, %v3435_v2  ;;  %v5433_v48 = vperm.slane %v10161_v51, 0  ;;  %v3521_v41 = vadd.f32 %v9844_v63, %v3485_v38 }
 0x2a5   : > { %v5496_v37 = vsel %vm5470_vm8, %v12024_v44, %v5495_v32  ;;  %v3552_v60 = vmax.f32 %v3520_v7, 0.0  ;;  %v4037_v18 = vrot.slane %v10166_v59, 6  ;;  %v5435_v30 = vperm.slane %v5287_v47, 0 }
 0x2a6   : > { %v5497_v0 = vsel %vm5472_vm9, %v12025_v50, %v5496_v37  ;;  %v3522_v54 = vadd.f32 %v9844_v63, %v3486_v49  ;;  %v4907_v32 = vmax.f32 %v4714_v55, %v3718_v40  ;;  %v5098_v33 = vmax.f32 %v4906_v1, %v10183_v58  ;;  %v3437_v37 = vpop.f32.mrf.mxu0  ;;  %v3984_v55 = vld [vmem:[#allocation3 + $0xfa] sm:$0xff] }
 0x2a7   : > { %v5498_v26 = vsel %vm5474_vm10, %v5431_v11, %v5497_v0  ;;  %3641 = vst.msk [vmem:[#allocation3 + $0x109] sm:$0xff] %vm3564_vm0, %v3552_v60  ;;  %v3553_v7 = vmax.f32 %v3521_v41, 0.0  ;;  %v3847_v51 = vrot.slane %v10183_v58, 4  ;;  %v3848_v11 = vrot.slane %v10183_v58, 6 }
 0x2a8   : > { %v5499_v21 = vsel %vm5476_vm11, %v5432_v46, %v5498_v26  ;;  %v5434_v44 = vperm.slane %v5286_v43, 0  ;;  %v3554_v47 = vmax.f32 %v3522_v54, 0.0  ;;  %v3952_v46 = vmax.f32 %v3717_v27, %v3845_v23 }
 0x2a9   : > { %v5500_v2 = vsel %vm5478_vm12, %v5433_v48, %v5499_v21  ;;  %v4908_v38 = vmax.f32 %v4715_v20, %v3719_v9  ;;  %v5436_v1 = vperm.slane %v5288_v57, 0  ;;  %3642 = vst.msk [vmem:[#allocation3 + $0x111] sm:$0xff] %vm3564_vm0, %v3553_v7  ;;  %v3487_v50 = vmul.f32 %v9827_v61, %v3437_v37  ;;  %v8094_v61 = vld [vmem:[%s11999_s10 + $0x28] sm:$0xff] }
 0x2aa   : > { %5541 = vst.msk [vmem:[#allocation4 + $0x41] sm:$0xff] %vm3564_vm0, %v5500_v2  ;;  %v3953_v0 = vmax.f32 %v10173_v53, %v10183_v58  ;;  %v3954_v49 = vmax.f32 %v3718_v40, %v3846_v42  ;;  %v5289_v60 = vmax.f32 %v5097_v3, %v4037_v18  ;;  %v5501_v43 = vsel %vm5466_vm6, %v5435_v30, %v5434_v44 }
 0x2ab   : > { %3643 = vst.msk [vmem:[#allocation3 + $0x121] sm:$0xff] %vm3564_vm0, %v3554_v47  ;;  %v4909_v48 = vmax.f32 %v4716_v10, %v3720_v8  ;;  %v5099_v26 = vmax.f32 %v4907_v32, %v3846_v42  ;;  %v5290_v41 = vmax.f32 %v5098_v33, %v3984_v55  ;;  %v3523_v27 = vadd.f32 %v9844_v63, %v3487_v50 }
 0x2ac   : > { %v3955_v20 = vmax.f32 %v3719_v9, %v3847_v51  ;;  %v3956_v23 = vmax.f32 %v3720_v8, %v3848_v11  ;;  %v4038_v57 = vrot.slane %v3984_v55, 2  ;;  %v4039_v21 = vrot.slane %v3984_v55, 4  ;;  %6080 = vmatpush.bf16.msrb.mxu3 %v8094_v61 }
 0x2ad   : > { %v4040_v53 = vrot.slane %v3984_v55, 6  ;;  %v5100_v58 = vmax.f32 %v4908_v38, %v3847_v51  ;;  %v5502_v3 = vsel %vm5468_vm7, %v5436_v1, %v5501_v43  ;;  %v3555_v40 = vmax.f32 %v3523_v27, 0.0 }
 0x2ae   : > { %v4141_v10 = vmax.f32 %v3949_v62, %v10166_v59  ;;  %v4142_v63 = vmax.f32 %v10179_v28, %v4035_v17  ;;  %v4143_v9 = vmax.f32 %v10181_v52, %v4036_v12  ;;  %v5437_v8 = vperm.slane %v5289_v60, 0  ;;  %v4175_v42 = vld [vmem:[#allocation3 + $0x108] sm:$0xff] }
 0x2af   : > { %v4144_v30 = vmax.f32 %v3952_v46, %v4037_v18  ;;  %v5101_v54 = vmax.f32 %v4909_v48, %v3848_v11  ;;  %v5291_v32 = vmax.f32 %v5099_v26, %v4038_v57  ;;  %v5438_v33 = vperm.slane %v5290_v41, 0  ;;  %3644 = vst.msk [vmem:[#allocation3 + $0x129] sm:$0xff] %vm3564_vm0, %v3555_v40 }
 0x2b0   : > { %v4145_v39 = vmax.f32 %v3953_v0, %v3984_v55  ;;  %v4146_v13 = vmax.f32 %v3954_v49, %v4038_v57  ;;  %v5503_v44 = vsel %vm5470_vm8, %v5437_v8, %v5502_v3  ;;  %v4147_v17 = vmax.f32 %v3955_v20, %v4039_v21  ;;  %v4176_v37 = vld [vmem:[#allocation3 + $0x110] sm:$0xff]  ;;  %v10262_v20 = vpop.f32.mrf.mxu0 }
 0x2b1   : > { %v5613_v2 = vld [vmem:[#allocation4 + $0x41] sm:$0xff]  ;;  %v4148_v28 = vmax.f32 %v3956_v23, %v4040_v53  ;;  %v10248_v59 = vmax.f32 %v5100_v58, %v4039_v21  ;;  %v4227_v52 = vrot.slane %v4175_v42, 2  ;;  %v4228_v12 = vrot.slane %v4175_v42, 4  ;;  %v4367_v0 = vld [vmem:[#allocation3 + $0x109] sm:$0xff] }
 0x2b2   : > { %v5597_v7 = vld [vmem:[#allocation4 + $0x40] sm:$0xff]  ;;  %v5621_v62 = vpack.c.bf16 %v5613_v2, %v5613_v2  ;;  %v5439_v46 = vperm.slane %v5291_v32, 0  ;;  %v4229_v38 = vrot.slane %v4175_v42, 6  ;;  %v10253_v55 = vmax.f32 %v5101_v54, %v4040_v53 }
 0x2b3   : > { %v5629_v51 = vld [vmem:[#allocation4 + $0x42] sm:$0xff]  ;;  %v5605_v11 = vpack.c.bf16 %v5597_v7, %v5597_v7  ;;  %v5504_v1 = vsel %vm5472_vm9, %v5438_v33, %v5503_v44  ;;  %v4333_v50 = vmax.f32 %v4141_v10, %v4175_v42  ;;  %v4334_v48 = vmax.f32 %v4142_v63, %v4227_v52  ;;  %v4559_v58 = vld [vmem:[#allocation3 + $0x10a] sm:$0xff] }
 0x2b4   : > { %v10251_v18 = vunpack.c.l.b16 %v5621_v62  ;;  %v5637_v47 = vpack.c.bf16 %v5629_v51, %v5629_v51  ;;  %v4230_v26 = vrot.slane %v4176_v37, 2  ;;  %v4231_v41 = vrot.slane %v4176_v37, 4  ;;  %v4368_v42 = vld [vmem:[#allocation3 + $0x111] sm:$0xff] }
 0x2b5   : > { %v10258_v60 = vunpack.c.l.b16 %v5605_v11  ;;  %v4232_v27 = vrot.slane %v4176_v37, 6  ;;  %v5440_v23 = vperm.slane %v10248_v59, 0  ;;  %v4335_v57 = vmax.f32 %v4143_v9, %v4228_v12  ;;  %v4560_v11 = vld [vmem:[#allocation3 + $0x112] sm:$0xff] }
 0x2b6   : > { %v5812_v49 = vpack.c.b16 %v10251_v18, %v10095_v4  ;;  %v10260_v43 = vunpack.c.l.b16 %v5637_v47  ;;  %v4336_v61 = vmax.f32 %v4144_v30, %v4229_v38  ;;  %v4419_v53 = vrot.slane %v4367_v0, 2  ;;  %v10274_v30 = vld [vmem:[#allocation3 + $0x120] sm:$0xff] }
 0x2b7   : > { %v5784_v21 = vpack.c.b16 %v10258_v60, %v10097_v31  ;;  %v5441_v3 = vperm.slane %v10253_v55, 0  ;;  %v5505_v40 = vsel %vm5474_vm10, %v5439_v46, %v5504_v1  ;;  %v4420_v10 = vrot.slane %v4367_v0, 4 }
 0x2b8   : > { %5817 = vrot.lane.b32.xlu1 %v5812_v49, %s11939_s29  ;;  %v5840_v4 = vpack.c.b16 %v10260_v43, %v10099_v16  ;;  %v4421_v63 = vrot.slane %v4367_v0, 6  ;;  %v4525_v8 = vmax.f32 %v4333_v50, %v4367_v0  ;;  %v4337_v9 = vmax.f32 %v4145_v39, %v4176_v37  ;;  %v10279_v0 = vld [vmem:[#allocation3 + $0x121] sm:$0xff]  ;;  %s12156_s29 = sld [smem:[#allocation13_spill]] }
 0x2b9   : > { %5789 = vrot.lane.b32.xlu0 %v5784_v21, %s8471_s4  ;;  %v4526_v31 = vmax.f32 %v4334_v48, %v4419_v53  ;;  %v4338_v54 = vmax.f32 %v4146_v13, %v4230_v26  ;;  %v4339_v32 = vmax.f32 %v4147_v17, %v4231_v41  ;;  %v4340_v16 = vmax.f32 %v4148_v28, %v4232_v27  ;;  %v3442_v21 = vpop.f32.mrf.mxu0 }
 0x2ba   : > { %5845 = vrot.lane.b32.xlu2 %v5840_v4, %s8470_s3  ;;  %v4527_v33 = vmax.f32 %v4335_v57, %v4420_v10  ;;  %v4611_v2 = vrot.slane %v4559_v58, 2  ;;  %v4612_v7 = vrot.slane %v4559_v58, 4  ;;  %v4613_v51 = vrot.slane %v4559_v58, 6  ;;  %v10283_v57 = vld [vmem:[#allocation3 + $0x128] sm:$0xff] }
 0x2bb   : > { %v4528_v62 = vmax.f32 %v4336_v61, %v4421_v63  ;;  %v4422_v44 = vrot.slane %v4368_v42, 2  ;;  %v4423_v59 = vrot.slane %v4368_v42, 4  ;;  %v4424_v52 = vrot.slane %v4368_v42, 6  ;;  %v10291_v10 = vld [vmem:[#allocation3 + $0x122] sm:$0xff] }
 0x2bc   : > { %v4529_v12 = vmax.f32 %v4337_v9, %v4368_v42  ;;  %v3721_v47 = vrot.slane %v10274_v30, 2  ;;  %v3722_v39 = vrot.slane %v10274_v30, 4  ;;  %v3723_v13 = vrot.slane %v10274_v30, 6 }
 0x2bd   : > { %v4530_v17 = vmax.f32 %v4338_v54, %v4422_v44  ;;  %v4531_v28 = vmax.f32 %v4339_v32, %v4423_v59  ;;  %v4532_v37 = vmax.f32 %v4340_v16, %v4424_v52  ;;  %v4717_v46 = vmax.f32 %v4525_v8, %v4559_v58  ;;  %v10298_v32 = vld [vmem:[#allocation3 + $0x129] sm:$0xff] }
 0x2be   : > { %v4718_v38 = vmax.f32 %v4526_v31, %v4611_v2  ;;  %v4719_v1 = vmax.f32 %v4527_v33, %v4612_v7  ;;  %v4720_v50 = vmax.f32 %v4528_v62, %v4613_v51  ;;  %v5506_v49 = vsel %vm5476_vm11, %v5440_v23, %v5505_v40  ;;  %v10300_v16 = vld [vmem:[#allocation3 + $0x12a] sm:$0xff] }
 0x2bf   : > { %v4614_v48 = vrot.slane %v4560_v11, 2  ;;  %v4615_v26 = vrot.slane %v4560_v11, 4  ;;  %v4616_v41 = vrot.slane %v4560_v11, 6  ;;  %v4910_v27 = vmax.f32 %v4717_v46, %v10274_v30 }
 0x2c0   : > { %v4721_v4 = vmax.f32 %v4529_v12, %v4560_v11  ;;  %v4911_v61 = vmax.f32 %v4718_v38, %v3721_v47  ;;  %v4912_v53 = vmax.f32 %v4719_v1, %v3722_v39  ;;  %v4913_v58 = vmax.f32 %v4720_v50, %v3723_v13 }
 0x2c1   : > { %v4722_v23 = vmax.f32 %v4530_v17, %v4614_v48  ;;  %v4723_v40 = vmax.f32 %v4531_v28, %v4615_v26  ;;  %v4724_v63 = vmax.f32 %v4532_v37, %v4616_v41  ;;  %v3849_v8 = vrot.slane %v10279_v0, 2 }
 0x2c2   : > { %v3850_v9 = vrot.slane %v10279_v0, 4  ;;  %v3851_v42 = vrot.slane %v10279_v0, 6  ;;  %v3724_v31 = vrot.slane %v10283_v57, 2  ;;  %v3725_v54 = vrot.slane %v10283_v57, 4 }
 0x2c3   : > { %v5102_v33 = vmax.f32 %v4910_v27, %v10279_v0  ;;  %v3726_v2 = vrot.slane %v10283_v57, 6  ;;  %v4041_v7 = vrot.slane %v10291_v10, 2  ;;  %v4042_v51 = vrot.slane %v10291_v10, 4  ;;  %v3445_v27 = vpop.f32.mrf.mxu0 }
 0x2c4   : > { %v5103_v62 = vmax.f32 %v4911_v61, %v3849_v8  ;;  %v5104_v44 = vmax.f32 %v4912_v53, %v3850_v9  ;;  %v5105_v59 = vmax.f32 %v4913_v58, %v3851_v42  ;;  %v11942_v52 = vrot.slane %v10291_v10, 6 }
 0x2c5   : > { %v3852_v12 = vrot.slane %v10298_v32, 2  ;;  %v3853_v11 = vrot.slane %v10298_v32, 4  ;;  %v3854_v17 = vrot.slane %v10298_v32, 6  ;;  %v11941_v28 = vrot.slane %v10300_v16, 2 }
 0x2c6   : > { %v4045_v37 = vrot.slane %v10300_v16, 4  ;;  %v4914_v46 = vmax.f32 %v4721_v4, %v10283_v57  ;;  %v4915_v38 = vmax.f32 %v4722_v23, %v3724_v31  ;;  %v4916_v1 = vmax.f32 %v4723_v40, %v3725_v54 }
 0x2c7   : > { %v4917_v50 = vmax.f32 %v4724_v63, %v3726_v2  ;;  %v5294_v48 = vmax.f32 %v5102_v33, %v10291_v10  ;;  %v5295_v26 = vmax.f32 %v5103_v62, %v4041_v7  ;;  %v5296_v41 = vmax.f32 %v5104_v44, %v4042_v51 }
 0x2c8   : > { %v5106_v4 = vmax.f32 %v4914_v46, %v10298_v32  ;;  %v5107_v61 = vmax.f32 %v4915_v38, %v3852_v12  ;;  %v5108_v53 = vmax.f32 %v4916_v1, %v3853_v11  ;;  %v5297_v58 = vmax.f32 %v5105_v59, %v11942_v52  ;;  %v10344_v38 = vld [vmem:[%s11988_s8] ss:$0 sm:$0xff] }
 0x2c9   : > { %v4046_v23 = vrot.slane %v10300_v16, 6  ;;  %v5442_v40 = vperm.slane %v5294_v48, 0  ;;  %v5443_v63 = vperm.slane %v5295_v26, 0  ;;  %v5444_v33 = vperm.slane %v5296_v41, 0 }
 0x2ca   : > { %v5298_v62 = vmax.f32 %v5106_v4, %v10300_v16  ;;  %v5299_v44 = vmax.f32 %v5107_v61, %v11941_v28  ;;  %v5445_v46 = vperm.slane %v5297_v58, 0  ;;  %v3488_v1 = vmul.f32 %v10344_v38, %v10262_v20  ;;  %v10357_v61 = vld [vmem:[%s11989_s9] ss:$0 sm:$0xff] }
 0x2cb   : > { %v5508_v59 = vsel %vm5466_vm6, %v5443_v63, %v5442_v40  ;;  %v5507_v48 = vsel %vm5478_vm12, %v5441_v3, %v5506_v49  ;;  %v3489_v26 = vmul.f32 %v10344_v38, %v3442_v21  ;;  %v3490_v41 = vmul.f32 %v10344_v38, %v3445_v27 }
 0x2cc   : > { %v5446_v4 = vperm.slane %v5298_v62, 0  ;;  %v3524_v58 = vadd.f32 %v10357_v61, %v3488_v1  ;;  %5542 = vst.msk [vmem:[#allocation4 + $0x51] sm:$0xff] %vm3564_vm0, %v5507_v48  ;;  %v5109_v20 = vmax.f32 %v4917_v50, %v3854_v17  ;;  %v5300_v55 = vmax.f32 %v5108_v53, %v4045_v37  ;;  %v3447_v50 = vpop.f32.mrf.mxu0  ;;  %v5732_v53 = vpop.permute.xlu0 %5731 }
 0x2cd   : > { %v3525_v3 = vadd.f32 %v10357_v61, %v3489_v26  ;;  %v3526_v49 = vadd.f32 %v10357_v61, %v3490_v41  ;;  %v5447_v21 = vperm.slane %v5299_v44, 0  ;;  %v5509_v27 = vsel %vm5468_vm7, %v5444_v33, %v5508_v59 }
 0x2ce   : > { %v3556_v40 = vmax.f32 %v3524_v58, 0.0  ;;  %v5301_v63 = vmax.f32 %v5109_v20, %v4046_v23  ;;  %v5448_v62 = vperm.slane %v5300_v55, 0  ;;  %v5510_v1 = vsel %vm5470_vm8, %v5445_v46, %v5509_v27 }
 0x2cf   : > { %v3557_v48 = vmax.f32 %v3525_v3, 0.0  ;;  %v3558_v28 = vmax.f32 %v3526_v49, 0.0  ;;  %v5511_v52 = vsel %vm5472_vm9, %v5446_v4, %v5510_v1  ;;  %v3491_v26 = vmul.f32 %v10344_v38, %v3447_v50 }
 0x2d0   : > { %3645 = vst.msk [vmem:[#allocation3 + $0x139] sm:$0xff] %vm3564_vm0, %v3556_v40  ;;  %v5449_v44 = vperm.slane %v5301_v63, 0  ;;  %v5512_v33 = vsel %vm5474_vm10, %v5447_v21, %v5511_v52  ;;  %v5707_v59 = vpack.c.b16 %v10134_v29, %v9982_v5  ;;  %v5760_v52 = vpop.permute.xlu1 %5759  ;;  %v3958_v50 = vmax.f32 %v3721_v47, %v3849_v8 }
 0x2d1   : > { %3646 = vst.msk [vmem:[#allocation3 + $0x141] sm:$0xff] %vm3564_vm0, %v3557_v48  ;;  %v5513_v46 = vsel %vm5476_vm11, %v5448_v62, %v5512_v33  ;;  %v3527_v41 = vadd.f32 %v10357_v61, %v3491_v26  ;;  %v3957_v48 = vmax.f32 %v10274_v30, %v10279_v0  ;;  %v3959_v26 = vmax.f32 %v3722_v39, %v3850_v9 }
 0x2d2   : > { %3647 = vst.msk [vmem:[#allocation3 + $0x151] sm:$0xff] %vm3564_vm0, %v3558_v28  ;;  %v5514_v4 = vsel %vm5478_vm12, %v5449_v44, %v5513_v46  ;;  %v5929_v58 = vsel %vm3564_vm0, %v5707_v59, %v5732_v53  ;;  %v8093_v28 = vld [vmem:[%s11999_s10 + $0x20] sm:$0xff]  ;;  %v3961_v53 = vmax.f32 %v10283_v57, %v10298_v32  ;;  %v3960_v44 = vmax.f32 %v3723_v13, %v3851_v42 }
 0x2d3   : > { %v5678_v20 = vld [vmem:[#allocation4 + $0x52] sm:$0xff]  ;;  %5543 = vst.msk [vmem:[#allocation4 + $0x61] sm:$0xff] %vm3564_vm0, %v5514_v4  ;;  %v3559_v21 = vmax.f32 %v3527_v41, 0.0  ;;  %6081 = vmatpush.bf16.msrb.mxu3 %v8093_v28  ;;  %v5940_v40 = vsel %vm715_vm2, %v5929_v58, %v5760_v52  ;;  %v3962_v47 = vmax.f32 %v3724_v31, %v3852_v12  ;;  %v3963_v39 = vmax.f32 %v3725_v54, %v3853_v11  ;;  %v5788_v12 = vpop.permute.xlu2 %5787 }
 0x2d4   : > { %v5662_v55 = vld [vmem:[#allocation4 + $0x51] sm:$0xff]  ;;  %v5686_v49 = vpack.c.bf16 %v5678_v20, %v5678_v20  ;;  %v4149_v0 = vmax.f32 %v3957_v48, %v10291_v10  ;;  %v10424_v13 = vpop.f32.mrf.mxu0  ;;  %v4150_v9 = vmax.f32 %v3958_v50, %v4041_v7  ;;  %v4151_v54 = vmax.f32 %v3959_v26, %v4042_v51 }
 0x2d5   : > { %v5646_v3 = vld [vmem:[#allocation4 + $0x50] sm:$0xff]  ;;  %v5670_v5 = vpack.c.bf16 %v5662_v55, %v5662_v55  ;;  %3648 = vst.msk [vmem:[#allocation3 + $0x159] sm:$0xff] %vm3564_vm0, %v3559_v21  ;;  %v4153_v32 = vmax.f32 %v3961_v53, %v10300_v16  ;;  %v12026_v41 = vrot.slane %v10291_v10, 6  ;;  %v12027_v4 = vrot.slane %v10300_v16, 2  ;;  %v8092_v16 = vld [vmem:[%s11999_s10 + $0x18] sm:$0xff] }
 0x2d6   : > { %v5654_v29 = vpack.c.bf16 %v5646_v3, %v5646_v3  ;;  %v10387_v27 = vunpack.c.l.b16 %v5686_v49  ;;  %v4155_v58 = vmax.f32 %v3963_v39, %v4045_v37  ;;  %v5949_v3 = vsel %vm5947_vm13, %v5940_v40, %v5788_v12 }
 0x2d7   : > { %v4177_v63 = vld [vmem:[#allocation3 + $0x138] sm:$0xff]  ;;  %v10391_v62 = vunpack.c.l.b16 %v5670_v5  ;;  %v4154_v51 = vmax.f32 %v3962_v47, %v12027_v4  ;;  %v5816_v47 = vpop.permute.xlu0 %5815  ;;  %6082 = vmatpush.bf16.msrb.mxu3 %v8092_v16 }
 0x2d8   : > { %v10393_v1 = vunpack.c.l.b16 %v5654_v29  ;;  %v4233_v33 = vrot.slane %v4177_v63, 2  ;;  %v10413_v59 = vpack.c.b16 %v10387_v27, %v10260_v43  ;;  %v4234_v8 = vrot.slane %v4177_v63, 4  ;;  %v4178_v30 = vld [vmem:[#allocation3 + $0x140] sm:$0xff] }
 0x2d9   : > { %v3964_v43 = vmax.f32 %v3726_v2, %v3854_v17  ;;  %v5896_v42 = vpack.c.b16 %v10391_v62, %v10251_v18  ;;  %v4235_v57 = vrot.slane %v4177_v63, 6  ;;  %v4341_v2 = vmax.f32 %v4149_v0, %v4177_v63  ;;  %v4369_v11 = vld [vmem:[#allocation3 + $0x139] sm:$0xff]  ;;  %v4370_v63 = vld [vmem:[#allocation3 + $0x141] sm:$0xff]  ;;  %v10453_v26 = vld [vmem:[#allocation3 + $0x150] sm:$0xff] }
 0x2da   : > { %7902 = vmatmul.msk.bf16.gmra.mxu0 %vm3564_vm0, %v10413_v59  ;;  %v5868_v31 = vpack.c.b16 %v10393_v1, %v10258_v60  ;;  %v4342_v17 = vmax.f32 %v4150_v9, %v4233_v33  ;;  %v4236_v7 = vrot.slane %v4178_v30, 2  ;;  %v4237_v46 = vrot.slane %v4178_v30, 4  ;;  %v4561_v5 = vld [vmem:[#allocation3 + $0x13a] sm:$0xff]  ;;  %v4562_v9 = vld [vmem:[#allocation3 + $0x142] sm:$0xff] }
 0x2db   : > { %5901 = vrot.lane.b32.xlu1 %v5896_v42, %s8472_s0  ;;  %v4238_v18 = vrot.slane %v4178_v30, 6  ;;  %v4152_v60 = vmax.f32 %v3960_v44, %v12026_v41  ;;  %v4343_v20 = vmax.f32 %v4151_v54, %v4234_v8  ;;  %5735 = vrot.lane.b32.xlu2 %v5896_v42, %s8469_s21  ;;  %v4156_v55 = vmax.f32 %v3964_v43, %v4046_v23 }
 0x2dc   : > { %5873 = vrot.lane.b32.xlu0 %v5868_v31, %s11987_s2  ;;  %v4425_v52 = vrot.slane %v4369_v11, 2  ;;  %v4345_v49 = vmax.f32 %v4153_v32, %v4178_v30  ;;  %v4426_v10 = vrot.slane %v4369_v11, 4  ;;  %v4427_v21 = vrot.slane %v4369_v11, 6  ;;  %v10461_v32 = vpop.f32.mrf.mxu0  ;;  %v10493_v16 = vld [vmem:[#allocation3 + $0x159] sm:$0xff] }
 0x2dd   : > { %v4344_v29 = vmax.f32 %v4152_v60, %v4235_v57  ;;  %v4533_v28 = vmax.f32 %v4341_v2, %v4369_v11  ;;  %v4346_v50 = vmax.f32 %v4154_v51, %v4236_v7  ;;  %v4347_v53 = vmax.f32 %v4155_v58, %v4237_v46  ;;  %v10471_v60 = vld [vmem:[#allocation3 + $0x151] sm:$0xff] }
 0x2de   : > { %v4534_v48 = vmax.f32 %v4342_v17, %v4425_v52  ;;  %v4348_v37 = vmax.f32 %v4156_v55, %v4238_v18  ;;  %v4535_v23 = vmax.f32 %v4343_v20, %v4426_v10  ;;  %v4617_v40 = vrot.slane %v4561_v5, 2  ;;  %v8091_v17 = vld [vmem:[%s11999_s10 + $0x10] sm:$0xff]  ;;  %v10473_v55 = vld [vmem:[#allocation3 + $0x158] sm:$0xff] }
 0x2df   : > { %v4618_v44 = vrot.slane %v4561_v5, 4  ;;  %v4619_v33 = vrot.slane %v4561_v5, 6  ;;  %v4428_v39 = vrot.slane %v4370_v63, 2  ;;  %v4429_v0 = vrot.slane %v4370_v63, 4  ;;  %6083 = vmatpush.bf16.msrb.mxu3 %v8091_v17  ;;  %v8089_v17 = vld [vmem:[%s11999_s10] sm:$0xff] }
 0x2e0   : > { %v4430_v8 = vrot.slane %v4370_v63, 6  ;;  %v4537_v30 = vmax.f32 %v4345_v49, %v4370_v63  ;;  %v4536_v43 = vmax.f32 %v4344_v29, %v4427_v21  ;;  %v3727_v42 = vrot.slane %v10453_v26, 2  ;;  %v8090_v63 = vld [vmem:[%s11999_s10 + $0x8] sm:$0xff] }
 0x2e1   : > { %v11948_v31 = vrot.slane %v10453_v26, 4  ;;  %v11946_v54 = vrot.slane %v10453_v26, 6  ;;  %v4538_v12 = vmax.f32 %v4346_v50, %v4428_v39  ;;  %v4539_v57 = vmax.f32 %v4347_v53, %v4429_v0 }
 0x2e2   : > { %v4540_v2 = vmax.f32 %v4348_v37, %v4430_v8  ;;  %v10466_v11 = vsel %vm2582_vm4, %v5949_v3, %v5816_v47  ;;  %v4725_v7 = vmax.f32 %v4533_v28, %v4561_v5  ;;  %v4726_v46 = vmax.f32 %v4534_v48, %v4617_v40  ;;  %v10482_v5 = vld [vmem:[#allocation3 + $0x152] sm:$0xff] }
 0x2e3   : > { %v4727_v18 = vmax.f32 %v4535_v23, %v4618_v44  ;;  %v4728_v41 = vmax.f32 %v4536_v43, %v4619_v33  ;;  %v4620_v4 = vrot.slane %v4562_v9, 2  ;;  %v4621_v51 = vrot.slane %v4562_v9, 4  ;;  %6084 = vmatpush.bf16.msrb.mxu3 %v8090_v63  ;;  %v5599_v63 = vld [vmem:[#allocation4 + $0x60] sm:$0xff] }
 0x2e4   : > { %5763 = vrot.lane.b32.xlu0 %v10413_v59, %s8468_s1  ;;  %v4622_v58 = vrot.slane %v4562_v9, 6  ;;  %v4729_v20 = vmax.f32 %v4537_v30, %v4562_v9  ;;  %v4918_v59 = vmax.f32 %v4725_v7, %v10453_v26  ;;  %v4919_v3 = vmax.f32 %v4726_v46, %v3727_v42  ;;  %v3455_v30 = vpop.f32.mrf.mxu0  ;;  %v10514_v7 = vpop.f32.mrf.mxu3 }
 0x2e5   : > { %v4920_v52 = vmax.f32 %v4727_v18, %v11948_v31  ;;  %v4921_v49 = vmax.f32 %v4728_v41, %v11946_v54  ;;  %v4730_v29 = vmax.f32 %v4538_v12, %v4620_v4  ;;  %v4731_v10 = vmax.f32 %v4539_v57, %v4621_v51  ;;  %v10508_v57 = vld [vmem:[#allocation3 + $0x15a] sm:$0xff] }
 0x2e6   : > { %v3855_v21 = vrot.slane %v10471_v60, 2  ;;  %v11949_v28 = vrot.slane %v10471_v60, 4  ;;  %v11947_v48 = vrot.slane %v10471_v60, 6  ;;  %v3730_v50 = vrot.slane %v10473_v55, 2 }
 0x2e7   : > { %v3731_v53 = vrot.slane %v10473_v55, 4  ;;  %v3732_v37 = vrot.slane %v10473_v55, 6  ;;  %v4732_v23 = vmax.f32 %v4540_v2, %v4622_v58  ;;  %v11945_v40 = vrot.slane %v10482_v5, 2  ;;  %6085 = vmatpush.bf16.msrb.mxu3 %v8089_v17 }
 0x2e8   : > { %v11944_v44 = vrot.slane %v10482_v5, 4  ;;  %v11943_v33 = vrot.slane %v10482_v5, 6  ;;  %v5110_v47 = vmax.f32 %v4918_v59, %v10471_v60  ;;  %v5111_v39 = vmax.f32 %v4919_v3, %v3855_v21 }
 0x2e9   : > { %v5112_v0 = vmax.f32 %v4920_v52, %v11949_v28  ;;  %v5113_v8 = vmax.f32 %v4921_v49, %v11947_v48  ;;  %v3858_v43 = vrot.slane %v10493_v16, 2  ;;  %v3859_v9 = vrot.slane %v10493_v16, 4 }
 0x2ea   : > { %v3860_v12 = vrot.slane %v10493_v16, 6  ;;  %v4922_v2 = vmax.f32 %v4729_v20, %v10473_v55  ;;  %v4923_v46 = vmax.f32 %v4730_v29, %v3730_v50  ;;  %v4924_v18 = vmax.f32 %v4731_v10, %v3731_v53  ;;  %v5631_v10 = vld [vmem:[#allocation4 + $0x62] sm:$0xff] }
 0x2eb   : > { %v4925_v41 = vmax.f32 %v4732_v23, %v3732_v37  ;;  %v5302_v4 = vmax.f32 %v5110_v47, %v10482_v5  ;;  %v5303_v58 = vmax.f32 %v5111_v39, %v11945_v40  ;;  %v5304_v20 = vmax.f32 %v5112_v0, %v11944_v44  ;;  %v1588_v44 = vld [vmem:[#allocation2 + $0x19a] sm:$0xff] }
 0x2ec   : > { %v5114_v51 = vmax.f32 %v4922_v2, %v10493_v16  ;;  %v5305_v59 = vmax.f32 %v5113_v8, %v11943_v33  ;;  %v11950_v3 = vrot.slane %v10508_v57, 2  ;;  %v4051_v52 = vrot.slane %v10508_v57, 4  ;;  %v5615_v33 = vld [vmem:[#allocation4 + $0x61] sm:$0xff] }
 0x2ed   : > { %v5115_v49 = vmax.f32 %v4923_v46, %v3858_v43  ;;  %v5116_v29 = vmax.f32 %v4924_v18, %v3859_v9  ;;  %v5450_v47 = vperm.slane %v5302_v4, 0  ;;  %v5451_v39 = vperm.slane %v5303_v58, 0  ;;  %v1589_v58 = vld [vmem:[#allocation2 + $0x1a2] sm:$0xff] }
 0x2ee   : > { %v5306_v23 = vmax.f32 %v5114_v51, %v10508_v57  ;;  %v5452_v0 = vperm.slane %v5304_v20, 0  ;;  %v4052_v8 = vrot.slane %v10508_v57, 6  ;;  %v5117_v2 = vmax.f32 %v4925_v41, %v3860_v12 }
 0x2ef   : > { %v5453_v17 = vperm.slane %v5305_v59, 0  ;;  %v3492_v46 = vmul.f32 %v10344_v38, %v10424_v13  ;;  %v5307_v18 = vmax.f32 %v5115_v49, %v11950_v3  ;;  %v5515_v40 = vsel %vm5466_vm6, %v5451_v39, %v5450_v47  ;;  %v3457_v47 = vpop.f32.mrf.mxu0 }
 0x2f0   : > { %v5639_v51 = vpack.c.bf16 %v5631_v10, %v5631_v10  ;;  %v5607_v4 = vpack.c.bf16 %v5599_v63, %v5599_v63  ;;  %v5308_v20 = vmax.f32 %v5116_v29, %v4051_v52  ;;  %v5454_v54 = vperm.slane %v5306_v23, 0 }
 0x2f1   : > { %v5516_v41 = vsel %vm5468_vm7, %v5452_v0, %v5515_v40  ;;  %v3528_v59 = vadd.f32 %v10357_v61, %v3492_v46  ;;  %v5623_v31 = vpack.c.bf16 %v5615_v33, %v5615_v33  ;;  %v1620_v28 = vpack.c.bf16 %v1588_v44, %v1588_v44  ;;  %v10562_v0 = vpop.f32.mrf.mxu3  ;;  %v5844_v44 = vpop.permute.xlu1 %5843 }
 0x2f2   : > { %v10549_v48 = vunpack.c.l.b16 %v5639_v51  ;;  %v10551_v13 = vunpack.c.l.b16 %v5607_v4  ;;  %v1621_v3 = vpack.c.bf16 %v1589_v58, %v1589_v58  ;;  %v3493_v10 = vmul.f32 %v10344_v38, %v10461_v32 }
 0x2f3   : > { %v3560_v49 = vmax.f32 %v3528_v59, 0.0  ;;  %v3494_v63 = vmul.f32 %v10344_v38, %v3455_v30  ;;  %v10560_v23 = vunpack.c.l.b16 %v5623_v31  ;;  %v2516_v39 = vunpack.c.l.b16 %v1620_v28 }
 0x2f4   : > { %v5841_v29 = vpack.c.b16 %v10549_v48, %v10387_v27  ;;  %v5785_v40 = vpack.c.b16 %v10551_v13, %v10393_v1  ;;  %v5455_v33 = vperm.slane %v5307_v18, 0  ;;  %v2517_v46 = vunpack.c.l.b16 %v1621_v3 }
 0x2f5   : > { %3649 = vst.msk [vmem:[#allocation3 + $0x169] sm:$0xff] %vm3564_vm0, %v3560_v49  ;;  %v3529_v32 = vadd.f32 %v10357_v61, %v3493_v10  ;;  %v3530_v30 = vadd.f32 %v10357_v61, %v3494_v63  ;;  %v5456_v51 = vperm.slane %v5308_v20, 0  ;;  %v5813_v27 = vpack.c.b16 %v10560_v23, %v10391_v62 }
 0x2f6   : > { %5847 = vrot.lane.b32.xlu0 %v5841_v29, %s8470_s3  ;;  %5791 = vrot.lane.b32.xlu1 %v5785_v40, %s8471_s4  ;;  %v3495_v31 = vmul.f32 %v10344_v38, %v3457_v47  ;;  %v5309_v28 = vmax.f32 %v5117_v2, %v4052_v8  ;;  %v2533_v18 = vpack.c.b16 %v2517_v46, %v2516_v39  ;;  %v12031_v29 = vrot.slane %v10471_v60, 6 }
 0x2f7   : > { %v3561_v4 = vmax.f32 %v3529_v32, 0.0  ;;  %v3562_v3 = vmax.f32 %v3530_v30, 0.0  ;;  %v5517_v58 = vsel %vm5470_vm8, %v5453_v17, %v5516_v41  ;;  %v5966_v20 = vsel %vm5964_vm14, %v10466_v11, %v5844_v44  ;;  %5819 = vrot.lane.b32.xlu2 %v5813_v27, %s12028_s6 }
 0x2f8   : > { %v3531_v59 = vadd.f32 %v10357_v61, %v3495_v31  ;;  %v5518_v49 = vsel %vm5472_vm9, %v5454_v54, %v5517_v58  ;;  %v3965_v38 = vmax.f32 %v10453_v26, %v10471_v60  ;;  %v3966_v62 = vmax.f32 %v3727_v42, %v3855_v21  ;;  %7840 = vmatmul.msk.bf16.gmra.mxu3 %vm715_vm2, %v2533_v18 }
 0x2f9   : > { %3650 = vst.msk [vmem:[#allocation3 + $0x171] sm:$0xff] %vm3564_vm0, %v3561_v4  ;;  %v5457_v2 = vperm.slane %v5309_v28, 0  ;;  %v5519_v11 = vsel %vm5474_vm10, %v5455_v33, %v5518_v49  ;;  %v3969_v61 = vmax.f32 %v10473_v55, %v10493_v16  ;;  %v3970_v54 = vmax.f32 %v3730_v50, %v3858_v43  ;;  %v10626_v18 = vpop.f32.mrf.mxu3 }
 0x2fa   : > { %3651 = vst.msk [vmem:[#allocation3 + $0x181] sm:$0xff] %vm3564_vm0, %v3562_v3  ;;  %v3563_v17 = vmax.f32 %v3531_v59, 0.0  ;;  %v5520_v42 = vsel %vm5476_vm11, %v5456_v51, %v5519_v11  ;;  %v3971_v21 = vmax.f32 %v3731_v53, %v3859_v9  ;;  %v3972_v41 = vmax.f32 %v3732_v37, %v3860_v12  ;;  %v5872_v9 = vpop.permute.xlu2 %5871 }
 0x2fb   : > { %v4157_v10 = vmax.f32 %v3965_v38, %v10482_v5  ;;  %v5521_v63 = vsel %vm5478_vm12, %v5457_v2, %v5520_v42  ;;  %v12029_v50 = vrot.slane %v10471_v60, 4  ;;  %v12030_v43 = vrot.slane %v10453_v26, 4 }
 0x2fc   : > { %v12032_v40 = vrot.slane %v10453_v26, 6  ;;  %v12033_v53 = vrot.slane %v10482_v5, 2  ;;  %v4179_v55 = vld [vmem:[#allocation3 + $0x168] sm:$0xff]  ;;  %3652 = vst.msk [vmem:[#allocation3 + $0x189] sm:$0xff] %vm3564_vm0, %v3563_v17  ;;  %v12034_v60 = vrot.slane %v10482_v5, 4  ;;  %v12035_v30 = vrot.slane %v10482_v5, 6 }
 0x2fd   : > { %v3967_v47 = vmax.f32 %v12030_v43, %v12029_v50  ;;  %v4239_v37 = vrot.slane %v4179_v55, 2  ;;  %v4240_v12 = vrot.slane %v4179_v55, 4  ;;  %v4241_v44 = vrot.slane %v4179_v55, 6  ;;  %v4371_v46 = vld [vmem:[#allocation3 + $0x169] sm:$0xff]  ;;  %5544 = vst.msk [vmem:[#allocation4 + $0x71] sm:$0xff] %vm3564_vm0, %v5521_v63 }
 0x2fe   : > { %v3968_v39 = vmax.f32 %v12032_v40, %v12031_v29  ;;  %v4158_v16 = vmax.f32 %v3966_v62, %v12033_v53  ;;  %v4349_v33 = vmax.f32 %v4157_v10, %v4179_v55  ;;  %v4161_v27 = vmax.f32 %v3969_v61, %v10508_v57 }
 0x2ff   : > { %v5900_v32 = vpop.permute.xlu0 %5899  ;;  %v4159_v26 = vmax.f32 %v3967_v47, %v12034_v60  ;;  %v12036_v31 = vrot.slane %v10508_v57, 2  ;;  %v4163_v4 = vmax.f32 %v3971_v21, %v4051_v52  ;;  %v4164_v3 = vmax.f32 %v3972_v41, %v4052_v8 }
 0x300   : > { %v4160_v51 = vmax.f32 %v3968_v39, %v12035_v30  ;;  %v5974_v58 = vsel %vm2615_vm5, %v5966_v20, %v5872_v9  ;;  %v4350_v59 = vmax.f32 %v4158_v16, %v4239_v37  ;;  %v4431_v49 = vrot.slane %v4371_v46, 2  ;;  %v4180_v62 = vld [vmem:[#allocation3 + $0x170] sm:$0xff] }
 0x301   : > { %v4162_v28 = vmax.f32 %v3970_v54, %v12036_v31  ;;  %v4432_v38 = vrot.slane %v4371_v46, 4  ;;  %v4433_v5 = vrot.slane %v4371_v46, 6  ;;  %v4372_v2 = vld [vmem:[#allocation3 + $0x171] sm:$0xff]  ;;  %v5983_v61 = vsel %vm5981_vm15, %v5974_v58, %v5900_v32  ;;  %v4756_v37 = vld [vmem:[#allocation3 + $0x180] sm:$0xff]  ;;  %v10634_v58 = vpop.f32.mrf.mxu3 }
 0x302   : > { %v4563_v11 = vld [vmem:[#allocation3 + $0x16a] sm:$0xff]  ;;  %v4351_v54 = vmax.f32 %v4159_v26, %v4240_v12  ;;  %v4352_v17 = vmax.f32 %v4160_v51, %v4241_v44  ;;  %v4541_v42 = vmax.f32 %v4349_v33, %v4371_v46  ;;  %v4242_v10 = vrot.slane %v4180_v62, 2  ;;  %v4564_v50 = vld [vmem:[#allocation3 + $0x172] sm:$0xff]  ;;  %v4948_v51 = vld [vmem:[#allocation3 + $0x181] sm:$0xff] }
 0x303   : > { %v4542_v63 = vmax.f32 %v4350_v59, %v4431_v49  ;;  %v4243_v52 = vrot.slane %v4180_v62, 4  ;;  %v4244_v21 = vrot.slane %v4180_v62, 6  ;;  %v4353_v57 = vmax.f32 %v4161_v27, %v4180_v62  ;;  %v4757_v27 = vld [vmem:[#allocation3 + $0x188] sm:$0xff] }
 0x304   : > { %v4354_v8 = vmax.f32 %v4162_v28, %v4242_v10  ;;  %v4434_v41 = vrot.slane %v4372_v2, 2  ;;  %v4435_v20 = vrot.slane %v4372_v2, 4  ;;  %v4623_v43 = vrot.slane %v4563_v11, 2  ;;  %v4949_v10 = vld [vmem:[#allocation3 + $0x189] sm:$0xff] }
 0x305   : > { %v4355_v47 = vmax.f32 %v4163_v4, %v4243_v52  ;;  %v4356_v29 = vmax.f32 %v4164_v3, %v4244_v21  ;;  %v4545_v40 = vmax.f32 %v4353_v57, %v4372_v2  ;;  %v4624_v39 = vrot.slane %v4563_v11, 4 }
 0x306   : > { %v4543_v53 = vmax.f32 %v4351_v54, %v4432_v38  ;;  %v4436_v16 = vrot.slane %v4372_v2, 6  ;;  %v4546_v9 = vmax.f32 %v4354_v8, %v4434_v41  ;;  %v4625_v55 = vrot.slane %v4563_v11, 6 }
 0x307   : > { %v4544_v12 = vmax.f32 %v4352_v17, %v4433_v5  ;;  %v4547_v44 = vmax.f32 %v4355_v47, %v4435_v20  ;;  %v4626_v33 = vrot.slane %v4564_v50, 2  ;;  %v4627_v46 = vrot.slane %v4564_v50, 4  ;;  %v5140_v20 = vld [vmem:[#allocation3 + $0x182] sm:$0xff] }
 0x308   : > { %v4548_v32 = vmax.f32 %v4356_v29, %v4436_v16  ;;  %v4628_v60 = vrot.slane %v4564_v50, 6  ;;  %v4733_v26 = vmax.f32 %v4541_v42, %v4563_v11  ;;  %v4734_v30 = vmax.f32 %v4542_v63, %v4623_v43  ;;  %6086 = vmatmul.bf16.vlgmr.msrb.gmra.mxu3 %v5983_v61 }
 0x309   : > { %v4735_v31 = vmax.f32 %v4543_v53, %v4624_v39  ;;  %v4736_v28 = vmax.f32 %v4544_v12, %v4625_v55  ;;  %v4737_v4 = vmax.f32 %v4545_v40, %v4564_v50  ;;  %v4816_v3 = vrot.slane %v4756_v37, 2  ;;  %v5141_v40 = vld [vmem:[#allocation3 + $0x18a] sm:$0xff] }
 0x30a   : > { %v4738_v59 = vmax.f32 %v4546_v9, %v4626_v33  ;;  %v4817_v49 = vrot.slane %v4756_v37, 4  ;;  %v4818_v38 = vrot.slane %v4756_v37, 6  ;;  %v4926_v62 = vmax.f32 %v4733_v26, %v4756_v37  ;;  %v5648_v33 = vld [vmem:[#allocation4 + $0x70] sm:$0xff] }
 0x30b   : > { %v4739_v5 = vmax.f32 %v4547_v44, %v4627_v46  ;;  %v4927_v2 = vmax.f32 %v4734_v30, %v4816_v3  ;;  %v5008_v54 = vrot.slane %v4948_v51, 2  ;;  %v4819_v17 = vrot.slane %v4757_v27, 2  ;;  %v5680_v44 = vld [vmem:[#allocation4 + $0x72] sm:$0xff] }
 0x30c   : > { %v4928_v11 = vmax.f32 %v4735_v31, %v4817_v49  ;;  %v4929_v42 = vmax.f32 %v4736_v28, %v4818_v38  ;;  %v5009_v63 = vrot.slane %v4948_v51, 4  ;;  %v4820_v52 = vrot.slane %v4757_v27, 4  ;;  %v5569_v28 = vld [vmem:[#allocation4 + $0x71] sm:$0xff] }
 0x30d   : > { %v5010_v21 = vrot.slane %v4948_v51, 6  ;;  %v4821_v57 = vrot.slane %v4757_v27, 6  ;;  %v4930_v8 = vmax.f32 %v4737_v4, %v4757_v27  ;;  %v4931_v41 = vmax.f32 %v4738_v59, %v4819_v17 }
 0x30e   : > { %v4740_v50 = vmax.f32 %v4548_v32, %v4628_v60  ;;  %v5118_v43 = vmax.f32 %v4926_v62, %v4948_v51  ;;  %v5119_v47 = vmax.f32 %v4927_v2, %v5008_v54  ;;  %v5011_v29 = vrot.slane %v4949_v10, 2 }
 0x30f   : > { %v5120_v61 = vmax.f32 %v4928_v11, %v5009_v63  ;;  %v5121_v39 = vmax.f32 %v4929_v42, %v5010_v21  ;;  %v4932_v53 = vmax.f32 %v4739_v5, %v4820_v52  ;;  %v5122_v16 = vmax.f32 %v4930_v8, %v4949_v10 }
 0x310   : > { %v5123_v9 = vmax.f32 %v4931_v41, %v5011_v29  ;;  %v5200_v55 = vrot.slane %v5140_v20, 2  ;;  %v5201_v37 = vrot.slane %v5140_v20, 4  ;;  %v5202_v12 = vrot.slane %v5140_v20, 6 }
 0x311   : > { %v4933_v46 = vmax.f32 %v4740_v50, %v4821_v57  ;;  %v5012_v26 = vrot.slane %v4949_v10, 4  ;;  %v5013_v30 = vrot.slane %v4949_v10, 6  ;;  %v5203_v27 = vrot.slane %v5141_v40, 2 }
 0x312   : > { %v5310_v31 = vmax.f32 %v5118_v43, %v5140_v20  ;;  %v5311_v32 = vmax.f32 %v5119_v47, %v5200_v55  ;;  %v5312_v60 = vmax.f32 %v5120_v61, %v5201_v37  ;;  %v5313_v51 = vmax.f32 %v5121_v39, %v5202_v12 }
 0x313   : > { %v5124_v4 = vmax.f32 %v4932_v53, %v5012_v26  ;;  %v5314_v3 = vmax.f32 %v5122_v16, %v5141_v40  ;;  %v5688_v59 = vpack.c.bf16 %v5680_v44, %v5680_v44  ;;  %v5656_v49 = vpack.c.bf16 %v5648_v33, %v5648_v33 }
 0x314   : > { %v5315_v38 = vmax.f32 %v5123_v9, %v5203_v27  ;;  %v5458_v62 = vperm.slane %v5310_v31, 0  ;;  %v5459_v5 = vperm.slane %v5311_v32, 0  ;;  %v5460_v2 = vperm.slane %v5312_v60, 0  ;;  %v1379_v31 = vld [vmem:[#allocation2 + $0xc2] sm:$0xff]  ;;  %v1380_v32 = vld [vmem:[#allocation2 + $0xca] sm:$0xff] }
 0x315   : > { %v5204_v54 = vrot.slane %v5141_v40, 4  ;;  %v5920_v17 = vunpack.c.l.b16 %v5688_v59  ;;  %v5864_v11 = vunpack.c.l.b16 %v5656_v49  ;;  %v5577_v42 = vpack.c.bf16 %v5569_v28, %v5569_v28  ;;  %v5650_v59 = vld [vmem:[#allocation4 + $0x90] sm:$0xff] }
 0x316   : > { %v5205_v63 = vrot.slane %v5141_v40, 6  ;;  %v5461_v10 = vperm.slane %v5313_v51, 0  ;;  %v5462_v52 = vperm.slane %v5314_v3, 0  ;;  %v5522_v21 = vsel %vm5466_vm6, %v5459_v5, %v5458_v62  ;;  %v5666_v51 = vld [vmem:[#allocation4 + $0x91] sm:$0xff] }
 0x317   : > { %v5925_v57 = vpack.c.b16 %v5920_v17, %v10549_v48  ;;  %v10639_v8 = vpack.c.b16 %v5864_v11, %v10551_v13  ;;  %v5726_v41 = vunpack.c.l.b16 %v5577_v42  ;;  %v5125_v20 = vmax.f32 %v4933_v46, %v5013_v30  ;;  %v10647_v48 = vpop.f32.mrf.mxu3 }
 0x318   : > { %v5316_v50 = vmax.f32 %v5124_v4, %v5204_v54  ;;  %v5463_v43 = vperm.slane %v5315_v38, 0  ;;  %v5523_v47 = vsel %vm5468_vm7, %v5460_v2, %v5522_v21  ;;  %v1411_v49 = vpack.c.bf16 %v1379_v31, %v1379_v31 }
 0x319   : > { %7903 = vmatmul.msk.bf16.gmra.mxu0 %vm3564_vm0, %v5925_v57  ;;  %5875 = vrot.lane.b32.xlu1 %v10639_v8, %s11987_s2  ;;  %v5730_v29 = vpack.c.b16 %v5726_v41, %v10560_v23  ;;  %v5317_v40 = vmax.f32 %v5125_v20, %v5205_v63  ;;  %v5524_v61 = vsel %vm5470_vm8, %v5461_v10, %v5523_v47  ;;  %v5682_v23 = vld [vmem:[#allocation4 + $0x92] sm:$0xff]  ;;  %v1381_v20 = vld [vmem:[#allocation2 + $0xda] sm:$0xff] }
 0x31a   : > { %v5464_v13 = vperm.slane %v5316_v50, 0  ;;  %v5525_v39 = vsel %vm5472_vm9, %v5462_v52, %v5524_v61  ;;  %v5690_v37 = vpack.c.bf16 %v5682_v23, %v5682_v23  ;;  %v1412_v38 = vpack.c.bf16 %v1380_v32, %v1380_v32  ;;  %v1445_v50 = vld [vmem:[#allocation2 + $0xe0] sm:$0xff] }
 0x31b   : > { %5737 = vrot.lane.b32.xlu0 %v5730_v29, %s8469_s21  ;;  %5903 = vrot.lane.b32.xlu2 %v5730_v29, %s8472_s0  ;;  %v5465_v53 = vperm.slane %v5317_v40, 0  ;;  %v5526_v16 = vsel %vm5474_vm10, %v5463_v43, %v5525_v39  ;;  %v5674_v54 = vpack.c.bf16 %v5666_v51, %v5666_v51  ;;  %v5658_v63 = vpack.c.bf16 %v5650_v59, %v5650_v59  ;;  %v1508_v29 = vld [vmem:[#allocation2 + $0xd9] sm:$0xff]  ;;  %v1510_v59 = vld [vmem:[#allocation2 + $0xf1] sm:$0xff] }
 0x31c   : > { %v5527_v9 = vsel %vm5476_vm11, %v5464_v13, %v5526_v16  ;;  %v5922_v60 = vunpack.c.l.b16 %v5690_v37  ;;  %v2164_v52 = vunpack.c.l.b16 %v1411_v49  ;;  %v2165_v21 = vunpack.c.l.b16 %v1412_v38  ;;  %v1444_v39 = vld [vmem:[#allocation2 + $0xd8] sm:$0xff]  ;;  %v5548_v32 = vld [vmem:[#allocation4 + $0x20] sm:$0xff]  ;;  %v1446_v49 = vld [vmem:[#allocation2 + $0xf0] sm:$0xff] }
 0x31d   : > { %v5528_v55 = vsel %vm5478_vm12, %v5465_v53, %v5527_v9  ;;  %v1413_v43 = vpack.c.bf16 %v1381_v20, %v1381_v20  ;;  %v1477_v16 = vpack.c.bf16 %v1445_v50, %v1445_v50  ;;  %v1540_v9 = vpack.c.bf16 %v1508_v29, %v1508_v29  ;;  %v1447_v51 = vld [vmem:[#allocation2 + $0xf8] sm:$0xff]  ;;  %v1385_v50 = vld [vmem:[#allocation2 + $0x10a] sm:$0xff] }
 0x31e   : > { %5545 = vst.msk [vmem:[#allocation4 + $0x81] sm:$0xff] %vm3564_vm0, %v5528_v55  ;;  %v2189_v40 = vpack.c.b16 %v2165_v21, %v2164_v52  ;;  %v1476_v37 = vpack.c.bf16 %v1444_v39, %v1444_v39  ;;  %v1542_v52 = vpack.c.bf16 %v1510_v59, %v1510_v59  ;;  %v1478_v21 = vpack.c.bf16 %v1446_v49, %v1446_v49  ;;  %v1512_v39 = vld [vmem:[#allocation2 + $0x109] sm:$0xff] }
 0x31f   : > { %v10657_v12 = vpop.f32.mrf.mxu3  ;;  %v2166_v55 = vunpack.c.l.b16 %v1413_v43  ;;  %v1386_v43 = vld [vmem:[#allocation2 + $0x112] sm:$0xff] }
 0x321   : > { %5765 = vrot.lane.b32.xlu1 %v5925_v57, %s8468_s1  ;;  %v5894_v57 = vunpack.c.l.b16 %v5674_v54  ;;  %v5556_v54 = vpack.c.bf16 %v5548_v32, %v5548_v32 }
 0x323   : > { %v5701_v29 = vunpack.c.l.b16 %v5556_v54 }
 0x325   : > { %v5633_v44 = vld [vmem:[#allocation4 + $0x82] sm:$0xff] }
 0x326   : > { %v5617_v33 = vld [vmem:[#allocation4 + $0x81] sm:$0xff]  ;;  %v5641_v26 = vpack.c.bf16 %v5633_v44, %v5633_v44  ;;  %v5549_v44 = vld [vmem:[#allocation4 + $0x30] sm:$0xff] }
 0x327   : > { %v5601_v46 = vld [vmem:[#allocation4 + $0x80] sm:$0xff]  ;;  %v5625_v30 = vpack.c.bf16 %v5617_v33, %v5617_v33  ;;  %v10663_v10 = vpop.f32.mrf.mxu3 }
 0x328   : > { %v5609_v27 = vpack.c.bf16 %v5601_v46, %v5601_v46  ;;  %v5838_v28 = vunpack.c.l.b16 %v5641_v26  ;;  %v2277_v46 = vunpack.c.l.b16 %v1477_v16  ;;  %v1383_v26 = vld [vmem:[#allocation2 + $0xf2] sm:$0xff] }
 0x329   : > { %v5810_v4 = vunpack.c.l.b16 %v5625_v30  ;;  %v1384_v30 = vld [vmem:[#allocation2 + $0xfa] sm:$0xff] }
 0x32a   : > { %v5782_v3 = vunpack.c.l.b16 %v5609_v27  ;;  %v5842_v62 = vpack.c.b16 %v5838_v28, %v5920_v17  ;;  %v5926_v42 = vpack.c.b16 %v5922_v60, %v5838_v28  ;;  %v1382_v17 = vld [vmem:[#allocation2 + $0xe2] sm:$0xff]  ;;  %v1511_v27 = vld [vmem:[#allocation2 + $0xf9] sm:$0xff]  ;;  %v2388_v60 = vunpack.c.l.b16 %v1540_v9 }
 0x32b   : > { %v5814_v5 = vpack.c.b16 %v5810_v4, %v5726_v41  ;;  %v5866_v41 = vunpack.c.l.b16 %v5658_v63  ;;  %v1414_v47 = vpack.c.bf16 %v1382_v17, %v1382_v17  ;;  %v5898_v61 = vpack.c.b16 %v5894_v57, %v5810_v4  ;;  %v5734_v57 = vpop.permute.xlu1 %5733 }
 0x32c   : > { %v5786_v2 = vpack.c.b16 %v5782_v3, %v5864_v11  ;;  %5849 = vrot.lane.b32.xlu1 %v5842_v62, %s8470_s3  ;;  %7904 = vmatmul.msk.bf16.vlgmr.msrb.gmra.mxu1 %vm3564_vm0, %v5926_v42  ;;  %v1509_v11 = vld [vmem:[#allocation2 + $0xe1] sm:$0xff]  ;;  %v5557_v28 = vpack.c.bf16 %v5549_v44, %v5549_v44  ;;  %v1415_v62 = vpack.c.bf16 %v1383_v26, %v1383_v26 }
 0x32d   : > { %5821 = vrot.lane.b32.xlu0 %v5814_v5, %s12028_s6  ;;  %v1541_v13 = vpack.c.bf16 %v1509_v11, %v1509_v11  ;;  %v5870_v53 = vpack.c.b16 %v5866_v41, %v5782_v3  ;;  %v2167_v23 = vunpack.c.l.b16 %v1414_v47  ;;  %v2276_v3 = vunpack.c.l.b16 %v1476_v37  ;;  %v1513_v47 = vld [vmem:[#allocation2 + $0x111] sm:$0xff] }
 0x32e   : > { %5793 = vrot.lane.b32.xlu2 %v5786_v2, %s8471_s4  ;;  %v1416_v5 = vpack.c.bf16 %v1384_v30, %v1384_v30  ;;  %v1543_v2 = vpack.c.bf16 %v1511_v27, %v1511_v27  ;;  %v1479_v63 = vpack.c.bf16 %v1447_v51, %v1447_v51  ;;  %v5702_v20 = vunpack.c.l.b16 %v5557_v28  ;;  %v5790_v51 = vpop.permute.xlu0 %5789  ;;  %s12157_s4 = sld [smem:[#allocation82_spill]] }
 0x32f   : > { %v2389_v33 = vunpack.c.l.b16 %v1541_v13  ;;  %v10668_v31 = vpop.f32.mrf.mxu3  ;;  %v2190_v4 = vpack.c.b16 %v2167_v23, %v2166_v55  ;;  %v2301_v42 = vpack.c.b16 %v2277_v46, %v2276_v3  ;;  %v2168_v17 = vunpack.c.l.b16 %v1415_v62  ;;  %v1448_v46 = vld [vmem:[#allocation2 + $0x108] sm:$0xff] }
 0x330   : > { %v2169_v41 = vunpack.c.l.b16 %v1416_v5  ;;  %v2391_v11 = vunpack.c.l.b16 %v1543_v2  ;;  %v2278_v13 = vunpack.c.l.b16 %v1478_v21  ;;  %v5708_v16 = vpack.c.b16 %v5702_v20, %v5701_v29  ;;  %v1451_v21 = vld [vmem:[#allocation2 + $0x128] sm:$0xff]  ;;  %v1450_v29 = vld [vmem:[#allocation2 + $0x120] sm:$0xff] }
 0x331   : > { %v10670_v38 = vpack.c.b16 %v2389_v33, %v2388_v60  ;;  %v1417_v9 = vpack.c.bf16 %v1385_v50, %v1385_v50  ;;  %v1418_v55 = vpack.c.bf16 %v1386_v43, %v1386_v43  ;;  %v1545_v23 = vpack.c.bf16 %v1513_v47, %v1513_v47  ;;  %v5762_v60 = vpop.permute.xlu2 %5761 }
 0x332   : > { %v2191_v44 = vpack.c.b16 %v2169_v41, %v2168_v17  ;;  %v5932_v26 = vsel %vm3564_vm0, %v5708_v16, %v5734_v57  ;;  %v1544_v27 = vpack.c.bf16 %v1512_v39, %v1512_v39  ;;  %v1480_v49 = vpack.c.bf16 %v1448_v46, %v1448_v46  ;;  %v1514_v41 = vld [vmem:[#allocation2 + $0x121] sm:$0xff] }
 0x333   : > { %v5818_v28 = vpop.permute.xlu1 %5817  ;;  %v2171_v3 = vunpack.c.l.b16 %v1418_v55  ;;  %v2393_v59 = vunpack.c.l.b16 %v1545_v23  ;;  %v5942_v62 = vsel %vm715_vm2, %v5932_v26, %v5762_v60  ;;  %v1482_v23 = vpack.c.bf16 %v1450_v29, %v1450_v29  ;;  %v1391_v29 = vld [vmem:[#allocation2 + $0x152] sm:$0xff] }
 0x334   : > { %2212 = vrot.lane.b32.xlu1 %v2189_v40, %s8468_s1  ;;  %v2279_v40 = vunpack.c.l.b16 %v1479_v63  ;;  %v5951_v5 = vsel %vm5947_vm13, %v5942_v62, %v5790_v51  ;;  %v2392_v2 = vunpack.c.l.b16 %v1544_v27  ;;  %v1388_v63 = vld [vmem:[#allocation2 + $0x12a] sm:$0xff]  ;;  %v2280_v17 = vunpack.c.l.b16 %v1480_v49  ;;  %v1389_v27 = vld [vmem:[#allocation2 + $0x13a] sm:$0xff]  ;;  %s8414_s8 = scalar_lea.hbm %s12157_s4, 512 }
 0x335   : > { %5905 = vrot.lane.b32.xlu0 %v5898_v61, %s8472_s0  ;;  %v2390_v61 = vunpack.c.l.b16 %v1542_v52  ;;  %v1515_v52 = vld [vmem:[#allocation2 + $0x129] sm:$0xff]  ;;  %v1420_v43 = vpack.c.bf16 %v1388_v63, %v1388_v63  ;;  %v1421_v49 = vpack.c.bf16 %v1389_v27, %v1389_v27  ;;  %v1452_v63 = vld [vmem:[#allocation2 + $0x138] sm:$0xff]  ;;  %s12102_s0 = sld [smem:[#allocation81_spill]] }
 0x336   : > { %5877 = vrot.lane.b32.xlu2 %v5870_v53, %s11987_s2  ;;  %v1449_v53 = vld [vmem:[#allocation2 + $0x110] sm:$0xff]  ;;  %v2302_v30 = vpack.c.b16 %v2279_v40, %v2278_v13  ;;  %v10687_v20 = vpack.c.b16 %v2393_v59, %v2392_v2  ;;  %v1547_v47 = vpack.c.bf16 %v1515_v52, %v1515_v52  ;;  %v2282_v59 = vunpack.c.l.b16 %v1482_v23 }
 0x337   : > { %v10676_v37 = vpop.f32.mrf.mxu3  ;;  %v10678_v33 = vpack.c.b16 %v2391_v11, %v2390_v61  ;;  %v1481_v32 = vpack.c.bf16 %v1449_v53, %v1449_v53  ;;  %v5959_v11 = vsel %vm2582_vm4, %v5951_v5, %v5818_v28  ;;  %v1483_v61 = vpack.c.bf16 %v1451_v21, %v1451_v21  ;;  %v1517_v28 = vld [vmem:[#allocation2 + $0x141] sm:$0xff]  ;;  %v1516_v5 = vld [vmem:[#allocation2 + $0x139] sm:$0xff] }
 0x338   : > { %v1546_v53 = vpack.c.bf16 %v1514_v41, %v1514_v41  ;;  %v2173_v26 = vunpack.c.l.b16 %v1420_v43 }
 0x339   : > { %v2281_v54 = vunpack.c.l.b16 %v1481_v32  ;;  %v5846_v39 = vpop.permute.xlu2 %5845  ;;  %v1390_v32 = vld [vmem:[#allocation2 + $0x142] sm:$0xff]  ;;  %v2283_v51 = vunpack.c.l.b16 %v1483_v61  ;;  %v1519_v61 = vld [vmem:[#allocation2 + $0x159] sm:$0xff] }
 0x33a   : > { %v5968_v55 = vsel %vm5964_vm14, %v5959_v11, %v5846_v39  ;;  %v1422_v62 = vpack.c.bf16 %v1390_v32, %v1390_v32  ;;  %v1484_v11 = vpack.c.bf16 %v1452_v63, %v1452_v63 }
 0x33b   : > { %v2303_v40 = vpack.c.b16 %v2281_v54, %v2280_v17  ;;  %v2304_v52 = vpack.c.b16 %v2283_v51, %v2282_v59  ;;  %v2174_v17 = vunpack.c.l.b16 %v1421_v49  ;;  %v1393_v59 = vld [vmem:[#allocation2 + $0x16a] sm:$0xff]  ;;  %v1394_v49 = vld [vmem:[#allocation2 + $0x172] sm:$0xff] }
 0x33c   : > { %2214 = vrot.lane.b32.xlu1 %v2190_v4, %s8468_s1  ;;  %v2170_v4 = vunpack.c.l.b16 %v1417_v9  ;;  %v2175_v41 = vunpack.c.l.b16 %v1422_v62 }
 0x33d   : > { %2436 = vrot.lane.b32.xlu0 %v10670_v38, %s11987_s2 }
 0x33e   : > { %2324 = vrot.lane.b32.xlu2 %v2301_v42, %s12028_s6  ;;  %v1387_v42 = vld [vmem:[#allocation2 + $0x122] sm:$0xff]  ;;  %v2192_v57 = vpack.c.b16 %v2171_v3, %v2170_v4  ;;  %v2394_v4 = vunpack.c.l.b16 %v1546_v53  ;;  %v1455_v53 = vld [vmem:[#allocation2 + $0x158] sm:$0xff] }
 0x33f   : > { %v1419_v50 = vpack.c.bf16 %v1387_v42, %v1387_v42  ;;  %v10690_v13 = vpop.f32.mrf.mxu3  ;;  %v1453_v3 = vld [vmem:[#allocation2 + $0x140] sm:$0xff]  ;;  %v1549_v42 = vpack.c.bf16 %v1517_v28, %v1517_v28  ;;  %v1487_v32 = vpack.c.bf16 %v1455_v53, %v1455_v53 }
 0x340   : > { %v1485_v21 = vpack.c.bf16 %v1453_v3, %v1453_v3 }
 0x341   : > { %v2172_v46 = vunpack.c.l.b16 %v1419_v50  ;;  %v2397_v50 = vunpack.c.l.b16 %v1549_v42  ;;  %v2287_v62 = vunpack.c.l.b16 %v1487_v32  ;;  %v1457_v42 = vld [vmem:[#allocation2 + $0x170] sm:$0xff] }
 0x343   : > { %v2193_v2 = vpack.c.b16 %v2173_v26, %v2172_v46  ;;  %v1551_v26 = vpack.c.bf16 %v1519_v61, %v1519_v61 }
 0x344   : > { %2216 = vrot.lane.b32.xlu1 %v2191_v44, %s8468_s1 }
 0x345   : > { %2438 = vrot.lane.b32.xlu0 %v10678_v33, %s11987_s2  ;;  %v2399_v3 = vunpack.c.l.b16 %v1551_v26  ;;  %v1396_v26 = vld [vmem:[#allocation2 + $0x18a] sm:$0xff] }
 0x346   : > { %2326 = vrot.lane.b32.xlu2 %v2302_v30, %s12028_s6  ;;  %v2395_v30 = vunpack.c.l.b16 %v1547_v47  ;;  %v2285_v47 = vunpack.c.l.b16 %v1485_v21  ;;  %v1425_v21 = vpack.c.bf16 %v1393_v59, %v1393_v59  ;;  %v1428_v59 = vpack.c.bf16 %v1396_v26, %v1396_v26 }
 0x347   : > { %v10705_v43 = vpop.f32.mrf.mxu3 }
 0x348   : > { %v10699_v54 = vpack.c.b16 %v2395_v30, %v2394_v4  ;;  %12037 = vst [vmem:[#allocation29_spill] sm:$0xff] %v10705_v43  ;;  %v1454_v30 = vld [vmem:[#allocation2 + $0x150] sm:$0xff] }
 0x349   : > { %v1486_v51 = vpack.c.bf16 %v1454_v30, %v1454_v30 }
 0x34c   : > { %2218 = vrot.lane.b32.xlu1 %v2192_v57, %s8468_s1  ;;  %v1548_v57 = vpack.c.bf16 %v1516_v5, %v1516_v5  ;;  %v1521_v5 = vld [vmem:[#allocation2 + $0x171] sm:$0xff] }
 0x34d   : > { %2440 = vrot.lane.b32.xlu0 %v10687_v20, %s11987_s2  ;;  %v5902_v16 = vpop.permute.xlu1 %5901 }
 0x34e   : > { %v5874_v9 = vpop.permute.xlu0 %5873  ;;  %2328 = vrot.lane.b32.xlu2 %v2303_v40, %s12028_s6  ;;  %v1392_v40 = vld [vmem:[#allocation2 + $0x15a] sm:$0xff]  ;;  %v2396_v39 = vunpack.c.l.b16 %v1548_v57  ;;  %v1426_v57 = vpack.c.bf16 %v1394_v49, %v1394_v49 }
 0x34f   : > { %v5976_v44 = vsel %vm2615_vm5, %v5968_v55, %v5874_v9  ;;  %v2284_v9 = vunpack.c.l.b16 %v1484_v11  ;;  %v1518_v55 = vld [vmem:[#allocation2 + $0x151] sm:$0xff]  ;;  %v1424_v46 = vpack.c.bf16 %v1392_v40, %v1392_v40  ;;  %v10713_v63 = vpop.f32.mrf.mxu3  ;;  %v1489_v40 = vpack.c.bf16 %v1457_v42, %v1457_v42  ;;  %v1458_v49 = vld [vmem:[#allocation2 + $0x180] sm:$0xff]  ;;  %v10725_v42 = vpop.f32.mrf.mxu1 }
 0x350   : > { %v5986_v60 = vsel %vm5981_vm15, %v5976_v44, %v5902_v16  ;;  %v2194_v16 = vpack.c.b16 %v2175_v41, %v2174_v17  ;;  %v10707_v23 = vpack.c.b16 %v2397_v50, %v2396_v39  ;;  %v1423_v44 = vpack.c.bf16 %v1391_v29, %v1391_v29  ;;  %12038 = vst [vmem:[#allocation30_spill] sm:$0xff] %v10713_v63  ;;  %v1520_v17 = vld [vmem:[#allocation2 + $0x169] sm:$0xff] }
 0x351   : > { %6091 = vmatmul.bf16.gmra.mxu3 %v5986_v60  ;;  %v2305_v27 = vpack.c.b16 %v2285_v47, %v2284_v9  ;;  %v1550_v60 = vpack.c.bf16 %v1518_v55, %v1518_v55  ;;  %v2177_v4 = vunpack.c.l.b16 %v1424_v46  ;;  %v1553_v50 = vpack.c.bf16 %v1521_v5, %v1521_v5  ;;  %v1456_v47 = vld [vmem:[#allocation2 + $0x168] sm:$0xff] }
 0x352   : > { %v2176_v28 = vunpack.c.l.b16 %v1423_v44  ;;  %v1552_v61 = vpack.c.bf16 %v1520_v17, %v1520_v17  ;;  %v2178_v39 = vunpack.c.l.b16 %v1425_v21  ;;  %v2179_v53 = vunpack.c.l.b16 %v1426_v57  ;;  %v1523_v44 = vld [vmem:[#allocation2 + $0x189] sm:$0xff]  ;;  %v1524_v57 = vld [vmem:[#allocation2 + $0x199] sm:$0xff]  ;;  %v1525_v17 = vld [vmem:[#allocation2 + $0x1a1] sm:$0xff] }
 0x353   : > { %v2401_v9 = vunpack.c.l.b16 %v1553_v50  ;;  %v2289_v55 = vunpack.c.l.b16 %v1489_v40  ;;  %v1395_v46 = vld [vmem:[#allocation2 + $0x182] sm:$0xff]  ;;  %v1490_v21 = vpack.c.bf16 %v1458_v49, %v1458_v49  ;;  %v5736_v49 = vpop.permute.xlu2 %5735 }
 0x354   : > { %2220 = vrot.lane.b32.xlu1 %v2193_v2, %s8468_s1  ;;  %v2398_v2 = vunpack.c.l.b16 %v1550_v60  ;;  %v2195_v41 = vpack.c.b16 %v2177_v4, %v2176_v28  ;;  %v2400_v30 = vunpack.c.l.b16 %v1552_v61  ;;  %v2196_v32 = vpack.c.b16 %v2179_v53, %v2178_v39 }
 0x355   : > { %2442 = vrot.lane.b32.xlu0 %v10699_v54, %s11987_s2  ;;  %v1555_v4 = vpack.c.bf16 %v1523_v44, %v1523_v44  ;;  %v1556_v61 = vpack.c.bf16 %v1524_v57, %v1524_v57  ;;  %v1557_v39 = vpack.c.bf16 %v1525_v17, %v1525_v17  ;;  %v2290_v53 = vunpack.c.l.b16 %v1490_v21 }
 0x356   : > { %2330 = vrot.lane.b32.xlu2 %v2304_v52, %s12028_s6  ;;  %v2286_v52 = vunpack.c.l.b16 %v1486_v51  ;;  %v10715_v11 = vpack.c.b16 %v2399_v3, %v2398_v2  ;;  %v1522_v51 = vld [vmem:[#allocation2 + $0x181] sm:$0xff]  ;;  %v10721_v28 = vpack.c.b16 %v2401_v9, %v2400_v30  ;;  %v1427_v3 = vpack.c.bf16 %v1395_v46, %v1395_v46 }
 0x357   : > { %v2404_v44 = vunpack.c.l.b16 %v1556_v61  ;;  %v2405_v46 = vunpack.c.l.b16 %v1557_v39  ;;  %v10739_v30 = vpop.f32.mrf.mxu1 }
 0x358   : > { %v2306_v29 = vpack.c.b16 %v2287_v62, %v2286_v52  ;;  %v10723_v62 = vpop.f32.mrf.mxu3  ;;  %v1554_v52 = vpack.c.bf16 %v1522_v51, %v1522_v51  ;;  %v2180_v50 = vunpack.c.l.b16 %v1427_v3  ;;  %v1461_v51 = vld [vmem:[#allocation2 + $0x1a0] sm:$0xff] }
 0x359   : > { %12039 = vst [vmem:[#allocation31_spill] sm:$0xff] %v10723_v62 }
 0x35a   : > { %v2402_v40 = vunpack.c.l.b16 %v1554_v52 }
 0x35b   : > { %v5820_v61 = vpop.permute.xlu2 %5819 }
 0x35c   : > { %2222 = vrot.lane.b32.xlu1 %v2194_v16, %s8468_s1  ;;  %v1488_v16 = vpack.c.bf16 %v1456_v47, %v1456_v47  ;;  %v2181_v47 = vunpack.c.l.b16 %v1428_v59  ;;  %v1493_v59 = vpack.c.bf16 %v1461_v51, %v1461_v51 }
 0x35d   : > { %2444 = vrot.lane.b32.xlu0 %v10707_v23, %s11987_s2 }
 0x35e   : > { %2332 = vrot.lane.b32.xlu2 %v2305_v27, %s12028_s6  ;;  %v1459_v27 = vld [vmem:[#allocation2 + $0x188] sm:$0xff]  ;;  %v2288_v60 = vunpack.c.l.b16 %v1488_v16  ;;  %v2197_v9 = vpack.c.b16 %v2181_v47, %v2180_v50  ;;  %v5764_v50 = vpop.permute.xlu0 %5763 }
 0x35f   : > { %v1491_v2 = vpack.c.bf16 %v1459_v27, %v1459_v27  ;;  %v5550_v27 = vld [vmem:[#allocation4 + $0x40] sm:$0xff]  ;;  %v10744_v17 = vpop.f32.mrf.mxu1 }
 0x360   : > { %v2307_v5 = vpack.c.b16 %v2289_v55, %v2288_v60  ;;  %v10736_v26 = vpop.f32.mrf.mxu3  ;;  %v1460_v60 = vld [vmem:[#allocation2 + $0x198] sm:$0xff] }
 0x361   : > { %12040 = vst [vmem:[#allocation32_spill] sm:$0xff] %v10736_v26  ;;  %v1492_v3 = vpack.c.bf16 %v1460_v60, %v1460_v60 }
 0x364   : > { %2224 = vrot.lane.b32.xlu1 %v2195_v41, %s8468_s1  ;;  %v2403_v41 = vunpack.c.l.b16 %v1555_v4  ;;  %v5558_v4 = vpack.c.bf16 %v5550_v27, %v5550_v27 }
 0x365   : > { %2446 = vrot.lane.b32.xlu0 %v10715_v11, %s11987_s2 }
 0x366   : > { %2334 = vrot.lane.b32.xlu2 %v2306_v29, %s12028_s6  ;;  %v2291_v29 = vunpack.c.l.b16 %v1491_v2  ;;  %v10731_v16 = vpack.c.b16 %v2403_v41, %v2402_v40  ;;  %v2293_v2 = vunpack.c.l.b16 %v1493_v59  ;;  %v5703_v21 = vunpack.c.l.b16 %v5558_v4 }
 0x368   : > { %v2308_v55 = vpack.c.b16 %v2291_v29, %v2290_v53  ;;  %v10742_v52 = vpop.f32.mrf.mxu3  ;;  %v5709_v41 = vpack.c.b16 %v10393_v1, %v5703_v21  ;;  %v5792_v47 = vpop.permute.xlu1 %5791 }
 0x369   : > { %12041 = vst [vmem:[#allocation33_spill] sm:$0xff] %v10742_v52 }
 0x36a   : > { %v5935_v29 = vsel %vm3564_vm0, %v5709_v41, %v5736_v49 }
 0x36b   : > { %v5944_v40 = vsel %vm715_vm2, %v5935_v29, %v5764_v50 }
 0x36c   : > { %2226 = vrot.lane.b32.xlu1 %v2196_v32, %s8468_s1  ;;  %v2421_v32 = vpack.c.b16 %v2405_v46, %v2404_v44  ;;  %v5953_v39 = vsel %vm5947_vm13, %v5944_v40, %v5792_v47  ;;  %v5848_v44 = vpop.permute.xlu0 %5847  ;;  %v1316_v47 = vld [vmem:[#allocation2 + $0xc9] sm:$0xff] }
 0x36d   : > { %2448 = vrot.lane.b32.xlu0 %v10721_v28, %s11987_s2  ;;  %v5961_v53 = vsel %vm2582_vm4, %v5953_v39, %v5820_v61  ;;  %v1315_v61 = vld [vmem:[#allocation2 + $0xc1] sm:$0xff]  ;;  %v1348_v39 = vpack.c.bf16 %v1316_v47, %v1316_v47 }
 0x36e   : > { %2336 = vrot.lane.b32.xlu2 %v2307_v5, %s12028_s6  ;;  %v2292_v5 = vunpack.c.l.b16 %v1492_v3  ;;  %v5970_v1 = vsel %vm5964_vm14, %v5961_v53, %v5848_v44 }
 0x370   : > { %v2309_v57 = vpack.c.b16 %v2293_v2, %v2292_v5 }
 0x374   : > { %2228 = vrot.lane.b32.xlu1 %v2197_v9, %s8468_s1  ;;  %v10752_v9 = vpop.f32.mrf.mxu3  ;;  %s12078_s1 = sld [smem:[#allocation74_spill]] }
 0x375   : > { %2450 = vrot.lane.b32.xlu0 %v10731_v16, %s11987_s2  ;;  %12042 = vst [vmem:[#allocation34_spill] sm:$0xff] %v10752_v9  ;;  %v5904_v27 = vpop.permute.xlu2 %5903 }
 0x376   : > { %2338 = vrot.lane.b32.xlu2 %v2308_v55, %s12028_s6  ;;  %v10754_v55 = vpop.f32.mrf.mxu1 }
 0x37c   : > { %v10759_v51 = vpop.f32.mrf.mxu3 }
 0x37d   : > { %2452 = vrot.lane.b32.xlu0 %v2421_v32, %s11987_s2  ;;  %12043 = vst [vmem:[#allocation35_spill] sm:$0xff] %v10759_v51  ;;  %s12079_s2 = smov %s12078_s1 }
 0x37e   : > { %2340 = vrot.lane.b32.xlu2 %v2309_v57, %s12028_s6  ;;  %v10761_v4 = vpop.f32.mrf.mxu1  ;;  %s11407_s6 = scalar_lea.vmem [#allocation8], %s12106_s23  ;;  %s8117_s23 = sshll.u32 %s12156_s29, 8 }
 0x37f   : > { %12044 = vst [vmem:[#allocation36_spill] sm:$0xff] %v10761_v4  ;;  %s7643_s30 = scalar_lea.hbm %s12157_s4, %s8117_s23  ;;  %s7632_s29 = scalar_lea.sflag [#allocation7], %s8666_s27 }
 0x384   : > { %v10766_v21 = vpop.f32.mrf.mxu3 }
 0x385   : > { %12045 = vst [vmem:[#allocation37_spill] sm:$0xff] %v10766_v21 }
 0x386   : > { %v10768_v57 = vpop.f32.mrf.mxu1 }
 0x387   : > { %12046 = vst [vmem:[#allocation38_spill] sm:$0xff] %v10768_v57 }
 0x388   : > { %v5794_v49 = vpop.permute.xlu2 %5793 }
 0x38b   : > { %v5876_v46 = vpop.permute.xlu1 %5875 }
 0x38c   : > { %v5978_v32 = vsel %vm2615_vm5, %v5970_v1, %v5876_v46  ;;  %v1347_v46 = vpack.c.bf16 %v1315_v61, %v1315_v61 }
 0x38d   : > { %v5989_v60 = vsel %vm5981_vm15, %v5978_v32, %v5904_v27  ;;  %v5738_v3 = vpop.permute.xlu0 %5737  ;;  %v10774_v32 = vpop.f32.mrf.mxu3 }
 0x38e   : > { %6096 = vmatmul.bf16.gmra.mxu3 %v5989_v60  ;;  %v5938_v5 = vsel %vm3564_vm0, %v10639_v8, %v5738_v3  ;;  %v2085_v8 = vunpack.c.l.b16 %v1348_v39  ;;  %12047 = vst [vmem:[#allocation39_spill] sm:$0xff] %v10774_v32  ;;  %v2084_v60 = vunpack.c.l.b16 %v1347_v46 }
 0x390   : > { %v5878_v53 = vpop.permute.xlu2 %5877 }
 0x393   : > { %v5766_v59 = vpop.permute.xlu1 %5765 }
 0x394   : > { %v5946_v2 = vsel %vm715_vm2, %v5938_v5, %v5766_v59  ;;  %v10777_v59 = vpop.f32.mrf.mxu1  ;;  %v2109_v5 = vpack.c.b16 %v2085_v8, %v2084_v60 }
 0x395   : > { %v5955_v29 = vsel %vm5947_vm13, %v5946_v2, %v5794_v49  ;;  %12048 = vst [vmem:[#allocation40_spill] sm:$0xff] %v10777_v59 }
 0x39c   : > { %v10784_v61 = vpop.f32.mrf.mxu1 }
 0x39d   : > { %12050 = vst [vmem:[#allocation42_spill] sm:$0xff] %v10784_v61 }
 0x39e   : > { %v5850_v41 = vpop.permute.xlu1 %5849 }
 0x39f   : > { %v5822_v50 = vpop.permute.xlu0 %5821 }
 0x3a0   : > { %v5963_v40 = vsel %vm2582_vm4, %v5955_v29, %v5822_v50  ;;  %v2325_v50 = vpop.permute.xlu2 %2324 }
 0x3a1   : > { %v5972_v44 = vsel %vm5964_vm14, %v5963_v40, %v5850_v41  ;;  %v10782_v40 = vpop.f32.mrf.mxu3 }
 0x3a2   : > { %v5980_v27 = vsel %vm2615_vm5, %v5972_v44, %v5878_v53  ;;  %12049 = vst [vmem:[#allocation41_spill] sm:$0xff] %v10782_v40 }
 0x3a4   : > { %v10790_v46 = vpop.f32.mrf.mxu1 }
 0x3a5   : > { %12052 = vst [vmem:[#allocation44_spill] sm:$0xff] %v10790_v46  ;;  %v1558_v46 = vld [vmem:[#allocation2 + $0x32] sm:$0xff] }
 0x3a6   : > { %v2213_v49 = vpop.permute.xlu1 %2212 }
 0x3a7   : > { %v5906_v1 = vpop.permute.xlu0 %5905  ;;  %v2687_v2 = vsel %vm715_vm2, %v2109_v5, %v2213_v49 }
 0x3a8   : > { %v5992_v3 = vsel %vm5981_vm15, %v5980_v27, %v5906_v1  ;;  %v2727_v41 = vsel %vm2582_vm4, %v2687_v2, %v2325_v50  ;;  %v2327_v1 = vpop.permute.xlu2 %2326 }
 0x3a9   : > { %6101 = vmatmul.bf16.gmra.mxu3 %v5992_v3  ;;  %v10786_v53 = vpop.f32.mrf.mxu3 }
 0x3aa   : > { %12051 = vst [vmem:[#allocation43_spill] sm:$0xff] %v10786_v53 }
 0x3ac   : > { %v10796_v49 = vpop.f32.mrf.mxu1 }
 0x3ad   : > { %12054 = vst [vmem:[#allocation46_spill] sm:$0xff] %v10796_v49 }
 0x3ae   : > { %v2215_v39 = vpop.permute.xlu1 %2214 }
 0x3af   : > { %v2437_v47 = vpop.permute.xlu0 %2436  ;;  %v2690_v44 = vsel %vm715_vm2, %v10670_v38, %v2215_v39 }
 0x3b0   : > { %v2766_v29 = vsel %vm2615_vm5, %v2727_v41, %v2437_v47  ;;  %v2729_v27 = vsel %vm2582_vm4, %v2690_v44, %v2327_v1  ;;  %v2329_v47 = vpop.permute.xlu2 %2328 }
 0x3b1   : > { %3116 = vmatmul.bf16.gmra.mxu2 %v2766_v29  ;;  %v10794_v3 = vpop.f32.mrf.mxu3 }
 0x3b2   : > { %12053 = vst [vmem:[#allocation45_spill] sm:$0xff] %v10794_v3 }
 0x3b4   : > { %v10804_v39 = vpop.f32.mrf.mxu1 }
 0x3b5   : > { %12056 = vst [vmem:[#allocation48_spill] sm:$0xff] %v10804_v39 }
 0x3b6   : > { %v2217_v5 = vpop.permute.xlu1 %2216 }
 0x3b7   : > { %v2439_v8 = vpop.permute.xlu0 %2438  ;;  %v2693_v2 = vsel %vm715_vm2, %v10678_v33, %v2217_v5 }
 0x3b8   : > { %v2769_v60 = vsel %vm2615_vm5, %v2729_v27, %v2439_v8  ;;  %v2731_v38 = vsel %vm2582_vm4, %v2693_v2, %v2329_v47 }
 0x3b9   : > { %v10801_v41 = vpop.f32.mrf.mxu3 }
 0x3ba   : > { %12055 = vst [vmem:[#allocation47_spill] sm:$0xff] %v10801_v41 }
 0x3bc   : > { %v10808_v1 = vpop.f32.mrf.mxu1 }
 0x3bd   : > { %12058 = vst [vmem:[#allocation50_spill] sm:$0xff] %v10808_v1 }
 0x3be   : > { %v2219_v44 = vpop.permute.xlu1 %2218 }
 0x3bf   : > { %v2441_v50 = vpop.permute.xlu0 %2440  ;;  %v2696_v27 = vsel %vm715_vm2, %v10687_v20, %v2219_v44 }
 0x3c0   : > { %v2772_v29 = vsel %vm2615_vm5, %v2731_v38, %v2441_v50 }
 0x3c1   : > { %3121 = vmatmul.bf16.gmra.mxu2 %v2769_v60  ;;  %v10806_v8 = vpop.f32.mrf.mxu3  ;;  %v2331_v60 = vpop.permute.xlu2 %2330 }
 0x3c2   : > { %12057 = vst [vmem:[#allocation49_spill] sm:$0xff] %v10806_v8  ;;  %v2733_v5 = vsel %vm2582_vm4, %v2696_v27, %v2331_v60 }
 0x3c4   : > { %v10816_v50 = vpop.f32.mrf.mxu1 }
 0x3c5   : > { %12060 = vst [vmem:[#allocation52_spill] sm:$0xff] %v10816_v50 }
 0x3c6   : > { %v2221_v38 = vpop.permute.xlu1 %2220 }
 0x3c7   : > { %v2443_v33 = vpop.permute.xlu0 %2442  ;;  %v2699_v8 = vsel %vm715_vm2, %v10699_v54, %v2221_v38 }
 0x3c8   : > { %v2775_v2 = vsel %vm2615_vm5, %v2733_v5, %v2443_v33 }
 0x3c9   : > { %v10814_v47 = vpop.f32.mrf.mxu3  ;;  %v2333_v3 = vpop.permute.xlu2 %2332 }
 0x3ca   : > { %12059 = vst [vmem:[#allocation51_spill] sm:$0xff] %v10814_v47  ;;  %v2735_v44 = vsel %vm2582_vm4, %v2699_v8, %v2333_v3  ;;  %v6116_v3 = vpop.f32.mrf.mxu0 }
 0x3cc   : > { %v10822_v20 = vpop.f32.mrf.mxu1 }
 0x3cd   : > { %12062 = vst [vmem:[#allocation54_spill] sm:$0xff] %v10822_v20 }
 0x3ce   : > { %v2223_v5 = vpop.permute.xlu1 %2222 }
 0x3cf   : > { %v2445_v41 = vpop.permute.xlu0 %2444 }
 0x3d0   : > { %v2778_v27 = vsel %vm2615_vm5, %v2735_v44, %v2445_v41 }
 0x3d1   : > { %3126 = vmatmul.bf16.gmra.mxu2 %v2772_v29  ;;  %v10818_v29 = vpop.f32.mrf.mxu3  ;;  %v2335_v47 = vpop.permute.xlu2 %2334 }
 0x3d2   : > { %12061 = vst [vmem:[#allocation53_spill] sm:$0xff] %v10818_v29 }
 0x3d4   : > { %v10828_v60 = vpop.f32.mrf.mxu1 }
 0x3d5   : > { %12063 = vst [vmem:[#allocation55_spill] sm:$0xff] %v10828_v60 }
 0x3d6   : > { %v2225_v44 = vpop.permute.xlu1 %2224 }
 0x3d7   : > { %v2447_v29 = vpop.permute.xlu0 %2446  ;;  %v2705_v60 = vsel %vm715_vm2, %v10715_v11, %v2225_v44 }
 0x3d9   : > { %v10826_v33 = vpop.f32.mrf.mxu3 }
 0x3da   : > { %v6117_v62 = vadd.f32 %v6116_v3, %v10826_v33 }
 0x3dc   : > { %v10834_v8 = vpop.f32.mrf.mxu1 }
 0x3dd   : > { %12064 = vst [vmem:[#allocation56_spill] sm:$0xff] %v10834_v8 }
 0x3e1   : > { %3131 = vmatmul.bf16.gmra.mxu2 %v2775_v2  ;;  %v2702_v2 = vsel %vm715_vm2, %v10707_v23, %v2223_v5  ;;  %v6089_v38 = vpop.f32.mrf.mxu3  ;;  %v2449_v23 = vpop.permute.xlu0 %2448 }
 0x3e2   : > { %v2737_v54 = vsel %vm2582_vm4, %v2702_v2, %v2335_v47  ;;  %v2337_v5 = vpop.permute.xlu2 %2336 }
 0x3e3   : > { %v2781_v53 = vsel %vm2615_vm5, %v2737_v54, %v2447_v29  ;;  %v2739_v40 = vsel %vm2582_vm4, %v2705_v60, %v2337_v5  ;;  %v2227_v54 = vpop.permute.xlu1 %2226 }
 0x3e4   : > { %v10838_v20 = vpop.f32.mrf.mxu1  ;;  %v2784_v47 = vsel %vm2615_vm5, %v2739_v40, %v2449_v23  ;;  %v2708_v50 = vsel %vm715_vm2, %v10721_v28, %v2227_v54 }
 0x3e5   : > { %12065 = vst [vmem:[#allocation57_spill] sm:$0xff] %v10838_v20 }
 0x3e9   : > { %v6092_v41 = vpop.f32.mrf.mxu3  ;;  %v2451_v32 = vpop.permute.xlu0 %2450 }
 0x3ea   : > { %v2339_v44 = vpop.permute.xlu2 %2338 }
 0x3eb   : > { %v2741_v20 = vsel %vm2582_vm4, %v2708_v50, %v2339_v44 }
 0x3ec   : > { %v10842_v2 = vpop.f32.mrf.mxu1  ;;  %v2787_v1 = vsel %vm2615_vm5, %v2741_v20, %v2451_v32 }
 0x3ed   : > { %12066 = vst [vmem:[#allocation58_spill] sm:$0xff] %v10842_v2  ;;  %v10850_v2 = vpop.f32.mrf.mxu2 }
 0x3f1   : > { %3136 = vmatmul.bf16.gmra.mxu2 %v2778_v27  ;;  %v6118_v27 = vpop.f32.mrf.mxu0  ;;  %v6094_v29 = vpop.f32.mrf.mxu3 }
 0x3f2   : > { %v2341_v28 = vpop.permute.xlu2 %2340  ;;  %v2453_v39 = vpop.permute.xlu0 %2452 }
 0x3f4   : > { %v10848_v60 = vpop.f32.mrf.mxu1 }
 0x3f5   : > { %12067 = vst [vmem:[#allocation59_spill] sm:$0xff] %v10848_v60 }
 0x3fc   : > { %v6131_v5 = vpop.f32.mrf.mxu1 }
 0x401   : > { %3141 = vmatmul.bf16.gmra.mxu2 %v2781_v53  ;;  %v6121_v53 = vpop.f32.mrf.mxu0 }
 0x402   : > { %v6122_v61 = vadd.f32 %v6121_v53, %v6092_v41 }
 0x404   : > { %v6133_v60 = vpop.f32.mrf.mxu1 }
 0x409   : > { %v6123_v11 = vpop.f32.mrf.mxu0 }
 0x411   : > { %3146 = vmatmul.bf16.gmra.mxu2 %v2784_v47  ;;  %v6097_v8 = vpop.f32.mrf.mxu3  ;;  %v6126_v23 = vpop.f32.mrf.mxu0 }
 0x412   : > { %v2229_v47 = vpop.permute.xlu1 %2228  ;;  %v6127_v49 = vadd.f32 %v6126_v23, %v6097_v8  ;;  %v6119_v8 = vadd.f32 %v6118_v27, %v6089_v38 }
 0x413   : > { %v2711_v21 = vsel %vm715_vm2, %v10731_v16, %v2229_v47  ;;  %v1559_v16 = vld [vmem:[#allocation2 + $0x3a] sm:$0xff] }
 0x414   : > { %v2743_v51 = vsel %vm2582_vm4, %v2711_v21, %v2341_v28  ;;  %v8187_v21 = vld [vmem:[%s11903_s12] ss:$0 sm:$0xff]  ;;  %v1590_v28 = vpack.c.bf16 %v1558_v46, %v1558_v46 }
 0x415   : > { %v2790_v32 = vsel %vm2615_vm5, %v2743_v51, %v2453_v39 }
 0x416   : > { %v2486_v59 = vunpack.c.l.b16 %v1590_v28 }
 0x419   : > { %v6099_v40 = vpop.f32.mrf.mxu3  ;;  %v6128_v44 = vpop.f32.mrf.mxu0 }
 0x41a   : > { %v6129_v20 = vadd.f32 %v6128_v44, %v6099_v40 }
 0x421   : > { %3151 = vmatmul.bf16.gmra.mxu2 %v2787_v1  ;;  %v8186_v1 = vld [vmem:[%s12068_s11] ss:$0 sm:$0xff] }
 0x422   : > { %v6145_v51 = vmul.f32 %v8186_v1, %v6129_v20  ;;  %v6144_v40 = vmul.f32 %v8186_v1, %v6127_v49  ;;  %v6142_v63 = vmul.f32 %v8186_v1, %v6122_v61 }
 0x424   : > { %v6156_v4 = vadd.f32 %v8187_v21, %v6144_v40  ;;  %v6154_v53 = vadd.f32 %v8187_v21, %v6142_v63  ;;  %v8101_v40 = vld [vmem:[%s11904_s13 + $0x18] sm:$0xff] }
 0x426   : > { %v6164_v38 = vmax.f32 %v6156_v4, 0.0  ;;  %v6162_v20 = vmax.f32 %v6154_v53, 0.0 }
 0x42c   : > { %v6102_v54 = vpop.f32.mrf.mxu3 }
 0x42d   : > { %v6132_v50 = vadd.f32 %v6131_v5, %v6102_v54  ;;  %v6124_v5 = vadd.f32 %v6123_v11, %v6094_v29  ;;  %v1591_v54 = vpack.c.bf16 %v1559_v16, %v1559_v16 }
 0x42f   : > { %v6146_v9 = vmul.f32 %v8186_v1, %v6132_v50  ;;  %v6143_v23 = vmul.f32 %v8186_v1, %v6124_v5  ;;  %v6157_v50 = vadd.f32 %v8187_v21, %v6145_v51  ;;  %v2487_v57 = vunpack.c.l.b16 %v1591_v54 }
 0x431   : > { %3156 = vmatmul.bf16.gmra.mxu2 %v2790_v32  ;;  %v6158_v44 = vadd.f32 %v8187_v21, %v6146_v9  ;;  %v6155_v46 = vadd.f32 %v8187_v21, %v6143_v23  ;;  %v6165_v49 = vmax.f32 %v6157_v50, 0.0  ;;  %v6140_v9 = vmul.f32 %v8186_v1, %v6117_v62  ;;  %v8098_v62 = vld [vmem:[%s11904_s13] sm:$0xff] }
 0x432   : > { %v2518_v27 = vpack.c.b16 %v2487_v57, %v2486_v59  ;;  %v8099_v59 = vld [vmem:[%s11904_s13 + $0x8] sm:$0xff]  ;;  %v8102_v23 = vld [vmem:[%s11904_s13 + $0x20] sm:$0xff] }
 0x433   : > { %v6166_v43 = vmax.f32 %v6158_v44, 0.0  ;;  %v6202_v33 = vpack.c.bf16 %v6165_v49, %v6164_v38  ;;  %v6163_v3 = vmax.f32 %v6155_v46, 0.0  ;;  %v6152_v61 = vadd.f32 %v8187_v21, %v6140_v9  ;;  %v8104_v49 = vld [vmem:[%s11904_s13 + $0x30] sm:$0xff]  ;;  %v8105_v38 = vld [vmem:[%s11904_s13 + $0x38] sm:$0xff] }
 0x434   : > { %v10859_v47 = vpop.f32.mrf.mxu2  ;;  %v6104_v52 = vpop.f32.mrf.mxu3 }
 0x435   : > { %v6134_v39 = vadd.f32 %v6133_v60, %v6104_v52  ;;  %v6141_v52 = vmul.f32 %v8186_v1, %v6119_v8  ;;  %v6201_v16 = vpack.c.bf16 %v6163_v3, %v6162_v20  ;;  %v6160_v51 = vmax.f32 %v6152_v61, 0.0  ;;  %v8106_v20 = vld [vmem:[%s11904_s13 + $0x40] sm:$0xff] }
 0x437   : > { %v6147_v32 = vmul.f32 %v8186_v1, %v6134_v39  ;;  %v6153_v60 = vadd.f32 %v8187_v21, %v6141_v52  ;;  %v8100_v39 = vld [vmem:[%s11904_s13 + $0x10] sm:$0xff]  ;;  %v8103_v52 = vld [vmem:[%s11904_s13 + $0x28] sm:$0xff] }
 0x439   : > { %v6159_v26 = vadd.f32 %v8187_v21, %v6147_v32  ;;  %v6161_v5 = vmax.f32 %v6153_v60, 0.0  ;;  %v8114_v32 = vld [vmem:[%s11905_s14] sm:$0xff] }
 0x43a   : > { %6500 = vmatpush.bf16.msra.mxu3 %v8114_v32  ;;  %v8109_v32 = vld [vmem:[%s11904_s13 + $0x58] sm:$0xff] }
 0x43b   : > { %v6167_v29 = vmax.f32 %v6159_v26, 0.0 }
 0x43c   : > { %v10865_v11 = vpop.f32.mrf.mxu2 }
 0x43d   : > { %v6203_v41 = vpack.c.bf16 %v6167_v29, %v6166_v43  ;;  %v6200_v43 = vpack.c.bf16 %v6161_v5, %v6160_v51 }
 0x43f   : > { %6336 = vmatpush.bf16.msra.mxu2 %v6203_v41 }
 0x441   : > { %7825 = vmatmul.msk.bf16.vlgmr.msrb.gmra.mxu2 %vm715_vm2, %v2518_v27 }
 0x443   : > { %6337 = vmatpush.bf16.msra.mxu2 %v6202_v33  ;;  %v3085_v33 = vadd.f32 %v9575_v15, %v9530_v19 }
 0x444   : > { %v10868_v26 = vpop.f32.mrf.mxu2 }
 0x447   : > { %6338 = vmatpush.bf16.msra.mxu2 %v6201_v16 }
 0x44b   : > { %6339 = vmatpush.bf16.msra.mxu2 %v6200_v43 }
 0x44c   : > { %v10870_v63 = vpop.f32.mrf.mxu2 }
 0x451   : > { %7969 = vmatmul.msk.bf16.vlgmr.msra.gmra.mxu2 %vm2582_vm4, %v8098_v62  ;;  %v8108_v62 = vld [vmem:[%s11904_s13 + $0x50] sm:$0xff] }
 0x454   : > { %v10876_v4 = vpop.f32.mrf.mxu2 }
 0x45c   : > { %v10878_v57 = vpop.f32.mrf.mxu2 }
 0x461   : > { %7970 = vmatmul.msk.bf16.gmra.mxu2 %vm2582_vm4, %v8099_v59 }
 0x464   : > { %v10884_v1 = vpop.f32.mrf.mxu2 }
 0x46c   : > { %v10886_v21 = vpop.f32.mrf.mxu2 }
 0x471   : > { %7971 = vmatmul.msk.bf16.gmra.mxu2 %vm2582_vm4, %v8100_v39 }
 0x474   : > { %v10892_v28 = vpop.f32.mrf.mxu2 }
 0x47c   : > { %v10894_v54 = vpop.f32.mrf.mxu2 }
 0x481   : > { %7972 = vmatmul.msk.bf16.gmra.mxu2 %vm2582_vm4, %v8101_v40 }
 0x484   : > { %v10900_v44 = vpop.f32.mrf.mxu2 }
 0x485   : > { %12069 = vst [vmem:[#allocation60_spill] sm:$0xff] %v10900_v44 }
 0x48c   : > { %v10905_v8 = vpop.f32.mrf.mxu2 }
 0x48d   : > { %12070 = vst [vmem:[#allocation61_spill] sm:$0xff] %v10905_v8 }
 0x491   : > { %7973 = vmatmul.msk.bf16.gmra.mxu2 %vm2582_vm4, %v8102_v23 }
 0x494   : > { %v10911_v50 = vpop.f32.mrf.mxu2 }
 0x495   : > { %12071 = vst [vmem:[#allocation62_spill] sm:$0xff] %v10911_v50 }
 0x49c   : > { %v10913_v29 = vpop.f32.mrf.mxu2 }
 0x49d   : > { %12072 = vst [vmem:[#allocation63_spill] sm:$0xff] %v10913_v29 }
 0x4a1   : > { %7974 = vmatmul.msk.bf16.gmra.mxu2 %vm2582_vm4, %v8103_v52 }
 0x4a4   : > { %v10919_v46 = vpop.f32.mrf.mxu2 }
 0x4a5   : > { %12073 = vst [vmem:[#allocation64_spill] sm:$0xff] %v10919_v46 }
 0x4ac   : > { %v10921_v41 = vpop.f32.mrf.mxu2 }
 0x4ad   : > { %12074 = vst [vmem:[#allocation65_spill] sm:$0xff] %v10921_v41 }
 0x4b1   : > { %7975 = vmatmul.msk.bf16.gmra.mxu2 %vm2582_vm4, %v8104_v49 }
 0x4b4   : > { %v10927_v9 = vpop.f32.mrf.mxu2 }
 0x4b5   : > { %12075 = vst [vmem:[#allocation66_spill] sm:$0xff] %v10927_v9 }
 0x4bc   : > { %v10929_v53 = vpop.f32.mrf.mxu2 }
 0x4bd   : > { %12076 = vst [vmem:[#allocation67_spill] sm:$0xff] %v10929_v53 }
 0x4c1   : > { %7976 = vmatmul.msk.bf16.gmra.mxu2 %vm2582_vm4, %v8105_v38  ;;  %v8110_v38 = vld [vmem:[%s11904_s13 + $0x60] sm:$0xff] }
 0x4c4   : > { %v3171_v27 = vpop.f32.mrf.mxu2 }
 0x4c5   : > { %v10936_v60 = vadd.f32 %v3171_v27, %v9586_v14  ;;  %v8107_v14 = vld [vmem:[%s11904_s13 + $0x48] sm:$0xff] }
 0x4cc   : > { %v3173_v3 = vpop.f32.mrf.mxu2 }
 0x4cd   : > { %v10940_v61 = vadd.f32 %v3173_v3, %v3085_v33 }
 0x4d1   : > { %7977 = vmatmul.msk.bf16.gmra.mxu2 %vm2582_vm4, %v8106_v20  ;;  %v8111_v20 = vld [vmem:[%s11904_s13 + $0x68] sm:$0xff] }
 0x4d4   : > { %v6341_v16 = vpop.f32.mrf.mxu2 }
 0x4dc   : > { %v6343_v5 = vpop.f32.mrf.mxu2 }
 0x4dd   : > { %v6421_v51 = vpack.c.bf16 %v6343_v5, %v6341_v16 }
 0x4df   : > { %7989 = vmatmul.msk.bf16.vlgmr.msra.gmra.mxu3 %vm3564_vm0, %v6421_v51 }
 0x4e1   : > { %7978 = vmatmul.msk.bf16.gmra.mxu2 %vm2582_vm4, %v8107_v14  ;;  %v8112_v14 = vld [vmem:[%s11904_s13 + $0x70] sm:$0xff] }
 0x4e4   : > { %v6346_v19 = vpop.f32.mrf.mxu2 }
 0x4ec   : > { %v6348_v15 = vpop.f32.mrf.mxu2 }
 0x4ed   : > { %v6422_v43 = vpack.c.bf16 %v6348_v15, %v6346_v19 }
 0x4ef   : > { %7990 = vmatmul.msk.bf16.gmra.mxu3 %vm3564_vm0, %v6422_v43 }
 0x4f1   : > { %7979 = vmatmul.msk.bf16.gmra.mxu2 %vm2582_vm4, %v8108_v62  ;;  %v8113_v62 = vld [vmem:[%s11904_s13 + $0x78] sm:$0xff] }
 0x4f4   : > { %v6351_v59 = vpop.f32.mrf.mxu2 }
 0x4fc   : > { %v6353_v39 = vpop.f32.mrf.mxu2 }
 0x4fd   : > { %v6423_v40 = vpack.c.bf16 %v6353_v39, %v6351_v59 }
 0x4ff   : > { %7991 = vmatmul.msk.bf16.gmra.mxu3 %vm3564_vm0, %v6423_v40 }
 0x501   : > { %7980 = vmatmul.msk.bf16.gmra.mxu2 %vm2582_vm4, %v8109_v32 }
 0x504   : > { %v6356_v23 = vpop.f32.mrf.mxu2 }
 0x50c   : > { %v6358_v52 = vpop.f32.mrf.mxu2 }
 0x50d   : > { %v6424_v49 = vpack.c.bf16 %v6358_v52, %v6356_v23 }
 0x50f   : > { %7992 = vmatmul.msk.bf16.gmra.mxu3 %vm3564_vm0, %v6424_v49  ;;  %v10986_v49 = vld [vmem:[%s11906_s15] ss:$0 sm:$0xff] }
 0x511   : > { %7981 = vmatmul.msk.bf16.gmra.mxu2 %vm2582_vm4, %v8110_v38  ;;  %v10991_v38 = vld [vmem:[%s11907_s16] ss:$0 sm:$0xff] }
 0x514   : > { %v6361_v27 = vpop.f32.mrf.mxu2 }
 0x51c   : > { %v6363_v33 = vpop.f32.mrf.mxu2 }
 0x51d   : > { %v6425_v3 = vpack.c.bf16 %v6363_v33, %v6361_v27 }
 0x51f   : > { %7993 = vmatmul.msk.bf16.gmra.mxu3 %vm3564_vm0, %v6425_v3 }
 0x521   : > { %7982 = vmatmul.msk.bf16.gmra.mxu2 %vm2582_vm4, %v8111_v20 }
 0x524   : > { %v6366_v16 = vpop.f32.mrf.mxu2 }
 0x52c   : > { %v6368_v5 = vpop.f32.mrf.mxu2 }
 0x52d   : > { %v6426_v51 = vpack.c.bf16 %v6368_v5, %v6366_v16 }
 0x52f   : > { %7994 = vmatmul.msk.bf16.gmra.mxu3 %vm3564_vm0, %v6426_v51 }
 0x531   : > { %7983 = vmatmul.msk.bf16.gmra.mxu2 %vm2582_vm4, %v8112_v14 }
 0x534   : > { %v6371_v19 = vpop.f32.mrf.mxu2 }
 0x53c   : > { %v6373_v15 = vpop.f32.mrf.mxu2 }
 0x53d   : > { %v6427_v43 = vpack.c.bf16 %v6373_v15, %v6371_v19 }
 0x53f   : > { %7995 = vmatmul.msk.bf16.gmra.mxu3 %vm3564_vm0, %v6427_v43 }
 0x541   : > { %7984 = vmatmul.msk.bf16.gmra.mxu2 %vm2582_vm4, %v8113_v62 }
 0x544   : > { %v6376_v59 = vpop.f32.mrf.mxu2 }
 0x54c   : > { %v6378_v39 = vpop.f32.mrf.mxu2 }
 0x54d   : > { %v6428_v40 = vpack.c.bf16 %v6378_v39, %v6376_v59 }
 0x54f   : > { %7996 = vmatmul.msk.bf16.gmra.mxu3 %vm3564_vm0, %v6428_v40 }
 0x554   : > { %v6381_v32 = vpop.f32.mrf.mxu2 }
 0x55c   : > { %v6383_v23 = vpop.f32.mrf.mxu2 }
 0x55d   : > { %v6429_v52 = vpack.c.bf16 %v6383_v23, %v6381_v32  ;;  %v8116_v32 = vld [vmem:[%s11908_s17 + $0x8] sm:$0xff] }
 0x55e   : > { %7380 = vmatpush.bf16.msra.mxu1 %v8116_v32 }
 0x55f   : > { %7997 = vmatmul.msk.bf16.gmra.mxu3 %vm3564_vm0, %v6429_v52 }
 0x562   : > { %v6502_v27 = vpop.f32.mrf.mxu3 }
 0x563   : > { %v6586_v33 = vmul.f32 %v10986_v49, %v6502_v27 }
 0x564   : > { %v6386_v3 = vpop.f32.mrf.mxu2 }
 0x565   : > { %v6622_v20 = vadd.f32 %v10991_v38, %v6586_v33 }
 0x567   : > { %v8005_v16 = vmul.f32 -1.442695, %v6622_v20 }
 0x569   : > { %8192 = vpow2.f32 %v8005_v16 }
 0x56a   : > { %v6504_v5 = vpop.f32.mrf.mxu3 }
 0x56b   : > { %v6587_v51 = vmul.f32 %v10986_v49, %v6504_v5 }
 0x56c   : > { %v6388_v14 = vpop.f32.mrf.mxu2 }
 0x56d   : > { %v6623_v19 = vadd.f32 %v10991_v38, %v6587_v51  ;;  %v6430_v15 = vpack.c.bf16 %v6388_v14, %v6386_v3 }
 0x56f   : > { %v8193_v43 = vpop.eup %8192  ;;  %v8006_v62 = vmul.f32 -1.442695, %v6623_v19  ;;  %7998 = vmatmul.msk.bf16.gmra.mxu3 %vm3564_vm0, %v6430_v15  ;;  %v8115_v19 = vld [vmem:[%s11908_s17] sm:$0xff] }
 0x570   : > { %v6750_v59 = vadd.f32 1.0, %v8193_v43  ;;  %7381 = vmatpush.bf16.msra.mxu1 %v8115_v19 }
 0x571   : > { %8194 = vpow2.f32 %v8006_v62 }
 0x572   : > { %8196 = vrcp.f32 %v6750_v59  ;;  %v6507_v39 = vpop.f32.mrf.mxu3  ;;  %v6793_v19 = vand.u32 2147483648, %v6750_v59  ;;  %vm6787_vm3 = vweird.f32 %v6750_v59 }
 0x573   : > { %v6588_v40 = vmul.f32 %v10986_v49, %v6507_v39 }
 0x574   : > { %v6391_v23 = vpop.f32.mrf.mxu2 }
 0x575   : > { %v6624_v52 = vadd.f32 %v10991_v38, %v6588_v40  ;;  %v11011_v40 = vld [vmem:[%s12077_s5] ss:$0 sm:$0xff] }
 0x577   : > { %v8195_v27 = vpop.eup %8194  ;;  %v8007_v33 = vmul.f32 -1.442695, %v6624_v52 }
 0x578   : > { %v8197_v3 = vpop.eup %8196  ;;  %v6751_v20 = vadd.f32 1.0, %v8195_v27 }
 0x579   : > { %v6783_v16 = vmul.f32 %v8197_v3, %v6750_v59  ;;  %8198 = vpow2.f32 %v8007_v33  ;;  %v3255_v33 = vmul.f32 %v11011_v40, %v10936_v60  ;;  %vm6788_vm1 = vweird.f32 %v8197_v3 }
 0x57a   : > { %8200 = vrcp.f32 %v6751_v20  ;;  %v6509_v5 = vpop.f32.mrf.mxu3  ;;  %v6791_v60 = vand.u32 2147483647, %v6750_v59  ;;  %vm11029_vm4 = vmor %vm6787_vm3, %vm6788_vm1  ;;  %v6808_v53 = vand.u32 2147483648, %v6751_v20  ;;  %vm6802_vm7 = vweird.f32 %v6751_v20 }
 0x57b   : > { %v6784_v51 = vsub.f32 1.0, %v6783_v16  ;;  %v6589_v14 = vmul.f32 %v10986_v49, %v6509_v5  ;;  %v3256_v16 = vmul.f32 %v11011_v40, %v10940_v61 }
 0x57c   : > { %v6393_v15 = vpop.f32.mrf.mxu2  ;;  %vm6792_vm6 = vcmp.eq.f32.partialorder %v6791_v60, 8.507059e+37  ;;  %v6809_v44 = vor.u32 1.1754944e-38, %v6808_v53 }
 0x57d   : > { %v6785_v43 = vmul.f32 %v8197_v3, %v6784_v51  ;;  %v6625_v62 = vadd.f32 %v10991_v38, %v6589_v14  ;;  %v6431_v39 = vpack.c.bf16 %v6393_v15, %v6391_v23  ;;  %v11023_v14 = vld [vmem:[%s12078_s1] ss:$0 sm:$0xff]  ;;  %s12100_s1 = sld [smem:[#allocation80_spill]] }
 0x57f   : > { %v8199_v32 = vpop.eup %8198  ;;  %v8008_v52 = vmul.f32 -1.442695, %v6625_v62  ;;  %7999 = vmatmul.msk.bf16.gmra.mxu3 %vm3564_vm0, %v6431_v39  ;;  %v6786_v23 = vadd.f32 %v8197_v3, %v6785_v43  ;;  %v3291_v39 = vadd.f32 %v11023_v14, %v3255_v33  ;;  %v3292_v43 = vadd.f32 %v11023_v14, %v3256_v16 }
 0x580   : > { %v8201_v27 = vpop.eup %8200  ;;  %v11018_v5 = vadd.f32 1.0, %v8199_v32  ;;  %v6794_v33 = vor.u32 1.1754944e-38, %v6793_v19 }
 0x581   : > { %v6798_v51 = vmul.f32 %v8201_v27, %v6751_v20  ;;  %8202 = vpow2.f32 %v8008_v52  ;;  %v6806_v52 = vand.u32 2147483647, %v6751_v20  ;;  %v6790_v41 = vsel %vm11029_vm4, %v8197_v3, %v6786_v23 }
 0x582   : > { %8204 = vrcp.f32 %v11018_v5  ;;  %v6512_v15 = vpop.f32.mrf.mxu3  ;;  %vm6803_vm5 = vweird.f32 %v8201_v27  ;;  %v3323_v8 = vmax.f32 %v3291_v39, 0.0  ;;  %v6795_v3 = vsel %vm6792_vm6, %v6794_v33, %v6790_v41 }
 0x583   : > { %v6799_v62 = vsub.f32 1.0, %v6798_v51  ;;  %v6590_v61 = vmul.f32 %v10986_v49, %v6512_v15  ;;  %v3090_v51 = vadd.f32 %v9632_v36, %v9621_v45  ;;  %vm6804_vm8 = vmor %vm6802_vm7, %vm6803_vm5  ;;  %v3324_v23 = vmax.f32 %v3292_v43, 0.0  ;;  %s12101_s21 = smov %s12100_s1 }
 0x584   : > { %v6396_v9 = vpop.f32.mrf.mxu2  ;;  %vm6807_vm9 = vcmp.eq.f32.partialorder %v6806_v52, 8.507059e+37  ;;  %v3177_v45 = vadd.f32 %v9397_v6, %v9619_v25  ;;  %v7262_v60 = vmul.f32 %v6795_v3, %v3323_v8  ;;  %vm6817_vm10 = vweird.f32 %v11018_v5 }
 0x585   : > { %v6800_v46 = vmul.f32 %v8201_v27, %v6799_v62  ;;  %v6626_v59 = vadd.f32 %v10991_v38, %v6590_v61  ;;  %v3179_v36 = vadd.f32 %v9415_v35, %v3090_v51  ;;  %v12082_v51 = vld [vmem:[#allocation20_spill] sm:$0xff] }
 0x586   : > { %v3257_v6 = vmul.f32 %v11011_v40, %v3177_v45  ;;  %v3095_v33 = vadd.f32 %v12082_v51, %v9696_v56  ;;  %v12084_v51 = vld [vmem:[#allocation18_spill] sm:$0xff] }
 0x587   : > { %v8203_v15 = vpop.eup %8202  ;;  %v6801_v16 = vadd.f32 %v8201_v27, %v6800_v46  ;;  %v8009_v29 = vmul.f32 -1.442695, %v6626_v59  ;;  %v3258_v35 = vmul.f32 %v11011_v40, %v3179_v36  ;;  %v6821_v36 = vand.u32 2147483647, %v11018_v5 }
 0x588   : > { %v11038_v50 = vpop.eup %8204  ;;  %v11040_v32 = vadd.f32 1.0, %v8203_v15 }
 0x589   : > { %v6805_v62 = vsel %vm6804_vm8, %v8201_v27, %v6801_v16  ;;  %8206 = vpow2.f32 %v8009_v29  ;;  %v6813_v19 = vmul.f32 %v11038_v50, %v11018_v5  ;;  %v3294_v16 = vadd.f32 %v11023_v14, %v3258_v35 }
 0x58a   : > { %8208 = vrcp.f32 %v11040_v32  ;;  %v6514_v46 = vpop.f32.mrf.mxu3  ;;  %v6810_v20 = vsel %vm6807_vm9, %v6809_v44, %v6805_v62  ;;  %vm6818_vm11 = vweird.f32 %v11038_v50  ;;  %vm6832_vm14 = vweird.f32 %v11040_v32 }
 0x58b   : > { %v6591_v53 = vmul.f32 %v10986_v49, %v6514_v46  ;;  %v7263_v41 = vmul.f32 %v6810_v20, %v3324_v23  ;;  %v6814_v43 = vsub.f32 1.0, %v6813_v19  ;;  %v6823_v46 = vand.u32 2147483648, %v11018_v5  ;;  %vm6819_vm13 = vmor %vm6817_vm10, %vm6818_vm11 }
 0x58c   : > { %v6398_v61 = vpop.f32.mrf.mxu2  ;;  %vm6822_vm15 = vcmp.eq.f32.partialorder %v6821_v36, 8.507059e+37 }
 0x58d   : > { %v6627_v27 = vadd.f32 %v10991_v38, %v6591_v53  ;;  %v6432_v29 = vpack.c.bf16 %v6398_v61, %v6396_v9  ;;  %v7294_v39 = vpack.c.bf16 %v7263_v41, %v7262_v60  ;;  %v3293_v9 = vadd.f32 %v11023_v14, %v3257_v6 }
 0x58e   : > { %v6815_v62 = vmul.f32 %v11038_v50, %v6814_v43  ;;  %v6824_v53 = vor.u32 1.1754944e-38, %v6823_v46  ;;  %v6836_v60 = vand.u32 2147483647, %v11040_v32  ;;  %v6838_v41 = vand.u32 2147483648, %v11040_v32 }
 0x58f   : > { %v8207_v25 = vpop.eup %8206  ;;  %v8010_v52 = vmul.f32 -1.442695, %v6627_v27  ;;  %8000 = vmatmul.msk.bf16.gmra.mxu3 %vm3564_vm0, %v6432_v29  ;;  %8045 = vmatmul.msk.bf16.vlgmr.msra.gmra.mxu1 %vm715_vm2, %v7294_v39  ;;  %v3325_v6 = vmax.f32 %v3293_v9, 0.0 }
 0x590   : > { %v8209_v44 = vpop.eup %8208  ;;  %v11054_v59 = vadd.f32 1.0, %v8207_v25  ;;  %v6816_v20 = vadd.f32 %v11038_v50, %v6815_v62  ;;  %v6839_v43 = vor.u32 1.1754944e-38, %v6838_v41  ;;  %vm6837_vm3 = vcmp.eq.f32.partialorder %v6836_v60, 8.507059e+37 }
 0x591   : > { %v6828_v8 = vmul.f32 %v8209_v44, %v11040_v32  ;;  %8210 = vpow2.f32 %v8010_v52  ;;  %vm6833_vm12 = vweird.f32 %v8209_v44  ;;  %v3326_v52 = vmax.f32 %v3294_v16, 0.0  ;;  %v12083_v32 = vld [vmem:[#allocation21_spill] sm:$0xff] }
 0x592   : > { %8212 = vrcp.f32 %v11054_v59  ;;  %v6517_v15 = vpop.f32.mrf.mxu3  ;;  %v6820_v29 = vsel %vm6819_vm13, %v11038_v50, %v6816_v20  ;;  %vm6834_vm1 = vmor %vm6832_vm14, %vm6833_vm12  ;;  %vm6847_vm4 = vweird.f32 %v11054_v59 }
 0x593   : > { %v6829_v3 = vsub.f32 1.0, %v6828_v8  ;;  %v6592_v23 = vmul.f32 %v10986_v49, %v6517_v15  ;;  %v6825_v35 = vsel %vm6822_vm15, %v6824_v53, %v6820_v29  ;;  %v3182_v15 = vadd.f32 %v12084_v51, %v12083_v32 }
 0x594   : > { %v6401_v45 = vpop.f32.mrf.mxu2  ;;  %v7264_v46 = vmul.f32 %v6825_v35, %v3325_v6 }
 0x595   : > { %v6628_v56 = vadd.f32 %v10991_v38, %v6592_v23  ;;  %v6830_v19 = vmul.f32 %v8209_v44, %v6829_v3  ;;  %v12085_v3 = vld [vmem:[#allocation19_spill] sm:$0xff]  ;;  %v3259_v53 = vmul.f32 %v11011_v40, %v3182_v15 }
 0x596   : > { %v3184_v50 = vadd.f32 %v12085_v3, %v3095_v33  ;;  %v6851_v3 = vand.u32 2147483647, %v11054_v59 }
 0x597   : > { %v8211_v61 = vpop.eup %8210  ;;  %v8011_v27 = vmul.f32 -1.442695, %v6628_v56  ;;  %v6831_v5 = vadd.f32 %v8209_v44, %v6830_v19 }
 0x598   : > { %v11074_v39 = vpop.eup %8212  ;;  %v11076_v25 = vadd.f32 1.0, %v8211_v61  ;;  %v3260_v33 = vmul.f32 %v11011_v40, %v3184_v50  ;;  %v6853_v50 = vand.u32 2147483648, %v11054_v59  ;;  %vm6852_vm9 = vcmp.eq.f32.partialorder %v6851_v3, 8.507059e+37 }
 0x599   : > { %8214 = vpow2.f32 %v8011_v27  ;;  %v6835_v8 = vsel %vm6834_vm1, %v8209_v44, %v6831_v5  ;;  %v6843_v9 = vmul.f32 %v11074_v39, %v11054_v59  ;;  %vm6848_vm5 = vweird.f32 %v11074_v39 }
 0x59a   : > { %8216 = vrcp.f32 %v11076_v25  ;;  %v6519_v23 = vpop.f32.mrf.mxu3  ;;  %v6840_v62 = vsel %vm6837_vm3, %v6839_v43, %v6835_v8  ;;  %v3296_v6 = vadd.f32 %v11023_v14, %v3260_v33  ;;  %v12086_v43 = vld [vmem:[#allocation23_spill] sm:$0xff]  ;;  %vm6849_vm7 = vmor %vm6847_vm4, %vm6848_vm5  ;;  %vm6862_vm8 = vweird.f32 %v11076_v25 }
 0x59b   : > { %v6593_v36 = vmul.f32 %v10986_v49, %v6519_v23  ;;  %v7265_v56 = vmul.f32 %v6840_v62, %v3326_v52  ;;  %v6844_v41 = vsub.f32 1.0, %v6843_v9  ;;  %v3100_v52 = vadd.f32 %v9796_v34, %v12086_v43 }
 0x59c   : > { %v6403_v16 = vpop.f32.mrf.mxu2  ;;  %v6854_v34 = vor.u32 1.1754944e-38, %v6853_v50 }
 0x59d   : > { %v6629_v44 = vadd.f32 %v10991_v38, %v6593_v36  ;;  %v6433_v20 = vpack.c.bf16 %v6403_v16, %v6401_v45  ;;  %v7295_v19 = vpack.c.bf16 %v7265_v56, %v7264_v46  ;;  %v3295_v45 = vadd.f32 %v11023_v14, %v3259_v53 }
 0x59e   : > { %v6845_v51 = vmul.f32 %v11074_v39, %v6844_v41  ;;  %v6866_v36 = vand.u32 2147483647, %v11076_v25  ;;  %v6868_v46 = vand.u32 2147483648, %v11076_v25  ;;  %v3328_v41 = vmax.f32 %v3296_v6, 0.0 }
 0x59f   : > { %v8215_v60 = vpop.eup %8214  ;;  %v8012_v61 = vmul.f32 -1.442695, %v6629_v44  ;;  %8001 = vmatmul.msk.bf16.gmra.mxu3 %vm3564_vm0, %v6433_v20  ;;  %8046 = vmatmul.msk.bf16.gmra.mxu1 %vm715_vm2, %v7295_v19  ;;  %v3327_v19 = vmax.f32 %v3295_v45, 0.0 }
 0x5a0   : > { %v8217_v27 = vpop.eup %8216  ;;  %v11091_v29 = vadd.f32 1.0, %v8215_v60  ;;  %v6846_v62 = vadd.f32 %v11074_v39, %v6845_v51  ;;  %v6869_v60 = vor.u32 1.1754944e-38, %v6868_v46  ;;  %vm6867_vm11 = vcmp.eq.f32.partialorder %v6866_v36, 8.507059e+37 }
 0x5a1   : > { %v6858_v5 = vmul.f32 %v8217_v27, %v11076_v25  ;;  %8218 = vpow2.f32 %v8012_v61  ;;  %vm6863_vm6 = vweird.f32 %v8217_v27  ;;  %v12087_v25 = vld [vmem:[#allocation22_spill] sm:$0xff]  ;;  %v3105_v46 = vadd.f32 %v9848_v24, %v9833_v22 }
 0x5a2   : > { %8220 = vrcp.f32 %v11091_v29  ;;  %v6522_v35 = vpop.f32.mrf.mxu3  ;;  %v6850_v44 = vsel %vm6849_vm7, %v11074_v39, %v6846_v62  ;;  %vm6864_vm10 = vmor %vm6862_vm8, %vm6863_vm6  ;;  %v3189_v39 = vadd.f32 %v10562_v0, %v3100_v52  ;;  %vm6877_vm12 = vweird.f32 %v11091_v29 }
 0x5a3   : > { %v6859_v8 = vsub.f32 1.0, %v6858_v5  ;;  %v6594_v32 = vmul.f32 %v10986_v49, %v6522_v35  ;;  %v6855_v33 = vsel %vm6852_vm9, %v6854_v34, %v6850_v44  ;;  %v3187_v5 = vadd.f32 %v10514_v7, %v12087_v25 }
 0x5a4   : > { %v6406_v15 = vpop.f32.mrf.mxu2  ;;  %v3262_v0 = vmul.f32 %v11011_v40, %v3189_v39 }
 0x5a5   : > { %v6630_v23 = vadd.f32 %v10991_v38, %v6594_v32  ;;  %v6860_v9 = vmul.f32 %v8217_v27, %v6859_v8  ;;  %v7266_v32 = vmul.f32 %v6855_v33, %v3327_v19  ;;  %v3261_v7 = vmul.f32 %v11011_v40, %v3187_v5 }
 0x5a7   : > { %v8219_v56 = vpop.eup %8218  ;;  %v8013_v16 = vmul.f32 -1.442695, %v6630_v23  ;;  %v6861_v59 = vadd.f32 %v8217_v27, %v6860_v9 }
 0x5a8   : > { %v11111_v20 = vpop.eup %8220  ;;  %v11113_v53 = vadd.f32 1.0, %v8219_v56 }
 0x5a9   : > { %8222 = vpow2.f32 %v8013_v16  ;;  %v6865_v61 = vsel %vm6864_vm10, %v8217_v27, %v6861_v59  ;;  %v6873_v45 = vmul.f32 %v11111_v20, %v11091_v29  ;;  %v3298_v16 = vadd.f32 %v11023_v14, %v3262_v0 }
 0x5aa   : > { %8224 = vrcp.f32 %v11113_v53  ;;  %v6524_v35 = vpop.f32.mrf.mxu3  ;;  %v6870_v43 = vsel %vm6867_vm11, %v6869_v60, %v6865_v61  ;;  %vm6878_vm13 = vweird.f32 %v11111_v20  ;;  %v6881_v60 = vand.u32 2147483647, %v11091_v29 }
 0x5ab   : > { %v6595_v8 = vmul.f32 %v10986_v49, %v6524_v35  ;;  %v7267_v51 = vmul.f32 %v6870_v43, %v3328_v41  ;;  %v6874_v52 = vsub.f32 1.0, %v6873_v45  ;;  %v6883_v41 = vand.u32 2147483648, %v11091_v29  ;;  %vm6879_vm15 = vmor %vm6877_vm12, %vm6878_vm13 }
 0x5ac   : > { %v6408_v6 = vpop.f32.mrf.mxu2  ;;  %vm6892_vm1 = vweird.f32 %v11113_v53  ;;  %v6896_v5 = vand.u32 2147483647, %v11113_v53  ;;  %v6898_v39 = vand.u32 2147483648, %v11113_v53  ;;  %vm6882_vm3 = vcmp.eq.f32.partialorder %v6881_v60, 8.507059e+37 }
 0x5ad   : > { %v6631_v27 = vadd.f32 %v10991_v38, %v6595_v8  ;;  %v6434_v3 = vpack.c.bf16 %v6408_v6, %v6406_v15  ;;  %v7296_v50 = vpack.c.bf16 %v7267_v51, %v7266_v32  ;;  %v3297_v15 = vadd.f32 %v11023_v14, %v3261_v7 }
 0x5ae   : > { %v6875_v19 = vmul.f32 %v11111_v20, %v6874_v52  ;;  %v6884_v25 = vor.u32 1.1754944e-38, %v6883_v41  ;;  %vm6897_vm5 = vcmp.eq.f32.partialorder %v6896_v5, 8.507059e+37  ;;  %v12090_v5 = vld [vmem:[#allocation26_spill] sm:$0xff] }
 0x5af   : > { %v8223_v23 = vpop.eup %8222  ;;  %v8014_v62 = vmul.f32 -1.442695, %v6631_v27  ;;  %8002 = vmatmul.msk.bf16.gmra.mxu3 %vm3564_vm0, %v6434_v3  ;;  %8047 = vmatmul.msk.bf16.gmra.mxu1 %vm715_vm2, %v7296_v50  ;;  %v3329_v32 = vmax.f32 %v3297_v15, 0.0  ;;  %v6899_v27 = vor.u32 1.1754944e-38, %v6898_v39  ;;  %v3330_v3 = vmax.f32 %v3298_v16, 0.0 }
 0x5b0   : > { %v8225_v9 = vpop.eup %8224  ;;  %v11128_v34 = vadd.f32 1.0, %v8223_v23  ;;  %v6876_v24 = vadd.f32 %v11111_v20, %v6875_v19 }
 0x5b1   : > { %v6888_v36 = vmul.f32 %v8225_v9, %v11113_v53  ;;  %8226 = vpow2.f32 %v8014_v62  ;;  %vm6893_vm14 = vweird.f32 %v8225_v9  ;;  %v12088_v53 = vld [vmem:[#allocation24_spill] sm:$0xff] }
 0x5b2   : > { %8228 = vrcp.f32 %v11128_v34  ;;  %v6527_v56 = vpop.f32.mrf.mxu3  ;;  %v6880_v45 = vsel %vm6879_vm15, %v11111_v20, %v6876_v24  ;;  %vm6894_vm4 = vmor %vm6892_vm1, %vm6893_vm14  ;;  %v3192_v7 = vadd.f32 %v10626_v18, %v12088_v53  ;;  %v3194_v20 = vadd.f32 %v10634_v58, %v3105_v46 }
 0x5b3   : > { %v6889_v44 = vsub.f32 1.0, %v6888_v36  ;;  %v6596_v59 = vmul.f32 %v10986_v49, %v6527_v56  ;;  %v6885_v6 = vsel %vm6882_vm3, %v6884_v25, %v6880_v45  ;;  %v12089_v25 = vld [vmem:[#allocation27_spill] sm:$0xff]  ;;  %vm6907_vm6 = vweird.f32 %v11128_v34 }
 0x5b4   : > { %v6411_v33 = vpop.f32.mrf.mxu2  ;;  %v7268_v36 = vmul.f32 %v6885_v6, %v3329_v32  ;;  %v3263_v18 = vmul.f32 %v11011_v40, %v3192_v7  ;;  %v3264_v58 = vmul.f32 %v11011_v40, %v3194_v20  ;;  %v3110_v39 = vadd.f32 %v12090_v5, %v12089_v25 }
 0x5b5   : > { %v6632_v22 = vadd.f32 %v10991_v38, %v6596_v59  ;;  %v6890_v61 = vmul.f32 %v8225_v9, %v6889_v44  ;;  %v6911_v32 = vand.u32 2147483647, %v11128_v34  ;;  %v6913_v6 = vand.u32 2147483648, %v11128_v34 }
 0x5b6   : > { %v3300_v24 = vadd.f32 %v11023_v14, %v3264_v58 }
 0x5b7   : > { %v8227_v35 = vpop.eup %8226  ;;  %v8015_v43 = vmul.f32 -1.442695, %v6632_v22  ;;  %v6891_v29 = vadd.f32 %v8225_v9, %v6890_v61  ;;  %v6914_v53 = vor.u32 1.1754944e-38, %v6913_v6  ;;  %vm6912_vm11 = vcmp.eq.f32.partialorder %v6911_v32, 8.507059e+37 }
 0x5b8   : > { %v11148_v8 = vpop.eup %8228  ;;  %v11150_v51 = vadd.f32 1.0, %v8227_v35 }
 0x5b9   : > { %8230 = vpow2.f32 %v8015_v43  ;;  %v6895_v50 = vsel %vm6894_vm4, %v8225_v9, %v6891_v29  ;;  %v6903_v52 = vmul.f32 %v11148_v8, %v11128_v34  ;;  %vm6908_vm7 = vweird.f32 %v11148_v8 }
 0x5ba   : > { %8232 = vrcp.f32 %v11150_v51  ;;  %v6529_v23 = vpop.f32.mrf.mxu3  ;;  %v6900_v0 = vsel %vm6897_vm5, %v6899_v27, %v6895_v50  ;;  %vm6909_vm9 = vmor %vm6907_vm6, %vm6908_vm7  ;;  %vm6922_vm10 = vweird.f32 %v11150_v51  ;;  %v6926_v7 = vand.u32 2147483647, %v11150_v51 }
 0x5bb   : > { %v6597_v62 = vmul.f32 %v10986_v49, %v6529_v23  ;;  %v7269_v15 = vmul.f32 %v6900_v0, %v3330_v3  ;;  %v6904_v59 = vsub.f32 1.0, %v6903_v52  ;;  %v6928_v20 = vand.u32 2147483648, %v11150_v51 }
 0x5bc   : > { %v6413_v56 = vpop.f32.mrf.mxu2  ;;  %vm6927_vm13 = vcmp.eq.f32.partialorder %v6926_v7, 8.507059e+37 }
 0x5bd   : > { %v6633_v9 = vadd.f32 %v10991_v38, %v6597_v62  ;;  %v6435_v16 = vpack.c.bf16 %v6413_v56, %v6411_v33  ;;  %v7297_v44 = vpack.c.bf16 %v7269_v15, %v7268_v36  ;;  %v3299_v33 = vadd.f32 %v11023_v14, %v3263_v18 }
 0x5be   : > { %v6905_v45 = vmul.f32 %v11148_v8, %v6904_v59 }
 0x5bf   : > { %v8231_v46 = vpop.eup %8230  ;;  %v8016_v19 = vmul.f32 -1.442695, %v6633_v9  ;;  %8003 = vmatmul.msk.bf16.gmra.mxu3 %vm3564_vm0, %v6435_v16  ;;  %8048 = vmatmul.msk.bf16.gmra.mxu1 %vm715_vm2, %v7297_v44  ;;  %v3331_v36 = vmax.f32 %v3299_v33, 0.0  ;;  %v6929_v9 = vor.u32 1.1754944e-38, %v6928_v20  ;;  %v3332_v16 = vmax.f32 %v3300_v24, 0.0 }
 0x5c0   : > { %v8233_v60 = vpop.eup %8232  ;;  %v11165_v41 = vadd.f32 1.0, %v8231_v46  ;;  %v6906_v3 = vadd.f32 %v11148_v8, %v6905_v45 }
 0x5c1   : > { %v6918_v22 = vmul.f32 %v8233_v60, %v11150_v51  ;;  %8234 = vpow2.f32 %v8016_v19  ;;  %vm6923_vm8 = vweird.f32 %v8233_v60  ;;  %v12091_v51 = vld [vmem:[#allocation25_spill] sm:$0xff] }
 0x5c2   : > { %8236 = vrcp.f32 %v11165_v41  ;;  %v6532_v61 = vpop.f32.mrf.mxu3  ;;  %v6910_v52 = vsel %vm6909_vm9, %v11148_v8, %v6906_v3  ;;  %vm6924_vm12 = vmor %vm6922_vm10, %vm6923_vm8  ;;  %v3197_v18 = vadd.f32 %v10647_v48, %v12091_v51  ;;  %v3199_v8 = vadd.f32 %v10657_v12, %v3110_v39 }
 0x5c3   : > { %v6919_v35 = vsub.f32 1.0, %v6918_v22  ;;  %v6598_v43 = vmul.f32 %v10986_v49, %v6532_v61  ;;  %v6915_v56 = vsel %vm6912_vm11, %v6914_v53, %v6910_v52  ;;  %v3115_v3 = vadd.f32 %v10850_v2, %v10725_v42 }
 0x5c4   : > { %v6416_v29 = vpop.f32.mrf.mxu2  ;;  %v7270_v22 = vmul.f32 %v6915_v56, %v3331_v36  ;;  %v3265_v48 = vmul.f32 %v11011_v40, %v3197_v18  ;;  %v3266_v12 = vmul.f32 %v11011_v40, %v3199_v8  ;;  %v6941_v20 = vand.u32 2147483647, %v11165_v41 }
 0x5c5   : > { %v6634_v27 = vadd.f32 %v10991_v38, %v6598_v43  ;;  %v6920_v50 = vmul.f32 %v8233_v60, %v6919_v35 }
 0x5c6   : > { %v3302_v6 = vadd.f32 %v11023_v14, %v3266_v12  ;;  %vm6942_vm4 = vcmp.eq.f32.partialorder %v6941_v20, 8.507059e+37 }
 0x5c7   : > { %v8235_v23 = vpop.eup %8234  ;;  %v8017_v0 = vmul.f32 -1.442695, %v6634_v27  ;;  %v6921_v34 = vadd.f32 %v8233_v60, %v6920_v50 }
 0x5c8   : > { %v11185_v62 = vpop.eup %8236  ;;  %v11187_v15 = vadd.f32 1.0, %v8235_v23  ;;  %v6943_v23 = vand.u32 2147483648, %v11165_v41 }
 0x5c9   : > { %8238 = vpow2.f32 %v8017_v0  ;;  %v6925_v44 = vsel %vm6924_vm12, %v8233_v60, %v6921_v34  ;;  %v6933_v59 = vmul.f32 %v11185_v62, %v11165_v41  ;;  %vm6938_vm14 = vweird.f32 %v11185_v62 }
 0x5ca   : > { %8240 = vrcp.f32 %v11187_v15  ;;  %v6534_v58 = vpop.f32.mrf.mxu3  ;;  %v6930_v46 = vsel %vm6927_vm13, %v6929_v9, %v6925_v44  ;;  %v6944_v42 = vor.u32 1.1754944e-38, %v6943_v23  ;;  %vm6952_vm3 = vweird.f32 %v11187_v15 }
 0x5cb   : > { %v6599_v19 = vmul.f32 %v10986_v49, %v6534_v58  ;;  %v7271_v33 = vmul.f32 %v6930_v46, %v3332_v16  ;;  %v6934_v39 = vsub.f32 1.0, %v6933_v59  ;;  %v6956_v2 = vand.u32 2147483647, %v11187_v15 }
 0x5cc   : > { %v6418_v24 = vpop.f32.mrf.mxu2  ;;  %v6958_v36 = vand.u32 2147483648, %v11187_v15  ;;  %v3334_v46 = vmax.f32 %v3302_v6, 0.0 }
 0x5cd   : > { %v6635_v60 = vadd.f32 %v10991_v38, %v6599_v19  ;;  %v6436_v61 = vpack.c.bf16 %v6418_v24, %v6416_v29  ;;  %v7298_v25 = vpack.c.bf16 %v7271_v33, %v7270_v22  ;;  %v3301_v29 = vadd.f32 %v11023_v14, %v3265_v48 }
 0x5ce   : > { %v6935_v7 = vmul.f32 %v11185_v62, %v6934_v39  ;;  %v6959_v58 = vor.u32 1.1754944e-38, %v6958_v36  ;;  %vm6957_vm6 = vcmp.eq.f32.partialorder %v6956_v2, 8.507059e+37 }
 0x5cf   : > { %v8239_v5 = vpop.eup %8238  ;;  %v8018_v35 = vmul.f32 -1.442695, %v6635_v60  ;;  %8004 = vmatmul.msk.bf16.gmra.mxu3 %vm3564_vm0, %v6436_v61  ;;  %8049 = vmatmul.msk.bf16.gmra.mxu1 %vm715_vm2, %v7298_v25  ;;  %vm6937_vm0 = vweird.f32 %v11165_v41  ;;  %v3333_v51 = vmax.f32 %v3301_v29, 0.0 }
 0x5d0   : > { %v8241_v43 = vpop.eup %8240  ;;  %v11202_v45 = vadd.f32 1.0, %v8239_v5  ;;  %v6936_v52 = vadd.f32 %v11185_v62, %v6935_v7  ;;  %vm6939_vm1 = vmor %vm6937_vm0, %vm6938_vm14 }
 0x5d1   : > { %v6948_v32 = vmul.f32 %v8241_v43, %v11187_v15  ;;  %8242 = vpow2.f32 %v8018_v35  ;;  %vm6953_vm15 = vweird.f32 %v8241_v43  ;;  %v12092_v15 = vld [vmem:[#allocation28_spill] sm:$0xff] }
 0x5d2   : > { %8244 = vrcp.f32 %v11202_v45  ;;  %v6537_v27 = vpop.f32.mrf.mxu3  ;;  %v6940_v16 = vsel %vm6939_vm1, %v11185_v62, %v6936_v52  ;;  %vm6954_vm5 = vmor %vm6952_vm3, %vm6953_vm15  ;;  %v3202_v19 = vadd.f32 %v10663_v10, %v12092_v15  ;;  %v3204_v62 = vadd.f32 %v10668_v31, %v3115_v3 }
 0x5d3   : > { %v6949_v50 = vsub.f32 1.0, %v6948_v32  ;;  %v6600_v53 = vmul.f32 %v10986_v49, %v6537_v27  ;;  %v6945_v8 = vsel %vm6942_vm4, %v6944_v42, %v6940_v16  ;;  %v3118_v3 = vadd.f32 %v10859_v47, %v10739_v30 }
 0x5d4   : > { %v7272_v61 = vmul.f32 %v6945_v8, %v3333_v51  ;;  %v3267_v5 = vmul.f32 %v11011_v40, %v3202_v19  ;;  %v3268_v10 = vmul.f32 %v11011_v40, %v3204_v62  ;;  %vm6967_vm7 = vweird.f32 %v11202_v45 }
 0x5d5   : > { %v6636_v0 = vadd.f32 %v10991_v38, %v6600_v53  ;;  %v6950_v34 = vmul.f32 %v8241_v43, %v6949_v50  ;;  %v3120_v53 = vadd.f32 %v10865_v11, %v10744_v17  ;;  %v6973_v52 = vand.u32 2147483648, %v11202_v45 }
 0x5d6   : > { %v3303_v6 = vadd.f32 %v11023_v14, %v3267_v5  ;;  %v3304_v27 = vadd.f32 %v11023_v14, %v3268_v10 }
 0x5d7   : > { %v8243_v56 = vpop.eup %8242  ;;  %v8019_v9 = vmul.f32 -1.442695, %v6636_v0  ;;  %v6951_v41 = vadd.f32 %v8241_v43, %v6950_v34  ;;  %v6971_v0 = vand.u32 2147483647, %v11202_v45  ;;  %v6974_v17 = vor.u32 1.1754944e-38, %v6973_v52 }
 0x5d8   : > { %v11222_v44 = vpop.eup %8244  ;;  %v11224_v18 = vadd.f32 1.0, %v8243_v56  ;;  %v3335_v16 = vmax.f32 %v3303_v6, 0.0 }
 0x5d9   : > { %8246 = vpow2.f32 %v8019_v9  ;;  %v6955_v59 = vsel %vm6954_vm5, %v8241_v43, %v6951_v41  ;;  %v6963_v24 = vmul.f32 %v11222_v44, %v11202_v45  ;;  %vm6968_vm8 = vweird.f32 %v11222_v44 }
 0x5da   : > { %8248 = vrcp.f32 %v11224_v18  ;;  %v6539_v22 = vpop.f32.mrf.mxu3  ;;  %v6960_v33 = vsel %vm6957_vm6, %v6959_v58, %v6955_v59  ;;  %vm6969_vm10 = vmor %vm6967_vm7, %vm6968_vm8  ;;  %vm6982_vm11 = vweird.f32 %v11224_v18  ;;  %v6986_v11 = vand.u32 2147483647, %v11224_v18 }
 0x5db   : > { %v6601_v60 = vmul.f32 %v10986_v49, %v6539_v22  ;;  %v7273_v25 = vmul.f32 %v6960_v33, %v3334_v46  ;;  %v6964_v31 = vsub.f32 1.0, %v6963_v24  ;;  %v6988_v42 = vand.u32 2147483648, %v11224_v18 }
 0x5dc   : > { %vm6972_vm12 = vcmp.eq.f32.partialorder %v6971_v0, 8.507059e+37  ;;  %v3336_v58 = vmax.f32 %v3304_v27, 0.0  ;;  %vm6987_vm0 = vcmp.eq.f32.partialorder %v6986_v11, 8.507059e+37  ;;  %v3209_v59 = vadd.f32 %v10690_v13, %v3120_v53 }
 0x5dd   : > { %v6637_v48 = vadd.f32 %v10991_v38, %v6601_v60  ;;  %v7299_v12 = vpack.c.bf16 %v7273_v25, %v7272_v61  ;;  %v6965_v23 = vmul.f32 %v11222_v44, %v6964_v31  ;;  %v6989_v8 = vor.u32 1.1754944e-38, %v6988_v42 }
 0x5de   : > { %v3123_v13 = vadd.f32 %v10868_v26, %v10754_v55  ;;  %v12094_v26 = vld [vmem:[#allocation36_spill] sm:$0xff] }
 0x5df   : > { %v8247_v39 = vpop.eup %8246  ;;  %v8020_v35 = vmul.f32 -1.442695, %v6637_v48  ;;  %8050 = vmatmul.msk.bf16.gmra.mxu1 %vm715_vm2, %v7299_v12  ;;  %v6966_v47 = vadd.f32 %v11222_v44, %v6965_v23  ;;  %v3125_v6 = vadd.f32 %v10870_v63, %v12094_v26 }
 0x5e0   : > { %v8249_v43 = vpop.eup %8248  ;;  %v11238_v32 = vadd.f32 1.0, %v8247_v39 }
 0x5e1   : > { %v6978_v29 = vmul.f32 %v8249_v43, %v11224_v18  ;;  %8250 = vpow2.f32 %v8020_v35  ;;  %vm6983_vm9 = vweird.f32 %v8249_v43  ;;  %v6970_v56 = vsel %vm6969_vm10, %v11222_v44, %v6966_v47 }
 0x5e2   : > { %8252 = vrcp.f32 %v11238_v32  ;;  %v6542_v50 = vpop.f32.mrf.mxu3  ;;  %v6975_v51 = vsel %vm6972_vm12, %v6974_v17, %v6970_v56  ;;  %vm6984_vm13 = vmor %vm6982_vm11, %vm6983_vm9  ;;  %v3207_v18 = vadd.f32 %v10676_v37, %v3118_v3  ;;  %v3270_v37 = vmul.f32 %v11011_v40, %v3209_v59 }
 0x5e3   : > { %v6979_v7 = vsub.f32 1.0, %v6978_v29  ;;  %v6602_v20 = vmul.f32 %v10986_v49, %v6542_v50  ;;  %v7274_v22 = vmul.f32 %v6975_v51, %v3335_v16  ;;  %vm6997_vm14 = vweird.f32 %v11238_v32  ;;  %v12095_v16 = vld [vmem:[#allocation30_spill] sm:$0xff] }
 0x5e4   : > { %v3269_v61 = vmul.f32 %v11011_v40, %v3207_v18  ;;  %v3306_v35 = vadd.f32 %v11023_v14, %v3270_v37  ;;  %v7001_v53 = vand.u32 2147483647, %v11238_v32 }
 0x5e5   : > { %v6638_v30 = vadd.f32 %v10991_v38, %v6602_v20  ;;  %v6980_v34 = vmul.f32 %v8249_v43, %v6979_v7  ;;  %v7003_v7 = vand.u32 2147483648, %v11238_v32 }
 0x5e6   : > { %v3305_v31 = vadd.f32 %v11023_v14, %v3269_v61  ;;  %vm7002_vm5 = vcmp.eq.f32.partialorder %v7001_v53, 8.507059e+37  ;;  %v12097_v61 = vld [vmem:[#allocation40_spill] sm:$0xff] }
 0x5e7   : > { %v8251_v2 = vpop.eup %8250  ;;  %v8021_v36 = vmul.f32 -1.442695, %v6638_v30  ;;  %v6981_v45 = vadd.f32 %v8249_v43, %v6980_v34  ;;  %v7004_v63 = vor.u32 1.1754944e-38, %v7003_v7  ;;  %v3130_v37 = vadd.f32 %v10878_v57, %v12097_v61 }
 0x5e8   : > { %v11260_v9 = vpop.eup %8252  ;;  %v11262_v41 = vadd.f32 1.0, %v8251_v2 }
 0x5e9   : > { %8254 = vpow2.f32 %v8021_v36  ;;  %v6985_v46 = vsel %vm6984_vm13, %v8249_v43, %v6981_v45  ;;  %v6993_v19 = vmul.f32 %v11260_v9, %v11238_v32  ;;  %v12093_v43 = vld [vmem:[#allocation29_spill] sm:$0xff]  ;;  %vm6998_vm15 = vweird.f32 %v11260_v9 }
 0x5ea   : > { %8256 = vrcp.f32 %v11262_v41  ;;  %v6544_v44 = vpop.f32.mrf.mxu3  ;;  %v6990_v15 = vsel %vm6987_vm0, %v6989_v8, %v6985_v46  ;;  %v3212_v29 = vadd.f32 %v12093_v43, %v3123_v13  ;;  %vm6999_vm3 = vmor %vm6997_vm14, %vm6998_vm15  ;;  %vm7012_vm4 = vweird.f32 %v11262_v41  ;;  %v12099_v43 = vld [vmem:[#allocation32_spill] sm:$0xff] }
 0x5eb   : > { %v6603_v62 = vmul.f32 %v10986_v49, %v6544_v44  ;;  %v7275_v33 = vmul.f32 %v6990_v15, %v3336_v58  ;;  %v6994_v48 = vsub.f32 1.0, %v6993_v19  ;;  %v7018_v52 = vand.u32 2147483648, %v11262_v41  ;;  %v11311_v58 = vld [vmem:[%s11906_s15] ss:$0 sm:$0xff] }
 0x5ec   : > { %v3338_v36 = vmax.f32 %v3306_v35, 0.0  ;;  %v3271_v45 = vmul.f32 %v11011_v40, %v3212_v29  ;;  %v11317_v44 = vld [vmem:[%s11907_s16] ss:$0 sm:$0xff]  ;;  %v3219_v57 = vadd.f32 %v12099_v43, %v3130_v37 }
 0x5ed   : > { %v6639_v24 = vadd.f32 %v10991_v38, %v6603_v62  ;;  %v7300_v60 = vpack.c.bf16 %v7275_v33, %v7274_v22  ;;  %v6995_v50 = vmul.f32 %v11260_v9, %v6994_v48  ;;  %v7019_v2 = vor.u32 1.1754944e-38, %v7018_v52  ;;  %v12096_v33 = vld [vmem:[#allocation38_spill] sm:$0xff] }
 0x5ee   : > { %v3307_v62 = vadd.f32 %v11023_v14, %v3271_v45 }
 0x5ef   : > { %v8255_v25 = vpop.eup %8254  ;;  %v8022_v12 = vmul.f32 -1.442695, %v6639_v24  ;;  %8051 = vmatmul.msk.bf16.gmra.mxu1 %vm715_vm2, %v7300_v60  ;;  %v6996_v23 = vadd.f32 %v11260_v9, %v6995_v50  ;;  %v3128_v24 = vadd.f32 %v10876_v4, %v12096_v33 }
 0x5f0   : > { %v8257_v5 = vpop.eup %8256  ;;  %v11277_v10 = vadd.f32 1.0, %v8255_v25 }
 0x5f1   : > { %v7008_v39 = vmul.f32 %v8257_v5, %v11262_v41  ;;  %8258 = vpow2.f32 %v8022_v12  ;;  %vm7013_vm1 = vweird.f32 %v8257_v5  ;;  %v7000_v34 = vsel %vm6999_vm3, %v11260_v9, %v6996_v23 }
 0x5f2   : > { %8260 = vrcp.f32 %v11277_v10  ;;  %v6547_v55 = vpop.f32.mrf.mxu3  ;;  %v7005_v42 = vsel %vm7002_vm5, %v7004_v63, %v7000_v34  ;;  %vm7014_vm6 = vmor %vm7012_vm4, %vm7013_vm1  ;;  %vm7027_vm8 = vweird.f32 %v11277_v10 }
 0x5f3   : > { %v7009_v27 = vsub.f32 1.0, %v7008_v39  ;;  %v6604_v3 = vmul.f32 %v10986_v49, %v6547_v55  ;;  %v7016_v49 = vand.u32 2147483647, %v11262_v41  ;;  %v3214_v41 = vadd.f32 %v12095_v16, %v3125_v6  ;;  %v11370_v16 = vld [vmem:[%s12102_s0] ss:$0 sm:$0xff] }
 0x5f4   : > { %v3339_v39 = vmax.f32 %v3307_v62, 0.0  ;;  %v7031_v6 = vand.u32 2147483647, %v11277_v10  ;;  %v12103_v62 = vld [vmem:[#allocation42_spill] sm:$0xff] }
 0x5f5   : > { %v6640_v20 = vadd.f32 %v10991_v38, %v6604_v3  ;;  %v7010_v0 = vmul.f32 %v8257_v5, %v7009_v27  ;;  %v3337_v38 = vmax.f32 %v3305_v31, 0.0  ;;  %vm7017_vm7 = vcmp.eq.f32.partialorder %v7016_v49, 8.507059e+37  ;;  %v12098_v31 = vld [vmem:[#allocation31_spill] sm:$0xff] }
 0x5f6   : > { %v3272_v22 = vmul.f32 %v11011_v40, %v3214_v41  ;;  %v3217_v35 = vadd.f32 %v12098_v31, %v3128_v24  ;;  %vm7032_vm13 = vcmp.eq.f32.partialorder %v7031_v6, 8.507059e+37 }
 0x5f7   : > { %v8259_v30 = vpop.eup %8258  ;;  %v8023_v47 = vmul.f32 -1.442695, %v6640_v20  ;;  %v7011_v32 = vadd.f32 %v8257_v5, %v7010_v0  ;;  %v7276_v18 = vmul.f32 %v7005_v42, %v3337_v38 }
 0x5f8   : > { %v11298_v17 = vpop.eup %8260  ;;  %v11300_v11 = vadd.f32 1.0, %v8259_v30  ;;  %v3308_v40 = vadd.f32 %v11023_v14, %v3272_v22  ;;  %v7033_v14 = vand.u32 2147483648, %v11277_v10  ;;  %v3133_v22 = vadd.f32 %v10884_v1, %v12103_v62 }
 0x5f9   : > { %8262 = vpow2.f32 %v8023_v47  ;;  %v7015_v56 = vsel %vm7014_vm6, %v8257_v5, %v7011_v32  ;;  %v7023_v8 = vmul.f32 %v11298_v17, %v11277_v10  ;;  %vm7028_vm9 = vweird.f32 %v11298_v17  ;;  %v11354_v32 = vld [vmem:[%s12077_s5] ss:$0 sm:$0xff]  ;;  %s7646_s5 = sshll.u32 %s7643_s30, 4  ;;  %s7647_s5 = int_to_ptr.hbm [resolvable:$true] %s7646_s5 }
 0x5fa   : > { %8264 = vrcp.f32 %v11300_v11  ;;  %v6549_v9 = vpop.f32.mrf.mxu3  ;;  %v7020_v51 = vsel %vm7017_vm7, %v7019_v2, %v7015_v56  ;;  %vm7029_vm11 = vmor %vm7027_vm8, %vm7028_vm9  ;;  %v7034_v53 = vor.u32 1.1754944e-38, %v7033_v14  ;;  %vm7042_vm12 = vweird.f32 %v11300_v11  ;;  %s8408_s7 = sshra.s32 %s7647_s5, 4  ;;  %s8409_s7 = int_to_ptr.hbm [resolvable:$true] %s8408_s7 }
 0x5fb   : > { %v6605_v46 = vmul.f32 %v11311_v58, %v6549_v9  ;;  %v7277_v59 = vmul.f32 %v7020_v51, %v3338_v36  ;;  %v7024_v13 = vsub.f32 1.0, %v7023_v8  ;;  %v7046_v7 = vand.u32 2147483647, %v11300_v11  ;;  %v11375_v8 = vld [vmem:[%s12079_s2] ss:$0 sm:$0xff]  ;;  %s7644_s2 = sshll.u32 %s11407_s6, 4  ;;  %p8415_p0 = scmp.lt.s32.totalorder %s8409_s7, %s12157_s4  ;;  %s7645_s2 = int_to_ptr.vmem [resolvable:$true] %s7644_s2 }
 0x5fc   : > { %v7048_v20 = vand.u32 2147483648, %v11300_v11  ;;  %v3340_v52 = vmax.f32 %v3308_v40, 0.0  ;;  %v3273_v38 = vmul.f32 %v11354_v32, %v3217_v35  ;;  %v3274_v42 = vmul.f32 %v11354_v32, %v3219_v57  ;;  %v12104_v40 = vld [vmem:[#allocation33_spill] sm:$0xff]  ;;  %v12105_v35 = vld [vmem:[#allocation44_spill] sm:$0xff]  ;;  %s8410_s23 = scalar_lea.hbm %s8409_s7, 256 }
 0x5fd   : > { %v6641_v15 = vadd.f32 %v11317_v44, %v6605_v46  ;;  %v7301_v19 = vpack.c.bf16 %v7277_v59, %v7276_v18  ;;  %v7025_v26 = vmul.f32 %v11298_v17, %v7024_v13  ;;  %vm7047_vm14 = vcmp.eq.f32.partialorder %v7046_v7, 8.507059e+37  ;;  %p8411_p6 = scmp.ne.s32.totalorder %s8409_s7, %s8410_s23  ;;  %p8416_p1 = scmp.lt.s32.totalorder %s8414_s8, %s8410_s23 }
 0x5fe   : > { %v7049_v34 = vor.u32 1.1754944e-38, %v7048_v20  ;;  %v11378_v46 = vadd.f32 %v11375_v8, %v3273_v38  ;;  %v3222_v31 = vadd.f32 %v12104_v40, %v3133_v22  ;;  %v12107_v20 = vld [vmem:[#allocation34_spill] sm:$0xff] }
 0x5ff   : > { %v8263_v60 = vpop.eup %8262  ;;  %v8024_v25 = vmul.f32 -1.442695, %v6641_v15  ;;  %8052 = vmatmul.msk.bf16.gmra.mxu1 %vm715_vm2, %v7301_v19  ;;  %v7026_v3 = vadd.f32 %v11298_v17, %v7025_v26  ;;  %v11383_v19 = vadd.f32 %v11375_v8, %v3274_v42  ;;  %p8412_p9 = pnand %p8411_p6, %p8630_p11  ;;  %p8417_p3 = por %p8416_p1, %p8415_p0 }
 0x600   : > { %v8265_v48 = vpop.eup %8264  ;;  %v11327_v12 = vadd.f32 1.0, %v8263_v60  ;;  %v3275_v7 = vmul.f32 %v11354_v32, %v3222_v31 }
 0x601   : > { %v7038_v5 = vmul.f32 %v8265_v48, %v11300_v11  ;;  %8266 = vpow2.f32 %v8024_v25  ;;  %vm7043_vm10 = vweird.f32 %v8265_v48  ;;  %v7030_v63 = vsel %vm7029_vm11, %v11298_v17, %v7026_v3  ;;  %v11360_v17 = vld [vmem:[%s12100_s1] ss:$0 sm:$0xff]  ;;  %p8413_p13 = pneg %p8412_p9 }
 0x602   : > { %8268 = vrcp.f32 %v11327_v12  ;;  %v6552_v4 = vpop.f32.mrf.mxu3  ;;  %v7035_v47 = vsel %vm7032_vm13, %v7034_v53, %v7030_v63  ;;  %vm7044_vm0 = vmor %vm7042_vm12, %vm7043_vm10  ;;  %v3341_v25 = vmax.f32 %v11378_v46, 0.0  ;;  %v3342_v1 = vmax.f32 %v11383_v19, 0.0 }
 0x603   : > { %v7039_v29 = vsub.f32 1.0, %v7038_v5  ;;  %v6606_v55 = vmul.f32 %v11311_v58, %v6552_v4  ;;  %v7278_v41 = vmul.f32 %v7035_v47, %v3339_v39  ;;  %v8330_v5 = vld [vmem:[%s8672_s25] sm:$0xff]  ;;  %v3135_v4 = vadd.f32 %v10886_v21, %v12105_v35  ;;  %p8418_p4 = pnand %p8417_p3, %p8413_p13 }
 0x604   : > { %vm7057_vm15 = vweird.f32 %v11327_v12  ;;  %v7061_v14 = vand.u32 2147483647, %v11327_v12 }
 0x605   : > { %v6642_v27 = vadd.f32 %v11317_v44, %v6606_v55  ;;  %v7040_v50 = vmul.f32 %v8265_v48, %v7039_v29 }
 0x606   : > { %vm7062_vm7 = vcmp.eq.f32.partialorder %v7061_v14, 8.507059e+37 }
 0x607   : > { %v8267_v23 = vpop.eup %8266  ;;  %v8025_v0 = vmul.f32 -1.442695, %v6642_v27  ;;  %v7041_v10 = vadd.f32 %v8265_v48, %v7040_v50  ;;  %v7063_v27 = vand.u32 2147483648, %v11327_v12 }
 0x608   : > { %v11346_v49 = vpop.eup %8268  ;;  %v11348_v30 = vadd.f32 1.0, %v8267_v23  ;;  %v3224_v23 = vadd.f32 %v12107_v20, %v3135_v4 }
 0x609   : > { %8270 = vpow2.f32 %v8025_v0  ;;  %v7045_v11 = vsel %vm7044_vm0, %v8265_v48, %v7041_v10  ;;  %v7053_v56 = vmul.f32 %v11346_v49, %v11327_v12  ;;  %vm7058_vm1 = vweird.f32 %v11346_v49 }
 0x60a   : > { %8272 = vrcp.f32 %v11348_v30  ;;  %v6554_v2 = vpop.f32.mrf.mxu3  ;;  %v7050_v36 = vsel %vm7047_vm14, %v7049_v34, %v7045_v11  ;;  %vm11416_vm3 = vmor %vm7057_vm15, %vm7058_vm1  ;;  %vm7072_vm4 = vweird.f32 %v11348_v30  ;;  %v7064_v11 = vor.u32 1.1754944e-38, %v7063_v27 }
 0x60b   : > { %v6607_v45 = vmul.f32 %v11311_v58, %v6554_v2  ;;  %v7279_v9 = vmul.f32 %v7050_v36, %v3340_v52  ;;  %v7054_v24 = vsub.f32 1.0, %v7053_v56  ;;  %v7076_v2 = vand.u32 2147483647, %v11348_v30  ;;  %v8331_v56 = vld [vmem:[%s8672_s25 + $0x8] sm:$0xff] }
 0x60c   : > { %v7383_v51 = vpop.f32.mrf.mxu1  ;;  %v7078_v36 = vand.u32 2147483648, %v11348_v30 }
 0x60d   : > { %v6643_v18 = vadd.f32 %v11317_v44, %v6607_v45  ;;  %v7467_v59 = vmul.f32 %v11360_v17, %v7383_v51  ;;  %v7302_v15 = vpack.c.bf16 %v7279_v9, %v7278_v41  ;;  %v7055_v26 = vmul.f32 %v11346_v49, %v7054_v24 }
 0x60e   : > { %v3276_v41 = vmul.f32 %v11354_v32, %v3224_v23  ;;  %v7079_v46 = vor.u32 1.1754944e-38, %v7078_v36  ;;  %vm7077_vm8 = vcmp.eq.f32.partialorder %v7076_v2, 8.507059e+37 }
 0x60f   : > { %v8271_v33 = vpop.eup %8270  ;;  %v8026_v60 = vmul.f32 -1.442695, %v6643_v18  ;;  %v7503_v61 = vadd.f32 %v11370_v16, %v7467_v59  ;;  %8053 = vmatmul.msk.bf16.gmra.mxu1 %vm715_vm2, %v7302_v15  ;;  %v7056_v50 = vadd.f32 %v11346_v49, %v7055_v26  ;;  %v11444_v15 = vadd.f32 %v11375_v8, %v3275_v7 }
 0x610   : > { %v8273_v37 = vpop.eup %8272  ;;  %v11389_v13 = vadd.f32 1.0, %v8271_v33 }
 0x611   : > { %v7068_v48 = vmul.f32 %v8273_v37, %v11348_v30  ;;  %8274 = vpow2.f32 %v8026_v60  ;;  %v7535_v39 = vadd.f32 %v8330_v5, %v7503_v61  ;;  %vm7073_vm5 = vweird.f32 %v8273_v37 }
 0x612   : > { %8276 = vrcp.f32 %v11389_v13  ;;  %v6557_v43 = vpop.f32.mrf.mxu3  ;;  %v7060_v52 = vsel %vm11416_vm3, %v11346_v49, %v7056_v50  ;;  %vm11429_vm6 = vmor %vm7072_vm4, %vm7073_vm5  ;;  %v11451_v61 = vadd.f32 %v11375_v8, %v3276_v41  ;;  %vm7087_vm9 = vweird.f32 %v11389_v13 }
 0x613   : > { %v7069_v57 = vsub.f32 1.0, %v7068_v48  ;;  %v7567_v29 = vmax.f32 %v7535_v39, 0.0  ;;  %v6608_v55 = vmul.f32 %v11311_v58, %v6557_v43  ;;  %v7065_v51 = vsel %vm7062_vm7, %v7064_v11, %v7060_v52  ;;  %v12115_v52 = vld [vmem:[#allocation37_spill] sm:$0xff] }
 0x614   : > { %v7385_v6 = vpop.f32.mrf.mxu1  ;;  %v7280_v24 = vmul.f32 %v7065_v51, %v3341_v25  ;;  %v7091_v20 = vand.u32 2147483647, %v11389_v13  ;;  %v7093_v23 = vand.u32 2147483648, %v11389_v13 }
 0x615   : > { %7599 = vst.msk [vmem:[%s11407_s6] sm:$0xff] %vm715_vm2, %v7567_v29  ;;  %v6644_v21 = vadd.f32 %v11317_v44, %v6608_v55  ;;  %v7468_v3 = vmul.f32 %v11360_v17, %v7385_v6  ;;  %v7070_v53 = vmul.f32 %v8273_v37, %v7069_v57  ;;  %v3343_v57 = vmax.f32 %v11444_v15, 0.0  ;;  %v12113_v55 = vld [vmem:[#allocation35_spill] sm:$0xff]  ;;  %v12114_v6 = vld [vmem:[#allocation48_spill] sm:$0xff] }
 0x616   : > { %v3140_v14 = vadd.f32 %v10894_v54, %v12114_v6  ;;  %v7094_v41 = vor.u32 1.1754944e-38, %v7093_v23  ;;  %vm7092_vm14 = vcmp.eq.f32.partialorder %v7091_v20, 8.507059e+37  ;;  %v12124_v20 = vld [vmem:[#allocation61_spill] sm:$0xff] }
 0x617   : > { %v8275_v0 = vpop.eup %8274  ;;  %v8027_v63 = vmul.f32 -1.442695, %v6644_v21  ;;  %v7504_v10 = vadd.f32 %v11370_v16, %v7468_v3  ;;  %v7071_v47 = vadd.f32 %v8273_v37, %v7070_v53 }
 0x618   : > { %v11425_v34 = vpop.eup %8276  ;;  %v11427_v38 = vadd.f32 1.0, %v8275_v0 }
 0x619   : > { %8278 = vpow2.f32 %v8027_v63  ;;  %v7536_v45 = vadd.f32 %v8331_v56, %v7504_v10  ;;  %v7075_v49 = vsel %vm11429_vm6, %v8273_v37, %v7071_v47  ;;  %v7083_v18 = vmul.f32 %v11425_v34, %v11389_v13  ;;  %v12112_v37 = vld [vmem:[#allocation46_spill] sm:$0xff] }
 0x61a   : > { %8280 = vrcp.f32 %v11427_v38  ;;  %v6559_v9 = vpop.f32.mrf.mxu3  ;;  %v7080_v62 = vsel %vm7077_vm8, %v7079_v46, %v7075_v49  ;;  %v3138_v48 = vadd.f32 %v10892_v28, %v12112_v37  ;;  %v3344_v28 = vmax.f32 %v11451_v61, 0.0 }
 0x61b   : > { %v7568_v59 = vmax.f32 %v7536_v45, 0.0  ;;  %v6609_v30 = vmul.f32 %v11311_v58, %v6559_v9  ;;  %v7281_v60 = vmul.f32 %v7080_v62, %v3342_v1  ;;  %v7084_v39 = vsub.f32 1.0, %v7083_v18  ;;  %v8332_v1 = vld [vmem:[%s8672_s25 + $0x10] sm:$0xff]  ;;  %v8333_v18 = vld [vmem:[%s8672_s25 + $0x18] sm:$0xff] }
 0x61c   : > { %v7388_v19 = vpop.f32.mrf.mxu1  ;;  %v3227_v26 = vadd.f32 %v12113_v55, %v3138_v48  ;;  %vm7088_vm10 = vweird.f32 %v11425_v34  ;;  %v3229_v47 = vadd.f32 %v12115_v52, %v3140_v14  ;;  %vm7102_vm12 = vweird.f32 %v11427_v38 }
 0x61d   : > { %7600 = vst.msk [vmem:[%s11407_s6 + $0x8] sm:$0xff] %vm715_vm2, %v7568_v59  ;;  %v6645_v22 = vadd.f32 %v11317_v44, %v6609_v30  ;;  %v7469_v33 = vmul.f32 %v11360_v17, %v7388_v19  ;;  %v7303_v35 = vpack.c.bf16 %v7281_v60, %v7280_v24  ;;  %v7085_v53 = vmul.f32 %v11425_v34, %v7084_v39  ;;  %vm11480_vm11 = vmor %vm7087_vm9, %vm7088_vm10 }
 0x61e   : > { %v3277_v10 = vmul.f32 %v11354_v32, %v3227_v26  ;;  %v7106_v51 = vand.u32 2147483647, %v11427_v38  ;;  %v7108_v46 = vand.u32 2147483648, %v11427_v38  ;;  %v3278_v30 = vmul.f32 %v11354_v32, %v3229_v47 }
 0x61f   : > { %v8279_v5 = vpop.eup %8278  ;;  %v8028_v40 = vmul.f32 -1.442695, %v6645_v22  ;;  %v7505_v31 = vadd.f32 %v11370_v16, %v7469_v33  ;;  %8054 = vmatmul.msk.bf16.gmra.mxu1 %vm715_vm2, %v7303_v35  ;;  %v7086_v0 = vadd.f32 %v11425_v34, %v7085_v53  ;;  %v12121_v35 = vld [vmem:[#allocation60_spill] sm:$0xff] }
 0x620   : > { %v8281_v4 = vpop.eup %8280  ;;  %v11456_v43 = vadd.f32 1.0, %v8279_v5  ;;  %v7109_v62 = vor.u32 1.1754944e-38, %v7108_v46  ;;  %vm7107_vm15 = vcmp.eq.f32.partialorder %v7106_v51, 8.507059e+37  ;;  %v11508_v24 = vadd.f32 %v11375_v8, %v3277_v10 }
 0x621   : > { %v7098_v25 = vmul.f32 %v8281_v4, %v11427_v38  ;;  %8282 = vpow2.f32 %v8028_v40  ;;  %v7537_v29 = vadd.f32 %v8332_v1, %v7505_v31  ;;  %vm7103_vm13 = vweird.f32 %v8281_v4  ;;  %v12120_v31 = vld [vmem:[#allocation50_spill] sm:$0xff] }
 0x622   : > { %8284 = vrcp.f32 %v11456_v43  ;;  %v6562_v27 = vpop.f32.mrf.mxu3  ;;  %v7090_v36 = vsel %vm11480_vm11, %v11425_v34, %v7086_v0  ;;  %vm11493_vm0 = vmor %vm7102_vm12, %vm7103_vm13  ;;  %v11515_v40 = vadd.f32 %v11375_v8, %v3278_v30  ;;  %vm7117_vm1 = vweird.f32 %v11456_v43 }
 0x623   : > { %v7099_v21 = vsub.f32 1.0, %v7098_v25  ;;  %v7569_v3 = vmax.f32 %v7537_v29, 0.0  ;;  %v6610_v50 = vmul.f32 %v11311_v58, %v6562_v27  ;;  %v7095_v19 = vsel %vm7092_vm14, %v7094_v41, %v7090_v36  ;;  %v12125_v41 = vld [vmem:[#allocation41_spill] sm:$0xff] }
 0x624   : > { %v7390_v7 = vpop.f32.mrf.mxu1  ;;  %v7282_v5 = vmul.f32 %v7095_v19, %v3343_v57  ;;  %v3345_v27 = vmax.f32 %v11508_v24, 0.0  ;;  %v7121_v47 = vand.u32 2147483647, %v11456_v43  ;;  %v7123_v11 = vand.u32 2147483648, %v11456_v43 }
 0x625   : > { %7601 = vst.msk [vmem:[%s11407_s6 + $0x10] sm:$0xff] %vm715_vm2, %v7569_v3  ;;  %v6646_v54 = vadd.f32 %v11317_v44, %v6610_v50  ;;  %v7470_v12 = vmul.f32 %v11360_v17, %v7390_v7  ;;  %v7100_v63 = vmul.f32 %v8281_v4, %v7099_v21  ;;  %v3346_v3 = vmax.f32 %v11515_v40, 0.0  ;;  %v12122_v50 = vld [vmem:[#allocation39_spill] sm:$0xff]  ;;  %v12123_v7 = vld [vmem:[#allocation52_spill] sm:$0xff] }
 0x626   : > { %v3145_v23 = vadd.f32 %v12124_v20, %v12123_v7  ;;  %v7124_v19 = vor.u32 1.1754944e-38, %v7123_v11  ;;  %vm7122_vm8 = vcmp.eq.f32.partialorder %v7121_v47, 8.507059e+37  ;;  %v12134_v47 = vld [vmem:[#allocation63_spill] sm:$0xff] }
 0x627   : > { %v8283_v13 = vpop.eup %8282  ;;  %v8029_v42 = vmul.f32 -1.442695, %v6646_v54  ;;  %v7506_v2 = vadd.f32 %v11370_v16, %v7470_v12  ;;  %v7101_v56 = vadd.f32 %v8281_v4, %v7100_v63 }
 0x628   : > { %v11489_v45 = vpop.eup %8284  ;;  %v11491_v49 = vadd.f32 1.0, %v8283_v13  ;;  %v3234_v9 = vadd.f32 %v12125_v41, %v3145_v23 }
 0x629   : > { %8286 = vpow2.f32 %v8029_v42  ;;  %v7538_v59 = vadd.f32 %v8333_v18, %v7506_v2  ;;  %v7105_v34 = vsel %vm11493_vm0, %v8281_v4, %v7101_v56  ;;  %v7113_v22 = vmul.f32 %v11489_v45, %v11456_v43 }
 0x62a   : > { %8288 = vrcp.f32 %v11491_v49  ;;  %v6564_v15 = vpop.f32.mrf.mxu3  ;;  %v7110_v61 = vsel %vm7107_vm15, %v7109_v62, %v7105_v34  ;;  %v3143_v4 = vadd.f32 %v12121_v35, %v12120_v31  ;;  %vm7118_vm3 = vweird.f32 %v11489_v45 }
 0x62b   : > { %v7570_v33 = vmax.f32 %v7538_v59, 0.0  ;;  %v6611_v38 = vmul.f32 %v11311_v58, %v6564_v15  ;;  %v7283_v39 = vmul.f32 %v7110_v61, %v3344_v28  ;;  %v7114_v1 = vsub.f32 1.0, %v7113_v22  ;;  %v8334_v28 = vld [vmem:[%s8672_s25 + $0x20] sm:$0xff]  ;;  %vm11544_vm4 = vmor %vm7117_vm1, %vm7118_vm3 }
 0x62c   : > { %v7393_v60 = vpop.f32.mrf.mxu1  ;;  %v3232_v53 = vadd.f32 %v12122_v50, %v3143_v4  ;;  %vm7132_vm5 = vweird.f32 %v11491_v49  ;;  %v7136_v22 = vand.u32 2147483647, %v11491_v49 }
 0x62d   : > { %7602 = vst.msk [vmem:[%s11407_s6 + $0x18] sm:$0xff] %vm715_vm2, %v7570_v33  ;;  %v6647_v37 = vadd.f32 %v11317_v44, %v6611_v38  ;;  %v7471_v48 = vmul.f32 %v11360_v17, %v7393_v60  ;;  %v7304_v26 = vpack.c.bf16 %v7283_v39, %v7282_v5  ;;  %v7115_v10 = vmul.f32 %v11489_v45, %v7114_v1  ;;  %v8335_v38 = vld [vmem:[%s8672_s25 + $0x28] sm:$0xff] }
 0x62e   : > { %v3279_v56 = vmul.f32 %v11354_v32, %v3232_v53  ;;  %v7138_v33 = vand.u32 2147483648, %v11491_v49  ;;  %v3280_v60 = vmul.f32 %v11354_v32, %v3234_v9  ;;  %vm7137_vm9 = vcmp.eq.f32.partialorder %v7136_v22, 8.507059e+37 }
 0x62f   : > { %v8287_v25 = vpop.eup %8286  ;;  %v8030_v29 = vmul.f32 -1.442695, %v6647_v37  ;;  %v7507_v55 = vadd.f32 %v11370_v16, %v7471_v48  ;;  %8055 = vmatmul.msk.bf16.gmra.mxu1 %vm715_vm2, %v7304_v26  ;;  %v7116_v2 = vadd.f32 %v11489_v45, %v7115_v10  ;;  %v12130_v26 = vld [vmem:[#allocation54_spill] sm:$0xff] }
 0x630   : > { %v8289_v6 = vpop.eup %8288  ;;  %v11520_v14 = vadd.f32 1.0, %v8287_v25  ;;  %v7139_v48 = vor.u32 1.1754944e-38, %v7138_v33  ;;  %v11572_v40 = vadd.f32 %v11375_v8, %v3279_v56 }
 0x631   : > { %v7128_v57 = vmul.f32 %v8289_v6, %v11491_v49  ;;  %8290 = vpow2.f32 %v8030_v29  ;;  %v7539_v21 = vadd.f32 %v8334_v28, %v7507_v55  ;;  %vm7133_vm6 = vweird.f32 %v8289_v6 }
 0x632   : > { %8292 = vrcp.f32 %v11520_v14  ;;  %v6567_v54 = vpop.f32.mrf.mxu3  ;;  %v7120_v59 = vsel %vm11544_vm4, %v11489_v45, %v7116_v2  ;;  %vm11557_vm7 = vmor %vm7132_vm5, %vm7133_vm6  ;;  %v11579_v55 = vadd.f32 %v11375_v8, %v3280_v60  ;;  %vm7147_vm10 = vweird.f32 %v11520_v14 }
 0x633   : > { %v7129_v12 = vsub.f32 1.0, %v7128_v57  ;;  %v7571_v0 = vmax.f32 %v7539_v21, 0.0  ;;  %v6612_v63 = vmul.f32 %v11311_v58, %v6567_v54  ;;  %v7125_v37 = vsel %vm7122_vm8, %v7124_v19, %v7120_v59  ;;  %v12135_v19 = vld [vmem:[#allocation45_spill] sm:$0xff] }
 0x634   : > { %v7395_v52 = vpop.f32.mrf.mxu1  ;;  %v7284_v1 = vmul.f32 %v7125_v37, %v3345_v27  ;;  %v3347_v54 = vmax.f32 %v11572_v40, 0.0  ;;  %v7151_v9 = vand.u32 2147483647, %v11520_v14  ;;  %v7153_v51 = vand.u32 2147483648, %v11520_v14 }
 0x635   : > { %7603 = vst.msk [vmem:[%s11407_s6 + $0x20] sm:$0xff] %vm715_vm2, %v7571_v0  ;;  %v6648_v13 = vadd.f32 %v11317_v44, %v6612_v63  ;;  %v7472_v42 = vmul.f32 %v11360_v17, %v7395_v52  ;;  %v7130_v36 = vmul.f32 %v8289_v6, %v7129_v12  ;;  %v3348_v0 = vmax.f32 %v11579_v55, 0.0  ;;  %v12132_v63 = vld [vmem:[#allocation43_spill] sm:$0xff] }
 0x636   : > { %v12133_v52 = vld [vmem:[#allocation55_spill] sm:$0xff]  ;;  %v7154_v37 = vor.u32 1.1754944e-38, %v7153_v51  ;;  %vm7152_vm15 = vcmp.eq.f32.partialorder %v7151_v9, 8.507059e+37 }
 0x637   : > { %v8291_v43 = vpop.eup %8290  ;;  %v8031_v46 = vmul.f32 -1.442695, %v6648_v13  ;;  %v7508_v18 = vadd.f32 %v11370_v16, %v7472_v42  ;;  %v7131_v34 = vadd.f32 %v8289_v6, %v7130_v36  ;;  %v3150_v11 = vadd.f32 %v12134_v47, %v12133_v52 }
 0x638   : > { %v11553_v30 = vpop.eup %8292  ;;  %v11555_v15 = vadd.f32 1.0, %v8291_v43 }
 0x639   : > { %8294 = vpow2.f32 %v8031_v46  ;;  %v7540_v24 = vadd.f32 %v8335_v38, %v7508_v18  ;;  %v7135_v45 = vsel %vm11557_vm7, %v8289_v6, %v7131_v34  ;;  %v7143_v5 = vmul.f32 %v11553_v30, %v11520_v14  ;;  %v12131_v6 = vld [vmem:[#allocation62_spill] sm:$0xff] }
 0x63a   : > { %8296 = vrcp.f32 %v11555_v15  ;;  %v6569_v61 = vpop.f32.mrf.mxu3  ;;  %v7140_v35 = vsel %vm7137_vm9, %v7139_v48, %v7135_v45  ;;  %v3148_v57 = vadd.f32 %v12131_v6, %v12130_v26  ;;  %vm7148_vm11 = vweird.f32 %v11553_v30 }
 0x63b   : > { %v7572_v39 = vmax.f32 %v7540_v24, 0.0  ;;  %v6613_v49 = vmul.f32 %v11311_v58, %v6569_v61  ;;  %v7285_v29 = vmul.f32 %v7140_v35, %v3346_v3  ;;  %v7144_v21 = vsub.f32 1.0, %v7143_v5  ;;  %v8336_v3 = vld [vmem:[%s8672_s25 + $0x30] sm:$0xff]  ;;  %vm11608_vm12 = vmor %vm7147_vm10, %vm7148_vm11 }
 0x63c   : > { %v7398_v31 = vpop.f32.mrf.mxu1  ;;  %v3237_v10 = vadd.f32 %v12132_v63, %v3148_v57  ;;  %v3239_v62 = vadd.f32 %v12135_v19, %v3150_v11  ;;  %vm7162_vm13 = vweird.f32 %v11555_v15  ;;  %v7166_v5 = vand.u32 2147483647, %v11555_v15  ;;  %v8338_v11 = vld [vmem:[%s8672_s25 + $0x40] sm:$0xff] }
 0x63d   : > { %7604 = vst.msk [vmem:[%s11407_s6 + $0x28] sm:$0xff] %vm715_vm2, %v7572_v39  ;;  %v6649_v4 = vadd.f32 %v11317_v44, %v6613_v49  ;;  %v7473_v25 = vmul.f32 %v11360_v17, %v7398_v31  ;;  %v7305_v7 = vpack.c.bf16 %v7285_v29, %v7284_v1  ;;  %v7145_v56 = vmul.f32 %v11553_v30, %v7144_v21  ;;  %v8337_v49 = vld [vmem:[%s8672_s25 + $0x38] sm:$0xff] }
 0x63e   : > { %v3281_v34 = vmul.f32 %v11354_v32, %v3237_v10  ;;  %v7168_v39 = vand.u32 2147483648, %v11555_v15  ;;  %v3282_v31 = vmul.f32 %v11354_v32, %v3239_v62  ;;  %vm7167_vm1 = vcmp.eq.f32.partialorder %v7166_v5, 8.507059e+37 }
 0x63f   : > { %v8295_v28 = vpop.eup %8294  ;;  %v8032_v50 = vmul.f32 -1.442695, %v6649_v4  ;;  %v7509_v53 = vadd.f32 %v11370_v16, %v7473_v25  ;;  %8056 = vmatmul.msk.bf16.gmra.mxu1 %vm715_vm2, %v7305_v7  ;;  %v7146_v18 = vadd.f32 %v11553_v30, %v7145_v56  ;;  %v12143_v56 = vld [vmem:[#allocation65_spill] sm:$0xff] }
 0x640   : > { %v8297_v20 = vpop.eup %8296  ;;  %v11584_v23 = vadd.f32 1.0, %v8295_v28  ;;  %v7169_v25 = vor.u32 1.1754944e-38, %v7168_v39  ;;  %v11636_v55 = vadd.f32 %v11375_v8, %v3281_v34 }
 0x641   : > { %v7158_v27 = vmul.f32 %v8297_v20, %v11555_v15  ;;  %8298 = vpow2.f32 %v8032_v50  ;;  %v7541_v12 = vadd.f32 %v8336_v3, %v7509_v53  ;;  %vm7163_vm0 = vweird.f32 %v8297_v20 }
 0x642   : > { %8300 = vrcp.f32 %v11584_v23  ;;  %v6572_v13 = vpop.f32.mrf.mxu3  ;;  %v7150_v24 = vsel %vm11608_vm12, %v11553_v30, %v7146_v18  ;;  %vm11621_vm14 = vmor %vm7162_vm13, %vm7163_vm0  ;;  %v11643_v53 = vadd.f32 %v11375_v8, %v3282_v31  ;;  %v3349_v52 = vmax.f32 %v11636_v55, 0.0 }
 0x643   : > { %v7159_v42 = vsub.f32 1.0, %v7158_v27  ;;  %v7573_v2 = vmax.f32 %v7541_v12, 0.0  ;;  %v6614_v36 = vmul.f32 %v11311_v58, %v6572_v13  ;;  %v7155_v4 = vsel %vm7152_vm15, %v7154_v37, %v7150_v24  ;;  %v12140_v13 = vld [vmem:[#allocation56_spill] sm:$0xff] }
 0x644   : > { %v7400_v41 = vpop.f32.mrf.mxu1  ;;  %v7286_v21 = vmul.f32 %v7155_v4, %v3347_v54  ;;  %vm7177_vm3 = vweird.f32 %v11584_v23  ;;  %v7181_v34 = vand.u32 2147483647, %v11584_v23  ;;  %v7183_v19 = vand.u32 2147483648, %v11584_v23 }
 0x645   : > { %7605 = vst.msk [vmem:[%s11407_s6 + $0x30] sm:$0xff] %vm715_vm2, %v7573_v2  ;;  %v6650_v43 = vadd.f32 %v11317_v44, %v6614_v36  ;;  %v7474_v46 = vmul.f32 %v11360_v17, %v7400_v41  ;;  %v7160_v59 = vmul.f32 %v8297_v20, %v7159_v42  ;;  %v12141_v42 = vld [vmem:[#allocation64_spill] sm:$0xff]  ;;  %v12142_v36 = vld [vmem:[#allocation57_spill] sm:$0xff] }
 0x646   : > { %v3153_v2 = vadd.f32 %v12141_v42, %v12140_v13  ;;  %v3155_v41 = vadd.f32 %v12143_v56, %v12142_v36  ;;  %vm7182_vm6 = vcmp.eq.f32.partialorder %v7181_v34, 8.507059e+37 }
 0x647   : > { %v8299_v14 = vpop.eup %8298  ;;  %v8033_v33 = vmul.f32 -1.442695, %v6650_v43  ;;  %v7510_v38 = vadd.f32 %v11370_v16, %v7474_v46  ;;  %v7161_v45 = vadd.f32 %v8297_v20, %v7160_v59 }
 0x648   : > { %v11617_v60 = vpop.eup %8300  ;;  %v11619_v61 = vadd.f32 1.0, %v8299_v14 }
 0x649   : > { %8302 = vpow2.f32 %v8033_v33  ;;  %v7542_v40 = vadd.f32 %v8337_v49, %v7510_v38  ;;  %v7165_v30 = vsel %vm11621_vm14, %v8297_v20, %v7161_v45  ;;  %v7173_v1 = vmul.f32 %v11617_v60, %v11584_v23 }
 0x64a   : > { %8304 = vrcp.f32 %v11619_v61  ;;  %v6574_v35 = vpop.f32.mrf.mxu3  ;;  %v7170_v6 = vsel %vm7167_vm1, %v7169_v25, %v7165_v30  ;;  %vm7178_vm4 = vweird.f32 %v11617_v60  ;;  %v7184_v38 = vor.u32 1.1754944e-38, %v7183_v19 }
 0x64b   : > { %v7574_v29 = vmax.f32 %v7542_v40, 0.0  ;;  %v6615_v15 = vmul.f32 %v11311_v58, %v6574_v35  ;;  %v7287_v50 = vmul.f32 %v7170_v6, %v3348_v0  ;;  %v7174_v20 = vsub.f32 1.0, %v7173_v1  ;;  %vm7179_vm5 = vmor %vm7177_vm3, %vm7178_vm4  ;;  %v12146_v1 = vld [vmem:[#allocation47_spill] sm:$0xff] }
 0x64c   : > { %v7403_v26 = vpop.f32.mrf.mxu1  ;;  %v3350_v0 = vmax.f32 %v11643_v53, 0.0  ;;  %vm7192_vm7 = vweird.f32 %v11619_v61  ;;  %v7196_v30 = vand.u32 2147483647, %v11619_v61  ;;  %v7198_v31 = vand.u32 2147483648, %v11619_v61  ;;  %v12152_v40 = vld [vmem:[#allocation59_spill] sm:$0xff] }
 0x64d   : > { %7606 = vst.msk [vmem:[%s11407_s6 + $0x38] sm:$0xff] %vm715_vm2, %v7574_v29  ;;  %v6651_v57 = vadd.f32 %v11317_v44, %v6615_v15  ;;  %v7475_v28 = vmul.f32 %v11360_v17, %v7403_v26  ;;  %v7306_v12 = vpack.c.bf16 %v7287_v50, %v7286_v21  ;;  %v7175_v18 = vmul.f32 %v11617_v60, %v7174_v20  ;;  %v12147_v15 = vld [vmem:[#allocation49_spill] sm:$0xff] }
 0x64e   : > { %v3242_v29 = vadd.f32 %v12146_v1, %v3153_v2  ;;  %v3244_v55 = vadd.f32 %v12147_v15, %v3155_v41  ;;  %v7199_v6 = vor.u32 1.1754944e-38, %v7198_v31  ;;  %vm7197_vm10 = vcmp.eq.f32.partialorder %v7196_v30, 8.507059e+37  ;;  %v12153_v30 = vld [vmem:[#allocation67_spill] sm:$0xff] }
 0x64f   : > { %v8303_v7 = vpop.eup %8302  ;;  %v8034_v27 = vmul.f32 -1.442695, %v6651_v57  ;;  %v7511_v3 = vadd.f32 %v11370_v16, %v7475_v28  ;;  %8057 = vmatmul.msk.bf16.gmra.mxu1 %vm715_vm2, %v7306_v12  ;;  %v7176_v14 = vadd.f32 %v11617_v60, %v7175_v18 }
 0x650   : > { %v8305_v63 = vpop.eup %8304  ;;  %v11646_v10 = vadd.f32 1.0, %v8303_v7  ;;  %v3283_v12 = vmul.f32 %v11354_v32, %v3242_v29 }
 0x651   : > { %v7188_v47 = vmul.f32 %v8305_v63, %v11619_v61  ;;  %8306 = vpow2.f32 %v8034_v27  ;;  %v7543_v54 = vadd.f32 %v8338_v11, %v7511_v3  ;;  %vm7193_vm8 = vweird.f32 %v8305_v63 }
 0x652   : > { %8308 = vrcp.f32 %v11646_v10  ;;  %v6577_v9 = vpop.f32.mrf.mxu3  ;;  %v7180_v37 = vsel %vm7179_vm5, %v11617_v60, %v7176_v14  ;;  %vm11676_vm9 = vmor %vm7192_vm7, %vm7193_vm8  ;;  %v8339_v60 = vld [vmem:[%s8672_s25 + $0x48] sm:$0xff]  ;;  %v3319_v36 = vadd.f32 %v11375_v8, %v3283_v12  ;;  %v7213_v41 = vand.u32 2147483648, %v11646_v10 }
 0x653   : > { %v7189_v51 = vsub.f32 1.0, %v7188_v47  ;;  %v7575_v43 = vmax.f32 %v7543_v54, 0.0  ;;  %v6616_v46 = vmul.f32 %v11311_v58, %v6577_v9  ;;  %v7185_v49 = vsel %vm7182_vm6, %v7184_v38, %v7180_v37  ;;  %v12151_v38 = vld [vmem:[#allocation66_spill] sm:$0xff] }
 0x654   : > { %v7405_v59 = vpop.f32.mrf.mxu1  ;;  %v7288_v53 = vmul.f32 %v7185_v49, %v3349_v52  ;;  %vm7207_vm12 = vweird.f32 %v11646_v10 }
 0x655   : > { %7607 = vst.msk [vmem:[%s11407_s6 + $0x40] sm:$0xff] %vm715_vm2, %v7575_v43  ;;  %v6652_v62 = vadd.f32 %v11317_v44, %v6616_v46  ;;  %v7476_v22 = vmul.f32 %v11360_v17, %v7405_v59  ;;  %v7190_v33 = vmul.f32 %v8305_v63, %v7189_v51  ;;  %v7211_v43 = vand.u32 2147483647, %v11646_v10 }
 0x657   : > { %v8307_v24 = vpop.eup %8306  ;;  %v8035_v45 = vmul.f32 -1.442695, %v6652_v62  ;;  %v7512_v23 = vadd.f32 %v11370_v16, %v7476_v22  ;;  %v7191_v48 = vadd.f32 %v8305_v63, %v7190_v33  ;;  %v3351_v22 = vmax.f32 %v3319_v36, 0.0  ;;  %v12150_v33 = vld [vmem:[#allocation58_spill] sm:$0xff] }
 0x658   : > { %v11672_v5 = vpop.eup %8308  ;;  %v11674_v39 = vadd.f32 1.0, %v8307_v24  ;;  %v3158_v24 = vadd.f32 %v12151_v38, %v12150_v33  ;;  %vm7212_vm14 = vcmp.eq.f32.partialorder %v7211_v43, 8.507059e+37 }
 0x659   : > { %v7203_v35 = vmul.f32 %v11672_v5, %v11646_v10  ;;  %8310 = vpow2.f32 %v8035_v45  ;;  %v7544_v4 = vadd.f32 %v8339_v60, %v7512_v23  ;;  %v7195_v25 = vsel %vm11676_vm9, %v8305_v63, %v7191_v48 }
 0x65a   : > { %8312 = vrcp.f32 %v11674_v39  ;;  %v6579_v26 = vpop.f32.mrf.mxu3  ;;  %v7200_v50 = vsel %vm7197_vm10, %v7199_v6, %v7195_v25  ;;  %v3284_v63 = vmul.f32 %v11354_v32, %v3244_v55  ;;  %vm7208_vm11 = vweird.f32 %v11672_v5  ;;  %v8341_v25 = vld [vmem:[%s8672_s25 + $0x58] sm:$0xff] }
 0x65b   : > { %v7204_v57 = vsub.f32 1.0, %v7203_v35  ;;  %v7576_v61 = vmax.f32 %v7544_v4, 0.0  ;;  %v6617_v28 = vmul.f32 %v11311_v58, %v6579_v26  ;;  %v7289_v27 = vmul.f32 %v7200_v50, %v3350_v0  ;;  %v8340_v0 = vld [vmem:[%s8672_s25 + $0x50] sm:$0xff]  ;;  %vm11714_vm13 = vmor %vm7207_vm12, %vm7208_vm11 }
 0x65c   : > { %v7408_v21 = vpop.f32.mrf.mxu1  ;;  %v3320_v56 = vadd.f32 %v11375_v8, %v3284_v63  ;;  %v7226_v59 = vand.u32 2147483647, %v11674_v39  ;;  %v7228_v34 = vand.u32 2147483648, %v11674_v39  ;;  %v7214_v45 = vor.u32 1.1754944e-38, %v7213_v41 }
 0x65d   : > { %7608 = vst.msk [vmem:[%s11407_s6 + $0x48] sm:$0xff] %vm715_vm2, %v7576_v61  ;;  %v6653_v7 = vadd.f32 %v11317_v44, %v6617_v28  ;;  %v7477_v20 = vmul.f32 %v11360_v17, %v7408_v21  ;;  %v7205_v3 = vmul.f32 %v11672_v5, %v7204_v57  ;;  %v7307_v54 = vpack.c.bf16 %v7289_v27, %v7288_v53  ;;  %v12154_v57 = vld [vmem:[#allocation51_spill] sm:$0xff]  ;;  %v12155_v28 = vld [vmem:[#allocation53_spill] sm:$0xff] }
 0x65e   : > { %v3352_v14 = vmax.f32 %v3320_v56, 0.0  ;;  %vm7222_vm15 = vweird.f32 %v11674_v39  ;;  %v7229_v60 = vor.u32 1.1754944e-38, %v7228_v34  ;;  %vm7227_vm3 = vcmp.eq.f32.partialorder %v7226_v59, 8.507059e+37 }
 0x65f   : > { %v8311_v47 = vpop.eup %8310  ;;  %v8036_v58 = vmul.f32 -1.442695, %v6653_v7  ;;  %v7513_v11 = vadd.f32 %v11370_v16, %v7477_v20  ;;  %8058 = vmatmul.msk.bf16.gmra.mxu1 %vm715_vm2, %v7307_v54  ;;  %v7206_v2 = vadd.f32 %v11672_v5, %v7205_v3  ;;  %v3247_v61 = vadd.f32 %v12154_v57, %v3158_v24 }
 0x660   : > { %v8313_v52 = vpop.eup %8312  ;;  %v11699_v13 = vadd.f32 1.0, %v8311_v47 }
 0x661   : > { %v7218_v44 = vmul.f32 %v8313_v52, %v11674_v39  ;;  %8314 = vpow2.f32 %v8036_v58  ;;  %v7545_v42 = vadd.f32 %v8340_v0, %v7513_v11  ;;  %v7210_v62 = vsel %vm11714_vm13, %v11672_v5, %v7206_v2  ;;  %v8342_v58 = vld [vmem:[%s8672_s25 + $0x60] sm:$0xff] }
 0x662   : > { %8316 = vrcp.f32 %v11699_v13  ;;  %vm7223_vm0 = vweird.f32 %v8313_v52  ;;  %v3160_v5 = vadd.f32 %v12153_v30, %v12152_v40  ;;  %v7215_v35 = vsel %vm7212_vm14, %v7214_v45, %v7210_v62  ;;  %v8343_v62 = vld [vmem:[%s8672_s25 + $0x68] sm:$0xff] }
 0x663   : > { %v7219_v9 = vsub.f32 1.0, %v7218_v44  ;;  %v7577_v51 = vmax.f32 %v7545_v42, 0.0  ;;  %vm7224_vm1 = vmor %vm7222_vm15, %vm7223_vm0  ;;  %v7290_v26 = vmul.f32 %v7215_v35, %v3351_v22  ;;  %v3285_v12 = vmul.f32 %v11354_v32, %v3247_v61 }
 0x664   : > { %v7410_v46 = vpop.f32.mrf.mxu1  ;;  %v3249_v21 = vadd.f32 %v12155_v28, %v3160_v5  ;;  %vm7237_vm5 = vweird.f32 %v11699_v13  ;;  %v7241_v42 = vand.u32 2147483647, %v11699_v13  ;;  %v8347_v28 = vld [vmem:[%s8672_s25 + $0x88] sm:$0xff] }
 0x665   : > { %7609 = vst.msk [vmem:[%s11407_s6 + $0x50] sm:$0xff] %vm715_vm2, %v7577_v51  ;;  %v7478_v19 = vmul.f32 %v11360_v17, %v7410_v46  ;;  %v7220_v10 = vmul.f32 %v8313_v52, %v7219_v9  ;;  %v3321_v2 = vadd.f32 %v11375_v8, %v3285_v12 }
 0x666   : > { %v3286_v63 = vmul.f32 %v11354_v32, %v3249_v21  ;;  %vm7242_vm8 = vcmp.eq.f32.partialorder %v7241_v42, 8.507059e+37 }
 0x667   : > { %v8315_v23 = vpop.eup %8314  ;;  %v7514_v37 = vadd.f32 %v11370_v16, %v7478_v19  ;;  %v7221_v48 = vadd.f32 %v8313_v52, %v7220_v10 }
 0x668   : > { %v8317_v49 = vpop.eup %8316  ;;  %v6781_v31 = vadd.f32 1.0, %v8315_v23  ;;  %v3322_v32 = vadd.f32 %v11375_v8, %v3286_v63  ;;  %v3353_v8 = vmax.f32 %v3321_v2, 0.0  ;;  %v8350_v2 = vld [vmem:[%s8672_s25 + $0xa0] sm:$0xff] }
 0x669   : > { %v7233_v4 = vmul.f32 %v8317_v49, %v11699_v13  ;;  %v7546_v1 = vadd.f32 %v8341_v25, %v7514_v37  ;;  %v7225_v29 = vsel %vm7224_vm1, %v8313_v52, %v7221_v48  ;;  %vm7238_vm4 = vweird.f32 %v8317_v49 }
 0x66a   : > { %8318 = vrcp.f32 %v6781_v31  ;;  %v7230_v15 = vsel %vm7227_vm3, %v7229_v60, %v7225_v29  ;;  %v7243_v52 = vand.u32 2147483648, %v11699_v13  ;;  %vm7239_vm6 = vmor %vm7237_vm5, %vm7238_vm4  ;;  %v7256_v56 = vand.u32 2147483647, %v6781_v31  ;;  %v8345_v60 = vld [vmem:[%s8672_s25 + $0x78] sm:$0xff] }
 0x66b   : > { %v7234_v55 = vsub.f32 1.0, %v7233_v4  ;;  %v7578_v39 = vmax.f32 %v7546_v1, 0.0  ;;  %v7291_v6 = vmul.f32 %v7230_v15, %v3352_v14  ;;  %v7258_v41 = vand.u32 2147483648, %v6781_v31 }
 0x66c   : > { %v7413_v50 = vpop.f32.mrf.mxu1  ;;  %v7244_v46 = vor.u32 1.1754944e-38, %v7243_v52  ;;  %vm7252_vm9 = vweird.f32 %v6781_v31  ;;  %v3354_v19 = vmax.f32 %v3322_v32, 0.0  ;;  %vm7257_vm11 = vcmp.eq.f32.partialorder %v7256_v56, 8.507059e+37 }
 0x66d   : > { %7610 = vst.msk [vmem:[%s11407_s6 + $0x58] sm:$0xff] %vm715_vm2, %v7578_v39  ;;  %v7479_v53 = vmul.f32 %v11360_v17, %v7413_v50  ;;  %v7308_v7 = vpack.c.bf16 %v7291_v6, %v7290_v26  ;;  %v7235_v20 = vmul.f32 %v8317_v49, %v7234_v55  ;;  %v7259_v34 = vor.u32 1.1754944e-38, %v7258_v41  ;;  %v8346_v55 = vld [vmem:[%s8672_s25 + $0x80] sm:$0xff] }
 0x66e   : > { %v11795_v41 = vld [vmem:[%s12101_s21] ss:$0 sm:$0xff] }
 0x66f   : > { %v7515_v27 = vadd.f32 %v11370_v16, %v7479_v53  ;;  %8059 = vmatmul.msk.bf16.gmra.mxu1 %vm715_vm2, %v7308_v7  ;;  %v7236_v54 = vadd.f32 %v8317_v49, %v7235_v20 }
 0x670   : > { %v8319_v3 = vpop.eup %8318 }
 0x671   : > { %v7248_v47 = vmul.f32 %v8319_v3, %v6781_v31  ;;  %v7547_v11 = vadd.f32 %v8342_v58, %v7515_v27  ;;  %v7240_v51 = vsel %vm7239_vm6, %v8317_v49, %v7236_v54  ;;  %vm7253_vm7 = vweird.f32 %v8319_v3  ;;  %v8344_v49 = vld [vmem:[%s8672_s25 + $0x70] sm:$0xff] }
 0x672   : > { %v7245_v59 = vsel %vm7242_vm8, %v7244_v46, %v7240_v51  ;;  %vm7254_vm10 = vmor %vm7252_vm9, %vm7253_vm7  ;;  %v8348_v27 = vld [vmem:[%s8672_s25 + $0x90] sm:$0xff] }
 0x673   : > { %v7249_v44 = vsub.f32 1.0, %v7248_v47  ;;  %v7579_v0 = vmax.f32 %v7547_v11, 0.0  ;;  %v7292_v38 = vmul.f32 %v7245_v59, %v3353_v8  ;;  %v8349_v11 = vld [vmem:[%s8672_s25 + $0x98] sm:$0xff]  ;;  %v11806_v8 = vld [vmem:[%s12102_s0] ss:$0 sm:$0xff] }
 0x674   : > { %v7415_v36 = vpop.f32.mrf.mxu1 }
 0x675   : > { %7611 = vst.msk [vmem:[%s11407_s6 + $0x60] sm:$0xff] %vm715_vm2, %v7579_v0  ;;  %v7480_v9 = vmul.f32 %v11360_v17, %v7415_v36  ;;  %v7250_v43 = vmul.f32 %v8319_v3, %v7249_v44 }
 0x677   : > { %v7516_v18 = vadd.f32 %v11370_v16, %v7480_v9  ;;  %v7251_v13 = vadd.f32 %v8319_v3, %v7250_v43 }
 0x679   : > { %v7548_v10 = vadd.f32 %v8343_v62, %v7516_v18  ;;  %v7255_v22 = vsel %vm7254_vm10, %v8319_v3, %v7251_v13 }
 0x67a   : > { %v7260_v14 = vsel %vm7257_vm11, %v7259_v34, %v7255_v22  ;;  %v8354_v34 = vld [vmem:[%s8672_s25 + $0xb0] sm:$0xff] }
 0x67b   : > { %v7580_v33 = vmax.f32 %v7548_v10, 0.0  ;;  %v7293_v24 = vmul.f32 %v7260_v14, %v3354_v19  ;;  %v8355_v14 = vld [vmem:[%s8672_s25 + $0xb8] sm:$0xff] }
 0x67c   : > { %v7418_v45 = vpop.f32.mrf.mxu1 }
 0x67d   : > { %7612 = vst.msk [vmem:[%s11407_s6 + $0x68] sm:$0xff] %vm715_vm2, %v7580_v33  ;;  %v7481_v23 = vmul.f32 %v11360_v17, %v7418_v45  ;;  %v7309_v37 = vpack.c.bf16 %v7293_v24, %v7292_v38 }
 0x67f   : > { %v7517_v48 = vadd.f32 %v11370_v16, %v7481_v23  ;;  %8060 = vmatmul.msk.bf16.gmra.mxu1 %vm715_vm2, %v7309_v37  ;;  %v8356_v37 = vld [vmem:[%s8672_s25 + $0xc0] sm:$0xff] }
 0x681   : > { %v7549_v40 = vadd.f32 %v8344_v49, %v7517_v48 }
 0x683   : > { %v7581_v30 = vmax.f32 %v7549_v40, 0.0 }
 0x684   : > { %v7420_v5 = vpop.f32.mrf.mxu1 }
 0x685   : > { %7613 = vst.msk [vmem:[%s11407_s6 + $0x70] sm:$0xff] %vm715_vm2, %v7581_v30  ;;  %v7482_v31 = vmul.f32 %v11360_v17, %v7420_v5 }
 0x687   : > { %v7518_v35 = vadd.f32 %v11370_v16, %v7482_v31  ;;  %v8357_v31 = vld [vmem:[%s8672_s25 + $0xc8] sm:$0xff] }
 0x689   : > { %v7550_v4 = vadd.f32 %v8345_v60, %v7518_v35 }
 0x68b   : > { %v7582_v25 = vmax.f32 %v7550_v4, 0.0 }
 0x68c   : > { %v7423_v1 = vpop.f32.mrf.mxu1 }
 0x68d   : > { %7614 = vst.msk [vmem:[%s11407_s6 + $0x78] sm:$0xff] %vm715_vm2, %v7582_v25  ;;  %v7483_v29 = vmul.f32 %v11360_v17, %v7423_v1 }
 0x68f   : > { %v7519_v15 = vadd.f32 %v11370_v16, %v7483_v29  ;;  %v8358_v29 = vld [vmem:[%s8672_s25 + $0xd0] sm:$0xff] }
 0x691   : > { %v7551_v39 = vadd.f32 %v8346_v55, %v7519_v15 }
 0x693   : > { %v7583_v26 = vmax.f32 %v7551_v39, 0.0 }
 0x694   : > { %v7425_v6 = vpop.f32.mrf.mxu1 }
 0x695   : > { %7615 = vst.msk [vmem:[%s11407_s6 + $0x80] sm:$0xff] %vm715_vm2, %v7583_v26  ;;  %v7484_v57 = vmul.f32 %v11360_v17, %v7425_v6 }
 0x697   : > { %v7520_v61 = vadd.f32 %v11370_v16, %v7484_v57  ;;  %v8359_v57 = vld [vmem:[%s8672_s25 + $0xd8] sm:$0xff] }
 0x699   : > { %v7552_v21 = vadd.f32 %v8347_v28, %v7520_v61 }
 0x69b   : > { %v7584_v50 = vmax.f32 %v7552_v21, 0.0 }
 0x69c   : > { %v7428_v53 = vpop.f32.mrf.mxu1 }
 0x69d   : > { %7616 = vst.msk [vmem:[%s11407_s6 + $0x88] sm:$0xff] %vm715_vm2, %v7584_v50  ;;  %v7485_v7 = vmul.f32 %v11360_v17, %v7428_v53 }
 0x69f   : > { %v7521_v20 = vadd.f32 %v11370_v16, %v7485_v7  ;;  %v8360_v7 = vld [vmem:[%s8672_s25 + $0xe0] sm:$0xff] }
 0x6a1   : > { %v7553_v3 = vadd.f32 %v8348_v27, %v7521_v20 }
 0x6a3   : > { %v7585_v12 = vmax.f32 %v7553_v3, 0.0 }
 0x6a4   : > { %v7430_v63 = vpop.f32.mrf.mxu1 }
 0x6a5   : > { %7617 = vst.msk [vmem:[%s11407_s6 + $0x90] sm:$0xff] %vm715_vm2, %v7585_v12  ;;  %v7486_v47 = vmul.f32 %v11360_v17, %v7430_v63 }
 0x6a7   : > { %v7522_v58 = vadd.f32 %v11370_v16, %v7486_v47  ;;  %v8361_v47 = vld [vmem:[%s8672_s25 + $0xe8] sm:$0xff] }
 0x6a9   : > { %v7554_v54 = vadd.f32 %v8349_v11, %v7522_v58 }
 0x6ab   : > { %v7586_v52 = vmax.f32 %v7554_v54, 0.0 }
 0x6ac   : > { %v7433_v44 = vpop.f32.mrf.mxu1 }
 0x6ad   : > { %7618 = vst.msk [vmem:[%s11407_s6 + $0x98] sm:$0xff] %vm715_vm2, %v7586_v52  ;;  %v7487_v0 = vmul.f32 %v11360_v17, %v7433_v44  ;;  %v8352_v17 = vld [vmem:[%s8672_s25 + $0xa8] sm:$0xff] }
 0x6af   : > { %v7523_v42 = vadd.f32 %v11370_v16, %v7487_v0  ;;  %v8362_v0 = vld [vmem:[%s8672_s25 + $0xf0] sm:$0xff] }
 0x6b1   : > { %v7555_v32 = vadd.f32 %v8350_v2, %v7523_v42 }
 0x6b3   : > { %v7587_v36 = vmax.f32 %v7555_v32, 0.0 }
 0x6b4   : > { %v7435_v56 = vpop.f32.mrf.mxu1 }
 0x6b5   : > { %7619 = vst.msk [vmem:[%s11407_s6 + $0xa0] sm:$0xff] %vm715_vm2, %v7587_v36  ;;  %v7488_v9 = vmul.f32 %v11795_v41, %v7435_v56 }
 0x6b7   : > { %v7524_v51 = vadd.f32 %v11370_v16, %v7488_v9  ;;  %v8363_v9 = vld [vmem:[%s8672_s25 + $0xf8] sm:$0xff] }
 0x6b9   : > { %v7556_v43 = vadd.f32 %v8352_v17, %v7524_v51 }
 0x6bb   : > { %v7588_v46 = vmax.f32 %v7556_v43, 0.0 }
 0x6bc   : > { %v7438_v18 = vpop.f32.mrf.mxu1 }
 0x6bd   : > { %7620 = vst.msk [vmem:[%s11407_s6 + $0xa8] sm:$0xff] %vm715_vm2, %v7588_v46  ;;  %v7489_v13 = vmul.f32 %v11795_v41, %v7438_v18 }
 0x6bf   : > { %v7525_v59 = vadd.f32 %v11806_v8, %v7489_v13 }
 0x6c1   : > { %v7557_v16 = vadd.f32 %v8354_v34, %v7525_v59 }
 0x6c3   : > { %v7589_v19 = vmax.f32 %v7557_v16, 0.0 }
 0x6c4   : > { %v7440_v62 = vpop.f32.mrf.mxu1 }
 0x6c5   : > { %7621 = vst.msk [vmem:[%s11407_s6 + $0xb0] sm:$0xff] %vm715_vm2, %v7589_v19  ;;  %v7490_v10 = vmul.f32 %v11795_v41, %v7440_v62 }
 0x6c7   : > { %v7526_v22 = vadd.f32 %v11806_v8, %v7490_v10 }
 0x6c9   : > { %v7558_v33 = vadd.f32 %v8355_v14, %v7526_v22 }
 0x6cb   : > { %v7590_v38 = vmax.f32 %v7558_v33, 0.0 }
 0x6cc   : > { %v7443_v24 = vpop.f32.mrf.mxu1 }
 0x6cd   : > { %7622 = vst.msk [vmem:[%s11407_s6 + $0xb8] sm:$0xff] %vm715_vm2, %v7590_v38  ;;  %v7491_v45 = vmul.f32 %v11795_v41, %v7443_v24 }
 0x6cf   : > { %v7527_v23 = vadd.f32 %v11806_v8, %v7491_v45 }
 0x6d1   : > { %v7559_v48 = vadd.f32 %v8356_v37, %v7527_v23 }
 0x6d3   : > { %v7591_v49 = vmax.f32 %v7559_v48, 0.0 }
 0x6d4   : > { %v7445_v40 = vpop.f32.mrf.mxu1 }
 0x6d5   : > { %7623 = vst.msk [vmem:[%s11407_s6 + $0xc0] sm:$0xff] %vm715_vm2, %v7591_v49  ;;  %v7492_v30 = vmul.f32 %v11795_v41, %v7445_v40 }
 0x6d7   : > { %v7528_v5 = vadd.f32 %v11806_v8, %v7492_v30 }
 0x6d9   : > { %v7560_v35 = vadd.f32 %v8357_v31, %v7528_v5 }
 0x6db   : > { %v7592_v60 = vmax.f32 %v7560_v35, 0.0 }
 0x6dc   : > { %v7448_v4 = vpop.f32.mrf.mxu1 }
 0x6dd   : > { %7624 = vst.msk [vmem:[%s11407_s6 + $0xc8] sm:$0xff] %vm715_vm2, %v7592_v60  ;;  %v7493_v25 = vmul.f32 %v11795_v41, %v7448_v4 }
 0x6df   : > { %v7529_v1 = vadd.f32 %v11806_v8, %v7493_v25 }
 0x6e1   : > { %v7561_v15 = vadd.f32 %v8358_v29, %v7529_v1 }
 0x6e3   : > { %v7593_v55 = vmax.f32 %v7561_v15, 0.0 }
 0x6e4   : > { %v7450_v39 = vpop.f32.mrf.mxu1 }
 0x6e5   : > { %7625 = vst.msk [vmem:[%s11407_s6 + $0xd0] sm:$0xff] %vm715_vm2, %v7593_v55  ;;  %v7494_v26 = vmul.f32 %v11795_v41, %v7450_v39 }
 0x6e7   : > { %v7530_v6 = vadd.f32 %v11806_v8, %v7494_v26 }
 0x6e9   : > { %v7562_v61 = vadd.f32 %v8359_v57, %v7530_v6 }
 0x6eb   : > { %v7594_v28 = vmax.f32 %v7562_v61, 0.0 }
 0x6ec   : > { %v7453_v21 = vpop.f32.mrf.mxu1 }
 0x6ed   : > { %7626 = vst.msk [vmem:[%s11407_s6 + $0xd8] sm:$0xff] %vm715_vm2, %v7594_v28  ;;  %v7495_v50 = vmul.f32 %v11795_v41, %v7453_v21 }
 0x6ef   : > { %v7531_v53 = vadd.f32 %v11806_v8, %v7495_v50 }
 0x6f1   : > { %v7563_v20 = vadd.f32 %v8360_v7, %v7531_v53 }
 0x6f3   : > { %v7595_v27 = vmax.f32 %v7563_v20, 0.0 }
 0x6f4   : > { %v7455_v3 = vpop.f32.mrf.mxu1 }
 0x6f5   : > { %7627 = vst.msk [vmem:[%s11407_s6 + $0xe0] sm:$0xff] %vm715_vm2, %v7595_v27  ;;  %v7496_v12 = vmul.f32 %v11795_v41, %v7455_v3 }
 0x6f7   : > { %v7532_v63 = vadd.f32 %v11806_v8, %v7496_v12 }
 0x6f9   : > { %v7564_v58 = vadd.f32 %v8361_v47, %v7532_v63 }
 0x6fb   : > { %v7596_v11 = vmax.f32 %v7564_v58, 0.0 }
 0x6fc   : > { %v7458_v54 = vpop.f32.mrf.mxu1 }
 0x6fd   : > { %7628 = vst.msk [vmem:[%s11407_s6 + $0xe8] sm:$0xff] %vm715_vm2, %v7596_v11  ;;  %v7497_v52 = vmul.f32 %v11795_v41, %v7458_v54 }
 0x6ff   : > { %v7533_v44 = vadd.f32 %v11806_v8, %v7497_v52 }
 0x701   : > { %v7565_v42 = vadd.f32 %v8362_v0, %v7533_v44 }
 0x703   : > { %v7597_v2 = vmax.f32 %v7565_v42, 0.0 }
 0x704   : > { %v7460_v32 = vpop.f32.mrf.mxu1 }
 0x705   : > { %7629 = vst.msk [vmem:[%s11407_s6 + $0xf0] sm:$0xff] %vm715_vm2, %v7597_v2  ;;  %v7498_v36 = vmul.f32 %v11795_v41, %v7460_v32 }
 0x707   : > { %v7534_v56 = vadd.f32 %v11806_v8, %v7498_v36 }
 0x709   : > { %v7566_v51 = vadd.f32 %v8363_v9, %v7534_v56 }
 0x70b   : > { %v7598_v17 = vmax.f32 %v7566_v51, 0.0 }
 0x70d   : > { %7630 = vst.msk [vmem:[%s11407_s6 + $0xf8] sm:$0xff] %vm715_vm2, %v7598_v17 }
 0x70e   : > { %8421 = shalt.err (!%p8418_p4)
}
 0x70f   : > { %s8473_s27 = smov 128   ;;  %s8474_s6 = smov 8  }
 0x710   : > { %8123 = dma.vmem_to_hbm [thread:$0]  (%p8630_p11), %s7645_s2, 4096, %s7647_s5, %s7632_s29, %s8473_s27, %s8473_s27, %s8474_s6  }
 0x711 PF: > { %s12159_s9 = sld [smem:[#allocation11_spill]]  ;;  %p12161_p7 = scmp.ge.s32.totalorder %s8460_s24, 2 }
 0x713   : > { %p8130_p5 = pnand %p12161_p7, %p8634_p12 }
 0x715   : > { %p8131_p8 = pneg %p8130_p5 }
 0x717   : > { %s7661_s11 = sand.u32 1, %s12159_s9  }
 0x718   : > { %s7662_s1 = scalar_lea.sflag [#allocation7], %s7661_s11 }
 0x719   : > { %8443 = dma.done.wait (%p8131_p8), %s7662_s1, 4096  }
 0x71a   : > { %8445 = vsyncadd (%p8131_p8), %s7662_s1, 4294963200  ;;  %s12162_s24 = sld [smem:[#allocation14_spill]]  ;;  %s12165_s1 = smov %s8452_s22 }
 0x71b   : > { %s12163_s7 = sld [smem:[#allocation12_spill]] }
 0x71c   : > { %s12164_s23 = sld [smem:[#allocation15_spill]] }
 0x720   : > { %p33_p10 = scmp.ge.s32.totalorder %s12162_s24, 4  }
 0x721   : > { %s12166_s22 = smov %s12163_s7 }
 0x722   :  { %35 = sbr.rel (!%p33_p10) target bundleno = 21 (0x15), region = 151 }
 0x727   :  { %7668 = vsyncpa [#allocation6], 1 }
 0x728   :  { %7670 = vsyncpa [#allocation6 + $0x1], 1 }
 0x729   :  { %7671 = vsyncpa [#allocation7], 1 }
 0x72a   :  { %7673 = vsyncpa [#allocation7 + $0x1], 1 }

</bundles_post_ra>
